<compile_context>
chip_gen: v5e
topology: v5e:2x2
jax: 0.10.0
libtpu: 0.0.40
codegen_flags: <defaults>
</compile_context>

<pallas_src>
import functools
import math

import jax
import jax.numpy as jnp
from jax.experimental import pallas as pl
from jax.experimental.pallas import tpu as pltpu


# ----------------------------------------------------------------------------
# Small helpers
# ----------------------------------------------------------------------------
def _round_up(a, b):
    return (a + b - 1) // b * b


def _pick_tile(dim, request, granule):
    """Largest multiple of `granule` <= request that divides round_up(dim, granule)."""
    padded = _round_up(dim, granule)
    t = min(_round_up(request, granule), padded)
    while padded % t != 0:
        t -= granule
    return t


def _gelu_tanh(x):
    # GELU with tanh approximation, matching torch.nn.GELU(approximate='tanh').
    c = math.sqrt(2.0 / math.pi)
    return 0.5 * x * (1.0 + jnp.tanh(c * (x + 0.044715 * x * x * x)))


def _ln_f32(x_f32, g, b, eps=1e-5):
    mu = jnp.mean(x_f32, axis=-1, keepdims=True)
    xc = x_f32 - mu
    var = jnp.mean(xc * xc, axis=-1, keepdims=True)
    return xc * jax.lax.rsqrt(var + eps) * g + b


# ----------------------------------------------------------------------------
# Kernel 1: LayerNorm + matmul (+bias).   out = LN(x) @ W + b
# ----------------------------------------------------------------------------
def _ln_matmul_kernel(x_ref, g_ref, b_ref, w_ref, bias_ref, o_ref, xn_ref):
    j = pl.program_id(1)

    @pl.when(j == 0)
    def _():
        # Compute LN once per row tile; cache in VMEM scratch (compute dtype).
        xn_ref[...] = _ln_f32(
            x_ref[...].astype(jnp.float32), g_ref[...], b_ref[...]
        ).astype(xn_ref.dtype)

    acc = jnp.dot(xn_ref[...], w_ref[...], preferred_element_type=jnp.float32)
    o_ref[...] = (acc + bias_ref[...]).astype(o_ref.dtype)


def ln_matmul(x2d, gamma, beta, w, bias, *, out_dtype,
              compute_dtype=jnp.bfloat16, tm=256, tn=512):
    M, C = x2d.shape
    N = w.shape[1]
    tm = _pick_tile(M, tm, 8)
    tn = _pick_tile(N, tn, 128)
    Mp, Np = _round_up(M, tm), _round_up(N, tn)

    xp = jnp.pad(x2d, ((0, Mp - M), (0, 0))) if Mp != M else x2d
    wp = w.astype(compute_dtype)
    bp = bias.reshape(1, N).astype(jnp.float32)
    if Np != N:
        wp = jnp.pad(wp, ((0, 0), (0, Np - N)))
        bp = jnp.pad(bp, ((0, 0), (0, Np - N)))
    g2 = gamma.reshape(1, C).astype(jnp.float32)
    b2 = beta.reshape(1, C).astype(jnp.float32)

    out = pl.pallas_call(
        _ln_matmul_kernel,
        out_shape=jax.ShapeDtypeStruct((Mp, Np), out_dtype),
        grid_spec=pltpu.PrefetchScalarGridSpec(
            num_scalar_prefetch=0,
            grid=(Mp // tm, Np // tn),
            in_specs=[
                pl.BlockSpec((tm, C), lambda i, j: (i, 0)),   # x (resident over j)
                pl.BlockSpec((1, C), lambda i, j: (0, 0)),    # ln gamma
                pl.BlockSpec((1, C), lambda i, j: (0, 0)),    # ln beta
                pl.BlockSpec((C, tn), lambda i, j: (0, j)),   # W slice
                pl.BlockSpec((1, tn), lambda i, j: (0, j)),   # bias slice
            ],
            out_specs=pl.BlockSpec((tm, tn), lambda i, j: (i, j)),
            scratch_shapes=[pltpu.VMEM((tm, C), compute_dtype)],
        ),
        compiler_params=pltpu.CompilerParams(
            dimension_semantics=("parallel", "arbitrary")),
    )(xp, g2, b2, wp, bp)
    return out[:M, :N]


# ----------------------------------------------------------------------------
# Kernel 2: causal flash attention over (B*H, T, D)
# ----------------------------------------------------------------------------
def _flash_attn_kernel(q_ref, k_ref, v_ref, o_ref, m_sc, l_sc, acc_sc, *,
                       scale, block_q, block_k):
    qi = pl.program_id(1)
    ki = pl.program_id(2)

    @pl.when(ki == 0)
    def _():
        m_sc[...] = jnp.full(m_sc.shape, -jnp.inf, jnp.float32)
        l_sc[...] = jnp.zeros(l_sc.shape, jnp.float32)
        acc_sc[...] = jnp.zeros(acc_sc.shape, jnp.float32)

    # Skip kv blocks that lie entirely above the causal diagonal.
    @pl.when(ki * block_k <= qi * block_q + (block_q - 1))
    def _():
        s = jax.lax.dot_general(
            q_ref[...], k_ref[...], (((1,), (1,)), ((), ())),
            preferred_element_type=jnp.float32) * scale
        row = qi * block_q + jax.lax.broadcasted_iota(jnp.int32, s.shape, 0)
        col = ki * block_k + jax.lax.broadcasted_iota(jnp.int32, s.shape, 1)
        s = jnp.where(row >= col, s, -1e30)

        m_prev = m_sc[...]
        m_new = jnp.maximum(m_prev, jnp.max(s, axis=-1, keepdims=True))
        alpha = jnp.exp(m_prev - m_new)
        p = jnp.exp(s - m_new)
        l_sc[...] = alpha * l_sc[...] + jnp.sum(p, axis=-1, keepdims=True)
        acc_sc[...] = alpha * acc_sc[...] + jnp.dot(
            p.astype(v_ref.dtype), v_ref[...],
            preferred_element_type=jnp.float32)
        m_sc[...] = m_new

    @pl.when(ki == pl.num_programs(2) - 1)
    def _():
        o_ref[...] = (acc_sc[...] *
                      pl.reciprocal(l_sc[...], approx=True)).astype(o_ref.dtype)


def flash_attention_causal(q, k, v, *, out_dtype, block=128):
    BH, T, D = q.shape
    scale = 1.0 / math.sqrt(D)
    blk = _pick_tile(T, block, 8)
    Tp = _round_up(T, blk)
    if Tp != T:
        pad = ((0, 0), (0, Tp - T), (0, 0))
        q, k, v = jnp.pad(q, pad), jnp.pad(k, pad), jnp.pad(v, pad)
    nblk = Tp // blk

    kernel = functools.partial(_flash_attn_kernel, scale=scale,
                               block_q=blk, block_k=blk)
    out = pl.pallas_call(
        kernel,
        out_shape=jax.ShapeDtypeStruct((BH, Tp, D), out_dtype),
        grid_spec=pltpu.PrefetchScalarGridSpec(
            num_scalar_prefetch=0,
            grid=(BH, nblk, nblk),
            in_specs=[
                pl.BlockSpec((None, blk, D), lambda b, i, j: (b, i, 0)),  # q
                pl.BlockSpec((None, blk, D), lambda b, i, j: (b, j, 0)),  # k
                pl.BlockSpec((None, blk, D), lambda b, i, j: (b, j, 0)),  # v
            ],
            out_specs=pl.BlockSpec((None, blk, D), lambda b, i, j: (b, i, 0)),
            scratch_shapes=[pltpu.VMEM((blk, 1), jnp.float32),
                            pltpu.VMEM((blk, 1), jnp.float32),
                            pltpu.VMEM((blk, D), jnp.float32)],
        ),
        compiler_params=pltpu.CompilerParams(
            dimension_semantics=("parallel", "parallel", "arbitrary")),
    )(q, k, v)
    return out[:, :T, :]


# ----------------------------------------------------------------------------
# Kernel 3: matmul + bias + residual.   out = y @ W + b + residual
# ----------------------------------------------------------------------------
def _matmul_bias_residual_kernel(y_ref, w_ref, b_ref, r_ref, o_ref):
    acc = jnp.dot(y_ref[...], w_ref[...], preferred_element_type=jnp.float32)
    o_ref[...] = (acc + b_ref[...] +
                  r_ref[...].astype(jnp.float32)).astype(o_ref.dtype)


def matmul_bias_residual(y2d, w, bias, resid2d, *, out_dtype,
                         compute_dtype=jnp.bfloat16, tm=256, tn=512):
    M, K = y2d.shape
    N = w.shape[1]
    tm = _pick_tile(M, tm, 8)
    tn = _pick_tile(N, tn, 128)
    Mp, Np = _round_up(M, tm), _round_up(N, tn)

    yp = y2d.astype(compute_dtype)
    if Mp != M:
        yp = jnp.pad(yp, ((0, Mp - M), (0, 0)))
    rp = resid2d
    if Mp != M or Np != N:
        rp = jnp.pad(rp, ((0, Mp - M), (0, Np - N)))
    wp = w.astype(compute_dtype)
    bp = bias.reshape(1, N).astype(jnp.float32)
    if Np != N:
        wp = jnp.pad(wp, ((0, 0), (0, Np - N)))
        bp = jnp.pad(bp, ((0, 0), (0, Np - N)))

    out = pl.pallas_call(
        _matmul_bias_residual_kernel,
        out_shape=jax.ShapeDtypeStruct((Mp, Np), out_dtype),
        grid_spec=pltpu.PrefetchScalarGridSpec(
            num_scalar_prefetch=0,
            grid=(Mp // tm, Np // tn),
            in_specs=[
                pl.BlockSpec((tm, K), lambda i, j: (i, 0)),
                pl.BlockSpec((K, tn), lambda i, j: (0, j)),
                pl.BlockSpec((1, tn), lambda i, j: (0, j)),
                pl.BlockSpec((tm, tn), lambda i, j: (i, j)),
            ],
            out_specs=pl.BlockSpec((tm, tn), lambda i, j: (i, j)),
        ),
        compiler_params=pltpu.CompilerParams(
            dimension_semantics=("parallel", "parallel")),
    )(yp, wp, bp, rp)
    return out[:M, :N]


# ----------------------------------------------------------------------------
# Kernel 4: ln_2 + c_fc + GELU(tanh) + c_proj + residual (hidden dim tiled)
# ----------------------------------------------------------------------------
def _ln_mlp_kernel(x_ref, g_ref, b_ref, wfc_ref, bfc_ref, wpj_ref, bpj_ref,
                   o_ref, xn_ref, acc_ref):
    k = pl.program_id(1)

    @pl.when(k == 0)
    def _():
        xn_ref[...] = _ln_f32(
            x_ref[...].astype(jnp.float32), g_ref[...], b_ref[...]
        ).astype(xn_ref.dtype)
        acc_ref[...] = jnp.zeros(acc_ref.shape, jnp.float32) + bpj_ref[...]

    h = jnp.dot(xn_ref[...], wfc_ref[...], preferred_element_type=jnp.float32)
    h = _gelu_tanh(h + bfc_ref[...])
    acc_ref[...] += jnp.dot(h.astype(wpj_ref.dtype), wpj_ref[...],
                            preferred_element_type=jnp.float32)

    @pl.when(k == pl.num_programs(1) - 1)
    def _():
        # Residual add fused: out = x + MLP(LN(x)).
        o_ref[...] = (acc_ref[...] +
                      x_ref[...].astype(jnp.float32)).astype(o_ref.dtype)


def ln_mlp(x2d, gamma, beta, w_fc, b_fc, w_proj, b_proj, *, out_dtype,
           compute_dtype=jnp.bfloat16, tm=256, th=512):
    M, C = x2d.shape
    H = w_fc.shape[1]
    tm = _pick_tile(M, tm, 8)
    th = _pick_tile(H, th, 128)
    Mp, Hp = _round_up(M, tm), _round_up(H, th)

    xp = jnp.pad(x2d, ((0, Mp - M), (0, 0))) if Mp != M else x2d
    wfc = w_fc.astype(compute_dtype)
    wpj = w_proj.astype(compute_dtype)
    bfc = b_fc.reshape(1, H).astype(jnp.float32)
    if Hp != H:
        wfc = jnp.pad(wfc, ((0, 0), (0, Hp - H)))
        bfc = jnp.pad(bfc, ((0, 0), (0, Hp - H)))
        wpj = jnp.pad(wpj, ((0, Hp - H), (0, 0)))
    bpj = b_proj.reshape(1, C).astype(jnp.float32)
    g2 = gamma.reshape(1, C).astype(jnp.float32)
    b2 = beta.reshape(1, C).astype(jnp.float32)

    out = pl.pallas_call(
        _ln_mlp_kernel,
        out_shape=jax.ShapeDtypeStruct((Mp, C), out_dtype),
        grid_spec=pltpu.PrefetchScalarGridSpec(
            num_scalar_prefetch=0,
            grid=(Mp // tm, Hp // th),
            in_specs=[
                pl.BlockSpec((tm, C), lambda i, k: (i, 0)),   # x (resident over k)
                pl.BlockSpec((1, C), lambda i, k: (0, 0)),    # ln gamma
                pl.BlockSpec((1, C), lambda i, k: (0, 0)),    # ln beta
                pl.BlockSpec((C, th), lambda i, k: (0, k)),   # W_fc slice
                pl.BlockSpec((1, th), lambda i, k: (0, k)),   # b_fc slice
                pl.BlockSpec((th, C), lambda i, k: (k, 0)),   # W_proj slice
                pl.BlockSpec((1, C), lambda i, k: (0, 0)),    # b_proj
            ],
            out_specs=pl.BlockSpec((tm, C), lambda i, k: (i, 0)),
            scratch_shapes=[pltpu.VMEM((tm, C), compute_dtype),
                            pltpu.VMEM((tm, C), jnp.float32)],
        ),
        compiler_params=pltpu.CompilerParams(
            dimension_semantics=("parallel", "arbitrary")),
    )(xp, g2, b2, wfc, bfc, wpj, bpj)
    return out[:M]


# ----------------------------------------------------------------------------
# Full GPT-2 forward (kernels glued by cheap JAX reshapes/transposes)
# ----------------------------------------------------------------------------
def gpt2_forward(params, idx, *, n_heads, compute_dtype=jnp.bfloat16,
                 attn_block=128):
    wte, wpe = params["wte"], params["wpe"]
    B, T = idx.shape
    V, C = wte.shape
    hd = C // n_heads
    assert T <= wpe.shape[0]

    # TODO(synk): embedding gather left to XLA (data-dependent row lookup).
    x = (wte[idx] + wpe[:T][None, :, :]).astype(jnp.float32)
    x2 = x.reshape(B * T, C)

    for blk in params["blocks"]:
        # ln_1 + c_attn (QKV projection), fused.
        qkv = ln_matmul(x2, blk["ln1_g"], blk["ln1_b"], blk["attn_w"],
                        blk["attn_b"], out_dtype=compute_dtype,
                        compute_dtype=compute_dtype)
        qkv = qkv.reshape(B, T, 3 * C)
        q, k, v = jnp.split(qkv, 3, axis=-1)

        def to_heads(t):
            return (t.reshape(B, T, n_heads, hd)
                     .transpose(0, 2, 1, 3)
                     .reshape(B * n_heads, T, hd))

        attn = flash_attention_causal(to_heads(q), to_heads(k), to_heads(v),
                                      out_dtype=compute_dtype,
                                      block=attn_block)
        attn = (attn.reshape(B, n_heads, T, hd)
                    .transpose(0, 2, 1, 3)
                    .reshape(B * T, C))

        # attention c_proj with fused residual add.
        x2 = matmul_bias_residual(attn, blk["attn_proj_w"], blk["attn_proj_b"],
                                  x2, out_dtype=jnp.float32,
                                  compute_dtype=compute_dtype)

        # ln_2 + MLP + residual, fused.
        x2 = ln_mlp(x2, blk["ln2_g"], blk["ln2_b"], blk["fc_w"], blk["fc_b"],
                    blk["mlp_proj_w"], blk["mlp_proj_b"],
                    out_dtype=jnp.float32, compute_dtype=compute_dtype)

    # ln_f + tied lm_head (no bias), fused.
    logits = ln_matmul(x2, params["lnf_g"], params["lnf_b"], wte.T,
                       jnp.zeros((V,), jnp.float32),
                       out_dtype=jnp.float32, compute_dtype=compute_dtype)
    return logits.reshape(B, T, V)


# ----------------------------------------------------------------------------
# Pure-JAX reference with matching numerics (bf16 MXU inputs, f32 accum)
# ----------------------------------------------------------------------------
def reference_gpt2(params, idx, *, n_heads, compute_dtype=jnp.bfloat16):
    wte, wpe = params["wte"], params["wpe"]
    B, T = idx.shape
    V, C = wte.shape
    hd = C // n_heads
    cd = compute_dtype

    def ln(x, g, b):
        mu = x.mean(-1, keepdims=True)
        xc = x - mu
        var = (xc * xc).mean(-1, keepdims=True)
        return xc * jax.lax.rsqrt(var + 1e-5) * g + b

    def linear(x, w, b=None):
        y = jnp.dot(x.astype(cd), w.astype(cd),
                    preferred_element_type=jnp.float32)
        return y if b is None else y + b

    x = (wte[idx] + wpe[:T][None, :, :]).astype(jnp.float32)
    for blk in params["blocks"]:
        h = ln(x, blk["ln1_g"], blk["ln1_b"])
        qkv = linear(h, blk["attn_w"], blk["attn_b"]).astype(cd)
        q, k, v = jnp.split(qkv, 3, axis=-1)
        q = q.reshape(B, T, n_heads, hd).transpose(0, 2, 1, 3)
        k = k.reshape(B, T, n_heads, hd).transpose(0, 2, 1, 3)
        v = v.reshape(B, T, n_heads, hd).transpose(0, 2, 1, 3)
        s = jnp.einsum("bhqd,bhkd->bhqk", q, k,
                       preferred_element_type=jnp.float32) / math.sqrt(hd)
        mask = jnp.tril(jnp.ones((T, T), bool))
        s = jnp.where(mask[None, None], s, -1e30)
        p = jax.nn.softmax(s, axis=-1)
        o = jnp.einsum("bhqk,bhkd->bhqd", p.astype(cd), v,
                       preferred_element_type=jnp.float32)
        o = o.transpose(0, 2, 1, 3).reshape(B, T, C).astype(cd)
        x = x + linear(o, blk["attn_proj_w"], blk["attn_proj_b"])
        h = ln(x, blk["ln2_g"], blk["ln2_b"])
        hh = _gelu_tanh(linear(h, blk["fc_w"], blk["fc_b"]))
        x = x + linear(hh.astype(cd), blk["mlp_proj_w"], blk["mlp_proj_b"])
    x = ln(x, params["lnf_g"], params["lnf_b"])
    return linear(x, wte.T)


# ----------------------------------------------------------------------------
# Parameter construction (weights stored transposed as (in, out))
# ----------------------------------------------------------------------------
def init_params(key, *, vocab_size, n_embed, max_seq_length, n_layer):
    C, H = n_embed, 4 * n_embed
    std = 0.02
    proj_std = std * (2 * n_layer) ** -0.5
    keys = jax.random.split(key, 4 + n_layer)
    params = {
        "wte": jax.random.normal(keys[0], (vocab_size, C), jnp.float32) * std,
        "wpe": jax.random.normal(keys[1], (max_seq_length, C), jnp.float32) * std,
        "lnf_g": 1.0 + 0.1 * jax.random.normal(keys[2], (C,), jnp.float32),
        "lnf_b": 0.1 * jax.random.normal(keys[3], (C,), jnp.float32),
        "blocks": [],
    }
    for l in range(n_layer):
        ks = jax.random.split(keys[4 + l], 12)
        params["blocks"].append({
            "ln1_g": 1.0 + 0.1 * jax.random.normal(ks[0], (C,), jnp.float32),
            "ln1_b": 0.1 * jax.random.normal(ks[1], (C,), jnp.float32),
            "attn_w": jax.random.normal(ks[2], (C, 3 * C), jnp.float32) * std,
            "attn_b": 0.02 * jax.random.normal(ks[3], (3 * C,), jnp.float32),
            "attn_proj_w": jax.random.normal(ks[4], (C, C), jnp.float32) * std,
            "attn_proj_b": 0.02 * jax.random.normal(ks[5], (C,), jnp.float32),
            "ln2_g": 1.0 + 0.1 * jax.random.normal(ks[6], (C,), jnp.float32),
            "ln2_b": 0.1 * jax.random.normal(ks[7], (C,), jnp.float32),
            "fc_w": jax.random.normal(ks[8], (C, H), jnp.float32) * std,
            "fc_b": 0.02 * jax.random.normal(ks[9], (H,), jnp.float32),
            "mlp_proj_w": jax.random.normal(ks[10], (H, C), jnp.float32) * proj_std,
            "mlp_proj_b": 0.02 * jax.random.normal(ks[11], (C,), jnp.float32),
        })
    return params


if __name__ == "__main__":
    # Small GPT-2-shaped config: exercises N-tiling of QKV / vocab padding,
    # the H-reduction accumulator in the MLP kernel, and multi-block causal
    # flash attention (2x2 kv blocks with one skipped above the diagonal).
    vocab_size, n_embed, n_heads, n_layer, max_seq = 1000, 256, 4, 2, 128
    B, T = 2, 64

    key = jax.random.PRNGKey(0)
    kp, ki = jax.random.split(key)
    params = init_params(kp, vocab_size=vocab_size, n_embed=n_embed,
                         max_seq_length=max_seq, n_layer=n_layer)
    idx = jax.random.randint(ki, (B, T), 0, vocab_size, dtype=jnp.int32)

    fwd = jax.jit(functools.partial(gpt2_forward, n_heads=n_heads,
                                    attn_block=32))
    logits = jax.block_until_ready(fwd(params, idx))

    ref = reference_gpt2(params, idx, n_heads=n_heads)
    assert logits.shape == (B, T, vocab_size)
    assert logits.dtype == jnp.float32
    max_err = float(jnp.max(jnp.abs(logits - ref)))
    assert jnp.allclose(logits, ref, atol=2e-2, rtol=2e-2), \
        f"mismatch vs reference, max abs err = {max_err}"

    print("KERNEL_OK")
</pallas_src>

<mosaic_0001>
module attributes {stable_mosaic.version = 11 : i64} {
  func.func @_ln_matmul_kernel(%arg0: i32, %arg1: i32, %arg2: memref<128x256xf32, #tpu.memory_space<vmem>>, %arg3: memref<1x256xf32, #tpu.memory_space<vmem>>, %arg4: memref<1x256xf32, #tpu.memory_space<vmem>>, %arg5: memref<256x384xbf16, #tpu.memory_space<vmem>>, %arg6: memref<1x384xf32, #tpu.memory_space<vmem>>, %arg7: memref<128x384xbf16, #tpu.memory_space<vmem>>, %arg8: memref<128x256xbf16, #tpu.memory_space<vmem>>) attributes {dimension_semantics = [#tpu.dimension_semantics<parallel>, #tpu.dimension_semantics<arbitrary>], iteration_bounds = array<i64: 1, 2>, scalar_prefetch = 0 : i64, scratch_operands = 1 : i64, tpu.core_type = #tpu.core_type<tc>, window_params = [{transform_indices = @transform_0, window_bounds = array<i64: 128, 256>}, {pipeline_mode = #tpu.pipeline_mode<synchronous>, transform_indices = @transform_1, window_bounds = array<i64: 1, 256>}, {pipeline_mode = #tpu.pipeline_mode<synchronous>, transform_indices = @transform_2, window_bounds = array<i64: 1, 256>}, {transform_indices = @transform_3, window_bounds = array<i64: 256, 384>}, {transform_indices = @transform_4, window_bounds = array<i64: 1, 384>}, {transform_indices = @transform_5, window_bounds = array<i64: 128, 384>}]} {
    %c0_i32 = arith.constant 0 : i32
    %0 = arith.cmpi eq, %arg1, %c0_i32 : i32
    %1 = arith.extui %0 : i1 to i32
    %c0_i32_0 = arith.constant 0 : i32
    %2 = arith.cmpi ne, %1, %c0_i32_0 : i32
    scf.if %2 {
      %c0_8 = arith.constant 0 : index
      %c0_9 = arith.constant 0 : index
      %11 = vector.load %arg2[%c0_8, %c0_9] : memref<128x256xf32, #tpu.memory_space<vmem>>, vector<128x256xf32>
      %c0_10 = arith.constant 0 : index
      %c0_11 = arith.constant 0 : index
      %12 = vector.load %arg3[%c0_10, %c0_11] : memref<1x256xf32, #tpu.memory_space<vmem>>, vector<1x256xf32>
      %c0_12 = arith.constant 0 : index
      %c0_13 = arith.constant 0 : index
      %13 = vector.load %arg4[%c0_12, %c0_13] : memref<1x256xf32, #tpu.memory_space<vmem>>, vector<1x256xf32>
      %cst_14 = arith.constant dense<0.000000e+00> : vector<128xf32>
      %14 = vector.multi_reduction <add>, %11, %cst_14 [1] : vector<128x256xf32> to vector<128xf32>
      %15 = vector.shape_cast %14 : vector<128xf32> to vector<128x1xf32>
      %cst_15 = arith.constant 2.560000e+02 : f32
      %16 = vector.broadcast %cst_15 : f32 to vector<128x1xf32>
      %17 = arith.divf %15, %16 : vector<128x1xf32>
      %18 = vector.broadcast %17 : vector<128x1xf32> to vector<128x256xf32>
      %19 = arith.subf %11, %18 : vector<128x256xf32>
      %20 = arith.mulf %19, %19 : vector<128x256xf32>
      %cst_16 = arith.constant dense<0.000000e+00> : vector<128xf32>
      %21 = vector.multi_reduction <add>, %20, %cst_16 [1] : vector<128x256xf32> to vector<128xf32>
      %22 = vector.shape_cast %21 : vector<128xf32> to vector<128x1xf32>
      %cst_17 = arith.constant 2.560000e+02 : f32
      %23 = vector.broadcast %cst_17 : f32 to vector<128x1xf32>
      %24 = arith.divf %22, %23 : vector<128x1xf32>
      %cst_18 = arith.constant 9.99999974E-6 : f32
      %25 = vector.broadcast %cst_18 : f32 to vector<128x1xf32>
      %26 = arith.addf %24, %25 : vector<128x1xf32>
      %27 = math.rsqrt %26 : vector<128x1xf32>
      %28 = vector.broadcast %27 : vector<128x1xf32> to vector<128x256xf32>
      %29 = arith.mulf %19, %28 : vector<128x256xf32>
      %30 = vector.broadcast %12 : vector<1x256xf32> to vector<128x256xf32>
      %31 = arith.mulf %29, %30 : vector<128x256xf32>
      %32 = vector.broadcast %13 : vector<1x256xf32> to vector<128x256xf32>
      %33 = arith.addf %31, %32 : vector<128x256xf32>
      %34 = arith.truncf %33 : vector<128x256xf32> to vector<128x256xbf16>
      %c0_19 = arith.constant 0 : index
      %c0_20 = arith.constant 0 : index
      %35 = vector.load %arg8[%c0_19, %c0_20] : memref<128x256xbf16, #tpu.memory_space<vmem>>, vector<128x256xbf16>
      tpu.vector_store %arg8[%c0_19, %c0_20], %34 {strides = array<i32>} : memref<128x256xbf16, #tpu.memory_space<vmem>>, vector<128x256xbf16>,
    } else {
    }
    %c0 = arith.constant 0 : index
    %c0_1 = arith.constant 0 : index
    %3 = vector.load %arg8[%c0, %c0_1] : memref<128x256xbf16, #tpu.memory_space<vmem>>, vector<128x256xbf16>
    %c0_2 = arith.constant 0 : index
    %c0_3 = arith.constant 0 : index
    %4 = vector.load %arg5[%c0_2, %c0_3] : memref<256x384xbf16, #tpu.memory_space<vmem>>, vector<256x384xbf16>
    %cst = arith.constant dense<0.000000e+00> : vector<128x384xf32>
    %5 = tpu.matmul %3, %4, %cst {dimension_numbers = #tpu.dot_dimension_numbers<[1], [0], [0], [1], [0, 0, 1, 1], [], []>} : vector<128x256xbf16>, vector<256x384xbf16>, vector<128x384xf32> -> vector<128x384xf32>
    %c0_4 = arith.constant 0 : index
    %c0_5 = arith.constant 0 : index
    %6 = vector.load %arg6[%c0_4, %c0_5] : memref<1x384xf32, #tpu.memory_space<vmem>>, vector<1x384xf32>
    %7 = vector.broadcast %6 : vector<1x384xf32> to vector<128x384xf32>
    %8 = arith.addf %5, %7 : vector<128x384xf32>
    %9 = arith.truncf %8 : vector<128x384xf32> to vector<128x384xbf16>
    %c0_6 = arith.constant 0 : index
    %c0_7 = arith.constant 0 : index
    %10 = vector.load %arg7[%c0_6, %c0_7] : memref<128x384xbf16, #tpu.memory_space<vmem>>, vector<128x384xbf16>
    tpu.vector_store %arg7[%c0_6, %c0_7], %9 {strides = array<i32>} : memref<128x384xbf16, #tpu.memory_space<vmem>>, vector<128x384xbf16>,
    return
  }
  func.func @transform_0(%arg0: i32, %arg1: i32) -> (i32, i32) {
    %c0_i32 = arith.constant 0 : i32
    %c0_i32_0 = arith.constant 0 : i32
    return %arg0, %c0_i32 : i32, i32
  }
  func.func @transform_1(%arg0: i32, %arg1: i32) -> (i32, i32) {
    %c0_i32 = arith.constant 0 : i32
    %c0_i32_0 = arith.constant 0 : i32
    %c0_i32_1 = arith.constant 0 : i32
    return %c0_i32, %c0_i32_0 : i32, i32
  }
  func.func @transform_2(%arg0: i32, %arg1: i32) -> (i32, i32) {
    %c0_i32 = arith.constant 0 : i32
    %c0_i32_0 = arith.constant 0 : i32
    %c0_i32_1 = arith.constant 0 : i32
    return %c0_i32, %c0_i32_0 : i32, i32
  }
  func.func @transform_3(%arg0: i32, %arg1: i32) -> (i32, i32) {
    %c0_i32 = arith.constant 0 : i32
    %c0_i32_0 = arith.constant 0 : i32
    return %c0_i32, %arg1 : i32, i32
  }
  func.func @transform_4(%arg0: i32, %arg1: i32) -> (i32, i32) {
    %c0_i32 = arith.constant 0 : i32
    %c0_i32_0 = arith.constant 0 : i32
    return %c0_i32, %arg1 : i32, i32
  }
  func.func @transform_5(%arg0: i32, %arg1: i32) -> (i32, i32) {
    %c0_i32 = arith.constant 0 : i32
    return %arg0, %arg1 : i32, i32
  }
}

module attributes {stable_mosaic.version = 11 : i64} {
  func.func @_flash_attn_kernel(%arg0: i32, %arg1: i32, %arg2: i32, %arg3: memref<1x32x64xbf16, #tpu.memory_space<vmem>>, %arg4: memref<1x32x64xbf16, #tpu.memory_space<vmem>>, %arg5: memref<1x32x64xbf16, #tpu.memory_space<vmem>>, %arg6: memref<1x32x64xbf16, #tpu.memory_space<vmem>>, %arg7: memref<32x1xf32, #tpu.memory_space<vmem>>, %arg8: memref<32x1xf32, #tpu.memory_space<vmem>>, %arg9: memref<32x64xf32, #tpu.memory_space<vmem>>) attributes {dimension_semantics = [#tpu.dimension_semantics<parallel>, #tpu.dimension_semantics<parallel>, #tpu.dimension_semantics<arbitrary>], iteration_bounds = array<i64: 8, 2, 2>, scalar_prefetch = 0 : i64, scratch_operands = 3 : i64, tpu.core_type = #tpu.core_type<tc>, window_params = [{transform_indices = @transform_0, window_bounds = array<i64: 1, 32, 64>}, {transform_indices = @transform_1, window_bounds = array<i64: 1, 32, 64>}, {transform_indices = @transform_2, window_bounds = array<i64: 1, 32, 64>}, {transform_indices = @transform_3, window_bounds = array<i64: 1, 32, 64>}]} {
    %c0_i32 = arith.constant 0 : i32
    %0 = arith.cmpi eq, %arg2, %c0_i32 : i32
    %1 = arith.extui %0 : i1 to i32
    %c0_i32_0 = arith.constant 0 : i32
    %2 = arith.cmpi ne, %1, %c0_i32_0 : i32
    scf.if %2 {
      %cst = arith.constant 0xFF800000 : f32
      %12 = vector.broadcast %cst : f32 to vector<32x1xf32>
      %c0 = arith.constant 0 : index
      %c0_4 = arith.constant 0 : index
      %13 = vector.load %arg7[%c0, %c0_4] : memref<32x1xf32, #tpu.memory_space<vmem>>, vector<32x1xf32>
      tpu.vector_store %arg7[%c0, %c0_4], %12 {strides = array<i32>} : memref<32x1xf32, #tpu.memory_space<vmem>>, vector<32x1xf32>,
      %cst_5 = arith.constant 0.000000e+00 : f32
      %14 = vector.broadcast %cst_5 : f32 to vector<32x1xf32>
      %c0_6 = arith.constant 0 : index
      %c0_7 = arith.constant 0 : index
      %15 = vector.load %arg8[%c0_6, %c0_7] : memref<32x1xf32, #tpu.memory_space<vmem>>, vector<32x1xf32>
      tpu.vector_store %arg8[%c0_6, %c0_7], %14 {strides = array<i32>} : memref<32x1xf32, #tpu.memory_space<vmem>>, vector<32x1xf32>,
      %cst_8 = arith.constant 0.000000e+00 : f32
      %16 = vector.broadcast %cst_8 : f32 to vector<32x64xf32>
      %c0_9 = arith.constant 0 : index
      %c0_10 = arith.constant 0 : index
      %17 = vector.load %arg9[%c0_9, %c0_10] : memref<32x64xf32, #tpu.memory_space<vmem>>, vector<32x64xf32>
      tpu.vector_store %arg9[%c0_9, %c0_10], %16 {strides = array<i32>} : memref<32x64xf32, #tpu.memory_space<vmem>>, vector<32x64xf32>,
    } else {
    }
    %c32_i32 = arith.constant 32 : i32
    %3 = arith.muli %arg2, %c32_i32 : i32
    %c32_i32_1 = arith.constant 32 : i32
    %4 = arith.muli %arg1, %c32_i32_1 : i32
    %c31_i32 = arith.constant 31 : i32
    %5 = arith.addi %4, %c31_i32 : i32
    %6 = arith.cmpi sle, %3, %5 : i32
    %7 = arith.extui %6 : i1 to i32
    %c0_i32_2 = arith.constant 0 : i32
    %8 = arith.cmpi ne, %7, %c0_i32_2 : i32
    scf.if %8 {
      %c0 = arith.constant 0 : index
      %c0_4 = arith.constant 0 : index
      %c0_5 = arith.constant 0 : index
      %12 = vector.load %arg3[%c0, %c0_4, %c0_5] : memref<1x32x64xbf16, #tpu.memory_space<vmem>>, vector<1x32x64xbf16>
      %13 = vector.shape_cast %12 : vector<1x32x64xbf16> to vector<32x64xbf16>
      %c0_6 = arith.constant 0 : index
      %c0_7 = arith.constant 0 : index
      %c0_8 = arith.constant 0 : index
      %14 = vector.load %arg4[%c0_6, %c0_7, %c0_8] : memref<1x32x64xbf16, #tpu.memory_space<vmem>>, vector<1x32x64xbf16>
      %15 = vector.shape_cast %14 : vector<1x32x64xbf16> to vector<32x64xbf16>
      %cst = arith.constant dense<0.000000e+00> : vector<32x32xf32>
      %16 = tpu.matmul %13, %15, %cst {dimension_numbers = #tpu.dot_dimension_numbers<[1], [1], [0], [0], [0, 0, 1, 0], [], []>} : vector<32x64xbf16>, vector<32x64xbf16>, vector<32x32xf32> -> vector<32x32xf32>
      %cst_9 = arith.constant 1.250000e-01 : f32
      %17 = vector.broadcast %cst_9 : f32 to vector<32x32xf32>
      %18 = arith.mulf %16, %17 : vector<32x32xf32>
      %c32_i32_10 = arith.constant 32 : i32
      %19 = arith.muli %arg1, %c32_i32_10 : i32
      %20 = tpu.iota {dimensions = array<i32: 0>} : vector<32x32xi32>
      %21 = vector.broadcast %19 : i32 to vector<32x32xi32>
      %22 = arith.addi %21, %20 : vector<32x32xi32>
      %c32_i32_11 = arith.constant 32 : i32
      %23 = arith.muli %arg2, %c32_i32_11 : i32
      %24 = tpu.iota {dimensions = array<i32: 1>} : vector<32x32xi32>
      %25 = vector.broadcast %23 : i32 to vector<32x32xi32>
      %26 = arith.addi %25, %24 : vector<32x32xi32>
      %27 = arith.cmpi sge, %22, %26 : vector<32x32xi32>
      %cst_12 = arith.constant -1.000000e+30 : f32
      %28 = vector.broadcast %cst_12 : f32 to vector<32x32xf32>
      %29 = arith.select %27, %18, %28 : vector<32x32xi1>, vector<32x32xf32>
      %c0_13 = arith.constant 0 : index
      %c0_14 = arith.constant 0 : index
      %30 = vector.load %arg7[%c0_13, %c0_14] : memref<32x1xf32, #tpu.memory_space<vmem>>, vector<32x1xf32>
      %cst_15 = arith.constant dense<0xFF800000> : vector<32xf32>
      %31 = vector.multi_reduction <maximumf>, %29, %cst_15 [1] : vector<32x32xf32> to vector<32xf32>
      %32 = vector.shape_cast %31 : vector<32xf32> to vector<32x1xf32>
      %33 = arith.maximumf %30, %32 : vector<32x1xf32>
      %34 = arith.subf %30, %33 : vector<32x1xf32>
      %35 = math.exp %34 : vector<32x1xf32>
      %36 = vector.broadcast %33 : vector<32x1xf32> to vector<32x32xf32>
      %37 = arith.subf %29, %36 : vector<32x32xf32>
      %38 = math.exp %37 : vector<32x32xf32>
      %c0_16 = arith.constant 0 : index
      %c0_17 = arith.constant 0 : index
      %39 = vector.load %arg8[%c0_16, %c0_17] : memref<32x1xf32, #tpu.memory_space<vmem>>, vector<32x1xf32>
      %40 = arith.mulf %35, %39 : vector<32x1xf32>
      %cst_18 = arith.constant dense<0.000000e+00> : vector<32xf32>
      %41 = vector.multi_reduction <add>, %38, %cst_18 [1] : vector<32x32xf32> to vector<32xf32>
      %42 = vector.shape_cast %41 : vector<32xf32> to vector<32x1xf32>
      %43 = arith.addf %40, %42 : vector<32x1xf32>
      %c0_19 = arith.constant 0 : index
      %c0_20 = arith.constant 0 : index
      %44 = vector.load %arg8[%c0_19, %c0_20] : memref<32x1xf32, #tpu.memory_space<vmem>>, vector<32x1xf32>
      tpu.vector_store %arg8[%c0_19, %c0_20], %43 {strides = array<i32>} : memref<32x1xf32, #tpu.memory_space<vmem>>, vector<32x1xf32>,
      %c0_21 = arith.constant 0 : index
      %c0_22 = arith.constant 0 : index
      %45 = vector.load %arg9[%c0_21, %c0_22] : memref<32x64xf32, #tpu.memory_space<vmem>>, vector<32x64xf32>
      %46 = vector.broadcast %35 : vector<32x1xf32> to vector<32x64xf32>
      %47 = arith.mulf %46, %45 : vector<32x64xf32>
      %48 = arith.truncf %38 : vector<32x32xf32> to vector<32x32xbf16>
      %c0_23 = arith.constant 0 : index
      %c0_24 = arith.constant 0 : index
      %c0_25 = arith.constant 0 : index
      %49 = vector.load %arg5[%c0_23, %c0_24, %c0_25] : memref<1x32x64xbf16, #tpu.memory_space<vmem>>, vector<1x32x64xbf16>
      %50 = vector.shape_cast %49 : vector<1x32x64xbf16> to vector<32x64xbf16>
      %cst_26 = arith.constant dense<0.000000e+00> : vector<32x64xf32>
      %51 = tpu.matmul %48, %50, %cst_26 {dimension_numbers = #tpu.dot_dimension_numbers<[1], [0], [0], [1], [0, 0, 1, 1], [], []>} : vector<32x32xbf16>, vector<32x64xbf16>, vector<32x64xf32> -> vector<32x64xf32>
      %52 = arith.addf %47, %51 : vector<32x64xf32>
      %c0_27 = arith.constant 0 : index
      %c0_28 = arith.constant 0 : index
      %53 = vector.load %arg9[%c0_27, %c0_28] : memref<32x64xf32, #tpu.memory_space<vmem>>, vector<32x64xf32>
      tpu.vector_store %arg9[%c0_27, %c0_28], %52 {strides = array<i32>} : memref<32x64xf32, #tpu.memory_space<vmem>>, vector<32x64xf32>,
      %c0_29 = arith.constant 0 : index
      %c0_30 = arith.constant 0 : index
      %54 = vector.load %arg7[%c0_29, %c0_30] : memref<32x1xf32, #tpu.memory_space<vmem>>, vector<32x1xf32>
      tpu.vector_store %arg7[%c0_29, %c0_30], %33 {strides = array<i32>} : memref<32x1xf32, #tpu.memory_space<vmem>>, vector<32x1xf32>,
    } else {
    }
    %c1_i32 = arith.constant 1 : i32
    %9 = arith.cmpi eq, %arg2, %c1_i32 : i32
    %10 = arith.extui %9 : i1 to i32
    %c0_i32_3 = arith.constant 0 : i32
    %11 = arith.cmpi ne, %10, %c0_i32_3 : i32
    scf.if %11 {
      %c0 = arith.constant 0 : index
      %c0_4 = arith.constant 0 : index
      %12 = vector.load %arg9[%c0, %c0_4] : memref<32x64xf32, #tpu.memory_space<vmem>>, vector<32x64xf32>
      %c0_5 = arith.constant 0 : index
      %c0_6 = arith.constant 0 : index
      %13 = vector.load %arg8[%c0_5, %c0_6] : memref<32x1xf32, #tpu.memory_space<vmem>>, vector<32x1xf32>
      %14 = tpu.reciprocal %13 {approx = true} : vector<32x1xf32> -> vector<32x1xf32>
      %15 = vector.broadcast %14 : vector<32x1xf32> to vector<32x64xf32>
      %16 = arith.mulf %12, %15 : vector<32x64xf32>
      %17 = arith.truncf %16 : vector<32x64xf32> to vector<32x64xbf16>
      %c0_7 = arith.constant 0 : index
      %c0_8 = arith.constant 0 : index
      %c0_9 = arith.constant 0 : index
      %18 = vector.load %arg6[%c0_7, %c0_8, %c0_9] : memref<1x32x64xbf16, #tpu.memory_space<vmem>>, vector<1x32x64xbf16>
      %19 = vector.shape_cast %18 : vector<1x32x64xbf16> to vector<32x64xbf16>
      %20 = vector.shape_cast %17 : vector<32x64xbf16> to vector<1x32x64xbf16>
      tpu.vector_store %arg6[%c0_7, %c0_8, %c0_9], %20 {strides = array<i32>} : memref<1x32x64xbf16, #tpu.memory_space<vmem>>, vector<1x32x64xbf16>,
    } else {
    }
    return
  }
  func.func @transform_0(%arg0: i32, %arg1: i32, %arg2: i32) -> (i32, i32, i32) {
    %c0_i32 = arith.constant 0 : i32
    %c0_i32_0 = arith.constant 0 : i32
    return %arg0, %arg1, %c0_i32 : i32, i32, i32
  }
  func.func @transform_1(%arg0: i32, %arg1: i32, %arg2: i32) -> (i32, i32, i32) {
    %c0_i32 = arith.constant 0 : i32
    %c0_i32_0 = arith.constant 0 : i32
    return %arg0, %arg2, %c0_i32 : i32, i32, i32
  }
  func.func @transform_2(%arg0: i32, %arg1: i32, %arg2: i32) -> (i32, i32, i32) {
    %c0_i32 = arith.constant 0 : i32
    %c0_i32_0 = arith.constant 0 : i32
    return %arg0, %arg2, %c0_i32 : i32, i32, i32
  }
  func.func @transform_3(%arg0: i32, %arg1: i32, %arg2: i32) -> (i32, i32, i32) {
    %c0_i32 = arith.constant 0 : i32
    %c0_i32_0 = arith.constant 0 : i32
    return %arg0, %arg1, %c0_i32 : i32, i32, i32
  }
}

module attributes {stable_mosaic.version = 11 : i64} {
  func.func @_matmul_bias_residual_kernel(%arg0: i32, %arg1: i32, %arg2: memref<128x256xbf16, #tpu.memory_space<vmem>>, %arg3: memref<256x256xbf16, #tpu.memory_space<vmem>>, %arg4: memref<1x256xf32, #tpu.memory_space<vmem>>, %arg5: memref<128x256xf32, #tpu.memory_space<vmem>>, %arg6: memref<128x256xf32, #tpu.memory_space<vmem>>) attributes {dimension_semantics = [#tpu.dimension_semantics<parallel>, #tpu.dimension_semantics<parallel>], iteration_bounds = array<i64: 1, 1>, scalar_prefetch = 0 : i64, scratch_operands = 0 : i64, tpu.core_type = #tpu.core_type<tc>, window_params = [{transform_indices = @transform_0, window_bounds = array<i64: 128, 256>}, {transform_indices = @transform_1, window_bounds = array<i64: 256, 256>}, {transform_indices = @transform_2, window_bounds = array<i64: 1, 256>}, {transform_indices = @transform_3, window_bounds = array<i64: 128, 256>}, {transform_indices = @transform_4, window_bounds = array<i64: 128, 256>}]} {
    %c0 = arith.constant 0 : index
    %c0_0 = arith.constant 0 : index
    %0 = vector.load %arg2[%c0, %c0_0] : memref<128x256xbf16, #tpu.memory_space<vmem>>, vector<128x256xbf16>
    %c0_1 = arith.constant 0 : index
    %c0_2 = arith.constant 0 : index
    %1 = vector.load %arg3[%c0_1, %c0_2] : memref<256x256xbf16, #tpu.memory_space<vmem>>, vector<256x256xbf16>
    %cst = arith.constant dense<0.000000e+00> : vector<128x256xf32>
    %2 = tpu.matmul %0, %1, %cst {dimension_numbers = #tpu.dot_dimension_numbers<[1], [0], [0], [1], [0, 0, 1, 1], [], []>} : vector<128x256xbf16>, vector<256x256xbf16>, vector<128x256xf32> -> vector<128x256xf32>
    %c0_3 = arith.constant 0 : index
    %c0_4 = arith.constant 0 : index
    %3 = vector.load %arg4[%c0_3, %c0_4] : memref<1x256xf32, #tpu.memory_space<vmem>>, vector<1x256xf32>
    %4 = vector.broadcast %3 : vector<1x256xf32> to vector<128x256xf32>
    %5 = arith.addf %2, %4 : vector<128x256xf32>
    %c0_5 = arith.constant 0 : index
    %c0_6 = arith.constant 0 : index
    %6 = vector.load %arg5[%c0_5, %c0_6] : memref<128x256xf32, #tpu.memory_space<vmem>>, vector<128x256xf32>
    %7 = arith.addf %5, %6 : vector<128x256xf32>
    %c0_7 = arith.constant 0 : index
    %c0_8 = arith.constant 0 : index
    %8 = vector.load %arg6[%c0_7, %c0_8] : memref<128x256xf32, #tpu.memory_space<vmem>>, vector<128x256xf32>
    tpu.vector_store %arg6[%c0_7, %c0_8], %7 {strides = array<i32>} : memref<128x256xf32, #tpu.memory_space<vmem>>, vector<128x256xf32>,
    return
  }
  func.func @transform_0(%arg0: i32, %arg1: i32) -> (i32, i32) {
    %c0_i32 = arith.constant 0 : i32
    %c0_i32_0 = arith.constant 0 : i32
    return %arg0, %c0_i32 : i32, i32
  }
  func.func @transform_1(%arg0: i32, %arg1: i32) -> (i32, i32) {
    %c0_i32 = arith.constant 0 : i32
    %c0_i32_0 = arith.constant 0 : i32
    return %c0_i32, %arg1 : i32, i32
  }
  func.func @transform_2(%arg0: i32, %arg1: i32) -> (i32, i32) {
    %c0_i32 = arith.constant 0 : i32
    %c0_i32_0 = arith.constant 0 : i32
    return %c0_i32, %arg1 : i32, i32
  }
  func.func @transform_3(%arg0: i32, %arg1: i32) -> (i32, i32) {
    %c0_i32 = arith.constant 0 : i32
    return %arg0, %arg1 : i32, i32
  }
  func.func @transform_4(%arg0: i32, %arg1: i32) -> (i32, i32) {
    %c0_i32 = arith.constant 0 : i32
    return %arg0, %arg1 : i32, i32
  }
}

module attributes {stable_mosaic.version = 11 : i64} {
  func.func @_ln_mlp_kernel(%arg0: i32, %arg1: i32, %arg2: memref<128x256xf32, #tpu.memory_space<vmem>>, %arg3: memref<1x256xf32, #tpu.memory_space<vmem>>, %arg4: memref<1x256xf32, #tpu.memory_space<vmem>>, %arg5: memref<256x512xbf16, #tpu.memory_space<vmem>>, %arg6: memref<1x512xf32, #tpu.memory_space<vmem>>, %arg7: memref<512x256xbf16, #tpu.memory_space<vmem>>, %arg8: memref<1x256xf32, #tpu.memory_space<vmem>>, %arg9: memref<128x256xf32, #tpu.memory_space<vmem>>, %arg10: memref<128x256xbf16, #tpu.memory_space<vmem>>, %arg11: memref<128x256xf32, #tpu.memory_space<vmem>>) attributes {dimension_semantics = [#tpu.dimension_semantics<parallel>, #tpu.dimension_semantics<arbitrary>], iteration_bounds = array<i64: 1, 2>, scalar_prefetch = 0 : i64, scratch_operands = 2 : i64, tpu.core_type = #tpu.core_type<tc>, window_params = [{transform_indices = @transform_0, window_bounds = array<i64: 128, 256>}, {pipeline_mode = #tpu.pipeline_mode<synchronous>, transform_indices = @transform_1, window_bounds = array<i64: 1, 256>}, {pipeline_mode = #tpu.pipeline_mode<synchronous>, transform_indices = @transform_2, window_bounds = array<i64: 1, 256>}, {transform_indices = @transform_3, window_bounds = array<i64: 256, 512>}, {transform_indices = @transform_4, window_bounds = array<i64: 1, 512>}, {transform_indices = @transform_5, window_bounds = array<i64: 512, 256>}, {pipeline_mode = #tpu.pipeline_mode<synchronous>, transform_indices = @transform_6, window_bounds = array<i64: 1, 256>}, {transform_indices = @transform_7, window_bounds = array<i64: 128, 256>}]} {
    %c0_i32 = arith.constant 0 : i32
    %0 = arith.cmpi eq, %arg1, %c0_i32 : i32
    %1 = arith.extui %0 : i1 to i32
    %c0_i32_0 = arith.constant 0 : i32
    %2 = arith.cmpi ne, %1, %c0_i32_0 : i32
    scf.if %2 {
      %c0_18 = arith.constant 0 : index
      %c0_19 = arith.constant 0 : index
      %31 = vector.load %arg2[%c0_18, %c0_19] : memref<128x256xf32, #tpu.memory_space<vmem>>, vector<128x256xf32>
      %c0_20 = arith.constant 0 : index
      %c0_21 = arith.constant 0 : index
      %32 = vector.load %arg3[%c0_20, %c0_21] : memref<1x256xf32, #tpu.memory_space<vmem>>, vector<1x256xf32>
      %c0_22 = arith.constant 0 : index
      %c0_23 = arith.constant 0 : index
      %33 = vector.load %arg4[%c0_22, %c0_23] : memref<1x256xf32, #tpu.memory_space<vmem>>, vector<1x256xf32>
      %cst_24 = arith.constant dense<0.000000e+00> : vector<128xf32>
      %34 = vector.multi_reduction <add>, %31, %cst_24 [1] : vector<128x256xf32> to vector<128xf32>
      %35 = vector.shape_cast %34 : vector<128xf32> to vector<128x1xf32>
      %cst_25 = arith.constant 2.560000e+02 : f32
      %36 = vector.broadcast %cst_25 : f32 to vector<128x1xf32>
      %37 = arith.divf %35, %36 : vector<128x1xf32>
      %38 = vector.broadcast %37 : vector<128x1xf32> to vector<128x256xf32>
      %39 = arith.subf %31, %38 : vector<128x256xf32>
      %40 = arith.mulf %39, %39 : vector<128x256xf32>
      %cst_26 = arith.constant dense<0.000000e+00> : vector<128xf32>
      %41 = vector.multi_reduction <add>, %40, %cst_26 [1] : vector<128x256xf32> to vector<128xf32>
      %42 = vector.shape_cast %41 : vector<128xf32> to vector<128x1xf32>
      %cst_27 = arith.constant 2.560000e+02 : f32
      %43 = vector.broadcast %cst_27 : f32 to vector<128x1xf32>
      %44 = arith.divf %42, %43 : vector<128x1xf32>
      %cst_28 = arith.constant 9.99999974E-6 : f32
      %45 = vector.broadcast %cst_28 : f32 to vector<128x1xf32>
      %46 = arith.addf %44, %45 : vector<128x1xf32>
      %47 = math.rsqrt %46 : vector<128x1xf32>
      %48 = vector.broadcast %47 : vector<128x1xf32> to vector<128x256xf32>
      %49 = arith.mulf %39, %48 : vector<128x256xf32>
      %50 = vector.broadcast %32 : vector<1x256xf32> to vector<128x256xf32>
      %51 = arith.mulf %49, %50 : vector<128x256xf32>
      %52 = vector.broadcast %33 : vector<1x256xf32> to vector<128x256xf32>
      %53 = arith.addf %51, %52 : vector<128x256xf32>
      %54 = arith.truncf %53 : vector<128x256xf32> to vector<128x256xbf16>
      %c0_29 = arith.constant 0 : index
      %c0_30 = arith.constant 0 : index
      %55 = vector.load %arg10[%c0_29, %c0_30] : memref<128x256xbf16, #tpu.memory_space<vmem>>, vector<128x256xbf16>
      tpu.vector_store %arg10[%c0_29, %c0_30], %54 {strides = array<i32>} : memref<128x256xbf16, #tpu.memory_space<vmem>>, vector<128x256xbf16>,
      %cst_31 = arith.constant 0.000000e+00 : f32
      %56 = vector.broadcast %cst_31 : f32 to vector<128x256xf32>
      %c0_32 = arith.constant 0 : index
      %c0_33 = arith.constant 0 : index
      %57 = vector.load %arg8[%c0_32, %c0_33] : memref<1x256xf32, #tpu.memory_space<vmem>>, vector<1x256xf32>
      %58 = vector.broadcast %57 : vector<1x256xf32> to vector<128x256xf32>
      %59 = arith.addf %56, %58 : vector<128x256xf32>
      %c0_34 = arith.constant 0 : index
      %c0_35 = arith.constant 0 : index
      %60 = vector.load %arg11[%c0_34, %c0_35] : memref<128x256xf32, #tpu.memory_space<vmem>>, vector<128x256xf32>
      tpu.vector_store %arg11[%c0_34, %c0_35], %59 {strides = array<i32>} : memref<128x256xf32, #tpu.memory_space<vmem>>, vector<128x256xf32>,
    } else {
    }
    %c0 = arith.constant 0 : index
    %c0_1 = arith.constant 0 : index
    %3 = vector.load %arg10[%c0, %c0_1] : memref<128x256xbf16, #tpu.memory_space<vmem>>, vector<128x256xbf16>
    %c0_2 = arith.constant 0 : index
    %c0_3 = arith.constant 0 : index
    %4 = vector.load %arg5[%c0_2, %c0_3] : memref<256x512xbf16, #tpu.memory_space<vmem>>, vector<256x512xbf16>
    %cst = arith.constant dense<0.000000e+00> : vector<128x512xf32>
    %5 = tpu.matmul %3, %4, %cst {dimension_numbers = #tpu.dot_dimension_numbers<[1], [0], [0], [1], [0, 0, 1, 1], [], []>} : vector<128x256xbf16>, vector<256x512xbf16>, vector<128x512xf32> -> vector<128x512xf32>
    %c0_4 = arith.constant 0 : index
    %c0_5 = arith.constant 0 : index
    %6 = vector.load %arg6[%c0_4, %c0_5] : memref<1x512xf32, #tpu.memory_space<vmem>>, vector<1x512xf32>
    %7 = vector.broadcast %6 : vector<1x512xf32> to vector<128x512xf32>
    %8 = arith.addf %5, %7 : vector<128x512xf32>
    %cst_6 = arith.constant 5.000000e-01 : f32
    %9 = vector.broadcast %cst_6 : f32 to vector<128x512xf32>
    %10 = arith.mulf %9, %8 : vector<128x512xf32>
    %cst_7 = arith.constant 4.471500e-02 : f32
    %11 = vector.broadcast %cst_7 : f32 to vector<128x512xf32>
    %12 = arith.mulf %11, %8 : vector<128x512xf32>
    %13 = arith.mulf %12, %8 : vector<128x512xf32>
    %14 = arith.mulf %13, %8 : vector<128x512xf32>
    %15 = arith.addf %8, %14 : vector<128x512xf32>
    %cst_8 = arith.constant 0.797884583 : f32
    %16 = vector.broadcast %cst_8 : f32 to vector<128x512xf32>
    %17 = arith.mulf %16, %15 : vector<128x512xf32>
    %18 = math.tanh %17 : vector<128x512xf32>
    %cst_9 = arith.constant 1.000000e+00 : f32
    %19 = vector.broadcast %cst_9 : f32 to vector<128x512xf32>
    %20 = arith.addf %19, %18 : vector<128x512xf32>
    %21 = arith.mulf %10, %20 : vector<128x512xf32>
    %c0_10 = arith.constant 0 : index
    %c0_11 = arith.constant 0 : index
    %22 = vector.load %arg11[%c0_10, %c0_11] : memref<128x256xf32, #tpu.memory_space<vmem>>, vector<128x256xf32>
    %23 = arith.truncf %21 : vector<128x512xf32> to vector<128x512xbf16>
    %c0_12 = arith.constant 0 : index
    %c0_13 = arith.constant 0 : index
    %24 = vector.load %arg7[%c0_12, %c0_13] : memref<512x256xbf16, #tpu.memory_space<vmem>>, vector<512x256xbf16>
    %cst_14 = arith.constant dense<0.000000e+00> : vector<128x256xf32>
    %25 = tpu.matmul %23, %24, %cst_14 {dimension_numbers = #tpu.dot_dimension_numbers<[1], [0], [0], [1], [0, 0, 1, 1], [], []>} : vector<128x512xbf16>, vector<512x256xbf16>, vector<128x256xf32> -> vector<128x256xf32>
    %26 = arith.addf %22, %25 : vector<128x256xf32>
    %c0_15 = arith.constant 0 : index
    %c0_16 = arith.constant 0 : index
    %27 = vector.load %arg11[%c0_15, %c0_16] : memref<128x256xf32, #tpu.memory_space<vmem>>, vector<128x256xf32>
    tpu.vector_store %arg11[%c0_15, %c0_16], %26 {strides = array<i32>} : memref<128x256xf32, #tpu.memory_space<vmem>>, vector<128x256xf32>,
    %c1_i32 = arith.constant 1 : i32
    %28 = arith.cmpi eq, %arg1, %c1_i32 : i32
    %29 = arith.extui %28 : i1 to i32
    %c0_i32_17 = arith.constant 0 : i32
    %30 = arith.cmpi ne, %29, %c0_i32_17 : i32
    scf.if %30 {
      %c0_18 = arith.constant 0 : index
      %c0_19 = arith.constant 0 : index
      %31 = vector.load %arg11[%c0_18, %c0_19] : memref<128x256xf32, #tpu.memory_space<vmem>>, vector<128x256xf32>
      %c0_20 = arith.constant 0 : index
      %c0_21 = arith.constant 0 : index
      %32 = vector.load %arg2[%c0_20, %c0_21] : memref<128x256xf32, #tpu.memory_space<vmem>>, vector<128x256xf32>
      %33 = arith.addf %31, %32 : vector<128x256xf32>
      %c0_22 = arith.constant 0 : index
      %c0_23 = arith.constant 0 : index
      %34 = vector.load %arg9[%c0_22, %c0_23] : memref<128x256xf32, #tpu.memory_space<vmem>>, vector<128x256xf32>
      tpu.vector_store %arg9[%c0_22, %c0_23], %33 {strides = array<i32>} : memref<128x256xf32, #tpu.memory_space<vmem>>, vector<128x256xf32>,
    } else {
    }
    return
  }
  func.func @transform_0(%arg0: i32, %arg1: i32) -> (i32, i32) {
    %c0_i32 = arith.constant 0 : i32
    %c0_i32_0 = arith.constant 0 : i32
    return %arg0, %c0_i32 : i32, i32
  }
  func.func @transform_1(%arg0: i32, %arg1: i32) -> (i32, i32) {
    %c0_i32 = arith.constant 0 : i32
    %c0_i32_0 = arith.constant 0 : i32
    %c0_i32_1 = arith.constant 0 : i32
    return %c0_i32, %c0_i32_0 : i32, i32
  }
  func.func @transform_2(%arg0: i32, %arg1: i32) -> (i32, i32) {
    %c0_i32 = arith.constant 0 : i32
    %c0_i32_0 = arith.constant 0 : i32
    %c0_i32_1 = arith.constant 0 : i32
    return %c0_i32, %c0_i32_0 : i32, i32
  }
  func.func @transform_3(%arg0: i32, %arg1: i32) -> (i32, i32) {
    %c0_i32 = arith.constant 0 : i32
    %c0_i32_0 = arith.constant 0 : i32
    return %c0_i32, %arg1 : i32, i32
  }
  func.func @transform_4(%arg0: i32, %arg1: i32) -> (i32, i32) {
    %c0_i32 = arith.constant 0 : i32
    %c0_i32_0 = arith.constant 0 : i32
    return %c0_i32, %arg1 : i32, i32
  }
  func.func @transform_5(%arg0: i32, %arg1: i32) -> (i32, i32) {
    %c0_i32 = arith.constant 0 : i32
    %c0_i32_0 = arith.constant 0 : i32
    return %arg1, %c0_i32 : i32, i32
  }
  func.func @transform_6(%arg0: i32, %arg1: i32) -> (i32, i32) {
    %c0_i32 = arith.constant 0 : i32
    %c0_i32_0 = arith.constant 0 : i32
    %c0_i32_1 = arith.constant 0 : i32
    return %c0_i32, %c0_i32_0 : i32, i32
  }
  func.func @transform_7(%arg0: i32, %arg1: i32) -> (i32, i32) {
    %c0_i32 = arith.constant 0 : i32
    %c0_i32_0 = arith.constant 0 : i32
    return %arg0, %c0_i32 : i32, i32
  }
}

module attributes {stable_mosaic.version = 11 : i64} {
  func.func @_ln_matmul_kernel(%arg0: i32, %arg1: i32, %arg2: memref<128x256xf32, #tpu.memory_space<vmem>>, %arg3: memref<1x256xf32, #tpu.memory_space<vmem>>, %arg4: memref<1x256xf32, #tpu.memory_space<vmem>>, %arg5: memref<256x512xbf16, #tpu.memory_space<vmem>>, %arg6: memref<1x512xf32, #tpu.memory_space<vmem>>, %arg7: memref<128x512xf32, #tpu.memory_space<vmem>>, %arg8: memref<128x256xbf16, #tpu.memory_space<vmem>>) attributes {dimension_semantics = [#tpu.dimension_semantics<parallel>, #tpu.dimension_semantics<arbitrary>], iteration_bounds = array<i64: 1, 2>, scalar_prefetch = 0 : i64, scratch_operands = 1 : i64, tpu.core_type = #tpu.core_type<tc>, window_params = [{transform_indices = @transform_0, window_bounds = array<i64: 128, 256>}, {pipeline_mode = #tpu.pipeline_mode<synchronous>, transform_indices = @transform_1, window_bounds = array<i64: 1, 256>}, {pipeline_mode = #tpu.pipeline_mode<synchronous>, transform_indices = @transform_2, window_bounds = array<i64: 1, 256>}, {transform_indices = @transform_3, window_bounds = array<i64: 256, 512>}, {transform_indices = @transform_4, window_bounds = array<i64: 1, 512>}, {transform_indices = @transform_5, window_bounds = array<i64: 128, 512>}]} {
    %c0_i32 = arith.constant 0 : i32
    %0 = arith.cmpi eq, %arg1, %c0_i32 : i32
    %1 = arith.extui %0 : i1 to i32
    %c0_i32_0 = arith.constant 0 : i32
    %2 = arith.cmpi ne, %1, %c0_i32_0 : i32
    scf.if %2 {
      %c0_8 = arith.constant 0 : index
      %c0_9 = arith.constant 0 : index
      %10 = vector.load %arg2[%c0_8, %c0_9] : memref<128x256xf32, #tpu.memory_space<vmem>>, vector<128x256xf32>
      %c0_10 = arith.constant 0 : index
      %c0_11 = arith.constant 0 : index
      %11 = vector.load %arg3[%c0_10, %c0_11] : memref<1x256xf32, #tpu.memory_space<vmem>>, vector<1x256xf32>
      %c0_12 = arith.constant 0 : index
      %c0_13 = arith.constant 0 : index
      %12 = vector.load %arg4[%c0_12, %c0_13] : memref<1x256xf32, #tpu.memory_space<vmem>>, vector<1x256xf32>
      %cst_14 = arith.constant dense<0.000000e+00> : vector<128xf32>
      %13 = vector.multi_reduction <add>, %10, %cst_14 [1] : vector<128x256xf32> to vector<128xf32>
      %14 = vector.shape_cast %13 : vector<128xf32> to vector<128x1xf32>
      %cst_15 = arith.constant 2.560000e+02 : f32
      %15 = vector.broadcast %cst_15 : f32 to vector<128x1xf32>
      %16 = arith.divf %14, %15 : vector<128x1xf32>
      %17 = vector.broadcast %16 : vector<128x1xf32> to vector<128x256xf32>
      %18 = arith.subf %10, %17 : vector<128x256xf32>
      %19 = arith.mulf %18, %18 : vector<128x256xf32>
      %cst_16 = arith.constant dense<0.000000e+00> : vector<128xf32>
      %20 = vector.multi_reduction <add>, %19, %cst_16 [1] : vector<128x256xf32> to vector<128xf32>
      %21 = vector.shape_cast %20 : vector<128xf32> to vector<128x1xf32>
      %cst_17 = arith.constant 2.560000e+02 : f32
      %22 = vector.broadcast %cst_17 : f32 to vector<128x1xf32>
      %23 = arith.divf %21, %22 : vector<128x1xf32>
      %cst_18 = arith.constant 9.99999974E-6 : f32
      %24 = vector.broadcast %cst_18 : f32 to vector<128x1xf32>
      %25 = arith.addf %23, %24 : vector<128x1xf32>
      %26 = math.rsqrt %25 : vector<128x1xf32>
      %27 = vector.broadcast %26 : vector<128x1xf32> to vector<128x256xf32>
      %28 = arith.mulf %18, %27 : vector<128x256xf32>
      %29 = vector.broadcast %11 : vector<1x256xf32> to vector<128x256xf32>
      %30 = arith.mulf %28, %29 : vector<128x256xf32>
      %31 = vector.broadcast %12 : vector<1x256xf32> to vector<128x256xf32>
      %32 = arith.addf %30, %31 : vector<128x256xf32>
      %33 = arith.truncf %32 : vector<128x256xf32> to vector<128x256xbf16>
      %c0_19 = arith.constant 0 : index
      %c0_20 = arith.constant 0 : index
      %34 = vector.load %arg8[%c0_19, %c0_20] : memref<128x256xbf16, #tpu.memory_space<vmem>>, vector<128x256xbf16>
      tpu.vector_store %arg8[%c0_19, %c0_20], %33 {strides = array<i32>} : memref<128x256xbf16, #tpu.memory_space<vmem>>, vector<128x256xbf16>,
    } else {
    }
    %c0 = arith.constant 0 : index
    %c0_1 = arith.constant 0 : index
    %3 = vector.load %arg8[%c0, %c0_1] : memref<128x256xbf16, #tpu.memory_space<vmem>>, vector<128x256xbf16>
    %c0_2 = arith.constant 0 : index
    %c0_3 = arith.constant 0 : index
    %4 = vector.load %arg5[%c0_2, %c0_3] : memref<256x512xbf16, #tpu.memory_space<vmem>>, vector<256x512xbf16>
    %cst = arith.constant dense<0.000000e+00> : vector<128x512xf32>
    %5 = tpu.matmul %3, %4, %cst {dimension_numbers = #tpu.dot_dimension_numbers<[1], [0], [0], [1], [0, 0, 1, 1], [], []>} : vector<128x256xbf16>, vector<256x512xbf16>, vector<128x512xf32> -> vector<128x512xf32>
    %c0_4 = arith.constant 0 : index
    %c0_5 = arith.constant 0 : index
    %6 = vector.load %arg6[%c0_4, %c0_5] : memref<1x512xf32, #tpu.memory_space<vmem>>, vector<1x512xf32>
    %7 = vector.broadcast %6 : vector<1x512xf32> to vector<128x512xf32>
    %8 = arith.addf %5, %7 : vector<128x512xf32>
    %c0_6 = arith.constant 0 : index
    %c0_7 = arith.constant 0 : index
    %9 = vector.load %arg7[%c0_6, %c0_7] : memref<128x512xf32, #tpu.memory_space<vmem>>, vector<128x512xf32>
    tpu.vector_store %arg7[%c0_6, %c0_7], %8 {strides = array<i32>} : memref<128x512xf32, #tpu.memory_space<vmem>>, vector<128x512xf32>,
    return
  }
  func.func @transform_0(%arg0: i32, %arg1: i32) -> (i32, i32) {
    %c0_i32 = arith.constant 0 : i32
    %c0_i32_0 = arith.constant 0 : i32
    return %arg0, %c0_i32 : i32, i32
  }
  func.func @transform_1(%arg0: i32, %arg1: i32) -> (i32, i32) {
    %c0_i32 = arith.constant 0 : i32
    %c0_i32_0 = arith.constant 0 : i32
    %c0_i32_1 = arith.constant 0 : i32
    return %c0_i32, %c0_i32_0 : i32, i32
  }
  func.func @transform_2(%arg0: i32, %arg1: i32) -> (i32, i32) {
    %c0_i32 = arith.constant 0 : i32
    %c0_i32_0 = arith.constant 0 : i32
    %c0_i32_1 = arith.constant 0 : i32
    return %c0_i32, %c0_i32_0 : i32, i32
  }
  func.func @transform_3(%arg0: i32, %arg1: i32) -> (i32, i32) {
    %c0_i32 = arith.constant 0 : i32
    %c0_i32_0 = arith.constant 0 : i32
    return %c0_i32, %arg1 : i32, i32
  }
  func.func @transform_4(%arg0: i32, %arg1: i32) -> (i32, i32) {
    %c0_i32 = arith.constant 0 : i32
    %c0_i32_0 = arith.constant 0 : i32
    return %c0_i32, %arg1 : i32, i32
  }
  func.func @transform_5(%arg0: i32, %arg1: i32) -> (i32, i32) {
    %c0_i32 = arith.constant 0 : i32
    return %arg0, %arg1 : i32, i32
  }
}

</mosaic_0001>

<bundles_post_ra>
// kernel: gpt2_forward.10
= control target key start
LH: loop header
LB: loop body
LE: loop exit
PB: predicated region body
PF: predicated region fallthrough
CT: control target
= control target key end

     0   :  { %s990_s12 = smov 0   ;;  %s992_s13 = smov 0   ;;  %s1139_s0 = inlined_call_operand.vmem [shape: bf16[8,64,64], index: 0, kind: input, shape index: {}]   ;;  %s1140_s1 = inlined_call_operand.vmem [shape: bf16[8,64,64], index: 1, kind: input, shape index: {}]   ;;  %s1141_s2 = inlined_call_operand.vmem [shape: bf16[8,64,64], index: 2, kind: input, shape index: {}]   ;;  %s1142_s3 = inlined_call_operand.vmem [shape: bf16[8,64,64], index: 3, kind: output, shape index: {}]  }
   0x1   :  { %s994_s14 = smov 0   ;;  %s996_s15 = smov 0  }
   0x2   :  { %s998_s16 = smov 0   ;;  %s1000_s17 = smov 0  }
   0x3   :  { %s1002_s18 = smov 0  }
   0x4 LB: > { %s25_s19 = sadd.s32 1, %s952_s15  ;;  %s28_s20 = sadd.s32 1, %s956_s16  ;;  %s964_s18 = sphi %s1002_s18, %s13_s18   ;;  %s960_s17 = sphi %s1000_s17, %s1148_s17   ;;  %s956_s16 = sphi %s998_s16, %s1147_s16   ;;  %s952_s15 = sphi %s996_s15, %s1146_s15   ;;  %s948_s14 = sphi %s994_s14, %s1145_s14   ;;  %s944_s13 = sphi %s992_s13, %s1144_s13   ;;  %s940_s12 = sphi %s990_s12, %s1143_s12  }
   0x5   : > { %p26_p0 = scmp.ge.s32.totalorder %s25_s19, 2  ;;  %p763_p1 = scmp.ge.s32.totalorder %s964_s18, 1 }
   0x6   : > { %p199_p2 = scmp.lt.s32.totalorder %s964_s18, 33  ;;  %s32_s21 = sadd.s32 1, %s960_s17 }
   0x7   : > { %s1150_s19 = smov (%p26_p0, %s25_s19), 0  ;;  %s1152_s20 = smov (!%p26_p0, %s28_s20), %s956_s16 }
   0x8   : > { %p200_p3 = pnand %p763_p1, %p199_p2  ;;  %p30_p4 = scmp.ge.s32.totalorder %s1152_s20, 2 }
   0x9   : > { %s764_s22 = sshll.u32 (!%p200_p3), %s944_s13, 2  ;;  %p250_p6 = scmp.lt.s32.totalorder (!%p200_p3), %s948_s14, 7 }
   0xa   : > { %s1154_s20 = smov (%p30_p4, %s1152_s20), 0  ;;  %s1156_s21 = smov (!%p30_p4, %s32_s21), %s960_s17 }
   0xb   : > { %p34_p5 = scmp.ge.s32.totalorder %s1156_s21, 8  ;;  %203 = sbr.rel (%p200_p3) target bundleno = 731 (0x2db), region = 32 }
   0xc   : > { %p252_p7 = scmp.lt.s32.totalorder (!%p200_p3), %s764_s22, 7  ;;  %s767_s23 = sshll.u32 (!%p200_p3), %s940_s12, 2 }
   0xd   : > { %s1158_s21 = smov (%p34_p5, %s1156_s21), 0  ;;  %p262_p8 = scmp.lt.s32.totalorder (!%p200_p3), %s767_s23, 7 }
   0xe   : > { %p776_p9 = scmp.ne.s32.totalorder (!%p200_p3), %s940_s12, 0 }
  0x10   : > { %s1160_s14 = smov (!%p250_p6, %s948_s14), 7  ;;  %s1162_s22 = smov (!%p252_p7, %s764_s22), 7 }
  0x11   : > { %s765_s24 = sshll.u32 %s1160_s14, 3  ;;  %s1164_s23 = smov (!%p262_p8, %s767_s23), 7 }
  0x12   : > { %s255_s25 = sadd.s32 %s765_s24, %s1162_s22  ;;  %s265_s6 = sadd.s32 %s765_s24, %s1164_s23 }
  0x13   : > { %s766_s26 = sshll.u32 %s255_s25, 2  ;;  %s769_s7 = sshll.u32 %s265_s6, 2 }
  0x14   : > { %s1041_s29 = scalar_lea.vmem %s1139_s0, %s766_s26  ;;  %s1046_s5 = scalar_lea.vmem %s1142_s3, %s766_s26 }
  0x15   : > { %s1051_s10 = scalar_lea.vmem %s1140_s1, %s769_s7  ;;  %s1056_s22 = scalar_lea.vmem %s1141_s2, %s769_s7 }
  0x16   : > { %293 = sbr.rel (%p776_p9) target bundleno = 40 (0x28), region = 36 }
  0x1b   : > { %vm294_vm0 = vcmask 7168   ;;  %v966_v0 = vmov -inf   ;;  %v967_v1 = vmov 0.0   ;;  %vm303_vm1 = vcmask 523264  }
  0x1c   : > { %295 = vst.msk [vmem:[#allocation2] sm:$0xff] %vm294_vm0, %v966_v0 }
  0x1d   : > { %296 = vst.msk [vmem:[#allocation2 + $0x8] sm:$0xff] %vm294_vm0, %v966_v0 }
  0x1e   : > { %297 = vst.msk [vmem:[#allocation2 + $0x10] sm:$0xff] %vm294_vm0, %v966_v0 }
  0x1f   : > { %298 = vst.msk [vmem:[#allocation2 + $0x18] sm:$0xff] %vm294_vm0, %v966_v0 }
  0x20   : > { %299 = vst.msk [vmem:[#allocation3] sm:$0xff] %vm294_vm0, %v967_v1 }
  0x21   : > { %300 = vst.msk [vmem:[#allocation3 + $0x8] sm:$0xff] %vm294_vm0, %v967_v1 }
  0x22   : > { %301 = vst.msk [vmem:[#allocation3 + $0x10] sm:$0xff] %vm294_vm0, %v967_v1 }
  0x23   : > { %302 = vst.msk [vmem:[#allocation3 + $0x18] sm:$0xff] %vm294_vm0, %v967_v1 }
  0x24   : > { %304 = vst.msk [vmem:[#allocation4] sm:$0xff] %vm303_vm1, %v967_v1 }
  0x25   : > { %305 = vst.msk [vmem:[#allocation4 + $0x8] sm:$0xff] %vm303_vm1, %v967_v1 }
  0x26   : > { %306 = vst.msk [vmem:[#allocation4 + $0x10] sm:$0xff] %vm303_vm1, %v967_v1 }
  0x27   : > { %307 = vst.msk [vmem:[#allocation4 + $0x18] sm:$0xff] %vm303_vm1, %v967_v1 }
  0x28 PF: > { %s777_s23 = sshll.u32 %s940_s12, 5  ;;  %s778_s24 = sshll.u32 %s944_s13, 5 }
  0x29   : > { %s310_s25 = sadd.s32 31, %s778_s24 }
  0x2a   : > { %p779_p10 = scmp.gt.s32.totalorder %s777_s23, %s310_s25 }
  0x2c   : > { %314 = sbr.rel (%p779_p10) target bundleno = 587 (0x24b), region = 40 }
  0x31   : > { %v814_v2 = vld [vmem:[%s1051_s10 + $0x8] sm:$0xff]  ;;  %vm343_vm2 = vcmask 523264   ;;  %v813_v4 = vld [vmem:[%s1051_s10] sm:$0xff]  ;;  %v379_v8 = vlaneseq  ;;  %v384_v11 = vstv %s778_s24  ;;  %v391_v12 = vstv %s777_s23  ;;  %v403_v42 = vld [vmem:[#allocation2 + $0x10] sm:$0xff] }
  0x32   : > { %v354_v3 = vsel %vm343_vm2, %v814_v2, 0  ;;  %v351_v5 = vsel %vm343_vm2, %v813_v4, 0  ;;  %v811_v6 = vld [vmem:[%s1041_s29] sm:$0xff]  ;;  %v812_v7 = vld [vmem:[%s1041_s29 + $0x8] sm:$0xff]  ;;  %vm405_vm4 = vcmask 261120   ;;  %v968_v37 = vmov 0  }
  0x33   : > { %362 = vmatpush.bf16.xpose.msra.mxu0 %v354_v3  ;;  %817 = vmatpush.bf16.xpose.msra.mxu2 %v354_v3  ;;  %v380_v9 = vshrl.u32 %v379_v8, 7  ;;  %v390_v10 = vand.u32 127, %v379_v8  ;;  %v401_v38 = vld [vmem:[#allocation2] sm:$0xff]  ;;  %vm490_vm8 = vcmask 7168   ;;  %v402_v44 = vld [vmem:[#allocation2 + $0x8] sm:$0xff]  ;;  %v404_v52 = vld [vmem:[#allocation2 + $0x18] sm:$0xff] }
  0x34   : > { %882 = vset.pattern.permute.xlu0 %v968_v37  ;;  %881 = vset.pattern.permute.xlu2 %v968_v37  ;;  %v816_v62 = vld [vmem:[%s1056_s22 + $0x8] sm:$0xff]  ;;  %v815_v63 = vld [vmem:[%s1056_s22] sm:$0xff] }
  0x35   : > { %v385_v13 = vadd.s32 %v384_v11, %v380_v9  ;;  %v392_v14 = vadd.s32 %v391_v12, %v390_v10  ;;  %v382_v15 = vadd.s32 16, %v380_v9  ;;  %v381_v17 = vadd.s32 8, %v380_v9  ;;  %883 = vset.pattern.permute.xlu1 %v968_v37  ;;  %819 = vmatpush.bf16.msra.mxu3 %v816_v62 }
  0x36   : > { %v383_v24 = vadd.s32 24, %v380_v9  ;;  %553 = vmatpush.bf16.msra.mxu1 %v816_v62 }
  0x37   : > { %vm393_vm3 = vcmp.ge.s32.totalorder %v385_v13, %v392_v14  ;;  %v387_v19 = vadd.s32 %v384_v11, %v382_v15  ;;  %v386_v22 = vadd.s32 %v384_v11, %v381_v17 }
  0x38   : > { %v388_v30 = vadd.s32 %v384_v11, %v383_v24 }
  0x39   : > { %vm395_vm5 = vcmp.ge.s32.totalorder %v387_v19, %v392_v14  ;;  %vm394_vm6 = vcmp.ge.s32.totalorder %v386_v22, %v392_v14  ;;  %820 = vmatpush.bf16.msra.mxu3 %v815_v63 }
  0x3a   : > { %vm396_vm7 = vcmp.ge.s32.totalorder %v388_v30, %v392_v14  ;;  %554 = vmatpush.bf16.msra.mxu1 %v815_v63  ;;  %v469_v30 = vld [vmem:[#allocation3 + $0x18] sm:$0xff] }
  0x3b   : > { %363 = vmatpush.bf16.xpose.msra.mxu0 %v351_v5  ;;  %818 = vmatpush.bf16.xpose.msra.mxu2 %v351_v5 }
  0x42   : > { %796 = vmatmul.msk.bf16.vlgmr.msra.gmra.mxu0 %vm343_vm2, %v811_v6  ;;  %797 = vmatmul.msk.bf16.vlgmr.msra.gmra.mxu2 %vm343_vm2, %v812_v7 }
  0xbf   : > { %v365_v16 = vpop.f32.mrf.mxu0 }
  0xc0   : > { %v375_v18 = vmul.f32 0.125, %v365_v16 }
  0xc2   : > { %v1069_v20 = vsel %vm393_vm3, %v375_v18, -1e+30 }
  0xc3   : > { %v406_v21 = vsel %vm405_vm4, %v1069_v20, -inf }
  0xc4   : > { %407 = vmax.xlane.f32.xlu1 %v406_v21 }
  0xc5   : > { %v370_v23 = vpop.f32.mrf.mxu2 }
  0xc6   : > { %v377_v25 = vmul.f32 0.125, %v370_v23 }
  0xc7   : > { %v367_v26 = vpop.f32.mrf.mxu0 }
  0xc8   : > { %v376_v27 = vmul.f32 0.125, %v367_v26  ;;  %v1073_v28 = vsel %vm395_vm5, %v377_v25, -1e+30  ;;  %v468_v25 = vld [vmem:[#allocation3 + $0x10] sm:$0xff] }
  0xc9   : > { %v412_v29 = vsel %vm405_vm4, %v1073_v28, -inf }
  0xca   : > { %413 = vmax.xlane.f32.xlu0 %v412_v29  ;;  %v1077_v31 = vsel %vm394_vm6, %v376_v27, -1e+30 }
  0xcb   : > { %v409_v32 = vsel %vm405_vm4, %v1077_v31, -inf }
  0xcc   : > { %410 = vmax.xlane.f32.xlu1 %v409_v32 }
  0xcd   : > { %v372_v33 = vpop.f32.mrf.mxu2 }
  0xce   : > { %v378_v34 = vmul.f32 0.125, %v372_v33 }
  0xd0   : > { %v400_v35 = vsel %vm396_vm7, %v378_v34, -1e+30  ;;  %v466_v34 = vld [vmem:[#allocation3] sm:$0xff] }
  0xd1   : > { %v415_v36 = vsel %vm405_vm4, %v400_v35, -inf }
  0xd2   : > { %416 = vmax.xlane.f32.xlu0 %v415_v36 }
 0x137   : > { %v408_v39 = vpop.xlane.xlu1 %407 }
 0x138   : > { %v418_v40 = vmax.f32 %v401_v38, %v408_v39  ;;  %v467_v39 = vld [vmem:[#allocation3 + $0x8] sm:$0xff] }
 0x13a   : > { %574 = vst.msk [vmem:[#allocation2] sm:$0xff] %vm490_vm8, %v418_v40  ;;  %436 = vperm.xlu0 %882, %v418_v40   ;;  %v422_v41 = vsub.f32 %v401_v38, %v418_v40  ;;  %v497_v38 = vld [vmem:[#allocation4 + $0x10] sm:$0xff] }
 0x13c   : > { %v426_v46 = vmul.f32 1.442695, %v422_v41 }
 0x13d   : > { %v414_v43 = vpop.xlane.xlu0 %413 }
 0x13e   : > { %v420_v45 = vmax.f32 %v403_v42, %v414_v43  ;;  %884 = vpow2.f32 %v426_v46  ;;  %v498_v46 = vld [vmem:[#allocation4 + $0x18] sm:$0xff] }
 0x13f   : > { %v411_v47 = vpop.xlane.xlu1 %410 }
 0x140   : > { %v424_v48 = vsub.f32 %v403_v42, %v420_v45  ;;  %576 = vst.msk [vmem:[#allocation2 + $0x10] sm:$0xff] %vm490_vm8, %v420_v45  ;;  %v419_v49 = vmax.f32 %v402_v44, %v411_v47  ;;  %446 = vperm.xlu2 %881, %v420_v45  }
 0x142   : > { %v430_v50 = vmul.f32 1.442695, %v424_v48  ;;  %575 = vst.msk [vmem:[#allocation2 + $0x8] sm:$0xff] %vm490_vm8, %v419_v49  ;;  %441 = vperm.xlu1 %883, %v419_v49   ;;  %v423_v51 = vsub.f32 %v402_v44, %v419_v49  ;;  %v495_v48 = vld [vmem:[#allocation4] sm:$0xff] }
 0x144   : > { %886 = vpow2.f32 %v430_v50  ;;  %v428_v55 = vmul.f32 1.442695, %v423_v51  ;;  %v1086_v56 = vpop.eup %884 }
 0x145   : > { %v417_v53 = vpop.xlane.xlu0 %416 }
 0x146   : > { %v421_v54 = vmax.f32 %v404_v52, %v417_v53  ;;  %888 = vpow2.f32 %v428_v55 }
 0x148   : > { %577 = vst.msk [vmem:[#allocation2 + $0x18] sm:$0xff] %vm490_vm8, %v421_v54  ;;  %451 = vperm.xlu2 %881, %v421_v54   ;;  %v425_v58 = vsub.f32 %v404_v52, %v421_v54  ;;  %v496_v54 = vld [vmem:[#allocation4 + $0x8] sm:$0xff] }
 0x14a   : > { %v887_v57 = vpop.eup %886  ;;  %501 = vperm.xlu1 %883, %v1086_v56   ;;  %v432_v59 = vmul.f32 1.442695, %v425_v58 }
 0x14b   : > { %511 = vperm.xlu0 %882, %v887_v57   ;;  %v472_v26 = vmul.f32 %v887_v57, %v468_v25 }
 0x14c   : > { %v1089_v60 = vpop.eup %888  ;;  %890 = vpow2.f32 %v432_v59 }
 0x14d   : > { %v471_v42 = vmul.f32 %v1089_v60, %v467_v39 }
 0x152   : > { %506 = vperm.xlu1 %883, %v1089_v60   ;;  %v891_v61 = vpop.eup %890 }
 0x15a   : > { %516 = vperm.xlu1 %883, %v891_v61  }
 0x19a   : > { %v447_v0 = vpop.permute.xlu2 %446 }
 0x19b   : > { %v456_v1 = vsub.f32 %v1073_v28, %v447_v0 }
 0x19d   : > { %v462_v2 = vmul.f32 1.442695, %v456_v1 }
 0x19f   : > { %892 = vpow2.f32 %v462_v2 }
 0x1a2   : > { %v452_v3 = vpop.permute.xlu2 %451 }
 0x1a3   : > { %v457_v4 = vsub.f32 %v400_v35, %v452_v3  ;;  %v470_v35 = vmul.f32 %v1086_v56, %v466_v34 }
 0x1a5   : > { %v893_v5 = vpop.eup %892  ;;  %v464_v6 = vmul.f32 1.442695, %v457_v4 }
 0x1a6   : > { %v480_v7 = vsel %vm405_vm4, %v893_v5, 0.0 }
 0x1a7   : > { %894 = vpow2.f32 %v464_v6  ;;  %481 = vadd.xlane.f32.xlu0 %v480_v7 }
 0x1ac   : > { %v437_v8 = vpop.permute.xlu0 %436 }
 0x1ad   : > { %v895_v9 = vpop.eup %894  ;;  %v454_v10 = vsub.f32 %v1069_v20, %v437_v8 }
 0x1ae   : > { %v483_v11 = vsel %vm405_vm4, %v895_v9, 0.0  ;;  %v524_v12 = vpack.c.bf16 %v895_v9, %v893_v5 }
 0x1af   : > { %v458_v13 = vmul.f32 1.442695, %v454_v10  ;;  %484 = vadd.xlane.f32.xlu1 %v483_v11 }
 0x1b0   : > { %807 = vmatmul.msk.bf16.vlgmr.msra.gmra.mxu3 %vm405_vm4, %v524_v12 }
 0x1b1   : > { %896 = vpow2.f32 %v458_v13 }
 0x1b4   : > { %v442_v14 = vpop.permute.xlu1 %441 }
 0x1b5   : > { %v455_v15 = vsub.f32 %v1077_v31, %v442_v14  ;;  %v473_v31 = vmul.f32 %v891_v61, %v469_v30 }
 0x1b7   : > { %v897_v16 = vpop.eup %896  ;;  %v460_v17 = vmul.f32 1.442695, %v455_v15 }
 0x1b8   : > { %v474_v18 = vsel %vm405_vm4, %v897_v16, 0.0 }
 0x1b9   : > { %898 = vpow2.f32 %v460_v17  ;;  %475 = vadd.xlane.f32.xlu2 %v474_v18 }
 0x1bc   : > { %v502_v22 = vpop.permute.xlu1 %501 }
 0x1bd   : > { %v512_v24 = vpop.permute.xlu0 %511  ;;  %v519_v51 = vmul.f32 %v502_v22, %v495_v48 }
 0x1be   : > { %v521_v40 = vmul.f32 %v512_v24, %v497_v38 }
 0x1bf   : > { %v899_v19 = vpop.eup %898 }
 0x1c0   : > { %v477_v20 = vsel %vm405_vm4, %v899_v19, 0.0  ;;  %v523_v21 = vpack.c.bf16 %v899_v19, %v897_v16 }
 0x1c1   : > { %478 = vadd.xlane.f32.xlu2 %v477_v20 }
 0x1c2   : > { %806 = vmatmul.msk.bf16.vlgmr.msra.gmra.mxu1 %vm405_vm4, %v523_v21 }
 0x1c4   : > { %v507_v23 = vpop.permute.xlu1 %506 }
 0x1c5   : > { %v520_v55 = vmul.f32 %v507_v23, %v496_v54 }
 0x1cc   : > { %v517_v27 = vpop.permute.xlu1 %516 }
 0x1cd   : > { %v522_v47 = vmul.f32 %v517_v27, %v498_v46 }
 0x21a   : > { %v482_v28 = vpop.xlane.xlu0 %481 }
 0x21b   : > { %v488_v29 = vadd.f32 %v482_v28, %v472_v26 }
 0x21d   : > { %493 = vst.msk [vmem:[#allocation3 + $0x10] sm:$0xff] %vm490_vm8, %v488_v29 }
 0x222   : > { %v485_v32 = vpop.xlane.xlu1 %484 }
 0x223   : > { %v489_v33 = vadd.f32 %v485_v32, %v473_v31 }
 0x225   : > { %494 = vst.msk [vmem:[#allocation3 + $0x18] sm:$0xff] %vm490_vm8, %v489_v33 }
 0x22c   : > { %v476_v36 = vpop.xlane.xlu2 %475 }
 0x22d   : > { %v486_v37 = vadd.f32 %v476_v36, %v470_v35 }
 0x22f   : > { %491 = vst.msk [vmem:[#allocation3] sm:$0xff] %vm490_vm8, %v486_v37 }
 0x233   : > { %v561_v41 = vpop.f32.mrf.mxu3 }
 0x234   : > { %v568_v43 = vadd.f32 %v561_v41, %v521_v40  ;;  %v479_v44 = vpop.xlane.xlu2 %478 }
 0x235   : > { %v487_v45 = vadd.f32 %v479_v44, %v471_v42 }
 0x236   : > { %572 = vst.msk [vmem:[#allocation4 + $0x10] sm:$0xff] %vm343_vm2, %v568_v43 }
 0x237   : > { %492 = vst.msk [vmem:[#allocation3 + $0x8] sm:$0xff] %vm490_vm8, %v487_v45 }
 0x23b   : > { %v563_v49 = vpop.f32.mrf.mxu3 }
 0x23c   : > { %v569_v50 = vadd.f32 %v563_v49, %v522_v47 }
 0x23e   : > { %573 = vst.msk [vmem:[#allocation4 + $0x18] sm:$0xff] %vm343_vm2, %v569_v50 }
 0x23f   : > { %v556_v52 = vpop.f32.mrf.mxu1 }
 0x240   : > { %v566_v53 = vadd.f32 %v556_v52, %v519_v51 }
 0x242   : > { %570 = vst.msk [vmem:[#allocation4] sm:$0xff] %vm343_vm2, %v566_v53 }
 0x247   : > { %v558_v56 = vpop.f32.mrf.mxu1 }
 0x248   : > { %v567_v57 = vadd.f32 %v558_v56, %v520_v55 }
 0x24a   : > { %571 = vst.msk [vmem:[#allocation4 + $0x8] sm:$0xff] %vm343_vm2, %v567_v57 }
 0x24b PF: > { %p808_p11 = scmp.ne.s32.totalorder %s940_s12, 1 }
 0x24d   : > { %581 = sbr.rel (%p808_p11) target bundleno = 731 (0x2db), region = 44 }
 0x252   : > { %v588_v58 = vld [vmem:[#allocation3 + $0x10] sm:$0xff]  ;;  %v586_v59 = vld [vmem:[#allocation3] sm:$0xff]  ;;  %v969_v60 = vmov 0   ;;  %v589_v61 = vld [vmem:[#allocation3 + $0x18] sm:$0xff]  ;;  %vm622_vm9 = vcmask 519168  }
 0x253   : > { %901 = vset.pattern.permute.xlu1 %v969_v60  ;;  %900 = vset.pattern.permute.xlu0 %v969_v60  ;;  %902 = vrcp.f32 %v588_v58  ;;  %v587_v62 = vld [vmem:[#allocation3 + $0x8] sm:$0xff]  ;;  %v584_v3 = vld [vmem:[#allocation4 + $0x10] sm:$0xff]  ;;  %v582_v4 = vld [vmem:[#allocation4] sm:$0xff] }
 0x254   : > { %904 = vrcp.f32 %v586_v59  ;;  %v585_v11 = vld [vmem:[#allocation4 + $0x18] sm:$0xff]  ;;  %v583_v12 = vld [vmem:[#allocation4 + $0x8] sm:$0xff] }
 0x255   : > { %906 = vrcp.f32 %v589_v61 }
 0x256   : > { %908 = vrcp.f32 %v587_v62 }
 0x259   : > { %v903_v63 = vpop.eup %902 }
 0x25a   : > { %v905_v0 = vpop.eup %904  ;;  %606 = vperm.xlu1 %901, %v903_v63  }
 0x25b   : > { %596 = vperm.xlu0 %900, %v905_v0   ;;  %v907_v1 = vpop.eup %906 }
 0x25c   : > { %v909_v2 = vpop.eup %908 }
 0x262   : > { %611 = vperm.xlu1 %901, %v907_v1  }
 0x263   : > { %601 = vperm.xlu0 %900, %v909_v2  }
 0x2cc   : > { %v607_v5 = vpop.permute.xlu1 %606 }
 0x2cd   : > { %v616_v6 = vmul.f32 %v607_v5, %v584_v3  ;;  %v597_v7 = vpop.permute.xlu0 %596 }
 0x2ce   : > { %v614_v8 = vmul.f32 %v597_v7, %v582_v4 }
 0x2cf   : > { %v620_v9 = vpack.c.bf16 %v616_v6, %v616_v6 }
 0x2d0   : > { %v618_v10 = vpack.c.bf16 %v614_v8, %v614_v8 }
 0x2d1   : > { %625 = vst.msk [vmem:[%s1046_s5 + $0x8] sm:$0xf] %vm622_vm9, %v620_v9 }
 0x2d2   : > { %623 = vst.msk [vmem:[%s1046_s5] sm:$0xf] %vm622_vm9, %v618_v10 }
 0x2d4   : > { %v612_v13 = vpop.permute.xlu1 %611 }
 0x2d5   : > { %v617_v14 = vmul.f32 %v612_v13, %v585_v11  ;;  %v602_v15 = vpop.permute.xlu0 %601 }
 0x2d6   : > { %v615_v16 = vmul.f32 %v602_v15, %v583_v12 }
 0x2d7   : > { %v621_v17 = vpack.c.bf16 %v617_v14, %v617_v14 }
 0x2d8   : > { %v619_v18 = vpack.c.bf16 %v615_v16, %v615_v16 }
 0x2d9   : > { %626 = vst.msk [vmem:[%s1046_s5 + $0xc] sm:$0xf] %vm622_vm9, %v621_v17 }
 0x2da   : > { %624 = vst.msk [vmem:[%s1046_s5 + $0x4] sm:$0xf] %vm622_vm9, %v619_v18 }
 0x2db PF: > { %s13_s18 = sadd.s32 1, %s964_s18   ;;  %s1143_s12 = smov %s952_s15 }
 0x2dc   : > { %p10_p12 = scmp.ge.s32.totalorder %s13_s18, 34   ;;  %s1144_s13 = smov %s956_s16 }
 0x2dd   : > { %s1145_s14 = smov %s960_s17  ;;  %s1146_s15 = smov %s1150_s19 }
 0x2de   : > { %s1147_s16 = smov %s1154_s20  ;;  %s1148_s17 = smov %s1158_s21 }
 0x2df   :  { %12 = sbr.rel (!%p10_p12) target bundleno = 4 (0x4), region = 80 }

// kernel: gpt2_forward.9
= control target key start
LH: loop header
LB: loop body
LE: loop exit
PB: predicated region body
PF: predicated region fallthrough
CT: control target
= control target key end

     0   :  { %s2565_s18 = smov 0   ;;  %s2567_s19 = smov 0   ;;  %s3790_s0 = inlined_call_operand.vmem [shape: f32[128,256], index: 0, kind: input, shape index: {}]   ;;  %s3791_s1 = inlined_call_operand.vmem [shape: f32[1,256], index: 1, kind: input, shape index: {}]   ;;  %s3792_s2 = inlined_call_operand.vmem [shape: f32[1,256], index: 2, kind: input, shape index: {}]   ;;  %s3793_s3 = inlined_call_operand.vmem [shape: bf16[256,768], index: 3, kind: input, shape index: {}]   ;;  %s3794_s4 = inlined_call_operand.vmem [shape: f32[1,768], index: 4, kind: input, shape index: {}]   ;;  %s3795_s5 = inlined_call_operand.vmem [shape: bf16[128,768], index: 5, kind: output, shape index: {}]  }
   0x1   :  { %s2569_s20 = smov 0   ;;  %s2571_s21 = smov 0  }
   0x2   :  { %s2573_s22 = smov 0  }
   0x3 LB: > { %s24_s23 = sadd.s32 1, %s2528_s21  ;;  %s1971_s24 = sadd.s32 4294967295, %s2532_s22   ;;  %s2532_s22 = sphi %s2573_s22, %s15_s22   ;;  %s2528_s21 = sphi %s2571_s21, %s3800_s21   ;;  %s2524_s20 = sphi %s2569_s20, %s3799_s20   ;;  %s2520_s19 = sphi %s2567_s19, %s3798_s19   ;;  %s2516_s18 = sphi %s2565_s18, %s3797_s18  }
   0x4   : > { %p25_p0 = scmp.ge.s32.totalorder %s24_s23, 2  ;;  %p109_p1 = scmp.ne.s32.totalorder %s2520_s19, %s2516_s18 }
   0x5   : > { %p110_p2 = scmp.eq.s32.totalorder %s2532_s22, 0  ;;  %p167_p4 = scmp.eq.s32.totalorder %s1971_s24, 1 }
   0x6   : > { %s3802_s23 = smov (%p25_p0, %s24_s23), 0  ;;  %s102_s26 = sadd.s32 1, %s2520_s19 }
   0x7   : > { %p111_p3 = por %p110_p2, %p109_p1  ;;  %s99_s25 = ssub.s32 %s2528_s21, %s3802_s23 }
   0x8   : > { %p100_p5 = scmp.eq.s32.totalorder %s99_s25, 0  ;;  %p2600_p6 = por %p167_p4, %p109_p1 }
   0x9   : > { %p1975_p7 = scmp.ge.s32.totalorder %s2532_s22, 2 }
   0xa   : > { %s2605_s28 = scalar_select %p100_p5, %s2520_s19, %s102_s26  }
   0xb   : > { %205 = sbr.rel (%p1975_p7) target bundleno = 85 (0x55), region = 28 }
  0x10   : > { %208 = sbr.rel (!%p111_p3) target bundleno = 85 (0x55), region = 32  ;;  %s210_s29 = sand.u32 (%p111_p3), 1, %s2520_s19  }
  0x11   : > { %s2334_s30 = smul.u32 (%p111_p3), 12, %s2528_s21 }
  0x12   : > { %s2416_s6 = smul.u32 (%p111_p3), 384, %s210_s29 }
  0x13   : > { %s2613_s9 = scalar_lea.vmem (%p111_p3), %s3793_s3, %s2334_s30 }
  0x14   : > { %v230_v0 = vld [vmem:[%s2613_s9] sm:$0xff] (%p111_p3)  ;;  %v232_v1 = vld [vmem:[%s2613_s9 + $0x18] sm:$0xff] (%p111_p3)  ;;  %v234_v2 = vld [vmem:[%s2613_s9 + $0x30] sm:$0xff] (%p111_p3)  ;;  %s2618_s10 = scalar_lea.vmem (%p111_p3), [#allocation3], %s2416_s6 }
  0x15   : > { %231 = vst [vmem:[%s2618_s10] sm:$0xff] %v230_v0  ;;  %v236_v3 = vld [vmem:[%s2613_s9 + $0x48] sm:$0xff]  ;;  %v238_v4 = vld [vmem:[%s2613_s9 + $0x60] sm:$0xff]  ;;  %v240_v5 = vld [vmem:[%s2613_s9 + $0x78] sm:$0xff] }
  0x16   : > { %233 = vst [vmem:[%s2618_s10 + $0xc] sm:$0xff] %v232_v1  ;;  %v242_v6 = vld [vmem:[%s2613_s9 + $0x90] sm:$0xff]  ;;  %v244_v7 = vld [vmem:[%s2613_s9 + $0xa8] sm:$0xff]  ;;  %v246_v8 = vld [vmem:[%s2613_s9 + $0xc0] sm:$0xff] }
  0x17   : > { %235 = vst [vmem:[%s2618_s10 + $0x18] sm:$0xff] %v234_v2  ;;  %v248_v9 = vld [vmem:[%s2613_s9 + $0xd8] sm:$0xff]  ;;  %v250_v10 = vld [vmem:[%s2613_s9 + $0xf0] sm:$0xff]  ;;  %v252_v11 = vld [vmem:[%s2613_s9 + $0x108] sm:$0xff] }
  0x18   : > { %237 = vst [vmem:[%s2618_s10 + $0x24] sm:$0xff] %v236_v3  ;;  %v254_v12 = vld [vmem:[%s2613_s9 + $0x120] sm:$0xff]  ;;  %v256_v13 = vld [vmem:[%s2613_s9 + $0x138] sm:$0xff]  ;;  %v258_v14 = vld [vmem:[%s2613_s9 + $0x150] sm:$0xff] }
  0x19   : > { %239 = vst [vmem:[%s2618_s10 + $0x30] sm:$0xff] %v238_v4  ;;  %v260_v15 = vld [vmem:[%s2613_s9 + $0x168] sm:$0xff]  ;;  %v262_v16 = vld [vmem:[%s2613_s9 + $0x180] sm:$0xff]  ;;  %v264_v17 = vld [vmem:[%s2613_s9 + $0x198] sm:$0xff] }
  0x1a   : > { %241 = vst [vmem:[%s2618_s10 + $0x3c] sm:$0xff] %v240_v5  ;;  %v266_v18 = vld [vmem:[%s2613_s9 + $0x1b0] sm:$0xff]  ;;  %v268_v19 = vld [vmem:[%s2613_s9 + $0x1c8] sm:$0xff]  ;;  %v270_v20 = vld [vmem:[%s2613_s9 + $0x1e0] sm:$0xff] }
  0x1b   : > { %243 = vst [vmem:[%s2618_s10 + $0x48] sm:$0xff] %v242_v6  ;;  %v272_v21 = vld [vmem:[%s2613_s9 + $0x1f8] sm:$0xff]  ;;  %v274_v22 = vld [vmem:[%s2613_s9 + $0x210] sm:$0xff]  ;;  %v276_v23 = vld [vmem:[%s2613_s9 + $0x228] sm:$0xff] }
  0x1c   : > { %245 = vst [vmem:[%s2618_s10 + $0x54] sm:$0xff] %v244_v7  ;;  %v278_v24 = vld [vmem:[%s2613_s9 + $0x240] sm:$0xff]  ;;  %v280_v25 = vld [vmem:[%s2613_s9 + $0x258] sm:$0xff]  ;;  %v282_v26 = vld [vmem:[%s2613_s9 + $0x270] sm:$0xff] }
  0x1d   : > { %247 = vst [vmem:[%s2618_s10 + $0x60] sm:$0xff] %v246_v8  ;;  %v284_v27 = vld [vmem:[%s2613_s9 + $0x288] sm:$0xff]  ;;  %v286_v28 = vld [vmem:[%s2613_s9 + $0x2a0] sm:$0xff]  ;;  %v288_v29 = vld [vmem:[%s2613_s9 + $0x2b8] sm:$0xff] }
  0x1e   : > { %249 = vst [vmem:[%s2618_s10 + $0x6c] sm:$0xff] %v248_v9  ;;  %v290_v30 = vld [vmem:[%s2613_s9 + $0x2d0] sm:$0xff]  ;;  %v292_v31 = vld [vmem:[%s2613_s9 + $0x2e8] sm:$0xff]  ;;  %v1979_v33 = vld [vmem:[%s2613_s9 + $0x20] sm:$0xf] }
  0x1f   : > { %251 = vst [vmem:[%s2618_s10 + $0x78] sm:$0xff] %v250_v10  ;;  %v1977_v32 = vld [vmem:[%s2613_s9 + $0x8] sm:$0xf]  ;;  %v1981_v34 = vld [vmem:[%s2613_s9 + $0x38] sm:$0xf] }
  0x20   : > { %253 = vst [vmem:[%s2618_s10 + $0x84] sm:$0xff] %v252_v11  ;;  %v1983_v35 = vld [vmem:[%s2613_s9 + $0x50] sm:$0xf]  ;;  %v1985_v36 = vld [vmem:[%s2613_s9 + $0x68] sm:$0xf] }
  0x21   : > { %255 = vst [vmem:[%s2618_s10 + $0x90] sm:$0xff] %v254_v12  ;;  %v1987_v37 = vld [vmem:[%s2613_s9 + $0x80] sm:$0xf]  ;;  %v1989_v38 = vld [vmem:[%s2613_s9 + $0x98] sm:$0xf] }
  0x22   : > { %257 = vst [vmem:[%s2618_s10 + $0x9c] sm:$0xff] %v256_v13  ;;  %v1991_v39 = vld [vmem:[%s2613_s9 + $0xb0] sm:$0xf]  ;;  %v1993_v40 = vld [vmem:[%s2613_s9 + $0xc8] sm:$0xf] }
  0x23   : > { %259 = vst [vmem:[%s2618_s10 + $0xa8] sm:$0xff] %v258_v14  ;;  %v1995_v41 = vld [vmem:[%s2613_s9 + $0xe0] sm:$0xf]  ;;  %v1997_v42 = vld [vmem:[%s2613_s9 + $0xf8] sm:$0xf] }
  0x24   : > { %261 = vst [vmem:[%s2618_s10 + $0xb4] sm:$0xff] %v260_v15  ;;  %v1999_v43 = vld [vmem:[%s2613_s9 + $0x110] sm:$0xf]  ;;  %v2001_v44 = vld [vmem:[%s2613_s9 + $0x128] sm:$0xf] }
  0x25   : > { %263 = vst [vmem:[%s2618_s10 + $0xc0] sm:$0xff] %v262_v16  ;;  %v2003_v45 = vld [vmem:[%s2613_s9 + $0x140] sm:$0xf]  ;;  %v2005_v46 = vld [vmem:[%s2613_s9 + $0x158] sm:$0xf] }
  0x26   : > { %265 = vst [vmem:[%s2618_s10 + $0xcc] sm:$0xff] %v264_v17  ;;  %v2007_v47 = vld [vmem:[%s2613_s9 + $0x170] sm:$0xf]  ;;  %v2009_v48 = vld [vmem:[%s2613_s9 + $0x188] sm:$0xf] }
  0x27   : > { %267 = vst [vmem:[%s2618_s10 + $0xd8] sm:$0xff] %v266_v18  ;;  %v2011_v49 = vld [vmem:[%s2613_s9 + $0x1a0] sm:$0xf]  ;;  %v2013_v50 = vld [vmem:[%s2613_s9 + $0x1b8] sm:$0xf] }
  0x28   : > { %269 = vst [vmem:[%s2618_s10 + $0xe4] sm:$0xff] %v268_v19  ;;  %v2015_v51 = vld [vmem:[%s2613_s9 + $0x1d0] sm:$0xf]  ;;  %v2017_v52 = vld [vmem:[%s2613_s9 + $0x1e8] sm:$0xf] }
  0x29   : > { %271 = vst [vmem:[%s2618_s10 + $0xf0] sm:$0xff] %v270_v20  ;;  %v2019_v53 = vld [vmem:[%s2613_s9 + $0x200] sm:$0xf]  ;;  %v2021_v54 = vld [vmem:[%s2613_s9 + $0x218] sm:$0xf] }
  0x2a   : > { %273 = vst [vmem:[%s2618_s10 + $0xfc] sm:$0xff] %v272_v21  ;;  %v2023_v55 = vld [vmem:[%s2613_s9 + $0x230] sm:$0xf]  ;;  %v2025_v56 = vld [vmem:[%s2613_s9 + $0x248] sm:$0xf] }
  0x2b   : > { %275 = vst [vmem:[%s2618_s10 + $0x108] sm:$0xff] %v274_v22  ;;  %v2027_v57 = vld [vmem:[%s2613_s9 + $0x260] sm:$0xf]  ;;  %v2029_v58 = vld [vmem:[%s2613_s9 + $0x278] sm:$0xf] }
  0x2c   : > { %277 = vst [vmem:[%s2618_s10 + $0x114] sm:$0xff] %v276_v23  ;;  %v2031_v59 = vld [vmem:[%s2613_s9 + $0x290] sm:$0xf]  ;;  %v2033_v60 = vld [vmem:[%s2613_s9 + $0x2a8] sm:$0xf] }
  0x2d   : > { %279 = vst [vmem:[%s2618_s10 + $0x120] sm:$0xff] %v278_v24  ;;  %v2035_v61 = vld [vmem:[%s2613_s9 + $0x2c0] sm:$0xf]  ;;  %v2037_v62 = vld [vmem:[%s2613_s9 + $0x2d8] sm:$0xf] }
  0x2e   : > { %281 = vst [vmem:[%s2618_s10 + $0x12c] sm:$0xff] %v280_v25  ;;  %v2039_v63 = vld [vmem:[%s2613_s9 + $0x2f0] sm:$0xf] }
  0x2f   : > { %283 = vst [vmem:[%s2618_s10 + $0x138] sm:$0xff] %v282_v26 }
  0x30   : > { %285 = vst [vmem:[%s2618_s10 + $0x144] sm:$0xff] %v284_v27 }
  0x31   : > { %287 = vst [vmem:[%s2618_s10 + $0x150] sm:$0xff] %v286_v28 }
  0x32   : > { %289 = vst [vmem:[%s2618_s10 + $0x15c] sm:$0xff] %v288_v29 }
  0x33   : > { %291 = vst [vmem:[%s2618_s10 + $0x168] sm:$0xff] %v290_v30 }
  0x34   : > { %293 = vst [vmem:[%s2618_s10 + $0x174] sm:$0xff] %v292_v31 }
  0x35   : > { %1978 = vst [vmem:[%s2618_s10 + $0x8] sm:$0xf] %v1977_v32 }
  0x36   : > { %1980 = vst [vmem:[%s2618_s10 + $0x14] sm:$0xf] %v1979_v33 }
  0x37   : > { %1982 = vst [vmem:[%s2618_s10 + $0x20] sm:$0xf] %v1981_v34 }
  0x38   : > { %1984 = vst [vmem:[%s2618_s10 + $0x2c] sm:$0xf] %v1983_v35 }
  0x39   : > { %1986 = vst [vmem:[%s2618_s10 + $0x38] sm:$0xf] %v1985_v36 }
  0x3a   : > { %1988 = vst [vmem:[%s2618_s10 + $0x44] sm:$0xf] %v1987_v37 }
  0x3b   : > { %1990 = vst [vmem:[%s2618_s10 + $0x50] sm:$0xf] %v1989_v38 }
  0x3c   : > { %1992 = vst [vmem:[%s2618_s10 + $0x5c] sm:$0xf] %v1991_v39 }
  0x3d   : > { %1994 = vst [vmem:[%s2618_s10 + $0x68] sm:$0xf] %v1993_v40 }
  0x3e   : > { %1996 = vst [vmem:[%s2618_s10 + $0x74] sm:$0xf] %v1995_v41 }
  0x3f   : > { %1998 = vst [vmem:[%s2618_s10 + $0x80] sm:$0xf] %v1997_v42 }
  0x40   : > { %2000 = vst [vmem:[%s2618_s10 + $0x8c] sm:$0xf] %v1999_v43 }
  0x41   : > { %2002 = vst [vmem:[%s2618_s10 + $0x98] sm:$0xf] %v2001_v44 }
  0x42   : > { %2004 = vst [vmem:[%s2618_s10 + $0xa4] sm:$0xf] %v2003_v45 }
  0x43   : > { %2006 = vst [vmem:[%s2618_s10 + $0xb0] sm:$0xf] %v2005_v46 }
  0x44   : > { %2008 = vst [vmem:[%s2618_s10 + $0xbc] sm:$0xf] %v2007_v47 }
  0x45   : > { %2010 = vst [vmem:[%s2618_s10 + $0xc8] sm:$0xf] %v2009_v48 }
  0x46   : > { %2012 = vst [vmem:[%s2618_s10 + $0xd4] sm:$0xf] %v2011_v49 }
  0x47   : > { %2014 = vst [vmem:[%s2618_s10 + $0xe0] sm:$0xf] %v2013_v50 }
  0x48   : > { %2016 = vst [vmem:[%s2618_s10 + $0xec] sm:$0xf] %v2015_v51 }
  0x49   : > { %2018 = vst [vmem:[%s2618_s10 + $0xf8] sm:$0xf] %v2017_v52 }
  0x4a   : > { %2020 = vst [vmem:[%s2618_s10 + $0x104] sm:$0xf] %v2019_v53 }
  0x4b   : > { %2022 = vst [vmem:[%s2618_s10 + $0x110] sm:$0xf] %v2021_v54 }
  0x4c   : > { %2024 = vst [vmem:[%s2618_s10 + $0x11c] sm:$0xf] %v2023_v55 }
  0x4d   : > { %2026 = vst [vmem:[%s2618_s10 + $0x128] sm:$0xf] %v2025_v56 }
  0x4e   : > { %2028 = vst [vmem:[%s2618_s10 + $0x134] sm:$0xf] %v2027_v57 }
  0x4f   : > { %2030 = vst [vmem:[%s2618_s10 + $0x140] sm:$0xf] %v2029_v58 }
  0x50   : > { %2032 = vst [vmem:[%s2618_s10 + $0x14c] sm:$0xf] %v2031_v59 }
  0x51   : > { %2034 = vst [vmem:[%s2618_s10 + $0x158] sm:$0xf] %v2033_v60 }
  0x52   : > { %2036 = vst [vmem:[%s2618_s10 + $0x164] sm:$0xf] %v2035_v61 }
  0x53   : > { %2038 = vst [vmem:[%s2618_s10 + $0x170] sm:$0xf] %v2037_v62 }
  0x54   : > { %2040 = vst [vmem:[%s2618_s10 + $0x17c] sm:$0xf] %v2039_v63 }
  0x55 PF: > { %p2041_p8 = scmp.ge.s32.totalorder %s2532_s22, 1  ;;  %p378_p9 = scmp.lt.s32.totalorder %s2532_s22, 3 }
  0x57   : > { %p379_p10 = pnand %p2041_p8, %p378_p9 }
  0x58   : > { %s385_s11 = sand.u32 (!%p379_p10), 1, %s2516_s18   ;;  %s429_s12 = smul.u32 (!%p379_p10), 3, %s2524_s20 }
  0x59   : > { %382 = sbr.rel (%p379_p10) target bundleno = 805 (0x325), region = 62  ;;  %p2042_p12 = scmp.ne.s32.totalorder (!%p379_p10), %s2524_s20, 0 }
  0x5a   : > { %s2417_s13 = smul.u32 (!%p379_p10), 384, %s385_s11  ;;  %p430_p11 = scmp.lt.s32.totalorder (!%p379_p10), %s429_s12, 5 }
  0x5b   : > { %s2418_s14 = smul.u32 (!%p379_p10), 192, %s385_s11 }
  0x5c   : > { %s2755_s24 = scalar_lea.vmem (!%p379_p10), [#allocation3], %s2417_s13 }
  0x5d   : > { %s2757_s25 = scalar_lea.vmem (!%p379_p10), [#allocation4], %s2418_s14 }
  0x5e   : > { %s3804_s12 = smov (!%p430_p11, %s429_s12), 5  ;;  %439 = sbr.rel (%p2042_p12) target bundleno = 439 (0x1b7), region = 70 }
  0x5f   : > { %s432_s17 = scalar_lea.vmem %s3794_s4, %s3804_s12 }
  0x63   : > { %v2763_v0 = vld [vmem:[%s3790_s0 + $0x40] sm:$0xff]  ;;  %v2768_v1 = vld [vmem:[%s3790_s0 + $0x48] sm:$0xff]  ;;  %v2799_v9 = vld [vmem:[%s3790_s0 + $0x50] sm:$0xff]  ;;  %v2534_v48 = vmov 256.0  }
  0x64   : > { %v2773_v2 = vld [vmem:[%s3790_s0 + $0x20] sm:$0xff]  ;;  %v486_v3 = vadd.f32 %v2768_v1, %v2763_v0  ;;  %v2780_v4 = vld [vmem:[%s3790_s0 + $0x28] sm:$0xff]  ;;  %v2804_v10 = vld [vmem:[%s3790_s0 + $0x58] sm:$0xff]  ;;  %2460 = vrcp.f32 %v2534_v48 }
  0x65   : > { %v2785_v5 = vld [vmem:[%s3790_s0] sm:$0xff]  ;;  %v2790_v6 = vld [vmem:[%s3790_s0 + $0x8] sm:$0xff]  ;;  %v480_v7 = vadd.f32 %v2780_v4, %v2773_v2  ;;  %v2809_v11 = vld [vmem:[%s3790_s0 + $0x30] sm:$0xff]  ;;  %v489_v15 = vadd.f32 %v2804_v10, %v2799_v9 }
  0x66   : > { %v474_v8 = vadd.f32 %v2790_v6, %v2785_v5  ;;  %487 = vadd.xlane.f32.xlu2 %v486_v3  ;;  %v2814_v12 = vld [vmem:[%s3790_s0 + $0x38] sm:$0xff]  ;;  %v2819_v13 = vld [vmem:[%s3790_s0 + $0x10] sm:$0xff]  ;;  %v2835_v18 = vld [vmem:[%s3790_s0 + $0x80] sm:$0xff] }
  0x67   : > { %481 = vadd.xlane.f32.xlu1 %v480_v7  ;;  %v2824_v14 = vld [vmem:[%s3790_s0 + $0x18] sm:$0xff]  ;;  %v483_v16 = vadd.f32 %v2814_v12, %v2809_v11  ;;  %v2840_v19 = vld [vmem:[%s3790_s0 + $0x88] sm:$0xff]  ;;  %v2845_v20 = vld [vmem:[%s3790_s0 + $0x60] sm:$0xff] }
  0x68   : > { %475 = vadd.xlane.f32.xlu0 %v474_v8  ;;  %v477_v17 = vadd.f32 %v2824_v14, %v2819_v13  ;;  %v2850_v21 = vld [vmem:[%s3790_s0 + $0x68] sm:$0xff]  ;;  %v2855_v22 = vld [vmem:[%s3790_s0 + $0x70] sm:$0xff]  ;;  %v2860_v23 = vld [vmem:[%s3790_s0 + $0x78] sm:$0xff]  ;;  %v498_v24 = vadd.f32 %v2840_v19, %v2835_v18 }
  0x69   : > { %v492_v25 = vadd.f32 %v2850_v21, %v2845_v20  ;;  %v495_v26 = vadd.f32 %v2860_v23, %v2855_v22  ;;  %v2871_v27 = vld [vmem:[%s3790_s0 + $0xb0] sm:$0xff]  ;;  %v2876_v28 = vld [vmem:[%s3790_s0 + $0xb8] sm:$0xff]  ;;  %v2891_v31 = vld [vmem:[%s3790_s0 + $0xa0] sm:$0xff] }
  0x6a   : > { %v2881_v29 = vld [vmem:[%s3790_s0 + $0x90] sm:$0xff]  ;;  %v2886_v30 = vld [vmem:[%s3790_s0 + $0x98] sm:$0xff]  ;;  %v2896_v32 = vld [vmem:[%s3790_s0 + $0xa8] sm:$0xff]  ;;  %v507_v33 = vadd.f32 %v2876_v28, %v2871_v27  ;;  %v2461_v49 = vpop.eup %2460 }
  0x6b   : > { %v501_v34 = vadd.f32 %v2886_v30, %v2881_v29  ;;  %v504_v35 = vadd.f32 %v2896_v32, %v2891_v31  ;;  %v2907_v36 = vld [vmem:[%s3790_s0 + $0xe0] sm:$0xff]  ;;  %v2912_v37 = vld [vmem:[%s3790_s0 + $0xe8] sm:$0xff]  ;;  %v2927_v40 = vld [vmem:[%s3790_s0 + $0xd0] sm:$0xff]  ;;  %v523_v50 = vmul.f32 256.0, %v2461_v49  ;;  %vm527_vm0 = vweird.f32 %v2461_v49 }
  0x6c   : > { %v2917_v38 = vld [vmem:[%s3790_s0 + $0xc0] sm:$0xff]  ;;  %v2922_v39 = vld [vmem:[%s3790_s0 + $0xc8] sm:$0xff]  ;;  %v2932_v41 = vld [vmem:[%s3790_s0 + $0xd8] sm:$0xff]  ;;  %v516_v42 = vadd.f32 %v2912_v37, %v2907_v36 }
  0x6d   : > { %v510_v43 = vadd.f32 %v2922_v39, %v2917_v38  ;;  %v513_v44 = vadd.f32 %v2932_v41, %v2927_v40  ;;  %v2943_v45 = vld [vmem:[%s3790_s0 + $0xf0] sm:$0xff]  ;;  %v2948_v46 = vld [vmem:[%s3790_s0 + $0xf8] sm:$0xff]  ;;  %v524_v51 = vsub.f32 1.0, %v523_v50 }
  0x6e   : > { %490 = vadd.xlane.f32.xlu2 %v489_v15  ;;  %v519_v47 = vadd.f32 %v2948_v46, %v2943_v45 }
  0x6f   : > { %484 = vadd.xlane.f32.xlu1 %v483_v16  ;;  %v525_v52 = vmul.f32 %v2461_v49, %v524_v51 }
  0x70   : > { %478 = vadd.xlane.f32.xlu0 %v477_v17 }
  0x71   : > { %v526_v53 = vadd.f32 %v2461_v49, %v525_v52 }
  0x73   : > { %v2952_v54 = vsel %vm527_vm0, %v2461_v49, %v526_v53 }
  0x76   : > { %499 = vadd.xlane.f32.xlu2 %v498_v24 }
  0x77   : > { %496 = vadd.xlane.f32.xlu1 %v495_v26 }
  0x78   : > { %493 = vadd.xlane.f32.xlu0 %v492_v25 }
  0x7e   : > { %508 = vadd.xlane.f32.xlu2 %v507_v33 }
  0x7f   : > { %505 = vadd.xlane.f32.xlu1 %v504_v35 }
  0x80   : > { %502 = vadd.xlane.f32.xlu0 %v501_v34 }
  0x86   : > { %517 = vadd.xlane.f32.xlu2 %v516_v42 }
  0x87   : > { %514 = vadd.xlane.f32.xlu1 %v513_v44 }
  0x88   : > { %511 = vadd.xlane.f32.xlu0 %v510_v43 }
  0x90   : > { %520 = vadd.xlane.f32.xlu0 %v519_v47 }
  0xd9   : > { %v488_v55 = vpop.xlane.xlu2 %487 }
  0xda   : > { %v482_v56 = vpop.xlane.xlu1 %481  ;;  %v533_v44 = vmul.f32 %v2952_v54, %v488_v55 }
  0xdb   : > { %v476_v57 = vpop.xlane.xlu0 %475  ;;  %v531_v58 = vmul.f32 %v2952_v54, %v482_v56 }
  0xdc   : > { %v529_v59 = vmul.f32 %v2952_v54, %v476_v57  ;;  %v3011_v51 = vsub.f32 %v2763_v0, %v533_v44  ;;  %v3014_v52 = vsub.f32 %v2768_v1, %v533_v44 }
  0xdd   : > { %v2957_v60 = vsub.f32 %v2773_v2, %v531_v58  ;;  %v2960_v61 = vsub.f32 %v2780_v4, %v531_v58 }
  0xde   : > { %v2963_v62 = vsub.f32 %v2785_v5, %v529_v59  ;;  %v2966_v63 = vsub.f32 %v2790_v6, %v529_v59 }
  0xdf   : > { %v581_v3 = vmul.f32 %v2957_v60, %v2957_v60  ;;  %v582_v7 = vmul.f32 %v2960_v61, %v2960_v61 }
  0xe0   : > { %v577_v8 = vmul.f32 %v2963_v62, %v2963_v62  ;;  %v578_v2 = vmul.f32 %v2966_v63, %v2966_v63 }
  0xe1   : > { %v491_v4 = vpop.xlane.xlu2 %490  ;;  %v615_v15 = vadd.f32 %v582_v7, %v581_v3 }
  0xe2   : > { %v609_v16 = vadd.f32 %v578_v2, %v577_v8  ;;  %v534_v5 = vmul.f32 %v2952_v54, %v491_v4  ;;  %v485_v17 = vpop.xlane.xlu1 %484 }
  0xe3   : > { %v479_v6 = vpop.xlane.xlu0 %478  ;;  %v532_v24 = vmul.f32 %v2952_v54, %v485_v17  ;;  %616 = vadd.xlane.f32.xlu0 %v615_v15 }
  0xe4   : > { %v530_v25 = vmul.f32 %v2952_v54, %v479_v6  ;;  %610 = vadd.xlane.f32.xlu1 %v609_v16  ;;  %v2980_v26 = vsub.f32 %v2799_v9, %v534_v5  ;;  %v2983_v33 = vsub.f32 %v2804_v10, %v534_v5 }
  0xe5   : > { %v2986_v34 = vsub.f32 %v2809_v11, %v532_v24  ;;  %v2989_v35 = vsub.f32 %v2814_v12, %v532_v24 }
  0xe6   : > { %v2992_v42 = vsub.f32 %v2819_v13, %v530_v25  ;;  %v2995_v43 = vsub.f32 %v2824_v14, %v530_v25  ;;  %v587_v9 = vmul.f32 %v2980_v26, %v2980_v26  ;;  %v588_v10 = vmul.f32 %v2983_v33, %v2983_v33 }
  0xe7   : > { %v583_v11 = vmul.f32 %v2986_v34, %v2986_v34  ;;  %v584_v12 = vmul.f32 %v2989_v35, %v2989_v35 }
  0xe8   : > { %v579_v13 = vmul.f32 %v2992_v42, %v2992_v42  ;;  %v580_v14 = vmul.f32 %v2995_v43, %v2995_v43  ;;  %v624_v47 = vadd.f32 %v588_v10, %v587_v9 }
  0xe9   : > { %v500_v48 = vpop.xlane.xlu2 %499  ;;  %v618_v49 = vadd.f32 %v584_v12, %v583_v11 }
  0xea   : > { %v612_v50 = vadd.f32 %v580_v14, %v579_v13  ;;  %v537_v53 = vmul.f32 %v2952_v54, %v500_v48  ;;  %v497_v56 = vpop.xlane.xlu1 %496 }
  0xeb   : > { %v494_v55 = vpop.xlane.xlu0 %493  ;;  %625 = vadd.xlane.f32.xlu0 %v624_v47  ;;  %v536_v0 = vmul.f32 %v2952_v54, %v497_v56 }
  0xec   : > { %v535_v57 = vmul.f32 %v2952_v54, %v494_v55  ;;  %619 = vadd.xlane.f32.xlu1 %v618_v49  ;;  %v3019_v58 = vsub.f32 %v2835_v18, %v537_v53  ;;  %v3022_v59 = vsub.f32 %v2840_v19, %v537_v53  ;;  %613 = vadd.xlane.f32.xlu2 %v612_v50 }
  0xed   : > { %v585_v18 = vmul.f32 %v3011_v51, %v3011_v51  ;;  %v586_v19 = vmul.f32 %v3014_v52, %v3014_v52  ;;  %v3047_v4 = vsub.f32 %v2860_v23, %v536_v0 }
  0xee   : > { %v3026_v1 = vsub.f32 %v2845_v20, %v535_v57  ;;  %v3029_v3 = vsub.f32 %v2850_v21, %v535_v57  ;;  %v593_v7 = vmul.f32 %v3019_v58, %v3019_v58  ;;  %v594_v8 = vmul.f32 %v3022_v59, %v3022_v59 }
  0xef   : > { %v3044_v21 = vsub.f32 %v2855_v22, %v536_v0  ;;  %v621_v24 = vadd.f32 %v586_v19, %v585_v18  ;;  %v592_v11 = vmul.f32 %v3047_v4, %v3047_v4 }
  0xf0   : > { %v589_v2 = vmul.f32 %v3026_v1, %v3026_v1  ;;  %v590_v20 = vmul.f32 %v3029_v3, %v3029_v3  ;;  %v633_v15 = vadd.f32 %v594_v8, %v593_v7 }
  0xf1   : > { %v509_v16 = vpop.xlane.xlu2 %508  ;;  %v591_v10 = vmul.f32 %v3044_v21, %v3044_v21 }
  0xf2   : > { %v627_v5 = vadd.f32 %v590_v20, %v589_v2  ;;  %v540_v17 = vmul.f32 %v2952_v54, %v509_v16  ;;  %v506_v25 = vpop.xlane.xlu1 %505 }
  0xf3   : > { %v503_v6 = vpop.xlane.xlu0 %502  ;;  %634 = vadd.xlane.f32.xlu0 %v633_v15  ;;  %v539_v9 = vmul.f32 %v2952_v54, %v506_v25  ;;  %v630_v49 = vadd.f32 %v592_v11, %v591_v10 }
  0xf4   : > { %v538_v44 = vmul.f32 %v2952_v54, %v503_v6  ;;  %628 = vadd.xlane.f32.xlu1 %v627_v5  ;;  %v3053_v22 = vsub.f32 %v2871_v27, %v540_v17  ;;  %v3056_v23 = vsub.f32 %v2876_v28, %v540_v17  ;;  %622 = vadd.xlane.f32.xlu2 %v621_v24 }
  0xf5   : > { %v3073_v14 = vsub.f32 %v2891_v31, %v539_v9 }
  0xf6   : > { %v3063_v12 = vsub.f32 %v2881_v29, %v538_v44  ;;  %v3066_v13 = vsub.f32 %v2886_v30, %v538_v44  ;;  %v599_v27 = vmul.f32 %v3053_v22, %v3053_v22  ;;  %v600_v28 = vmul.f32 %v3056_v23, %v3056_v23 }
  0xf7   : > { %v3080_v29 = vsub.f32 %v2896_v32, %v539_v9  ;;  %v597_v0 = vmul.f32 %v3073_v14, %v3073_v14 }
  0xf8   : > { %v595_v47 = vmul.f32 %v3063_v12, %v3063_v12  ;;  %v596_v48 = vmul.f32 %v3066_v13, %v3066_v13  ;;  %v642_v30 = vadd.f32 %v600_v28, %v599_v27 }
  0xf9   : > { %v518_v50 = vpop.xlane.xlu2 %517  ;;  %v598_v18 = vmul.f32 %v3080_v29, %v3080_v29 }
  0xfa   : > { %v636_v53 = vadd.f32 %v596_v48, %v595_v47  ;;  %v543_v55 = vmul.f32 %v2952_v54, %v518_v50  ;;  %v515_v57 = vpop.xlane.xlu1 %514 }
  0xfb   : > { %v512_v56 = vpop.xlane.xlu0 %511  ;;  %643 = vadd.xlane.f32.xlu0 %v642_v30  ;;  %v542_v8 = vmul.f32 %v2952_v54, %v515_v57  ;;  %v639_v5 = vadd.f32 %v598_v18, %v597_v0 }
  0xfc   : > { %v541_v31 = vmul.f32 %v2952_v54, %v512_v56  ;;  %637 = vadd.xlane.f32.xlu1 %v636_v53  ;;  %v3087_v7 = vsub.f32 %v2907_v36, %v543_v55  ;;  %v3090_v32 = vsub.f32 %v2912_v37, %v543_v55  ;;  %631 = vadd.xlane.f32.xlu2 %v630_v49 }
  0xfd   : > { %v3110_v16 = vsub.f32 %v2927_v40, %v542_v8 }
  0xfe   : > { %v3096_v19 = vsub.f32 %v2917_v38, %v541_v31  ;;  %v3099_v2 = vsub.f32 %v2922_v39, %v541_v31  ;;  %v605_v20 = vmul.f32 %v3087_v7, %v3087_v7  ;;  %v606_v36 = vmul.f32 %v3090_v32, %v3090_v32 }
  0xff   : > { %v3113_v38 = vsub.f32 %v2932_v41, %v542_v8  ;;  %v603_v25 = vmul.f32 %v3110_v16, %v3110_v16 }
 0x100   : > { %v601_v37 = vmul.f32 %v3096_v19, %v3096_v19  ;;  %v602_v15 = vmul.f32 %v3099_v2, %v3099_v2  ;;  %v651_v39 = vadd.f32 %v606_v36, %v605_v20 }
 0x101   : > { %v604_v44 = vmul.f32 %v3113_v38, %v3113_v38 }
 0x102   : > { %v645_v17 = vadd.f32 %v602_v15, %v601_v37  ;;  %v472_v37 = vld [vmem:[%s3791_s1] sm:$0x3] }
 0x103   : > { %v521_v6 = vpop.xlane.xlu0 %520  ;;  %652 = vadd.xlane.f32.xlu0 %v651_v39  ;;  %v648_v11 = vadd.f32 %v604_v44, %v603_v25  ;;  %v473_v39 = vld [vmem:[%s3792_s2] sm:$0x3] }
 0x104   : > { %v544_v24 = vmul.f32 %v2952_v54, %v521_v6  ;;  %646 = vadd.xlane.f32.xlu1 %v645_v17  ;;  %640 = vadd.xlane.f32.xlu2 %v639_v5  ;;  %v3150_v6 = vperm.slane %v472_v37, 0 }
 0x106   : > { %v3121_v40 = vsub.f32 %v2943_v45, %v544_v24  ;;  %v3124_v41 = vsub.f32 %v2948_v46, %v544_v24  ;;  %v3152_v24 = vperm.slane %v472_v37, 1 }
 0x108   : > { %v607_v9 = vmul.f32 %v3121_v40, %v3121_v40  ;;  %v608_v10 = vmul.f32 %v3124_v41, %v3124_v41 }
 0x10a   : > { %v654_v27 = vadd.f32 %v608_v10, %v607_v9  ;;  %v3154_v9 = vperm.slane %v473_v39, 0  ;;  %v3156_v10 = vperm.slane %v473_v39, 1 }
 0x10c   : > { %655 = vadd.xlane.f32.xlu1 %v654_v27  ;;  %649 = vadd.xlane.f32.xlu2 %v648_v11 }
 0x156   : > { %v617_v47 = vpop.xlane.xlu0 %616 }
 0x157   : > { %v611_v28 = vpop.xlane.xlu1 %610  ;;  %v659_v45 = vmul.f32 %v617_v47, %v2952_v54 }
 0x158   : > { %v657_v48 = vmul.f32 %v611_v28, %v2952_v54 }
 0x159   : > { %v675_v49 = vadd.f32 1e-05, %v659_v45 }
 0x15a   : > { %v673_v30 = vadd.f32 1e-05, %v657_v48 }
 0x15b   : > { %vm715_vm3 = vweird.f32 %v675_v49 }
 0x15c   : > { %2462 = vrsqrt.f32 %v673_v30  ;;  %vm695_vm1 = vweird.f32 %v673_v30 }
 0x15d   : > { %2464 = vrsqrt.f32 %v675_v49 }
 0x15e   : > { %v626_v50 = vpop.xlane.xlu0 %625 }
 0x15f   : > { %v620_v46 = vpop.xlane.xlu1 %619  ;;  %v614_v55 = vpop.xlane.xlu2 %613  ;;  %v662_v56 = vmul.f32 %v626_v50, %v2952_v54 }
 0x160   : > { %v660_v53 = vmul.f32 %v620_v46, %v2952_v54  ;;  %v658_v57 = vmul.f32 %v614_v55, %v2952_v54 }
 0x161   : > { %v3137_v8 = vadd.f32 1e-05, %v662_v56 }
 0x162   : > { %v2463_v31 = vpop.eup %2462  ;;  %v3135_v0 = vadd.f32 1e-05, %v660_v53  ;;  %v3139_v36 = vadd.f32 1e-05, %v658_v57 }
 0x163   : > { %v2465_v18 = vpop.eup %2464  ;;  %v690_v20 = vmul.f32 %v2463_v31, %v673_v30  ;;  %vm696_vm2 = vweird.f32 %v2463_v31  ;;  %vm745_vm7 = vweird.f32 %v3137_v8 }
 0x164   : > { %v710_v15 = vmul.f32 %v2465_v18, %v675_v49  ;;  %2466 = vrsqrt.f32 %v3135_v0  ;;  %vm716_vm4 = vweird.f32 %v2465_v18  ;;  %vm725_vm5 = vweird.f32 %v3135_v0  ;;  %vm697_vm8 = vmor %vm695_vm1, %vm696_vm2 }
 0x165   : > { %v691_v5 = vmul.f32 %v2463_v31, %v690_v20  ;;  %2468 = vrsqrt.f32 %v3139_v36  ;;  %vm717_vm9 = vmor %vm715_vm3, %vm716_vm4  ;;  %vm705_vm13 = vweird.f32 %v3139_v36 }
 0x166   : > { %v711_v17 = vmul.f32 %v2465_v18, %v710_v15  ;;  %2470 = vrsqrt.f32 %v3137_v8  ;;  %v635_v47 = vpop.xlane.xlu0 %634 }
 0x167   : > { %v692_v25 = vmul.f32 0.5, %v691_v5  ;;  %v629_v44 = vpop.xlane.xlu1 %628  ;;  %v623_v27 = vpop.xlane.xlu2 %622  ;;  %v665_v20 = vmul.f32 %v635_v47, %v2952_v54 }
 0x168   : > { %v712_v11 = vmul.f32 0.5, %v711_v17  ;;  %v663_v28 = vmul.f32 %v629_v44, %v2952_v54  ;;  %v661_v45 = vmul.f32 %v623_v27, %v2952_v54 }
 0x169   : > { %v693_v48 = vsub.f32 1.5, %v692_v25 }
 0x16a   : > { %v2467_v46 = vpop.eup %2466  ;;  %v713_v50 = vsub.f32 1.5, %v712_v11  ;;  %v3160_v53 = vadd.f32 1e-05, %v663_v28  ;;  %v3169_v5 = vadd.f32 1e-05, %v661_v45 }
 0x16b   : > { %v2469_v55 = vpop.eup %2468  ;;  %v694_v56 = vmul.f32 %v2463_v31, %v693_v48  ;;  %v720_v57 = vmul.f32 %v2467_v46, %v3135_v0  ;;  %vm726_vm6 = vweird.f32 %v2467_v46 }
 0x16c   : > { %v2471_v37 = vpop.eup %2470  ;;  %v714_v15 = vmul.f32 %v2465_v18, %v713_v50  ;;  %v700_v39 = vmul.f32 %v2469_v55, %v3139_v36  ;;  %2472 = vrsqrt.f32 %v3160_v53  ;;  %vm706_vm10 = vweird.f32 %v2469_v55  ;;  %vm727_vm12 = vmor %vm725_vm5, %vm726_vm6 }
 0x16d   : > { %v698_v17 = vsel %vm697_vm8, %v2463_v31, %v694_v56  ;;  %v721_v25 = vmul.f32 %v2467_v46, %v720_v57  ;;  %v740_v44 = vmul.f32 %v2471_v37, %v3137_v8  ;;  %2474 = vrsqrt.f32 %v3169_v5  ;;  %vm707_vm14 = vmor %vm705_vm13, %vm706_vm10 }
 0x16e   : > { %v849_v11 = vmul.f32 %v698_v17, %v2963_v62  ;;  %v850_v30 = vmul.f32 %v698_v17, %v2966_v63  ;;  %v718_v27 = vsel %vm717_vm9, %v2465_v18, %v714_v15  ;;  %v701_v28 = vmul.f32 %v2469_v55, %v700_v39 }
 0x16f   : > { %v853_v47 = vmul.f32 %v718_v27, %v2957_v60  ;;  %v854_v48 = vmul.f32 %v718_v27, %v2960_v61  ;;  %v722_v45 = vmul.f32 0.5, %v721_v25  ;;  %v741_v50 = vmul.f32 %v2471_v37, %v740_v44  ;;  %v3182_v57 = vpop.xlane.xlu1 %637  ;;  %v632_v25 = vpop.xlane.xlu2 %631 }
 0x170   : > { %v886_v31 = vmul.f32 %v3150_v6, %v849_v11  ;;  %v887_v49 = vmul.f32 %v3152_v24, %v850_v30  ;;  %v702_v56 = vmul.f32 0.5, %v701_v28  ;;  %vm746_vm11 = vweird.f32 %v2471_v37 }
 0x171   : > { %v890_v62 = vmul.f32 %v3150_v6, %v853_v47  ;;  %v891_v63 = vmul.f32 %v3152_v24, %v854_v48  ;;  %v723_v18 = vsub.f32 1.5, %v722_v45  ;;  %v742_v15 = vmul.f32 0.5, %v741_v50  ;;  %v644_v45 = vpop.xlane.xlu0 %643  ;;  %vm747_vm15 = vmor %vm745_vm7, %vm746_vm11 }
 0x172   : > { %v3186_v60 = vpop.eup %2472  ;;  %v923_v61 = vadd.f32 %v3154_v9, %v886_v31  ;;  %v924_v39 = vadd.f32 %v3156_v10, %v887_v49  ;;  %v703_v17 = vsub.f32 1.5, %v702_v56  ;;  %v3199_v56 = vadd.f32 1e-05, %v665_v20 }
 0x173   : > { %v927_v44 = vadd.f32 %v3154_v9, %v890_v62  ;;  %v928_v11 = vadd.f32 %v3156_v10, %v891_v63  ;;  %v724_v30 = vmul.f32 %v2467_v46, %v723_v18  ;;  %v743_v27 = vsub.f32 1.5, %v742_v15  ;;  %v2475_v62 = vpop.eup %2474 }
 0x174   : > { %v955_v28 = vpack.c.bf16 %v924_v39, %v923_v61  ;;  %v704_v47 = vmul.f32 %v2469_v55, %v703_v17  ;;  %v750_v48 = vmul.f32 %v3186_v60, %v3160_v53  ;;  %v730_v61 = vmul.f32 %v2475_v62, %v3169_v5 }
 0x175   : > { %v957_v50 = vpack.c.bf16 %v928_v11, %v927_v44  ;;  %v728_v31 = vsel %vm727_vm12, %v2467_v46, %v724_v30  ;;  %v744_v49 = vmul.f32 %v2471_v37, %v743_v27  ;;  %vm735_vm0 = vweird.f32 %v3169_v5 }
 0x176   : > { %971 = vst [vmem:[#allocation2] sm:$0xff] %v955_v28  ;;  %v855_v63 = vmul.f32 %v728_v31, %v2986_v34  ;;  %v856_v0 = vmul.f32 %v728_v31, %v2989_v35  ;;  %v708_v18 = vsel %vm707_vm14, %v2469_v55, %v704_v47  ;;  %v751_v36 = vmul.f32 %v3186_v60, %v750_v48 }
 0x177   : > { %973 = vst [vmem:[#allocation2 + $0x10] sm:$0xff] %v957_v50  ;;  %v851_v46 = vmul.f32 %v708_v18, %v2992_v42  ;;  %v852_v15 = vmul.f32 %v708_v18, %v2995_v43  ;;  %v748_v20 = vsel %vm747_vm15, %v2471_v37, %v744_v49  ;;  %v731_v42 = vmul.f32 %v2475_v62, %v730_v61  ;;  %v647_v30 = vpop.xlane.xlu1 %646  ;;  %v641_v31 = vpop.xlane.xlu2 %640 }
 0x178   : > { %v892_v34 = vmul.f32 %v3150_v6, %v855_v63  ;;  %v893_v35 = vmul.f32 %v3152_v24, %v856_v0  ;;  %v859_v55 = vmul.f32 %v748_v20, %v2980_v26  ;;  %v860_v8 = vmul.f32 %v748_v20, %v2983_v33 }
 0x179   : > { %v888_v39 = vmul.f32 %v3150_v6, %v851_v46  ;;  %v889_v17 = vmul.f32 %v3152_v24, %v852_v15  ;;  %vm756_vm1 = vweird.f32 %v3186_v60  ;;  %v732_v27 = vmul.f32 0.5, %v731_v42  ;;  %v653_v15 = vpop.xlane.xlu0 %652 }
 0x17a   : > { %v929_v43 = vadd.f32 %v3154_v9, %v892_v34  ;;  %v930_v37 = vadd.f32 %v3156_v10, %v893_v35  ;;  %v896_v44 = vmul.f32 %v3150_v6, %v859_v55  ;;  %v897_v11 = vmul.f32 %v3152_v24, %v860_v8 }
 0x17b   : > { %v925_v26 = vadd.f32 %v3154_v9, %v888_v39  ;;  %v926_v33 = vadd.f32 %v3156_v10, %v889_v17  ;;  %v752_v28 = vmul.f32 0.5, %v751_v36  ;;  %2476 = vrsqrt.f32 %v3199_v56 }
 0x17c   : > { %v958_v47 = vpack.c.bf16 %v930_v37, %v929_v43  ;;  %v933_v48 = vadd.f32 %v3154_v9, %v896_v44  ;;  %v934_v50 = vadd.f32 %v3156_v10, %v897_v11  ;;  %v733_v63 = vsub.f32 1.5, %v732_v27 }
 0x17d   : > { %v956_v49 = vpack.c.bf16 %v926_v33, %v925_v26  ;;  %vm736_vm2 = vweird.f32 %v2475_v62  ;;  %v753_v0 = vsub.f32 1.5, %v752_v28  ;;  %vm755_vm3 = vweird.f32 %v3160_v53 }
 0x17e   : > { %974 = vst [vmem:[#allocation2 + $0x18] sm:$0xff] %v958_v47  ;;  %v960_v18 = vpack.c.bf16 %v934_v50, %v933_v48  ;;  %v664_v46 = vmul.f32 %v632_v25, %v2952_v54  ;;  %v666_v36 = vmul.f32 %v3182_v57, %v2952_v54  ;;  %v734_v20 = vmul.f32 %v2475_v62, %v733_v63  ;;  %vm757_vm4 = vmor %vm755_vm3, %vm756_vm1 }
 0x17f   : > { %972 = vst [vmem:[#allocation2 + $0x8] sm:$0xff] %v956_v49  ;;  %v754_v61 = vmul.f32 %v3186_v60, %v753_v0  ;;  %v668_v34 = vmul.f32 %v644_v45, %v2952_v54  ;;  %v667_v35 = vmul.f32 %v641_v31, %v2952_v54  ;;  %vm737_vm5 = vmor %vm735_vm0, %vm736_vm2  ;;  %v669_v57 = vmul.f32 %v647_v30, %v2952_v54  ;;  %v656_v30 = vpop.xlane.xlu1 %655  ;;  %v650_v28 = vpop.xlane.xlu2 %649 }
 0x180   : > { %976 = vst [vmem:[#allocation2 + $0x28] sm:$0xff] %v960_v18  ;;  %v3239_v53 = vadd.f32 1e-05, %v664_v46  ;;  %v738_v25 = vsel %vm737_vm5, %v2475_v62, %v734_v20  ;;  %v3243_v8 = vadd.f32 1e-05, %v666_v36  ;;  %v671_v39 = vmul.f32 %v653_v15, %v2952_v54 }
 0x181   : > { %v758_v55 = vsel %vm757_vm4, %v3186_v60, %v754_v61  ;;  %v2477_v17 = vpop.eup %2476  ;;  %v857_v45 = vmul.f32 %v738_v25, %v3011_v51  ;;  %v858_v42 = vmul.f32 %v738_v25, %v3014_v52  ;;  %v3252_v62 = vadd.f32 1e-05, %v668_v34 }
 0x182   : > { %v861_v43 = vmul.f32 %v758_v55, %v3026_v1  ;;  %v862_v5 = vmul.f32 %v758_v55, %v3029_v3  ;;  %v770_v37 = vmul.f32 %v2477_v17, %v3199_v56  ;;  %2478 = vrsqrt.f32 %v3239_v53 }
 0x183   : > { %v3254_v60 = vadd.f32 1e-05, %v667_v35  ;;  %v894_v44 = vmul.f32 %v3150_v6, %v857_v45  ;;  %v895_v11 = vmul.f32 %v3152_v24, %v858_v42  ;;  %vm775_vm6 = vweird.f32 %v3199_v56 }
 0x184   : > { %v898_v51 = vmul.f32 %v3150_v6, %v861_v43  ;;  %v899_v52 = vmul.f32 %v3152_v24, %v862_v5  ;;  %v771_v1 = vmul.f32 %v2477_v17, %v770_v37  ;;  %2480 = vrsqrt.f32 %v3243_v8 }
 0x185   : > { %v931_v3 = vadd.f32 %v3154_v9, %v894_v44  ;;  %v932_v26 = vadd.f32 %v3156_v10, %v895_v11  ;;  %2482 = vrsqrt.f32 %v3252_v62  ;;  %v3267_v48 = vadd.f32 1e-05, %v669_v57 }
 0x186   : > { %v935_v33 = vadd.f32 %v3154_v9, %v898_v51  ;;  %v936_v27 = vadd.f32 %v3156_v10, %v899_v52  ;;  %v772_v47 = vmul.f32 0.5, %v771_v1  ;;  %v672_v50 = vmul.f32 %v656_v30, %v2952_v54 }
 0x187   : > { %v959_v31 = vpack.c.bf16 %v932_v26, %v931_v3  ;;  %2484 = vrsqrt.f32 %v3254_v60  ;;  %v3271_v63 = vadd.f32 1e-05, %v671_v39  ;;  %vm776_vm7 = vweird.f32 %v2477_v17 }
 0x188   : > { %v961_v49 = vpack.c.bf16 %v936_v27, %v935_v33  ;;  %v2479_v0 = vpop.eup %2478  ;;  %v773_v18 = vsub.f32 1.5, %v772_v47  ;;  %2486 = vrsqrt.f32 %v3267_v48  ;;  %v670_v46 = vmul.f32 %v650_v28, %v2952_v54  ;;  %vm777_vm9 = vmor %vm775_vm6, %vm776_vm7 }
 0x189   : > { %975 = vst [vmem:[#allocation2 + $0x20] sm:$0xff] %v959_v31  ;;  %v760_v36 = vmul.f32 %v2479_v0, %v3239_v53  ;;  %2488 = vrsqrt.f32 %v3271_v63  ;;  %vm765_vm8 = vweird.f32 %v3239_v53  ;;  %vm766_vm10 = vweird.f32 %v2479_v0 }
 0x18a   : > { %v2481_v15 = vpop.eup %2480  ;;  %977 = vst [vmem:[#allocation2 + $0x30] sm:$0xff] %v961_v49  ;;  %v774_v20 = vmul.f32 %v2477_v17, %v773_v18  ;;  %v3278_v61 = vadd.f32 1e-05, %v670_v46  ;;  %vm785_vm11 = vweird.f32 %v3243_v8  ;;  %vm805_vm13 = vweird.f32 %v3252_v62  ;;  %vm767_vm3 = vmor %vm765_vm8, %vm766_vm10 }
 0x18b   : > { %v761_v34 = vmul.f32 %v2479_v0, %v760_v36  ;;  %v780_v35 = vmul.f32 %v2481_v15, %v3243_v8  ;;  %v3284_v54 = vpop.eup %2482  ;;  %vm786_vm12 = vweird.f32 %v2481_v15  ;;  %v3288_v25 = vadd.f32 1e-05, %v672_v50 }
 0x18c   : > { %v778_v57 = vsel %vm777_vm9, %v2477_v17, %v774_v20  ;;  %2490 = vrsqrt.f32 %v3278_v61  ;;  %v800_v5 = vmul.f32 %v3284_v54, %v3252_v62  ;;  %vm806_vm14 = vweird.f32 %v3284_v54  ;;  %vm787_vm6 = vmor %vm785_vm11, %vm786_vm12 }
 0x18d   : > { %v2485_v55 = vpop.eup %2484  ;;  %v865_v56 = vmul.f32 %v778_v57, %v3019_v58  ;;  %v866_v39 = vmul.f32 %v778_v57, %v3022_v59  ;;  %v762_v45 = vmul.f32 0.5, %v761_v34  ;;  %v781_v42 = vmul.f32 %v2481_v15, %v780_v35  ;;  %vm807_vm7 = vmor %vm805_vm13, %vm806_vm14 }
 0x18e   : > { %v3292_v43 = vpop.eup %2486  ;;  %v790_v17 = vmul.f32 %v2485_v55, %v3254_v60  ;;  %vm796_vm15 = vweird.f32 %v2485_v55  ;;  %vm795_vm0 = vweird.f32 %v3254_v60  ;;  %v801_v51 = vmul.f32 %v3284_v54, %v800_v5 }
 0x18f   : > { %v3298_v37 = vpop.eup %2488  ;;  %v902_v44 = vmul.f32 %v3150_v6, %v865_v56  ;;  %v903_v58 = vmul.f32 %v3152_v24, %v866_v39  ;;  %v763_v11 = vsub.f32 1.5, %v762_v45  ;;  %v782_v59 = vmul.f32 0.5, %v781_v42  ;;  %vm797_vm8 = vmor %vm795_vm0, %vm796_vm15 }
 0x190   : > { %v791_v52 = vmul.f32 %v2485_v55, %v790_v17  ;;  %v810_v30 = vmul.f32 %v3292_v43, %v3267_v48  ;;  %vm816_vm1 = vweird.f32 %v3292_v43  ;;  %vm815_vm2 = vweird.f32 %v3267_v48 }
 0x191   : > { %v939_v1 = vadd.f32 %v3154_v9, %v902_v44  ;;  %v940_v3 = vadd.f32 %v3156_v10, %v903_v58  ;;  %v764_v26 = vmul.f32 %v2479_v0, %v763_v11  ;;  %v783_v33 = vsub.f32 1.5, %v782_v59  ;;  %vm817_vm9 = vmor %vm815_vm2, %vm816_vm1 }
 0x192   : > { %v3310_v27 = vpop.eup %2490  ;;  %v802_v28 = vmul.f32 0.5, %v801_v51  ;;  %v792_v47 = vmul.f32 0.5, %v791_v52  ;;  %v811_v50 = vmul.f32 %v3292_v43, %v810_v30  ;;  %v830_v31 = vmul.f32 %v3298_v37, %v3271_v63 }
 0x193   : > { %v963_v49 = vpack.c.bf16 %v940_v3, %v939_v1  ;;  %v768_v18 = vsel %vm767_vm3, %v2479_v0, %v764_v26  ;;  %v784_v46 = vmul.f32 %v2481_v15, %v783_v33  ;;  %vm835_vm4 = vweird.f32 %v3271_v63 }
 0x194   : > { %vm836_vm5 = vweird.f32 %v3298_v37  ;;  %v863_v36 = vmul.f32 %v768_v18, %v3044_v21  ;;  %v864_v20 = vmul.f32 %v768_v18, %v3047_v4  ;;  %v803_v53 = vsub.f32 1.5, %v802_v28 }
 0x195   : > { %v793_v34 = vsub.f32 1.5, %v792_v47  ;;  %979 = vst [vmem:[#allocation2 + $0x40] sm:$0xff] %v963_v49  ;;  %v788_v35 = vsel %vm787_vm6, %v2481_v15, %v784_v46  ;;  %v812_v57 = vmul.f32 0.5, %v811_v50  ;;  %v831_v0 = vmul.f32 %v3298_v37, %v830_v31  ;;  %vm837_vm10 = vmor %vm835_vm4, %vm836_vm5 }
 0x196   : > { %v820_v56 = vmul.f32 %v3310_v27, %v3278_v61  ;;  %v900_v39 = vmul.f32 %v3150_v6, %v863_v36  ;;  %v901_v21 = vmul.f32 %v3152_v24, %v864_v20  ;;  %v867_v4 = vmul.f32 %v788_v35, %v3063_v12 }
 0x197   : > { %v868_v45 = vmul.f32 %v788_v35, %v3066_v13  ;;  %v804_v8 = vmul.f32 %v3284_v54, %v803_v53  ;;  %v794_v15 = vmul.f32 %v2485_v55, %v793_v34  ;;  %v813_v42 = vsub.f32 1.5, %v812_v57 }
 0x198   : > { %v832_v5 = vmul.f32 0.5, %v831_v0  ;;  %v937_v17 = vadd.f32 %v3154_v9, %v900_v39  ;;  %v938_v44 = vadd.f32 %v3156_v10, %v901_v21  ;;  %v904_v58 = vmul.f32 %v3150_v6, %v867_v4 }
 0x199   : > { %v905_v12 = vmul.f32 %v3152_v24, %v868_v45  ;;  %v808_v13 = vsel %vm807_vm7, %v3284_v54, %v804_v8  ;;  %v798_v11 = vsel %vm797_vm8, %v2485_v55, %v794_v15  ;;  %v814_v62 = vmul.f32 %v3292_v43, %v813_v42 }
 0x19a   : > { %v833_v59 = vsub.f32 1.5, %v832_v5  ;;  %v962_v51 = vpack.c.bf16 %v938_v44, %v937_v17  ;;  %v941_v52 = vadd.f32 %v3154_v9, %v904_v58  ;;  %v871_v1 = vmul.f32 %v808_v13, %v3053_v22 }
 0x19b   : > { %v942_v30 = vadd.f32 %v3156_v10, %v905_v12  ;;  %v872_v60 = vmul.f32 %v808_v13, %v3056_v23  ;;  %v869_v54 = vmul.f32 %v798_v11, %v3073_v14  ;;  %v870_v55 = vmul.f32 %v798_v11, %v3080_v29 }
 0x19c   : > { %v818_v3 = vsel %vm817_vm9, %v3292_v43, %v814_v62  ;;  %978 = vst [vmem:[#allocation2 + $0x38] sm:$0xff] %v962_v51  ;;  %v908_v33 = vmul.f32 %v3150_v6, %v871_v1  ;;  %v834_v14 = vmul.f32 %v3298_v37, %v833_v59  ;;  %2492 = vrsqrt.f32 %v3288_v25 }
 0x19d   : > { %v964_v26 = vpack.c.bf16 %v942_v30, %v941_v52  ;;  %v873_v28 = vmul.f32 %v818_v3, %v3096_v19  ;;  %v874_v22 = vmul.f32 %v818_v3, %v3099_v2  ;;  %v909_v47 = vmul.f32 %v3152_v24, %v872_v60 }
 0x19e   : > { %v906_v48 = vmul.f32 %v3150_v6, %v869_v54  ;;  %v907_v23 = vmul.f32 %v3152_v24, %v870_v55  ;;  %v945_v29 = vadd.f32 %v3154_v9, %v908_v33  ;;  %v821_v19 = vmul.f32 %v3310_v27, %v820_v56 }
 0x19f   : > { %980 = vst [vmem:[#allocation2 + $0x48] sm:$0xff] %v964_v26  ;;  %v910_v43 = vmul.f32 %v3150_v6, %v873_v28  ;;  %v911_v50 = vmul.f32 %v3152_v24, %v874_v22  ;;  %v946_v2 = vadd.f32 %v3156_v10, %v909_v47  ;;  %v838_v18 = vsel %vm837_vm10, %v3298_v37, %v834_v14 }
 0x1a0   : > { %v943_v31 = vadd.f32 %v3154_v9, %v906_v48  ;;  %v944_v49 = vadd.f32 %v3156_v10, %v907_v23  ;;  %v877_v20 = vmul.f32 %v838_v18, %v3087_v7  ;;  %v878_v53 = vmul.f32 %v838_v18, %v3090_v32 }
 0x1a1   : > { %v947_v46 = vadd.f32 %v3154_v9, %v910_v43  ;;  %v948_v36 = vadd.f32 %v3156_v10, %v911_v50  ;;  %v966_v63 = vpack.c.bf16 %v946_v2, %v945_v29  ;;  %v822_v35 = vmul.f32 0.5, %v821_v19 }
 0x1a2   : > { %v965_v34 = vpack.c.bf16 %v944_v49, %v943_v31  ;;  %v914_v0 = vmul.f32 %v3150_v6, %v877_v20  ;;  %v915_v56 = vmul.f32 %v3152_v24, %v878_v53  ;;  %vm826_vm11 = vweird.f32 %v3310_v27  ;;  %v2493_v45 = vpop.eup %2492 }
 0x1a3   : > { %v967_v57 = vpack.c.bf16 %v948_v36, %v947_v46  ;;  %982 = vst [vmem:[#allocation2 + $0x58] sm:$0xff] %v966_v63  ;;  %v823_v37 = vsub.f32 1.5, %v822_v35  ;;  %vm825_vm12 = vweird.f32 %v3278_v61  ;;  %v840_v42 = vmul.f32 %v2493_v45, %v3288_v25 }
 0x1a4   : > { %981 = vst [vmem:[#allocation2 + $0x50] sm:$0xff] %v965_v34  ;;  %v951_v39 = vadd.f32 %v3154_v9, %v914_v0  ;;  %v952_v7 = vadd.f32 %v3156_v10, %v915_v56  ;;  %vm827_vm13 = vmor %vm825_vm12, %vm826_vm11  ;;  %vm846_vm14 = vweird.f32 %v2493_v45  ;;  %vm845_vm15 = vweird.f32 %v3288_v25 }
 0x1a5   : > { %983 = vst [vmem:[#allocation2 + $0x60] sm:$0xff] %v967_v57  ;;  %v824_v32 = vmul.f32 %v3310_v27, %v823_v37  ;;  %v841_v44 = vmul.f32 %v2493_v45, %v840_v42  ;;  %vm847_vm0 = vmor %vm845_vm15, %vm846_vm14 }
 0x1a6   : > { %v969_v21 = vpack.c.bf16 %v952_v7, %v951_v39 }
 0x1a7   : > { %v828_v4 = vsel %vm827_vm13, %v3310_v27, %v824_v32  ;;  %v842_v12 = vmul.f32 0.5, %v841_v44 }
 0x1a8   : > { %985 = vst [vmem:[#allocation2 + $0x70] sm:$0xff] %v969_v21  ;;  %v875_v8 = vmul.f32 %v828_v4, %v3110_v16  ;;  %v876_v15 = vmul.f32 %v828_v4, %v3113_v38 }
 0x1a9   : > { %v843_v27 = vsub.f32 1.5, %v842_v12 }
 0x1aa   : > { %v912_v5 = vmul.f32 %v3150_v6, %v875_v8  ;;  %v913_v17 = vmul.f32 %v3152_v24, %v876_v15 }
 0x1ab   : > { %v844_v11 = vmul.f32 %v2493_v45, %v843_v27 }
 0x1ac   : > { %v949_v58 = vadd.f32 %v3154_v9, %v912_v5  ;;  %v950_v61 = vadd.f32 %v3156_v10, %v913_v17 }
 0x1ad   : > { %v848_v16 = vsel %vm847_vm0, %v2493_v45, %v844_v11 }
 0x1ae   : > { %v968_v13 = vpack.c.bf16 %v950_v61, %v949_v58  ;;  %v879_v38 = vmul.f32 %v848_v16, %v3121_v40  ;;  %v880_v62 = vmul.f32 %v848_v16, %v3124_v41 }
 0x1b0   : > { %984 = vst [vmem:[#allocation2 + $0x68] sm:$0xff] %v968_v13  ;;  %v916_v59 = vmul.f32 %v3150_v6, %v879_v38  ;;  %v917_v51 = vmul.f32 %v3152_v24, %v880_v62 }
 0x1b2   : > { %v953_v52 = vadd.f32 %v3154_v9, %v916_v59  ;;  %v954_v30 = vadd.f32 %v3156_v10, %v917_v51 }
 0x1b4   : > { %v970_v1 = vpack.c.bf16 %v954_v30, %v953_v52 }
 0x1b6   : > { %986 = vst [vmem:[#allocation2 + $0x78] sm:$0xff] %v970_v1 }
 0x1b7 PF: > { %v2193_v40 = vld [vmem:[%s2755_s24 + $0xa8] sm:$0xf]  ;;  %v2373_v41 = vld [vmem:[%s2755_s24 + $0xb0] sm:$0xf0]  ;;  %v2181_v10 = vld [vmem:[%s2755_s24 + $0x90] sm:$0xf] }
 0x1b8   : > { %v2289_v6 = vld [vmem:[%s2755_s24 + $0x168] sm:$0xf]  ;;  %v2194_v24 = vor.u32 %v2373_v41, %v2193_v40  ;;  %v2397_v9 = vld [vmem:[%s2755_s24 + $0x170] sm:$0xf0]  ;;  %v2370_v25 = vld [vmem:[%s2755_s24 + $0x98] sm:$0xf0] }
 0x1b9   : > { %v2290_v60 = vor.u32 %v2397_v9, %v2289_v6  ;;  %v2277_v54 = vld [vmem:[%s2755_s24 + $0x150] sm:$0xf]  ;;  %v2394_v55 = vld [vmem:[%s2755_s24 + $0x158] sm:$0xf0]  ;;  %v2182_v3 = vor.u32 %v2370_v25, %v2181_v10  ;;  %v2169_v33 = vld [vmem:[%s2755_s24 + $0x78] sm:$0xf] }
 0x1ba   : > { %1411 = vmatpush.bf16.msra.mxu0 %v2194_v24  ;;  %2400 = vmatpush.bf16.msra.mxu2 %v2194_v24  ;;  %v2278_v26 = vor.u32 %v2394_v55, %v2277_v54  ;;  %v2367_v28 = vld [vmem:[%s2755_s24 + $0x80] sm:$0xf0]  ;;  %v2265_v22 = vld [vmem:[%s2755_s24 + $0x138] sm:$0xf]  ;;  %v2157_v14 = vld [vmem:[%s2755_s24 + $0x60] sm:$0xf] }
 0x1bb   : > { %1460 = vmatpush.bf16.msra.mxu1 %v2290_v60  ;;  %2408 = vmatpush.bf16.msra.mxu3 %v2290_v60  ;;  %v2391_v47 = vld [vmem:[%s2755_s24 + $0x140] sm:$0xf0]  ;;  %v2170_v48 = vor.u32 %v2367_v28, %v2169_v33  ;;  %v2364_v29 = vld [vmem:[%s2755_s24 + $0x68] sm:$0xf0]  ;;  %v2253_v43 = vld [vmem:[%s2755_s24 + $0x120] sm:$0xf] }
 0x1bc   : > { %v2266_v23 = vor.u32 %v2391_v47, %v2265_v22  ;;  %v2388_v50 = vld [vmem:[%s2755_s24 + $0x128] sm:$0xf0]  ;;  %v2158_v19 = vor.u32 %v2364_v29, %v2157_v14  ;;  %v2145_v31 = vld [vmem:[%s2755_s24 + $0x48] sm:$0xf]  ;;  %v2361_v49 = vld [vmem:[%s2755_s24 + $0x50] sm:$0xf0] }
 0x1bd   : > { %v2254_v2 = vor.u32 %v2388_v50, %v2253_v43  ;;  %v2241_v18 = vld [vmem:[%s2755_s24 + $0x108] sm:$0xf]  ;;  %v2385_v46 = vld [vmem:[%s2755_s24 + $0x110] sm:$0xf0]  ;;  %v2146_v36 = vor.u32 %v2361_v49, %v2145_v31  ;;  %v2133_v53 = vld [vmem:[%s2755_s24 + $0x30] sm:$0xf] }
 0x1be   : > { %1412 = vmatpush.bf16.msra.mxu0 %v2182_v3  ;;  %2401 = vmatpush.bf16.msra.mxu2 %v2182_v3  ;;  %v2242_v20 = vor.u32 %v2385_v46, %v2241_v18  ;;  %v2358_v63 = vld [vmem:[%s2755_s24 + $0x38] sm:$0xf0]  ;;  %v2229_v34 = vld [vmem:[%s2755_s24 + $0xf0] sm:$0xf]  ;;  %v2121_v56 = vld [vmem:[%s2755_s24 + $0x18] sm:$0xf] }
 0x1bf   : > { %1461 = vmatpush.bf16.msra.mxu1 %v2278_v26  ;;  %2409 = vmatpush.bf16.msra.mxu3 %v2278_v26  ;;  %v2382_v35 = vld [vmem:[%s2755_s24 + $0xf8] sm:$0xf0]  ;;  %v2134_v57 = vor.u32 %v2358_v63, %v2133_v53  ;;  %v2355_v37 = vld [vmem:[%s2755_s24 + $0x20] sm:$0xf0]  ;;  %v2217_v39 = vld [vmem:[%s2755_s24 + $0xd8] sm:$0xf] }
 0x1c0   : > { %v2230_v0 = vor.u32 %v2382_v35, %v2229_v34  ;;  %v2379_v7 = vld [vmem:[%s2755_s24 + $0xe0] sm:$0xf0]  ;;  %v2122_v32 = vor.u32 %v2355_v37, %v2121_v56  ;;  %v2109_v21 = vld [vmem:[%s2755_s24] sm:$0xf]  ;;  %v2352_v45 = vld [vmem:[%s2755_s24 + $0x8] sm:$0xf0] }
 0x1c1   : > { %v2218_v4 = vor.u32 %v2379_v7, %v2217_v39  ;;  %v2205_v8 = vld [vmem:[%s2755_s24 + $0xc0] sm:$0xf]  ;;  %v2376_v15 = vld [vmem:[%s2755_s24 + $0xc8] sm:$0xf0]  ;;  %v2336_v5 = vld [vmem:[#allocation2 + $0x4] sm:$0xf0]  ;;  %v2110_v27 = vor.u32 %v2352_v45, %v2109_v21 }
 0x1c2   : > { %1413 = vmatpush.bf16.msra.mxu0 %v2170_v48  ;;  %2402 = vmatpush.bf16.msra.mxu2 %v2170_v48  ;;  %v2045_v42 = vld [vmem:[#allocation2] sm:$0xf]  ;;  %v2344_v44 = vld [vmem:[#allocation2 + $0x44] sm:$0xf0]  ;;  %v2372_v58 = vld [vmem:[%s2755_s24 + $0xac] sm:$0xf]  ;;  %v2206_v62 = vor.u32 %v2376_v15, %v2205_v8 }
 0x1c3   : > { %1462 = vmatpush.bf16.msra.mxu1 %v2266_v23  ;;  %2410 = vmatpush.bf16.msra.mxu3 %v2266_v23  ;;  %v2077_v17 = vld [vmem:[#allocation2 + $0x40] sm:$0xf]  ;;  %v2195_v61 = vld [vmem:[%s2755_s24 + $0xb4] sm:$0xf0]  ;;  %v2396_v12 = vld [vmem:[%s2755_s24 + $0x16c] sm:$0xf]  ;;  %v3444_v24 = vor.u32 %v2336_v5, %v2045_v42 }
 0x1c4   : > { %v2291_v13 = vld [vmem:[%s2755_s24 + $0x174] sm:$0xf0]  ;;  %v2335_v11 = vld [vmem:[#allocation2 + $0x4] sm:$0xf]  ;;  %v2047_v16 = vld [vmem:[#allocation2 + $0x8] sm:$0xf0]  ;;  %v2198_v30 = vor.u32 %v2372_v58, %v2195_v61  ;;  %v3446_v9 = vor.u32 %v2344_v44, %v2077_v17 }
 0x1c5   : > { %v2343_v38 = vld [vmem:[#allocation2 + $0x44] sm:$0xf]  ;;  %v2079_v59 = vld [vmem:[#allocation2 + $0x48] sm:$0xf0]  ;;  %v2201_v51 = vld [vmem:[%s2755_s24 + $0xb0] sm:$0xf]  ;;  %v2294_v1 = vor.u32 %v2396_v12, %v2291_v13  ;;  %v3451_v54 = vor.u32 %v2335_v11, %v2047_v16 }
 0x1c6   : > { %1414 = vmatpush.bf16.msra.mxu0 %v2158_v19  ;;  %2403 = vmatpush.bf16.msra.mxu2 %v2158_v19  ;;  %v2374_v52 = vld [vmem:[%s2755_s24 + $0xb8] sm:$0xf0]  ;;  %v2369_v40 = vld [vmem:[%s2755_s24 + $0x94] sm:$0xf]  ;;  %v2297_v41 = vld [vmem:[%s2755_s24 + $0x170] sm:$0xf]  ;;  %v3453_v55 = vor.u32 %v2343_v38, %v2079_v59 }
 0x1c7   : > { %1463 = vmatpush.bf16.msra.mxu1 %v2254_v2  ;;  %2411 = vmatpush.bf16.msra.mxu3 %v2254_v2  ;;  %v2398_v6 = vld [vmem:[%s2755_s24 + $0x178] sm:$0xf0]  ;;  %v2183_v10 = vld [vmem:[%s2755_s24 + $0x9c] sm:$0xf0]  ;;  %v2393_v25 = vld [vmem:[%s2755_s24 + $0x154] sm:$0xf]  ;;  %v2202_v3 = vor.u32 %v2374_v52, %v2201_v51 }
 0x1c8   : > { %v2279_v60 = vld [vmem:[%s2755_s24 + $0x15c] sm:$0xf0]  ;;  %v2298_v26 = vor.u32 %v2398_v6, %v2297_v41  ;;  %v2189_v33 = vld [vmem:[%s2755_s24 + $0x98] sm:$0xf]  ;;  %v2371_v28 = vld [vmem:[%s2755_s24 + $0xa0] sm:$0xf0]  ;;  %v2186_v22 = vor.u32 %v2369_v40, %v2183_v10 }
 0x1c9   : > { %v2282_v47 = vor.u32 %v2393_v25, %v2279_v60  ;;  %v2366_v48 = vld [vmem:[%s2755_s24 + $0x7c] sm:$0xf]  ;;  %v2285_v23 = vld [vmem:[%s2755_s24 + $0x158] sm:$0xf]  ;;  %v2395_v14 = vld [vmem:[%s2755_s24 + $0x160] sm:$0xf0]  ;;  %v2190_v19 = vor.u32 %v2371_v28, %v2189_v33 }
 0x1ca   : > { %1415 = vmatpush.bf16.msra.mxu0 %v2146_v36  ;;  %2404 = vmatpush.bf16.msra.mxu2 %v2146_v36  ;;  %v2171_v29 = vld [vmem:[%s2755_s24 + $0x84] sm:$0xf0]  ;;  %v2390_v43 = vld [vmem:[%s2755_s24 + $0x13c] sm:$0xf]  ;;  %v2286_v2 = vor.u32 %v2395_v14, %v2285_v23  ;;  %v2177_v31 = vld [vmem:[%s2755_s24 + $0x80] sm:$0xf] }
 0x1cb   : > { %1464 = vmatpush.bf16.msra.mxu1 %v2242_v20  ;;  %2412 = vmatpush.bf16.msra.mxu3 %v2242_v20  ;;  %v2267_v50 = vld [vmem:[%s2755_s24 + $0x144] sm:$0xf0]  ;;  %v2368_v49 = vld [vmem:[%s2755_s24 + $0x88] sm:$0xf0]  ;;  %v2174_v18 = vor.u32 %v2366_v48, %v2171_v29  ;;  %v2363_v36 = vld [vmem:[%s2755_s24 + $0x64] sm:$0xf] }
 0x1cc   : > { %v2270_v46 = vor.u32 %v2390_v43, %v2267_v50  ;;  %v2273_v20 = vld [vmem:[%s2755_s24 + $0x140] sm:$0xf]  ;;  %v2392_v53 = vld [vmem:[%s2755_s24 + $0x148] sm:$0xf0]  ;;  %v2159_v63 = vld [vmem:[%s2755_s24 + $0x6c] sm:$0xf0] }
 0x1cd   : > { %v2387_v34 = vld [vmem:[%s2755_s24 + $0x124] sm:$0xf]  ;;  %v2255_v35 = vld [vmem:[%s2755_s24 + $0x12c] sm:$0xf0]  ;;  %v2165_v56 = vld [vmem:[%s2755_s24 + $0x68] sm:$0xf] }
 0x1ce   : > { %1416 = vmatpush.bf16.msra.mxu0 %v2134_v57  ;;  %2405 = vmatpush.bf16.msra.mxu2 %v2134_v57  ;;  %v2178_v57 = vor.u32 %v2368_v49, %v2177_v31  ;;  %v2365_v37 = vld [vmem:[%s2755_s24 + $0x70] sm:$0xf0]  ;;  %v2053_v39 = vld [vmem:[#allocation2 + $0x10] sm:$0xf]  ;;  %v2338_v7 = vld [vmem:[#allocation2 + $0x14] sm:$0xf0]  ;;  %v2258_v45 = vor.u32 %v2387_v34, %v2255_v35 }
 0x1cf   : > { %1465 = vmatpush.bf16.msra.mxu1 %v2230_v0  ;;  %2413 = vmatpush.bf16.msra.mxu3 %v2230_v0  ;;  %v2274_v0 = vor.u32 %v2392_v53, %v2273_v20  ;;  %v2346_v21 = vld [vmem:[#allocation2 + $0x54] sm:$0xf0]  ;;  %v2360_v8 = vld [vmem:[%s2755_s24 + $0x4c] sm:$0xf]  ;;  %v2261_v15 = vld [vmem:[%s2755_s24 + $0x128] sm:$0xf] }
 0x1d0   : > { %v2389_v42 = vld [vmem:[%s2755_s24 + $0x130] sm:$0xf0]  ;;  %v2147_v5 = vld [vmem:[%s2755_s24 + $0x54] sm:$0xf0]  ;;  %v2384_v17 = vld [vmem:[%s2755_s24 + $0x10c] sm:$0xf] }
 0x1d1   : > { %v2243_v44 = vld [vmem:[%s2755_s24 + $0x114] sm:$0xf0]  ;;  %v2337_v58 = vld [vmem:[#allocation2 + $0x14] sm:$0xf]  ;;  %v2055_v61 = vld [vmem:[#allocation2 + $0x18] sm:$0xf0]  ;;  %v2262_v11 = vor.u32 %v2389_v42, %v2261_v15 }
 0x1d2   : > { %1417 = vmatpush.bf16.msra.mxu0 %v2122_v32  ;;  %2406 = vmatpush.bf16.msra.mxu2 %v2122_v32  ;;  %v2085_v32 = vld [vmem:[#allocation2 + $0x50] sm:$0xf]  ;;  %v2345_v12 = vld [vmem:[#allocation2 + $0x54] sm:$0xf]  ;;  %v2087_v13 = vld [vmem:[#allocation2 + $0x58] sm:$0xf0]  ;;  %v2246_v59 = vor.u32 %v2384_v17, %v2243_v44  ;;  %v3495_v25 = vor.u32 %v2337_v58, %v2055_v61 }
 0x1d3   : > { %1466 = vmatpush.bf16.msra.mxu1 %v2218_v4  ;;  %2414 = vmatpush.bf16.msra.mxu3 %v2218_v4  ;;  %v2162_v4 = vor.u32 %v2363_v36, %v2159_v63  ;;  %v2153_v16 = vld [vmem:[%s2755_s24 + $0x50] sm:$0xf]  ;;  %v2362_v38 = vld [vmem:[%s2755_s24 + $0x58] sm:$0xf0]  ;;  %v2357_v51 = vld [vmem:[%s2755_s24 + $0x34] sm:$0xf]  ;;  %v3490_v40 = vor.u32 %v2346_v21, %v2085_v32  ;;  %v3497_v60 = vor.u32 %v2345_v12, %v2087_v13 }
 0x1d4   : > { %v2249_v52 = vld [vmem:[%s2755_s24 + $0x110] sm:$0xf]  ;;  %v2135_v41 = vld [vmem:[%s2755_s24 + $0x3c] sm:$0xf0]  ;;  %v2381_v6 = vld [vmem:[%s2755_s24 + $0xf4] sm:$0xf] }
 0x1d5   : > { %v2231_v10 = vld [vmem:[%s2755_s24 + $0xfc] sm:$0xf0]  ;;  %v2138_v33 = vor.u32 %v2357_v51, %v2135_v41  ;;  %v2354_v48 = vld [vmem:[%s2755_s24 + $0x1c] sm:$0xf]  ;;  %v2123_v23 = vld [vmem:[%s2755_s24 + $0x24] sm:$0xf0] }
 0x1d6   : > { %1418 = vmatpush.bf16.msra.mxu0 %v2110_v27  ;;  %2407 = vmatpush.bf16.msra.mxu2 %v2110_v27  ;;  %v2166_v27 = vor.u32 %v2365_v37, %v2165_v56  ;;  %v2234_v28 = vor.u32 %v2381_v6, %v2231_v10  ;;  %v2237_v14 = vld [vmem:[%s2755_s24 + $0xf8] sm:$0xf]  ;;  %v2383_v43 = vld [vmem:[%s2755_s24 + $0x100] sm:$0xf0]  ;;  %v2378_v50 = vld [vmem:[%s2755_s24 + $0xdc] sm:$0xf] }
 0x1d7   : > { %1467 = vmatpush.bf16.msra.mxu1 %v2206_v62  ;;  %2415 = vmatpush.bf16.msra.mxu3 %v2206_v62  ;;  %v2150_v62 = vor.u32 %v2360_v8, %v2147_v5  ;;  %v2238_v31 = vor.u32 %v2383_v43, %v2237_v14  ;;  %v2351_v36 = vld [vmem:[%s2755_s24 + $0x4] sm:$0xf]  ;;  %v2111_v20 = vld [vmem:[%s2755_s24 + $0xc] sm:$0xf0]  ;;  %v2225_v53 = vld [vmem:[%s2755_s24 + $0xe0] sm:$0xf] }
 0x1d8   : > { %v2380_v63 = vld [vmem:[%s2755_s24 + $0xe8] sm:$0xf0]  ;;  %v2375_v34 = vld [vmem:[%s2755_s24 + $0xc4] sm:$0xf]  ;;  %v2207_v35 = vld [vmem:[%s2755_s24 + $0xcc] sm:$0xf0]  ;;  %v2114_v37 = vor.u32 %v2351_v36, %v2111_v20 }
 0x1d9   : > { %1419 = vmatmul.bf16.vlgmr.msra.gmra.mxu0 %v3444_v24  ;;  %1439 = vmatmul.bf16.vlgmr.msra.gmra.mxu2 %v3446_v9  ;;  %v2117_v56 = vld [vmem:[%s2755_s24 + $0x8] sm:$0xf]  ;;  %v2377_v21 = vld [vmem:[%s2755_s24 + $0xd0] sm:$0xf0]  ;;  %v2093_v8 = vld [vmem:[#allocation2 + $0x60] sm:$0xf] }
 0x1da   : > { %1509 = vmatpush.bf16.msrb.mxu2 %v2198_v30  ;;  %1468 = vmatmul.bf16.vlgmr.msra.gmra.mxu1 %v3451_v54  ;;  %v2386_v30 = vld [vmem:[%s2755_s24 + $0x118] sm:$0xf0]  ;;  %v2213_v32 = vld [vmem:[%s2755_s24 + $0xc8] sm:$0xf]  ;;  %v2339_v42 = vld [vmem:[#allocation2 + $0x24] sm:$0xf] }
 0x1db   : > { %1558 = vmatpush.bf16.msrb.mxu3 %v2294_v1  ;;  %1607 = vmatpush.bf16.msrb.mxu0 %v2202_v3  ;;  %v3488_v1 = vor.u32 %v2338_v7, %v2053_v39  ;;  %v2154_v3 = vor.u32 %v2362_v38, %v2153_v16  ;;  %v2210_v39 = vor.u32 %v2375_v34, %v2207_v35  ;;  %v2353_v7 = vld [vmem:[%s2755_s24 + $0x10] sm:$0xf0]  ;;  %v2348_v15 = vld [vmem:[#allocation2 + $0x64] sm:$0xf0]  ;;  %v2063_v5 = vld [vmem:[#allocation2 + $0x28] sm:$0xf0] }
 0x1dc   : > { %1488 = vmatmul.bf16.vlgmr.msra.gmra.mxu3 %v3453_v55  ;;  %1656 = vmatpush.bf16.msrb.mxu1 %v2298_v26  ;;  %v2250_v26 = vor.u32 %v2386_v30, %v2249_v52  ;;  %v2347_v17 = vld [vmem:[#allocation2 + $0x64] sm:$0xf]  ;;  %v2095_v44 = vld [vmem:[#allocation2 + $0x68] sm:$0xf0]  ;;  %v2118_v58 = vor.u32 %v2353_v7, %v2117_v56  ;;  %v2214_v61 = vor.u32 %v2377_v21, %v2213_v32  ;;  %v2069_v16 = vld [vmem:[#allocation2 + $0x30] sm:$0xf] }
 0x1dd   : > { %v3523_v13 = vor.u32 %v2348_v15, %v2093_v8  ;;  %v2342_v38 = vld [vmem:[#allocation2 + $0x34] sm:$0xf0]  ;;  %v2341_v51 = vld [vmem:[#allocation2 + $0x34] sm:$0xf]  ;;  %v2071_v52 = vld [vmem:[#allocation2 + $0x38] sm:$0xf0] }
 0x1de   : > { %1510 = vmatpush.bf16.msrb.mxu2 %v2186_v22  ;;  %v2141_v22 = vld [vmem:[%s2755_s24 + $0x38] sm:$0xf]  ;;  %v2349_v30 = vld [vmem:[#allocation2 + $0x74] sm:$0xf]  ;;  %v2103_v41 = vld [vmem:[#allocation2 + $0x78] sm:$0xf0]  ;;  %v2070_v6 = vor.u32 %v2342_v38, %v2069_v16 }
 0x1df   : > { %1559 = vmatpush.bf16.msrb.mxu3 %v2282_v47  ;;  %1608 = vmatpush.bf16.msrb.mxu0 %v2190_v19  ;;  %v2359_v47 = vld [vmem:[%s2755_s24 + $0x40] sm:$0xf0]  ;;  %v2219_v19 = vld [vmem:[%s2755_s24 + $0xe4] sm:$0xf0]  ;;  %s2399_s12 = smul.u32 (%p2600_p6), 12, %s2524_s20 }
 0x1e0   : > { %1657 = vmatpush.bf16.msrb.mxu1 %v2286_v2  ;;  %v2142_v29 = vor.u32 %v2359_v47, %v2141_v22  ;;  %v2126_v2 = vor.u32 %v2354_v48, %v2123_v23  ;;  %v2222_v49 = vor.u32 %v2378_v50, %v2219_v19 }
 0x1e1   : > { %s3711_s26 = scalar_lea.vmem (%p2600_p6), %s3795_s5, %s2399_s12 }
 0x1e2   : > { %1511 = vmatpush.bf16.msrb.mxu2 %v2174_v18  ;;  %v2129_v18 = vld [vmem:[%s2755_s24 + $0x20] sm:$0xf] }
 0x1e3   : > { %1560 = vmatpush.bf16.msrb.mxu3 %v2270_v46  ;;  %1609 = vmatpush.bf16.msrb.mxu0 %v2178_v57  ;;  %v2356_v46 = vld [vmem:[%s2755_s24 + $0x28] sm:$0xf0] }
 0x1e4   : > { %1658 = vmatpush.bf16.msrb.mxu1 %v2274_v0  ;;  %v2130_v57 = vor.u32 %v2356_v46, %v2129_v18  ;;  %v2226_v0 = vor.u32 %v2380_v63, %v2225_v53 }
 0x1e6   : > { %1512 = vmatpush.bf16.msrb.mxu2 %v2162_v4  ;;  %v2061_v4 = vld [vmem:[#allocation2 + $0x20] sm:$0xf] }
 0x1e7   : > { %1561 = vmatpush.bf16.msrb.mxu3 %v2258_v45  ;;  %1610 = vmatpush.bf16.msrb.mxu0 %v2166_v27  ;;  %v2340_v45 = vld [vmem:[#allocation2 + $0x24] sm:$0xf0]  ;;  %v2066_v27 = vor.u32 %v2339_v42, %v2063_v5 }
 0x1e8   : > { %1659 = vmatpush.bf16.msrb.mxu1 %v2262_v11  ;;  %v2062_v12 = vor.u32 %v2340_v45, %v2061_v4  ;;  %v3525_v11 = vor.u32 %v2347_v17, %v2095_v44 }
 0x1e9   : > { %1424 = vmatmul.bf16.gmra.mxu0 %v3488_v1  ;;  %1444 = vmatmul.bf16.gmra.mxu2 %v3490_v40 }
 0x1ea   : > { %1513 = vmatpush.bf16.msrb.mxu2 %v2150_v62  ;;  %1473 = vmatmul.bf16.gmra.mxu1 %v3495_v25  ;;  %v2101_v62 = vld [vmem:[#allocation2 + $0x70] sm:$0xf] }
 0x1eb   : > { %1562 = vmatpush.bf16.msrb.mxu3 %v2246_v59  ;;  %1611 = vmatpush.bf16.msrb.mxu0 %v2154_v3  ;;  %v2350_v59 = vld [vmem:[#allocation2 + $0x74] sm:$0xf0]  ;;  %v2074_v3 = vor.u32 %v2341_v51, %v2071_v52 }
 0x1ec   : > { %1493 = vmatmul.bf16.gmra.mxu3 %v3497_v60  ;;  %1660 = vmatpush.bf16.msrb.mxu1 %v2250_v26  ;;  %v3529_v10 = vor.u32 %v2350_v59, %v2101_v62  ;;  %v3531_v26 = vor.u32 %v2349_v30, %v2103_v41 }
 0x1ee   : > { %1514 = vmatpush.bf16.msrb.mxu2 %v2138_v33 }
 0x1ef   : > { %1563 = vmatpush.bf16.msrb.mxu3 %v2234_v28  ;;  %1612 = vmatpush.bf16.msrb.mxu0 %v2142_v29 }
 0x1f0   : > { %1661 = vmatpush.bf16.msrb.mxu1 %v2238_v31 }
 0x1f2   : > { %1515 = vmatpush.bf16.msrb.mxu2 %v2126_v2 }
 0x1f3   : > { %1564 = vmatpush.bf16.msrb.mxu3 %v2222_v49  ;;  %1613 = vmatpush.bf16.msrb.mxu0 %v2130_v57 }
 0x1f4   : > { %1662 = vmatpush.bf16.msrb.mxu1 %v2226_v0 }
 0x1f6   : > { %1516 = vmatpush.bf16.msrb.mxu2 %v2114_v37 }
 0x1f7   : > { %1565 = vmatpush.bf16.msrb.mxu3 %v2210_v39  ;;  %1614 = vmatpush.bf16.msrb.mxu0 %v2118_v58 }
 0x1f8   : > { %1663 = vmatpush.bf16.msrb.mxu1 %v2214_v61 }
 0x1f9   : > { %1429 = vmatmul.bf16.gmra.mxu0 %v2062_v12  ;;  %1449 = vmatmul.bf16.gmra.mxu2 %v3523_v13 }
 0x1fa   : > { %1478 = vmatmul.bf16.gmra.mxu1 %v2066_v27 }
 0x1fc   : > { %1498 = vmatmul.bf16.gmra.mxu3 %v3525_v11 }
 0x209   : > { %1434 = vmatmul.bf16.gmra.mxu0 %v2070_v6  ;;  %1454 = vmatmul.bf16.gmra.mxu2 %v3529_v10 }
 0x20a   : > { %1483 = vmatmul.bf16.gmra.mxu1 %v2074_v3 }
 0x20c   : > { %1503 = vmatmul.bf16.gmra.mxu3 %v3531_v26 }
 0x219   : > { %1517 = vmatmul.bf16.vlgmr.msrb.gmra.mxu2 %v3444_v24  ;;  %1615 = vmatmul.bf16.vlgmr.msrb.gmra.mxu0 %v3444_v24  ;;  %v3548_v24 = vld [vmem:[%s432_s17] sm:$0x7] }
 0x21a   : > { %1664 = vmatmul.bf16.vlgmr.msrb.gmra.mxu1 %v3451_v54 }
 0x21c   : > { %1566 = vmatmul.bf16.vlgmr.msrb.gmra.mxu3 %v3451_v54  ;;  %v3551_v54 = vperm.slane %v3548_v24, 0 }
 0x229   : > { %1522 = vmatmul.bf16.gmra.mxu2 %v3488_v1  ;;  %1620 = vmatmul.bf16.gmra.mxu0 %v3488_v1 }
 0x22a   : > { %1669 = vmatmul.bf16.gmra.mxu1 %v3495_v25 }
 0x22c   : > { %1571 = vmatmul.bf16.gmra.mxu3 %v3495_v25 }
 0x239   : > { %1527 = vmatmul.bf16.gmra.mxu2 %v2062_v12  ;;  %1625 = vmatmul.bf16.gmra.mxu0 %v2062_v12 }
 0x23a   : > { %1674 = vmatmul.bf16.gmra.mxu1 %v2066_v27 }
 0x23c   : > { %1576 = vmatmul.bf16.gmra.mxu3 %v2066_v27 }
 0x249   : > { %1532 = vmatmul.bf16.gmra.mxu2 %v2070_v6  ;;  %1630 = vmatmul.bf16.gmra.mxu0 %v2070_v6 }
 0x24a   : > { %1679 = vmatmul.bf16.gmra.mxu1 %v2074_v3 }
 0x24c   : > { %1581 = vmatmul.bf16.gmra.mxu3 %v2074_v3 }
 0x256   : > { %v1420_v1 = vpop.f32.mrf.mxu0 }
 0x257   : > { %v1421_v25 = vadd.f32 %v1420_v1, %v3551_v54  ;;  %v1469_v33 = vpop.f32.mrf.mxu1  ;;  %v3615_v1 = vperm.slane %v3548_v24, 2 }
 0x259   : > { %v3554_v28 = vadd.f32 %v1469_v33, %v1421_v25  ;;  %1537 = vmatmul.bf16.gmra.mxu2 %v3446_v9  ;;  %1635 = vmatmul.bf16.gmra.mxu0 %v3446_v9 }
 0x25a   : > { %1684 = vmatmul.bf16.gmra.mxu1 %v3453_v55 }
 0x25c   : > { %1586 = vmatmul.bf16.gmra.mxu3 %v3453_v55  ;;  %v1440_v22 = vpop.f32.mrf.mxu2 }
 0x25d   : > { %v1441_v47 = vadd.f32 %v1440_v22, %v3551_v54 }
 0x25e   : > { %v1422_v23 = vpop.f32.mrf.mxu0 }
 0x25f   : > { %v1489_v48 = vpop.f32.mrf.mxu3  ;;  %v1423_v29 = vadd.f32 %v1422_v23, %v3551_v54  ;;  %v1471_v43 = vpop.f32.mrf.mxu1 }
 0x260   : > { %v3561_v14 = vadd.f32 %v1489_v48, %v1441_v47 }
 0x261   : > { %v3564_v50 = vadd.f32 %v1471_v43, %v1423_v29  ;;  %v3622_v29 = vperm.slane %v3548_v24, 1 }
 0x264   : > { %v1442_v19 = vpop.f32.mrf.mxu2 }
 0x265   : > { %v1443_v2 = vadd.f32 %v1442_v19, %v3551_v54 }
 0x266   : > { %v1425_v31 = vpop.f32.mrf.mxu0 }
 0x267   : > { %v1491_v9 = vpop.f32.mrf.mxu3  ;;  %v1426_v55 = vadd.f32 %v1425_v31, %v3551_v54  ;;  %v1474_v18 = vpop.f32.mrf.mxu1 }
 0x268   : > { %v3567_v49 = vadd.f32 %v1491_v9, %v1443_v2 }
 0x269   : > { %v3570_v46 = vadd.f32 %v1474_v18, %v1426_v55  ;;  %1542 = vmatmul.bf16.gmra.mxu2 %v3490_v40  ;;  %1640 = vmatmul.bf16.gmra.mxu0 %v3490_v40 }
 0x26a   : > { %1689 = vmatmul.bf16.gmra.mxu1 %v3497_v60 }
 0x26c   : > { %1591 = vmatmul.bf16.gmra.mxu3 %v3497_v60  ;;  %v1445_v36 = vpop.f32.mrf.mxu2 }
 0x26d   : > { %v1446_v20 = vadd.f32 %v1445_v36, %v3551_v54 }
 0x26e   : > { %v1427_v63 = vpop.f32.mrf.mxu0 }
 0x26f   : > { %v1494_v53 = vpop.f32.mrf.mxu3  ;;  %v1428_v35 = vadd.f32 %v1427_v63, %v3551_v54  ;;  %v1476_v57 = vpop.f32.mrf.mxu1 }
 0x270   : > { %v3577_v34 = vadd.f32 %v1494_v53, %v1446_v20 }
 0x271   : > { %v3580_v0 = vadd.f32 %v1476_v57, %v1428_v35 }
 0x274   : > { %v1447_v56 = vpop.f32.mrf.mxu2 }
 0x275   : > { %v1448_v37 = vadd.f32 %v1447_v56, %v3551_v54 }
 0x276   : > { %v1430_v39 = vpop.f32.mrf.mxu0 }
 0x277   : > { %v1496_v40 = vpop.f32.mrf.mxu3  ;;  %v1431_v60 = vadd.f32 %v1430_v39, %v3551_v54  ;;  %v1479_v32 = vpop.f32.mrf.mxu1 }
 0x278   : > { %v3583_v7 = vadd.f32 %v1496_v40, %v1448_v37 }
 0x279   : > { %v3586_v21 = vadd.f32 %v1479_v32, %v1431_v60  ;;  %1547 = vmatmul.bf16.gmra.mxu2 %v3523_v13  ;;  %1645 = vmatmul.bf16.gmra.mxu0 %v3523_v13 }
 0x27a   : > { %1694 = vmatmul.bf16.gmra.mxu1 %v3525_v11 }
 0x27c   : > { %1596 = vmatmul.bf16.gmra.mxu3 %v3525_v11  ;;  %v1450_v4 = vpop.f32.mrf.mxu2 }
 0x27d   : > { %v1451_v45 = vadd.f32 %v1450_v4, %v3551_v54 }
 0x27e   : > { %v1432_v15 = vpop.f32.mrf.mxu0 }
 0x27f   : > { %v1499_v8 = vpop.f32.mrf.mxu3  ;;  %v1433_v5 = vadd.f32 %v1432_v15, %v3551_v54  ;;  %v1481_v17 = vpop.f32.mrf.mxu1 }
 0x280   : > { %v3593_v42 = vadd.f32 %v1499_v8, %v1451_v45 }
 0x281   : > { %v3596_v44 = vadd.f32 %v1481_v17, %v1433_v5 }
 0x284   : > { %v1452_v58 = vpop.f32.mrf.mxu2 }
 0x285   : > { %v1453_v61 = vadd.f32 %v1452_v58, %v3551_v54 }
 0x286   : > { %v1435_v13 = vpop.f32.mrf.mxu0 }
 0x287   : > { %v1501_v12 = vpop.f32.mrf.mxu3  ;;  %v1436_v11 = vadd.f32 %v1435_v13, %v3551_v54  ;;  %v1484_v16 = vpop.f32.mrf.mxu1 }
 0x288   : > { %v3599_v27 = vadd.f32 %v1501_v12, %v1453_v61 }
 0x289   : > { %v3602_v38 = vadd.f32 %v1484_v16, %v1436_v11  ;;  %1552 = vmatmul.bf16.gmra.mxu2 %v3529_v10  ;;  %1650 = vmatmul.bf16.gmra.mxu0 %v3529_v10 }
 0x28a   : > { %1699 = vmatmul.bf16.gmra.mxu1 %v3531_v26 }
 0x28c   : > { %1601 = vmatmul.bf16.gmra.mxu3 %v3531_v26  ;;  %v1455_v62 = vpop.f32.mrf.mxu2 }
 0x28d   : > { %v1456_v59 = vadd.f32 %v1455_v62, %v3551_v54 }
 0x28e   : > { %v1437_v52 = vpop.f32.mrf.mxu0 }
 0x28f   : > { %v1504_v51 = vpop.f32.mrf.mxu3  ;;  %v1438_v41 = vadd.f32 %v1437_v52, %v3551_v54  ;;  %v1486_v6 = vpop.f32.mrf.mxu1 }
 0x290   : > { %v3609_v30 = vadd.f32 %v1504_v51, %v1456_v59 }
 0x291   : > { %v3612_v3 = vadd.f32 %v1486_v6, %v1438_v41 }
 0x294   : > { %v1457_v10 = vpop.f32.mrf.mxu2 }
 0x295   : > { %v1458_v25 = vadd.f32 %v1457_v10, %v3551_v54 }
 0x296   : > { %v1616_v33 = vpop.f32.mrf.mxu0 }
 0x297   : > { %v1506_v26 = vpop.f32.mrf.mxu3  ;;  %v1617_v47 = vadd.f32 %v1616_v33, %v3615_v1  ;;  %v1665_v48 = vpop.f32.mrf.mxu1 }
 0x298   : > { %v3618_v22 = vadd.f32 %v1506_v26, %v1458_v25 }
 0x299   : > { %v1666_v23 = vadd.f32 %v1665_v48, %v1617_v47 }
 0x29b   : > { %v1706_v43 = vpack.c.bf16 %v1666_v23, %v1666_v23 }
 0x29c   : > { %v1518_v19 = vpop.f32.mrf.mxu2 }
 0x29d   : > { %1738 = vst [vmem:[%s2757_s25 + $0x8] sm:$0xf] %v1706_v43  ;;  %v1519_v2 = vadd.f32 %v1518_v19, %v3622_v29 }
 0x29e   : > { %v1618_v54 = vpop.f32.mrf.mxu0 }
 0x29f   : > { %v1567_v9 = vpop.f32.mrf.mxu3  ;;  %v1619_v55 = vadd.f32 %v1618_v54, %v3615_v1  ;;  %v1667_v18 = vpop.f32.mrf.mxu1 }
 0x2a0   : > { %v1568_v31 = vadd.f32 %v1567_v9, %v1519_v2 }
 0x2a1   : > { %v1668_v20 = vadd.f32 %v1667_v18, %v1619_v55 }
 0x2a2   : > { %v1705_v36 = vpack.c.bf16 %v1568_v31, %v3554_v28 }
 0x2a3   : > { %v1708_v53 = vpack.c.bf16 %v1668_v20, %v1668_v20 }
 0x2a4   : > { %1737 = vst [vmem:[%s2757_s25] sm:$0xff] %v1705_v36  ;;  %v1520_v24 = vpop.f32.mrf.mxu2 }
 0x2a5   : > { %1740 = vst [vmem:[%s2757_s25 + $0x14] sm:$0xf] %v1708_v53  ;;  %v1521_v63 = vadd.f32 %v1520_v24, %v3622_v29 }
 0x2a6   : > { %v1621_v57 = vpop.f32.mrf.mxu0 }
 0x2a7   : > { %v1569_v35 = vpop.f32.mrf.mxu3  ;;  %v1622_v37 = vadd.f32 %v1621_v57, %v3615_v1  ;;  %v1670_v40 = vpop.f32.mrf.mxu1 }
 0x2a8   : > { %v1570_v56 = vadd.f32 %v1569_v35, %v1521_v63 }
 0x2a9   : > { %v1671_v60 = vadd.f32 %v1670_v40, %v1622_v37 }
 0x2aa   : > { %v1707_v39 = vpack.c.bf16 %v1570_v56, %v3564_v50 }
 0x2ab   : > { %v1710_v28 = vpack.c.bf16 %v1671_v60, %v1671_v60 }
 0x2ac   : > { %1739 = vst [vmem:[%s2757_s25 + $0xc] sm:$0xff] %v1707_v39  ;;  %v1523_v32 = vpop.f32.mrf.mxu2 }
 0x2ad   : > { %1742 = vst [vmem:[%s2757_s25 + $0x20] sm:$0xf] %v1710_v28  ;;  %v1524_v4 = vadd.f32 %v1523_v32, %v3622_v29 }
 0x2ae   : > { %v1623_v8 = vpop.f32.mrf.mxu0 }
 0x2af   : > { %v1572_v45 = vpop.f32.mrf.mxu3  ;;  %v1624_v5 = vadd.f32 %v1623_v8, %v3615_v1  ;;  %v1672_v17 = vpop.f32.mrf.mxu1 }
 0x2b0   : > { %v1573_v15 = vadd.f32 %v1572_v45, %v1524_v4 }
 0x2b1   : > { %v1673_v61 = vadd.f32 %v1672_v17, %v1624_v5 }
 0x2b2   : > { %v1709_v58 = vpack.c.bf16 %v1573_v15, %v3570_v46 }
 0x2b3   : > { %v1712_v50 = vpack.c.bf16 %v1673_v61, %v1673_v61 }
 0x2b4   : > { %1741 = vst [vmem:[%s2757_s25 + $0x18] sm:$0xff] %v1709_v58  ;;  %v1525_v12 = vpop.f32.mrf.mxu2 }
 0x2b5   : > { %1744 = vst [vmem:[%s2757_s25 + $0x2c] sm:$0xf] %v1712_v50  ;;  %v1526_v13 = vadd.f32 %v1525_v12, %v3622_v29 }
 0x2b6   : > { %v1626_v16 = vpop.f32.mrf.mxu0 }
 0x2b7   : > { %v1574_v11 = vpop.f32.mrf.mxu3  ;;  %v1627_v59 = vadd.f32 %v1626_v16, %v3615_v1  ;;  %v1675_v51 = vpop.f32.mrf.mxu1 }
 0x2b8   : > { %v1575_v62 = vadd.f32 %v1574_v11, %v1526_v13 }
 0x2b9   : > { %v1676_v41 = vadd.f32 %v1675_v51, %v1627_v59 }
 0x2ba   : > { %v1711_v52 = vpack.c.bf16 %v1575_v62, %v3580_v0 }
 0x2bb   : > { %v1714_v46 = vpack.c.bf16 %v1676_v41, %v1676_v41 }
 0x2bc   : > { %1743 = vst [vmem:[%s2757_s25 + $0x24] sm:$0xff] %v1711_v52  ;;  %v1528_v6 = vpop.f32.mrf.mxu2 }
 0x2bd   : > { %1746 = vst [vmem:[%s2757_s25 + $0x38] sm:$0xf] %v1714_v46  ;;  %v1529_v10 = vadd.f32 %v1528_v6, %v3622_v29 }
 0x2be   : > { %v1628_v26 = vpop.f32.mrf.mxu0 }
 0x2bf   : > { %v1577_v25 = vpop.f32.mrf.mxu3  ;;  %v1629_v47 = vadd.f32 %v1628_v26, %v3615_v1  ;;  %v1677_v48 = vpop.f32.mrf.mxu1 }
 0x2c0   : > { %v1578_v33 = vadd.f32 %v1577_v25, %v1529_v10 }
 0x2c1   : > { %v1678_v43 = vadd.f32 %v1677_v48, %v1629_v47 }
 0x2c2   : > { %v1713_v23 = vpack.c.bf16 %v1578_v33, %v3586_v21 }
 0x2c3   : > { %v1716_v0 = vpack.c.bf16 %v1678_v43, %v1678_v43 }
 0x2c4   : > { %1745 = vst [vmem:[%s2757_s25 + $0x30] sm:$0xff] %v1713_v23  ;;  %v1530_v19 = vpop.f32.mrf.mxu2 }
 0x2c5   : > { %1748 = vst [vmem:[%s2757_s25 + $0x44] sm:$0xf] %v1716_v0  ;;  %v1531_v2 = vadd.f32 %v1530_v19, %v3622_v29 }
 0x2c6   : > { %v1631_v54 = vpop.f32.mrf.mxu0 }
 0x2c7   : > { %v1579_v9 = vpop.f32.mrf.mxu3  ;;  %v1632_v55 = vadd.f32 %v1631_v54, %v3615_v1  ;;  %v1680_v18 = vpop.f32.mrf.mxu1 }
 0x2c8   : > { %v1580_v31 = vadd.f32 %v1579_v9, %v1531_v2 }
 0x2c9   : > { %v1681_v20 = vadd.f32 %v1680_v18, %v1632_v55 }
 0x2ca   : > { %v1715_v36 = vpack.c.bf16 %v1580_v31, %v3596_v44 }
 0x2cb   : > { %v1718_v21 = vpack.c.bf16 %v1681_v20, %v1681_v20 }
 0x2cc   : > { %1747 = vst [vmem:[%s2757_s25 + $0x3c] sm:$0xff] %v1715_v36  ;;  %v1533_v53 = vpop.f32.mrf.mxu2 }
 0x2cd   : > { %1750 = vst [vmem:[%s2757_s25 + $0x50] sm:$0xf] %v1718_v21  ;;  %v1534_v24 = vadd.f32 %v1533_v53, %v3622_v29 }
 0x2ce   : > { %v1633_v35 = vpop.f32.mrf.mxu0 }
 0x2cf   : > { %v1582_v63 = vpop.f32.mrf.mxu3  ;;  %v1634_v56 = vadd.f32 %v1633_v35, %v3615_v1  ;;  %v1682_v37 = vpop.f32.mrf.mxu1 }
 0x2d0   : > { %v1583_v57 = vadd.f32 %v1582_v63, %v1534_v24 }
 0x2d1   : > { %v1683_v39 = vadd.f32 %v1682_v37, %v1634_v56 }
 0x2d2   : > { %v1717_v40 = vpack.c.bf16 %v1583_v57, %v3602_v38 }
 0x2d3   : > { %v1720_v44 = vpack.c.bf16 %v1683_v39, %v1683_v39 }
 0x2d4   : > { %1749 = vst [vmem:[%s2757_s25 + $0x48] sm:$0xff] %v1717_v40  ;;  %v1535_v60 = vpop.f32.mrf.mxu2 }
 0x2d5   : > { %1752 = vst [vmem:[%s2757_s25 + $0x5c] sm:$0xf] %v1720_v44  ;;  %v1536_v28 = vadd.f32 %v1535_v60, %v3622_v29 }
 0x2d6   : > { %v1636_v4 = vpop.f32.mrf.mxu0 }
 0x2d7   : > { %v1584_v32 = vpop.f32.mrf.mxu3  ;;  %v1637_v8 = vadd.f32 %v1636_v4, %v3615_v1  ;;  %v1685_v15 = vpop.f32.mrf.mxu1 }
 0x2d8   : > { %v1585_v45 = vadd.f32 %v1584_v32, %v1536_v28 }
 0x2d9   : > { %v1686_v17 = vadd.f32 %v1685_v15, %v1637_v8 }
 0x2da   : > { %v1719_v5 = vpack.c.bf16 %v1585_v45, %v3612_v3 }
 0x2db   : > { %v1722_v38 = vpack.c.bf16 %v1686_v17, %v1686_v17 }
 0x2dc   : > { %1751 = vst [vmem:[%s2757_s25 + $0x54] sm:$0xff] %v1719_v5  ;;  %v1538_v58 = vpop.f32.mrf.mxu2 }
 0x2dd   : > { %1754 = vst [vmem:[%s2757_s25 + $0x68] sm:$0xf] %v1722_v38  ;;  %v1539_v61 = vadd.f32 %v1538_v58, %v3622_v29 }
 0x2de   : > { %v1638_v12 = vpop.f32.mrf.mxu0 }
 0x2df   : > { %v1587_v50 = vpop.f32.mrf.mxu3  ;;  %v1639_v11 = vadd.f32 %v1638_v12, %v3615_v1  ;;  %v1687_v16 = vpop.f32.mrf.mxu1 }
 0x2e0   : > { %v1588_v13 = vadd.f32 %v1587_v50, %v1539_v61 }
 0x2e1   : > { %v1688_v59 = vadd.f32 %v1687_v16, %v1639_v11 }
 0x2e2   : > { %v1721_v62 = vpack.c.bf16 %v1588_v13, %v3561_v14 }
 0x2e3   : > { %v1724_v3 = vpack.c.bf16 %v1688_v59, %v1688_v59 }
 0x2e4   : > { %1753 = vst [vmem:[%s2757_s25 + $0x60] sm:$0xff] %v1721_v62  ;;  %v1540_v51 = vpop.f32.mrf.mxu2 }
 0x2e5   : > { %1756 = vst [vmem:[%s2757_s25 + $0x74] sm:$0xf] %v1724_v3  ;;  %v1541_v52 = vadd.f32 %v1540_v51, %v3622_v29 }
 0x2e6   : > { %v1641_v46 = vpop.f32.mrf.mxu0 }
 0x2e7   : > { %v1589_v41 = vpop.f32.mrf.mxu3  ;;  %v1642_v10 = vadd.f32 %v1641_v46, %v3615_v1  ;;  %v1690_v25 = vpop.f32.mrf.mxu1 }
 0x2e8   : > { %v1590_v6 = vadd.f32 %v1589_v41, %v1541_v52 }
 0x2e9   : > { %v1691_v33 = vadd.f32 %v1690_v25, %v1642_v10  ;;  %v1804_v10 = vld [vmem:[%s2757_s25 + $0x30] sm:$0xff] (%p2600_p6)  ;;  %v1806_v25 = vld [vmem:[%s2757_s25 + $0x3c] sm:$0xff] (%p2600_p6) }
 0x2ea   : > { %v1723_v26 = vpack.c.bf16 %v1590_v6, %v3567_v49  ;;  %1805 = vst [vmem:[%s3711_s26 + $0x60] sm:$0xff] (%p2600_p6), %v1804_v10 }
 0x2eb   : > { %v1726_v14 = vpack.c.bf16 %v1691_v33, %v1691_v33  ;;  %v1810_v33 = vld [vmem:[%s2757_s25 + $0x54] sm:$0xff] (%p2600_p6)  ;;  %1807 = vst [vmem:[%s3711_s26 + $0x78] sm:$0xff] (%p2600_p6), %v1806_v25 }
 0x2ec   : > { %1755 = vst [vmem:[%s2757_s25 + $0x6c] sm:$0xff] %v1723_v26  ;;  %v1543_v47 = vpop.f32.mrf.mxu2  ;;  %v1808_v26 = vld [vmem:[%s2757_s25 + $0x48] sm:$0xff] (%p2600_p6) }
 0x2ed   : > { %1758 = vst [vmem:[%s2757_s25 + $0x80] sm:$0xf] %v1726_v14  ;;  %v1544_v48 = vadd.f32 %v1543_v47, %v3622_v29  ;;  %v1812_v14 = vld [vmem:[%s2757_s25 + $0x60] sm:$0xff] (%p2600_p6) }
 0x2ee   : > { %v1643_v43 = vpop.f32.mrf.mxu0  ;;  %1809 = vst [vmem:[%s3711_s26 + $0x90] sm:$0xff] (%p2600_p6), %v1808_v26 }
 0x2ef   : > { %v1592_v23 = vpop.f32.mrf.mxu3  ;;  %v1644_v19 = vadd.f32 %v1643_v43, %v3615_v1  ;;  %v1692_v2 = vpop.f32.mrf.mxu1  ;;  %1811 = vst [vmem:[%s3711_s26 + $0xa8] sm:$0xff] (%p2600_p6), %v1810_v33 }
 0x2f0   : > { %v1593_v0 = vadd.f32 %v1592_v23, %v1544_v48  ;;  %1813 = vst [vmem:[%s3711_s26 + $0xc0] sm:$0xff] (%p2600_p6), %v1812_v14 }
 0x2f1   : > { %v1693_v54 = vadd.f32 %v1692_v2, %v1644_v19 }
 0x2f2   : > { %v1725_v9 = vpack.c.bf16 %v1593_v0, %v3577_v34 }
 0x2f3   : > { %v1728_v49 = vpack.c.bf16 %v1693_v54, %v1693_v54  ;;  %v1814_v47 = vld [vmem:[%s2757_s25 + $0x6c] sm:$0xff] (%p2600_p6)  ;;  %v2302_v54 = vld [vmem:[%s2757_s25 + $0x14] sm:$0xf] (%p2600_p6) }
 0x2f4   : > { %1757 = vst [vmem:[%s2757_s25 + $0x78] sm:$0xff] %v1725_v9  ;;  %v1545_v31 = vpop.f32.mrf.mxu2  ;;  %v2300_v9 = vld [vmem:[%s2757_s25 + $0x8] sm:$0xf] (%p2600_p6) }
 0x2f5   : > { %1760 = vst [vmem:[%s2757_s25 + $0x8c] sm:$0xf] %v1728_v49  ;;  %v1546_v55 = vadd.f32 %v1545_v31, %v3622_v29  ;;  %v2304_v49 = vld [vmem:[%s2757_s25 + $0x20] sm:$0xf] (%p2600_p6)  ;;  %v2306_v31 = vld [vmem:[%s2757_s25 + $0x2c] sm:$0xf] (%p2600_p6) }
 0x2f6   : > { %v1646_v36 = vpop.f32.mrf.mxu0  ;;  %1815 = vst [vmem:[%s3711_s26 + $0xd8] sm:$0xff] (%p2600_p6), %v1814_v47 }
 0x2f7   : > { %v1594_v18 = vpop.f32.mrf.mxu3  ;;  %v1647_v21 = vadd.f32 %v1646_v36, %v3615_v1  ;;  %v1695_v53 = vpop.f32.mrf.mxu1  ;;  %2301 = vst [vmem:[%s3711_s26 + $0x8] sm:$0xf] (%p2600_p6), %v2300_v9  ;;  %v2312_v36 = vld [vmem:[%s2757_s25 + $0x50] sm:$0xf] (%p2600_p6) }
 0x2f8   : > { %v1595_v20 = vadd.f32 %v1594_v18, %v1546_v55  ;;  %2303 = vst [vmem:[%s3711_s26 + $0x20] sm:$0xf] (%p2600_p6), %v2302_v54  ;;  %v2308_v55 = vld [vmem:[%s2757_s25 + $0x38] sm:$0xf] (%p2600_p6)  ;;  %v2310_v18 = vld [vmem:[%s2757_s25 + $0x44] sm:$0xf] (%p2600_p6) }
 0x2f9   : > { %v1696_v63 = vadd.f32 %v1695_v53, %v1647_v21  ;;  %2305 = vst [vmem:[%s3711_s26 + $0x38] sm:$0xf] (%p2600_p6), %v2304_v49  ;;  %v2316_v21 = vld [vmem:[%s2757_s25 + $0x68] sm:$0xf] (%p2600_p6)  ;;  %v2318_v53 = vld [vmem:[%s2757_s25 + $0x74] sm:$0xf] (%p2600_p6) }
 0x2fa   : > { %v1727_v24 = vpack.c.bf16 %v1595_v20, %v3583_v7  ;;  %2307 = vst [vmem:[%s3711_s26 + $0x50] sm:$0xf] (%p2600_p6), %v2306_v31  ;;  %v2314_v20 = vld [vmem:[%s2757_s25 + $0x5c] sm:$0xf] (%p2600_p6) }
 0x2fb   : > { %v1730_v34 = vpack.c.bf16 %v1696_v63, %v1696_v63  ;;  %v1816_v48 = vld [vmem:[%s2757_s25 + $0x78] sm:$0xff] (%p2600_p6)  ;;  %2309 = vst [vmem:[%s3711_s26 + $0x68] sm:$0xf] (%p2600_p6), %v2308_v55 }
 0x2fc   : > { %1759 = vst [vmem:[%s2757_s25 + $0x84] sm:$0xff] %v1727_v24  ;;  %v1548_v35 = vpop.f32.mrf.mxu2  ;;  %v2320_v24 = vld [vmem:[%s2757_s25 + $0x80] sm:$0xf] (%p2600_p6)  ;;  %v2322_v63 = vld [vmem:[%s2757_s25 + $0x8c] sm:$0xf] (%p2600_p6) }
 0x2fd   : > { %1762 = vst [vmem:[%s2757_s25 + $0x98] sm:$0xf] %v1730_v34  ;;  %v1549_v57 = vadd.f32 %v1548_v35, %v3622_v29 }
 0x2fe   : > { %v1648_v37 = vpop.f32.mrf.mxu0  ;;  %1817 = vst [vmem:[%s3711_s26 + $0xf0] sm:$0xff] (%p2600_p6), %v1816_v48 }
 0x2ff   : > { %v1597_v56 = vpop.f32.mrf.mxu3  ;;  %v1649_v39 = vadd.f32 %v1648_v37, %v3615_v1  ;;  %v1697_v44 = vpop.f32.mrf.mxu1  ;;  %2311 = vst [vmem:[%s3711_s26 + $0x80] sm:$0xf] (%p2600_p6), %v2310_v18 }
 0x300   : > { %v1598_v40 = vadd.f32 %v1597_v56, %v1549_v57  ;;  %2313 = vst [vmem:[%s3711_s26 + $0x98] sm:$0xf] (%p2600_p6), %v2312_v36 }
 0x301   : > { %v1698_v28 = vadd.f32 %v1697_v44, %v1649_v39  ;;  %2315 = vst [vmem:[%s3711_s26 + $0xb0] sm:$0xf] (%p2600_p6), %v2314_v20 }
 0x302   : > { %v1729_v60 = vpack.c.bf16 %v1598_v40, %v3593_v42  ;;  %2317 = vst [vmem:[%s3711_s26 + $0xc8] sm:$0xf] (%p2600_p6), %v2316_v21 }
 0x303   : > { %v1732_v7 = vpack.c.bf16 %v1698_v28, %v1698_v28  ;;  %v1818_v23 = vld [vmem:[%s2757_s25 + $0x84] sm:$0xff] (%p2600_p6)  ;;  %2319 = vst [vmem:[%s3711_s26 + $0xe0] sm:$0xf] (%p2600_p6), %v2318_v53 }
 0x304   : > { %1761 = vst [vmem:[%s2757_s25 + $0x90] sm:$0xff] %v1729_v60  ;;  %v1550_v32 = vpop.f32.mrf.mxu2  ;;  %v2324_v34 = vld [vmem:[%s2757_s25 + $0x98] sm:$0xf] (%p2600_p6) }
 0x305   : > { %1764 = vst [vmem:[%s2757_s25 + $0xa4] sm:$0xf] %v1732_v7  ;;  %v1551_v4 = vadd.f32 %v1550_v32, %v3622_v29 }
 0x306   : > { %v1651_v8 = vpop.f32.mrf.mxu0  ;;  %1819 = vst [vmem:[%s3711_s26 + $0x108] sm:$0xff] (%p2600_p6), %v1818_v23 }
 0x307   : > { %v1599_v45 = vpop.f32.mrf.mxu3  ;;  %v1652_v5 = vadd.f32 %v1651_v8, %v3615_v1  ;;  %v1700_v17 = vpop.f32.mrf.mxu1  ;;  %2321 = vst [vmem:[%s3711_s26 + $0xf8] sm:$0xf] (%p2600_p6), %v2320_v24 }
 0x308   : > { %v1600_v15 = vadd.f32 %v1599_v45, %v1551_v4  ;;  %2323 = vst [vmem:[%s3711_s26 + $0x110] sm:$0xf] (%p2600_p6), %v2322_v63 }
 0x309   : > { %v1701_v58 = vadd.f32 %v1700_v17, %v1652_v5  ;;  %2325 = vst [vmem:[%s3711_s26 + $0x128] sm:$0xf] (%p2600_p6), %v2324_v34 }
 0x30a   : > { %v1731_v38 = vpack.c.bf16 %v1600_v15, %v3599_v27 }
 0x30b   : > { %v1734_v42 = vpack.c.bf16 %v1701_v58, %v1701_v58  ;;  %v1820_v43 = vld [vmem:[%s2757_s25 + $0x90] sm:$0xff] (%p2600_p6) }
 0x30c   : > { %1763 = vst [vmem:[%s2757_s25 + $0x9c] sm:$0xff] %v1731_v38  ;;  %v1553_v61 = vpop.f32.mrf.mxu2  ;;  %v2326_v35 = vld [vmem:[%s2757_s25 + $0xa4] sm:$0xf] (%p2600_p6) }
 0x30d   : > { %1766 = vst [vmem:[%s2757_s25 + $0xb0] sm:$0xf] %v1734_v42  ;;  %v1554_v50 = vadd.f32 %v1553_v61, %v3622_v29 }
 0x30e   : > { %v1653_v13 = vpop.f32.mrf.mxu0  ;;  %1821 = vst [vmem:[%s3711_s26 + $0x120] sm:$0xff] (%p2600_p6), %v1820_v43 }
 0x30f   : > { %v1602_v12 = vpop.f32.mrf.mxu3  ;;  %v1654_v16 = vadd.f32 %v1653_v13, %v3615_v1  ;;  %v1702_v62 = vpop.f32.mrf.mxu1  ;;  %v1798_v1 = vld [vmem:[%s2757_s25 + $0xc] sm:$0xff] (%p2600_p6)  ;;  %2327 = vst [vmem:[%s3711_s26 + $0x140] sm:$0xf] (%p2600_p6), %v2326_v35 }
 0x310   : > { %v1603_v11 = vadd.f32 %v1602_v12, %v1554_v50  ;;  %1799 = vst [vmem:[%s3711_s26 + $0x18] sm:$0xff] (%p2600_p6), %v1798_v1 }
 0x311   : > { %v1703_v3 = vadd.f32 %v1702_v62, %v1654_v16 }
 0x312   : > { %v1733_v59 = vpack.c.bf16 %v1603_v11, %v3609_v30  ;;  %v1796_v30 = vld [vmem:[%s2757_s25] sm:$0xff] (%p2600_p6) }
 0x313   : > { %v1736_v27 = vpack.c.bf16 %v1703_v3, %v1703_v3  ;;  %1797 = vst [vmem:[%s3711_s26] sm:$0xff] (%p2600_p6), %v1796_v30  ;;  %v1822_v0 = vld [vmem:[%s2757_s25 + $0x9c] sm:$0xff] (%p2600_p6) }
 0x314   : > { %1765 = vst [vmem:[%s2757_s25 + $0xa8] sm:$0xff] %v1733_v59  ;;  %v1555_v51 = vpop.f32.mrf.mxu2  ;;  %v2328_v57 = vld [vmem:[%s2757_s25 + $0xb0] sm:$0xf] (%p2600_p6) }
 0x315   : > { %1768 = vst [vmem:[%s2757_s25 + $0xbc] sm:$0xf] %v1736_v27  ;;  %v1556_v52 = vadd.f32 %v1555_v51, %v3622_v29  ;;  %v1802_v29 = vld [vmem:[%s2757_s25 + $0x24] sm:$0xff] (%p2600_p6) }
 0x316   : > { %1803 = vst [vmem:[%s3711_s26 + $0x48] sm:$0xff] (%p2600_p6), %v1802_v29 }
 0x317   : > { %v1604_v41 = vpop.f32.mrf.mxu3  ;;  %1823 = vst [vmem:[%s3711_s26 + $0x138] sm:$0xff] (%p2600_p6), %v1822_v0 }
 0x318   : > { %v1605_v46 = vadd.f32 %v1604_v41, %v1556_v52  ;;  %1775 = sbr.rel (!%p2600_p6) target bundleno = 805 (0x325), region = 74  ;;  %2329 = vst [vmem:[%s3711_s26 + $0x158] sm:$0xf] (%p2600_p6), %v2328_v57 }
 0x31a   : > { %v1735_v6 = vpack.c.bf16 %v1605_v46, %v3618_v22  ;;  %v1800_v22 = vld [vmem:[%s2757_s25 + $0x18] sm:$0xff] (%p2600_p6) }
 0x31b   : > { %1801 = vst [vmem:[%s3711_s26 + $0x30] sm:$0xff] (%p2600_p6), %v1800_v22  ;;  %v1824_v19 = vld [vmem:[%s2757_s25 + $0xa8] sm:$0xff] (%p2600_p6) }
 0x31c   : > { %1767 = vst [vmem:[%s2757_s25 + $0xb4] sm:$0xff] %v1735_v6  ;;  %v2330_v56 = vld [vmem:[%s2757_s25 + $0xbc] sm:$0xf] (%p2600_p6) }
 0x31d   : > { %1825 = vst [vmem:[%s3711_s26 + $0x150] sm:$0xff] %v1824_v19 }
 0x31e   : > { %2331 = vst [vmem:[%s3711_s26 + $0x170] sm:$0xf] %v2330_v56 }
 0x323   : > { %v1826_v2 = vld [vmem:[%s2757_s25 + $0xb4] sm:$0xff] }
 0x324   : > { %1827 = vst [vmem:[%s3711_s26 + $0x168] sm:$0xff] %v1826_v2 }
 0x325 PF: > { %s15_s22 = sadd.s32 1, %s2532_s22   ;;  %s3797_s18 = smov %s2520_s19 }
 0x326   : > { %p12_p13 = scmp.ge.s32.totalorder %s15_s22, 4   ;;  %s3798_s19 = smov %s2605_s28 }
 0x327   : > { %s3799_s20 = smov %s2528_s21  ;;  %s3800_s21 = smov %s3802_s23 }
 0x328   :  { %14 = sbr.rel (!%p12_p13) target bundleno = 3 (0x3), region = 149 }

// kernel: gpt2_forward.11
= control target key start
LH: loop header
LB: loop body
LE: loop exit
PB: predicated region body
PF: predicated region fallthrough
CT: control target
= control target key end

     0   :  { %s1391_s1 = inlined_call_operand.vmem [shape: bf16[256,256], index: 1, kind: input, shape index: {}]   ;;  %s1392_s0 = inlined_call_operand.vmem [shape: bf16[128,256], index: 0, kind: input, shape index: {}]   ;;  %s1393_s2 = inlined_call_operand.vmem [shape: f32[1,256], index: 2, kind: input, shape index: {}]   ;;  %s1394_s3 = inlined_call_operand.vmem [shape: f32[128,256], index: 3, kind: input, shape index: {}]   ;;  %s1395_s4 = inlined_call_operand.vmem [shape: f32[128,256], index: 4, kind: output, shape index: {}]  }
   0x1   :  { %v729_v0 = vld [vmem:[%s1391_s1 + $0x70] sm:$0xf]  ;;  %v830_v1 = vld [vmem:[%s1391_s1 + $0x74] sm:$0xf0]  ;;  %v829_v5 = vld [vmem:[%s1391_s1 + $0x74] sm:$0xf] }
   0x2   :  { %v793_v2 = vld [vmem:[%s1391_s1 + $0xf0] sm:$0xf]  ;;  %v730_v3 = vor.u32 %v830_v1, %v729_v0  ;;  %v846_v4 = vld [vmem:[%s1391_s1 + $0xf4] sm:$0xf0]  ;;  %v731_v6 = vld [vmem:[%s1391_s1 + $0x78] sm:$0xf0] }
   0x3   :  { %v794_v7 = vor.u32 %v846_v4, %v793_v2  ;;  %v734_v8 = vor.u32 %v829_v5, %v731_v6  ;;  %v845_v9 = vld [vmem:[%s1391_s1 + $0xf4] sm:$0xf]  ;;  %v795_v10 = vld [vmem:[%s1391_s1 + $0xf8] sm:$0xf0]  ;;  %v721_v11 = vld [vmem:[%s1391_s1 + $0x60] sm:$0xf] }
   0x4   :  { %311 = vmatpush.bf16.msra.mxu0 %v730_v3  ;;  %v798_v12 = vor.u32 %v845_v9, %v795_v10  ;;  %v828_v13 = vld [vmem:[%s1391_s1 + $0x64] sm:$0xf0]  ;;  %v785_v14 = vld [vmem:[%s1391_s1 + $0xe0] sm:$0xf]  ;;  %v827_v18 = vld [vmem:[%s1391_s1 + $0x64] sm:$0xf] }
   0x5   :  { %v844_v15 = vld [vmem:[%s1391_s1 + $0xe4] sm:$0xf0]  ;;  %360 = vmatpush.bf16.msra.mxu1 %v794_v7  ;;  %409 = vmatpush.bf16.msra.mxu2 %v734_v8  ;;  %v722_v16 = vor.u32 %v828_v13, %v721_v11  ;;  %v723_v19 = vld [vmem:[%s1391_s1 + $0x68] sm:$0xf0]  ;;  %v843_v20 = vld [vmem:[%s1391_s1 + $0xe4] sm:$0xf] }
   0x6   :  { %v786_v17 = vor.u32 %v844_v15, %v785_v14  ;;  %458 = vmatpush.bf16.msra.mxu3 %v798_v12  ;;  %v726_v21 = vor.u32 %v827_v18, %v723_v19  ;;  %v787_v22 = vld [vmem:[%s1391_s1 + $0xe8] sm:$0xf0]  ;;  %v713_v23 = vld [vmem:[%s1391_s1 + $0x50] sm:$0xf]  ;;  %v826_v24 = vld [vmem:[%s1391_s1 + $0x54] sm:$0xf0] }
   0x7   :  { %v790_v25 = vor.u32 %v843_v20, %v787_v22  ;;  %v777_v26 = vld [vmem:[%s1391_s1 + $0xd0] sm:$0xf]  ;;  %v842_v27 = vld [vmem:[%s1391_s1 + $0xd4] sm:$0xf0]  ;;  %v825_v28 = vld [vmem:[%s1391_s1 + $0x54] sm:$0xf]  ;;  %v714_v29 = vor.u32 %v826_v24, %v713_v23 }
   0x8   :  { %312 = vmatpush.bf16.msra.mxu0 %v722_v16  ;;  %v715_v30 = vld [vmem:[%s1391_s1 + $0x58] sm:$0xf0]  ;;  %v841_v31 = vld [vmem:[%s1391_s1 + $0xd4] sm:$0xf]  ;;  %v778_v33 = vor.u32 %v842_v27, %v777_v26  ;;  %v705_v35 = vld [vmem:[%s1391_s1 + $0x40] sm:$0xf] }
   0x9   :  { %v779_v32 = vld [vmem:[%s1391_s1 + $0xd8] sm:$0xf0]  ;;  %361 = vmatpush.bf16.msra.mxu1 %v786_v17  ;;  %410 = vmatpush.bf16.msra.mxu2 %v726_v21  ;;  %v718_v34 = vor.u32 %v825_v28, %v715_v30  ;;  %v824_v36 = vld [vmem:[%s1391_s1 + $0x44] sm:$0xf0]  ;;  %v769_v37 = vld [vmem:[%s1391_s1 + $0xc0] sm:$0xf] }
   0xa   :  { %459 = vmatpush.bf16.msra.mxu3 %v790_v25  ;;  %v782_v38 = vor.u32 %v841_v31, %v779_v32  ;;  %v840_v39 = vld [vmem:[%s1391_s1 + $0xc4] sm:$0xf0]  ;;  %v823_v40 = vld [vmem:[%s1391_s1 + $0x44] sm:$0xf]  ;;  %v707_v41 = vld [vmem:[%s1391_s1 + $0x48] sm:$0xf0]  ;;  %v706_v44 = vor.u32 %v824_v36, %v705_v35 }
   0xb   :  { %v839_v42 = vld [vmem:[%s1391_s1 + $0xc4] sm:$0xf]  ;;  %v771_v43 = vld [vmem:[%s1391_s1 + $0xc8] sm:$0xf0]  ;;  %v770_v45 = vor.u32 %v840_v39, %v769_v37  ;;  %v710_v46 = vor.u32 %v823_v40, %v707_v41  ;;  %v697_v47 = vld [vmem:[%s1391_s1 + $0x30] sm:$0xf] }
   0xc   :  { %313 = vmatpush.bf16.msra.mxu0 %v714_v29  ;;  %v822_v48 = vld [vmem:[%s1391_s1 + $0x34] sm:$0xf0]  ;;  %v761_v49 = vld [vmem:[%s1391_s1 + $0xb0] sm:$0xf]  ;;  %v774_v50 = vor.u32 %v839_v42, %v771_v43  ;;  %v821_v52 = vld [vmem:[%s1391_s1 + $0x34] sm:$0xf] }
   0xd   :  { %362 = vmatpush.bf16.msra.mxu1 %v778_v33  ;;  %411 = vmatpush.bf16.msra.mxu2 %v718_v34  ;;  %v838_v51 = vld [vmem:[%s1391_s1 + $0xb4] sm:$0xf0]  ;;  %v699_v53 = vld [vmem:[%s1391_s1 + $0x38] sm:$0xf0]  ;;  %v837_v54 = vld [vmem:[%s1391_s1 + $0xb4] sm:$0xf]  ;;  %v698_v56 = vor.u32 %v822_v48, %v697_v47 }
   0xe   :  { %460 = vmatpush.bf16.msra.mxu3 %v782_v38  ;;  %v763_v55 = vld [vmem:[%s1391_s1 + $0xb8] sm:$0xf0]  ;;  %v762_v57 = vor.u32 %v838_v51, %v761_v49  ;;  %v702_v58 = vor.u32 %v821_v52, %v699_v53  ;;  %v689_v59 = vld [vmem:[%s1391_s1 + $0x20] sm:$0xf]  ;;  %v820_v60 = vld [vmem:[%s1391_s1 + $0x24] sm:$0xf0] }
   0xf   :  { %v753_v61 = vld [vmem:[%s1391_s1 + $0xa0] sm:$0xf]  ;;  %v766_v62 = vor.u32 %v837_v54, %v763_v55  ;;  %v836_v63 = vld [vmem:[%s1391_s1 + $0xa4] sm:$0xf0]  ;;  %v819_v0 = vld [vmem:[%s1391_s1 + $0x24] sm:$0xf]  ;;  %v690_v4 = vor.u32 %v820_v60, %v689_v59 }
  0x10   :  { %314 = vmatpush.bf16.msra.mxu0 %v706_v44  ;;  %v691_v1 = vld [vmem:[%s1391_s1 + $0x28] sm:$0xf0]  ;;  %v835_v2 = vld [vmem:[%s1391_s1 + $0xa4] sm:$0xf]  ;;  %v754_v5 = vor.u32 %v836_v63, %v753_v61  ;;  %v681_v7 = vld [vmem:[%s1391_s1 + $0x10] sm:$0xf] }
  0x11   :  { %363 = vmatpush.bf16.msra.mxu1 %v770_v45  ;;  %412 = vmatpush.bf16.msra.mxu2 %v710_v46  ;;  %v755_v3 = vld [vmem:[%s1391_s1 + $0xa8] sm:$0xf0]  ;;  %v694_v6 = vor.u32 %v819_v0, %v691_v1  ;;  %v818_v8 = vld [vmem:[%s1391_s1 + $0x14] sm:$0xf0]  ;;  %v745_v9 = vld [vmem:[%s1391_s1 + $0x90] sm:$0xf] }
  0x12   :  { %461 = vmatpush.bf16.msra.mxu3 %v774_v50  ;;  %v758_v10 = vor.u32 %v835_v2, %v755_v3  ;;  %v834_v11 = vld [vmem:[%s1391_s1 + $0x94] sm:$0xf0]  ;;  %v817_v12 = vld [vmem:[%s1391_s1 + $0x14] sm:$0xf]  ;;  %v683_v13 = vld [vmem:[%s1391_s1 + $0x18] sm:$0xf0]  ;;  %v682_v16 = vor.u32 %v818_v8, %v681_v7 }
  0x13   :  { %v833_v14 = vld [vmem:[%s1391_s1 + $0x94] sm:$0xf]  ;;  %v747_v15 = vld [vmem:[%s1391_s1 + $0x98] sm:$0xf0]  ;;  %v746_v17 = vor.u32 %v834_v11, %v745_v9  ;;  %v686_v18 = vor.u32 %v817_v12, %v683_v13  ;;  %v673_v19 = vld [vmem:[%s1391_s1] sm:$0xf] }
  0x14   :  { %315 = vmatpush.bf16.msra.mxu0 %v698_v56  ;;  %v816_v20 = vld [vmem:[%s1391_s1 + $0x4] sm:$0xf0]  ;;  %v737_v21 = vld [vmem:[%s1391_s1 + $0x80] sm:$0xf]  ;;  %v750_v22 = vor.u32 %v833_v14, %v747_v15  ;;  %v815_v24 = vld [vmem:[%s1391_s1 + $0x4] sm:$0xf] }
  0x15   :  { %364 = vmatpush.bf16.msra.mxu1 %v762_v57  ;;  %413 = vmatpush.bf16.msra.mxu2 %v702_v58  ;;  %v832_v23 = vld [vmem:[%s1391_s1 + $0x84] sm:$0xf0]  ;;  %v675_v25 = vld [vmem:[%s1391_s1 + $0x8] sm:$0xf0]  ;;  %v831_v26 = vld [vmem:[%s1391_s1 + $0x84] sm:$0xf]  ;;  %v674_v28 = vor.u32 %v816_v20, %v673_v19 }
  0x16   :  { %462 = vmatpush.bf16.msra.mxu3 %v766_v62  ;;  %v739_v27 = vld [vmem:[%s1391_s1 + $0x88] sm:$0xf0]  ;;  %v609_v29 = vld [vmem:[%s1392_s0] sm:$0xf]  ;;  %v800_v30 = vld [vmem:[%s1392_s0 + $0x4] sm:$0xf0]  ;;  %v738_v31 = vor.u32 %v832_v23, %v737_v21  ;;  %v678_v32 = vor.u32 %v815_v24, %v675_v25 }
  0x17   :  { %v799_v33 = vld [vmem:[%s1392_s0 + $0x4] sm:$0xf]  ;;  %v611_v34 = vld [vmem:[%s1392_s0 + $0x8] sm:$0xf0]  ;;  %v742_v35 = vor.u32 %v831_v26, %v739_v27  ;;  %v610_v36 = vor.u32 %v800_v30, %v609_v29  ;;  %v617_v38 = vld [vmem:[%s1392_s0 + $0x10] sm:$0xf] }
  0x18   :  { %316 = vmatpush.bf16.msra.mxu0 %v690_v4  ;;  %v614_v37 = vor.u32 %v799_v33, %v611_v34  ;;  %v802_v39 = vld [vmem:[%s1392_s0 + $0x14] sm:$0xf0]  ;;  %v801_v40 = vld [vmem:[%s1392_s0 + $0x14] sm:$0xf]  ;;  %v619_v41 = vld [vmem:[%s1392_s0 + $0x18] sm:$0xf0] }
  0x19   :  { %365 = vmatpush.bf16.msra.mxu1 %v754_v5  ;;  %414 = vmatpush.bf16.msra.mxu2 %v694_v6  ;;  %v618_v42 = vor.u32 %v802_v39, %v617_v38  ;;  %v622_v43 = vor.u32 %v801_v40, %v619_v41  ;;  %v625_v44 = vld [vmem:[%s1392_s0 + $0x20] sm:$0xf]  ;;  %v804_v45 = vld [vmem:[%s1392_s0 + $0x24] sm:$0xf0]  ;;  %v803_v46 = vld [vmem:[%s1392_s0 + $0x24] sm:$0xf] }
  0x1a   :  { %463 = vmatpush.bf16.msra.mxu3 %v758_v10  ;;  %v627_v47 = vld [vmem:[%s1392_s0 + $0x28] sm:$0xf0]  ;;  %v626_v48 = vor.u32 %v804_v45, %v625_v44  ;;  %v633_v50 = vld [vmem:[%s1392_s0 + $0x30] sm:$0xf]  ;;  %v806_v51 = vld [vmem:[%s1392_s0 + $0x34] sm:$0xf0] }
  0x1b   :  { %v630_v49 = vor.u32 %v803_v46, %v627_v47  ;;  %v805_v52 = vld [vmem:[%s1392_s0 + $0x34] sm:$0xf]  ;;  %v635_v53 = vld [vmem:[%s1392_s0 + $0x38] sm:$0xf0]  ;;  %v634_v54 = vor.u32 %v806_v51, %v633_v50  ;;  %v641_v56 = vld [vmem:[%s1392_s0 + $0x40] sm:$0xf] }
  0x1c   :  { %317 = vmatpush.bf16.msra.mxu0 %v682_v16  ;;  %v638_v55 = vor.u32 %v805_v52, %v635_v53  ;;  %v808_v57 = vld [vmem:[%s1392_s0 + $0x44] sm:$0xf0]  ;;  %v807_v58 = vld [vmem:[%s1392_s0 + $0x44] sm:$0xf]  ;;  %v643_v59 = vld [vmem:[%s1392_s0 + $0x48] sm:$0xf0] }
  0x1d   :  { %366 = vmatpush.bf16.msra.mxu1 %v746_v17  ;;  %415 = vmatpush.bf16.msra.mxu2 %v686_v18  ;;  %v642_v60 = vor.u32 %v808_v57, %v641_v56  ;;  %v646_v61 = vor.u32 %v807_v58, %v643_v59  ;;  %v649_v62 = vld [vmem:[%s1392_s0 + $0x50] sm:$0xf]  ;;  %v810_v63 = vld [vmem:[%s1392_s0 + $0x54] sm:$0xf0]  ;;  %v809_v0 = vld [vmem:[%s1392_s0 + $0x54] sm:$0xf] }
  0x1e   :  { %464 = vmatpush.bf16.msra.mxu3 %v750_v22  ;;  %v651_v1 = vld [vmem:[%s1392_s0 + $0x58] sm:$0xf0]  ;;  %v650_v2 = vor.u32 %v810_v63, %v649_v62  ;;  %v657_v4 = vld [vmem:[%s1392_s0 + $0x60] sm:$0xf]  ;;  %v812_v5 = vld [vmem:[%s1392_s0 + $0x64] sm:$0xf0] }
  0x1f   :  { %v654_v3 = vor.u32 %v809_v0, %v651_v1  ;;  %v811_v6 = vld [vmem:[%s1392_s0 + $0x64] sm:$0xf]  ;;  %v659_v7 = vld [vmem:[%s1392_s0 + $0x68] sm:$0xf0]  ;;  %v658_v8 = vor.u32 %v812_v5, %v657_v4  ;;  %v665_v10 = vld [vmem:[%s1392_s0 + $0x70] sm:$0xf] }
  0x20   :  { %318 = vmatpush.bf16.msra.mxu0 %v674_v28  ;;  %v662_v9 = vor.u32 %v811_v6, %v659_v7  ;;  %v814_v11 = vld [vmem:[%s1392_s0 + $0x74] sm:$0xf0]  ;;  %v813_v12 = vld [vmem:[%s1392_s0 + $0x74] sm:$0xf]  ;;  %v667_v13 = vld [vmem:[%s1392_s0 + $0x78] sm:$0xf0] }
  0x21   :  { %367 = vmatpush.bf16.msra.mxu1 %v738_v31  ;;  %416 = vmatpush.bf16.msra.mxu2 %v678_v32  ;;  %v666_v14 = vor.u32 %v814_v11, %v665_v10  ;;  %v670_v15 = vor.u32 %v813_v12, %v667_v13  ;;  %v65_v16 = vld [vmem:[%s1393_s2] sm:$0x3]  ;;  %v508_v29 = vld [vmem:[%s1394_s3 + $0x8] sm:$0xff]  ;;  %v509_v33 = vld [vmem:[%s1394_s3 + $0x10] sm:$0xff] }
  0x22   :  { %465 = vmatpush.bf16.msra.mxu3 %v742_v35  ;;  %v1163_v17 = vperm.slane %v65_v16, 0  ;;  %v507_v21 = vld [vmem:[%s1394_s3] sm:$0xff]  ;;  %v1169_v23 = vperm.slane %v65_v16, 1  ;;  %v510_v41 = vld [vmem:[%s1394_s3 + $0x18] sm:$0xff]  ;;  %v512_v53 = vld [vmem:[%s1394_s3 + $0x28] sm:$0xff] }
  0x23   :  { %319 = vmatmul.bf16.vlgmr.msra.gmra.mxu0 %v610_v36  ;;  %v511_v45 = vld [vmem:[%s1394_s3 + $0x20] sm:$0xff]  ;;  %v513_v57 = vld [vmem:[%s1394_s3 + $0x30] sm:$0xff]  ;;  %v514_v1 = vld [vmem:[%s1394_s3 + $0x38] sm:$0xff] }
  0x24   :  { %368 = vmatmul.bf16.vlgmr.msra.gmra.mxu1 %v614_v37  ;;  %417 = vmatmul.bf16.vlgmr.msra.gmra.mxu2 %v610_v36  ;;  %v515_v5 = vld [vmem:[%s1394_s3 + $0x40] sm:$0xff]  ;;  %v516_v13 = vld [vmem:[%s1394_s3 + $0x48] sm:$0xff] }
  0x25   :  { %466 = vmatmul.bf16.vlgmr.msra.gmra.mxu3 %v614_v37 }
  0x33   :  { %324 = vmatmul.bf16.gmra.mxu0 %v618_v42 }
  0x34   :  { %373 = vmatmul.bf16.gmra.mxu1 %v622_v43  ;;  %422 = vmatmul.bf16.gmra.mxu2 %v618_v42 }
  0x35   :  { %471 = vmatmul.bf16.gmra.mxu3 %v622_v43 }
  0x43   :  { %329 = vmatmul.bf16.gmra.mxu0 %v626_v48 }
  0x44   :  { %378 = vmatmul.bf16.gmra.mxu1 %v630_v49  ;;  %427 = vmatmul.bf16.gmra.mxu2 %v626_v48 }
  0x45   :  { %476 = vmatmul.bf16.gmra.mxu3 %v630_v49 }
  0x53   :  { %334 = vmatmul.bf16.gmra.mxu0 %v634_v54 }
  0x54   :  { %383 = vmatmul.bf16.gmra.mxu1 %v638_v55  ;;  %432 = vmatmul.bf16.gmra.mxu2 %v634_v54 }
  0x55   :  { %481 = vmatmul.bf16.gmra.mxu3 %v638_v55 }
  0x63   :  { %339 = vmatmul.bf16.gmra.mxu0 %v642_v60 }
  0x64   :  { %388 = vmatmul.bf16.gmra.mxu1 %v646_v61  ;;  %437 = vmatmul.bf16.gmra.mxu2 %v642_v60 }
  0x65   :  { %486 = vmatmul.bf16.gmra.mxu3 %v646_v61 }
  0x73   :  { %344 = vmatmul.bf16.gmra.mxu0 %v650_v2 }
  0x74   :  { %393 = vmatmul.bf16.gmra.mxu1 %v654_v3  ;;  %442 = vmatmul.bf16.gmra.mxu2 %v650_v2 }
  0x75   :  { %491 = vmatmul.bf16.gmra.mxu3 %v654_v3 }
  0x83   :  { %349 = vmatmul.bf16.gmra.mxu0 %v658_v8 }
  0x84   :  { %398 = vmatmul.bf16.gmra.mxu1 %v662_v9  ;;  %447 = vmatmul.bf16.gmra.mxu2 %v658_v8 }
  0x85   :  { %496 = vmatmul.bf16.gmra.mxu3 %v662_v9 }
  0x93   :  { %354 = vmatmul.bf16.gmra.mxu0 %v666_v14 }
  0x94   :  { %403 = vmatmul.bf16.gmra.mxu1 %v670_v15  ;;  %452 = vmatmul.bf16.gmra.mxu2 %v666_v14 }
  0x95   :  { %501 = vmatmul.bf16.gmra.mxu3 %v670_v15 }
  0xa0   :  { %v320_v18 = vpop.f32.mrf.mxu0 }
  0xa1   :  { %v321_v19 = vadd.f32 %v320_v18, %v1163_v17  ;;  %v369_v20 = vpop.f32.mrf.mxu1  ;;  %v517_v18 = vld [vmem:[%s1394_s3 + $0x50] sm:$0xff] }
  0xa3   :  { %v370_v22 = vadd.f32 %v369_v20, %v321_v19 }
  0xa5   :  { %v539_v24 = vadd.f32 %v507_v21, %v370_v22 }
  0xa7   :  { %571 = vst [vmem:[%s1395_s4] sm:$0xff] %v539_v24  ;;  %v418_v25 = vpop.f32.mrf.mxu2 }
  0xa8   :  { %v419_v26 = vadd.f32 %v418_v25, %v1169_v23  ;;  %v467_v27 = vpop.f32.mrf.mxu3  ;;  %v322_v28 = vpop.f32.mrf.mxu0 }
  0xa9   :  { %v323_v30 = vadd.f32 %v322_v28, %v1163_v17  ;;  %v371_v31 = vpop.f32.mrf.mxu1 }
  0xaa   :  { %v468_v32 = vadd.f32 %v467_v27, %v419_v26  ;;  %v518_v27 = vld [vmem:[%s1394_s3 + $0x58] sm:$0xff] }
  0xab   :  { %v372_v34 = vadd.f32 %v371_v31, %v323_v30  ;;  %v519_v31 = vld [vmem:[%s1394_s3 + $0x60] sm:$0xff] }
  0xac   :  { %v540_v35 = vadd.f32 %v508_v29, %v468_v32 }
  0xad   :  { %v541_v36 = vadd.f32 %v509_v33, %v372_v34 }
  0xae   :  { %572 = vst [vmem:[%s1395_s4 + $0x8] sm:$0xff] %v540_v35 }
  0xaf   :  { %573 = vst [vmem:[%s1395_s4 + $0x10] sm:$0xff] %v541_v36  ;;  %v420_v37 = vpop.f32.mrf.mxu2 }
  0xb0   :  { %v421_v38 = vadd.f32 %v420_v37, %v1169_v23  ;;  %v469_v39 = vpop.f32.mrf.mxu3  ;;  %v325_v40 = vpop.f32.mrf.mxu0 }
  0xb1   :  { %v326_v42 = vadd.f32 %v325_v40, %v1163_v17  ;;  %v374_v43 = vpop.f32.mrf.mxu1 }
  0xb2   :  { %v470_v44 = vadd.f32 %v469_v39, %v421_v38  ;;  %v520_v39 = vld [vmem:[%s1394_s3 + $0x68] sm:$0xff] }
  0xb3   :  { %v375_v46 = vadd.f32 %v374_v43, %v326_v42  ;;  %v521_v43 = vld [vmem:[%s1394_s3 + $0x70] sm:$0xff] }
  0xb4   :  { %v542_v47 = vadd.f32 %v510_v41, %v470_v44 }
  0xb5   :  { %v543_v48 = vadd.f32 %v511_v45, %v375_v46 }
  0xb6   :  { %574 = vst [vmem:[%s1395_s4 + $0x18] sm:$0xff] %v542_v47 }
  0xb7   :  { %575 = vst [vmem:[%s1395_s4 + $0x20] sm:$0xff] %v543_v48  ;;  %v423_v49 = vpop.f32.mrf.mxu2 }
  0xb8   :  { %v424_v50 = vadd.f32 %v423_v49, %v1169_v23  ;;  %v472_v51 = vpop.f32.mrf.mxu3  ;;  %v327_v52 = vpop.f32.mrf.mxu0 }
  0xb9   :  { %v328_v54 = vadd.f32 %v327_v52, %v1163_v17  ;;  %v376_v55 = vpop.f32.mrf.mxu1 }
  0xba   :  { %v473_v56 = vadd.f32 %v472_v51, %v424_v50  ;;  %v522_v51 = vld [vmem:[%s1394_s3 + $0x78] sm:$0xff] }
  0xbb   :  { %v377_v58 = vadd.f32 %v376_v55, %v328_v54  ;;  %v523_v55 = vld [vmem:[%s1394_s3 + $0x80] sm:$0xff] }
  0xbc   :  { %v544_v59 = vadd.f32 %v512_v53, %v473_v56 }
  0xbd   :  { %v545_v60 = vadd.f32 %v513_v57, %v377_v58 }
  0xbe   :  { %576 = vst [vmem:[%s1395_s4 + $0x28] sm:$0xff] %v544_v59 }
  0xbf   :  { %577 = vst [vmem:[%s1395_s4 + $0x30] sm:$0xff] %v545_v60  ;;  %v425_v61 = vpop.f32.mrf.mxu2 }
  0xc0   :  { %v426_v62 = vadd.f32 %v425_v61, %v1169_v23  ;;  %v474_v63 = vpop.f32.mrf.mxu3  ;;  %v330_v0 = vpop.f32.mrf.mxu0 }
  0xc1   :  { %v331_v2 = vadd.f32 %v330_v0, %v1163_v17  ;;  %v379_v3 = vpop.f32.mrf.mxu1 }
  0xc2   :  { %v475_v4 = vadd.f32 %v474_v63, %v426_v62  ;;  %v524_v63 = vld [vmem:[%s1394_s3 + $0x88] sm:$0xff] }
  0xc3   :  { %v380_v6 = vadd.f32 %v379_v3, %v331_v2  ;;  %v525_v3 = vld [vmem:[%s1394_s3 + $0x90] sm:$0xff] }
  0xc4   :  { %v546_v7 = vadd.f32 %v514_v1, %v475_v4 }
  0xc5   :  { %v547_v8 = vadd.f32 %v515_v5, %v380_v6 }
  0xc6   :  { %578 = vst [vmem:[%s1395_s4 + $0x38] sm:$0xff] %v546_v7 }
  0xc7   :  { %579 = vst [vmem:[%s1395_s4 + $0x40] sm:$0xff] %v547_v8  ;;  %v428_v9 = vpop.f32.mrf.mxu2 }
  0xc8   :  { %v429_v10 = vadd.f32 %v428_v9, %v1169_v23  ;;  %v477_v11 = vpop.f32.mrf.mxu3  ;;  %v332_v12 = vpop.f32.mrf.mxu0 }
  0xc9   :  { %v333_v14 = vadd.f32 %v332_v12, %v1163_v17  ;;  %v381_v15 = vpop.f32.mrf.mxu1 }
  0xca   :  { %v478_v16 = vadd.f32 %v477_v11, %v429_v10  ;;  %v526_v11 = vld [vmem:[%s1394_s3 + $0x98] sm:$0xff] }
  0xcb   :  { %v382_v19 = vadd.f32 %v381_v15, %v333_v14  ;;  %v527_v15 = vld [vmem:[%s1394_s3 + $0xa0] sm:$0xff] }
  0xcc   :  { %v548_v20 = vadd.f32 %v516_v13, %v478_v16 }
  0xcd   :  { %v549_v21 = vadd.f32 %v517_v18, %v382_v19 }
  0xce   :  { %580 = vst [vmem:[%s1395_s4 + $0x48] sm:$0xff] %v548_v20 }
  0xcf   :  { %581 = vst [vmem:[%s1395_s4 + $0x50] sm:$0xff] %v549_v21  ;;  %v430_v22 = vpop.f32.mrf.mxu2 }
  0xd0   :  { %v431_v24 = vadd.f32 %v430_v22, %v1169_v23  ;;  %v479_v25 = vpop.f32.mrf.mxu3  ;;  %v335_v26 = vpop.f32.mrf.mxu0 }
  0xd1   :  { %v336_v28 = vadd.f32 %v335_v26, %v1163_v17  ;;  %v384_v29 = vpop.f32.mrf.mxu1 }
  0xd2   :  { %v480_v30 = vadd.f32 %v479_v25, %v431_v24  ;;  %v528_v25 = vld [vmem:[%s1394_s3 + $0xa8] sm:$0xff] }
  0xd3   :  { %v385_v32 = vadd.f32 %v384_v29, %v336_v28  ;;  %v529_v29 = vld [vmem:[%s1394_s3 + $0xb0] sm:$0xff] }
  0xd4   :  { %v550_v33 = vadd.f32 %v518_v27, %v480_v30 }
  0xd5   :  { %v551_v34 = vadd.f32 %v519_v31, %v385_v32 }
  0xd6   :  { %582 = vst [vmem:[%s1395_s4 + $0x58] sm:$0xff] %v550_v33 }
  0xd7   :  { %583 = vst [vmem:[%s1395_s4 + $0x60] sm:$0xff] %v551_v34  ;;  %v433_v35 = vpop.f32.mrf.mxu2 }
  0xd8   :  { %v434_v36 = vadd.f32 %v433_v35, %v1169_v23  ;;  %v482_v37 = vpop.f32.mrf.mxu3  ;;  %v337_v38 = vpop.f32.mrf.mxu0 }
  0xd9   :  { %v338_v40 = vadd.f32 %v337_v38, %v1163_v17  ;;  %v386_v41 = vpop.f32.mrf.mxu1 }
  0xda   :  { %v483_v42 = vadd.f32 %v482_v37, %v434_v36  ;;  %v530_v37 = vld [vmem:[%s1394_s3 + $0xb8] sm:$0xff] }
  0xdb   :  { %v387_v44 = vadd.f32 %v386_v41, %v338_v40  ;;  %v531_v41 = vld [vmem:[%s1394_s3 + $0xc0] sm:$0xff] }
  0xdc   :  { %v552_v45 = vadd.f32 %v520_v39, %v483_v42 }
  0xdd   :  { %v553_v46 = vadd.f32 %v521_v43, %v387_v44 }
  0xde   :  { %584 = vst [vmem:[%s1395_s4 + $0x68] sm:$0xff] %v552_v45 }
  0xdf   :  { %585 = vst [vmem:[%s1395_s4 + $0x70] sm:$0xff] %v553_v46  ;;  %v435_v47 = vpop.f32.mrf.mxu2 }
  0xe0   :  { %v436_v48 = vadd.f32 %v435_v47, %v1169_v23  ;;  %v484_v49 = vpop.f32.mrf.mxu3  ;;  %v340_v50 = vpop.f32.mrf.mxu0 }
  0xe1   :  { %v341_v52 = vadd.f32 %v340_v50, %v1163_v17  ;;  %v389_v53 = vpop.f32.mrf.mxu1 }
  0xe2   :  { %v485_v54 = vadd.f32 %v484_v49, %v436_v48  ;;  %v532_v49 = vld [vmem:[%s1394_s3 + $0xc8] sm:$0xff] }
  0xe3   :  { %v390_v56 = vadd.f32 %v389_v53, %v341_v52  ;;  %v533_v53 = vld [vmem:[%s1394_s3 + $0xd0] sm:$0xff] }
  0xe4   :  { %v554_v57 = vadd.f32 %v522_v51, %v485_v54 }
  0xe5   :  { %v555_v58 = vadd.f32 %v523_v55, %v390_v56 }
  0xe6   :  { %586 = vst [vmem:[%s1395_s4 + $0x78] sm:$0xff] %v554_v57 }
  0xe7   :  { %587 = vst [vmem:[%s1395_s4 + $0x80] sm:$0xff] %v555_v58  ;;  %v438_v59 = vpop.f32.mrf.mxu2 }
  0xe8   :  { %v439_v60 = vadd.f32 %v438_v59, %v1169_v23  ;;  %v487_v61 = vpop.f32.mrf.mxu3  ;;  %v342_v62 = vpop.f32.mrf.mxu0 }
  0xe9   :  { %v343_v0 = vadd.f32 %v342_v62, %v1163_v17  ;;  %v391_v1 = vpop.f32.mrf.mxu1 }
  0xea   :  { %v488_v2 = vadd.f32 %v487_v61, %v439_v60  ;;  %v534_v61 = vld [vmem:[%s1394_s3 + $0xd8] sm:$0xff] }
  0xeb   :  { %v392_v4 = vadd.f32 %v391_v1, %v343_v0  ;;  %v535_v1 = vld [vmem:[%s1394_s3 + $0xe0] sm:$0xff] }
  0xec   :  { %v556_v5 = vadd.f32 %v524_v63, %v488_v2 }
  0xed   :  { %v557_v6 = vadd.f32 %v525_v3, %v392_v4 }
  0xee   :  { %588 = vst [vmem:[%s1395_s4 + $0x88] sm:$0xff] %v556_v5 }
  0xef   :  { %589 = vst [vmem:[%s1395_s4 + $0x90] sm:$0xff] %v557_v6  ;;  %v440_v7 = vpop.f32.mrf.mxu2 }
  0xf0   :  { %v441_v8 = vadd.f32 %v440_v7, %v1169_v23  ;;  %v489_v9 = vpop.f32.mrf.mxu3  ;;  %v345_v10 = vpop.f32.mrf.mxu0 }
  0xf1   :  { %v346_v12 = vadd.f32 %v345_v10, %v1163_v17  ;;  %v394_v13 = vpop.f32.mrf.mxu1 }
  0xf2   :  { %v490_v14 = vadd.f32 %v489_v9, %v441_v8  ;;  %v536_v9 = vld [vmem:[%s1394_s3 + $0xe8] sm:$0xff] }
  0xf3   :  { %v395_v16 = vadd.f32 %v394_v13, %v346_v12  ;;  %v537_v13 = vld [vmem:[%s1394_s3 + $0xf0] sm:$0xff] }
  0xf4   :  { %v558_v18 = vadd.f32 %v526_v11, %v490_v14 }
  0xf5   :  { %v559_v19 = vadd.f32 %v527_v15, %v395_v16 }
  0xf6   :  { %590 = vst [vmem:[%s1395_s4 + $0x98] sm:$0xff] %v558_v18 }
  0xf7   :  { %591 = vst [vmem:[%s1395_s4 + $0xa0] sm:$0xff] %v559_v19  ;;  %v443_v20 = vpop.f32.mrf.mxu2 }
  0xf8   :  { %v444_v21 = vadd.f32 %v443_v20, %v1169_v23  ;;  %v492_v22 = vpop.f32.mrf.mxu3  ;;  %v347_v24 = vpop.f32.mrf.mxu0  ;;  %v538_v20 = vld [vmem:[%s1394_s3 + $0xf8] sm:$0xff] }
  0xf9   :  { %v348_v26 = vadd.f32 %v347_v24, %v1163_v17  ;;  %v396_v27 = vpop.f32.mrf.mxu1 }
  0xfa   :  { %v493_v28 = vadd.f32 %v492_v22, %v444_v21 }
  0xfb   :  { %v397_v30 = vadd.f32 %v396_v27, %v348_v26 }
  0xfc   :  { %v560_v31 = vadd.f32 %v528_v25, %v493_v28 }
  0xfd   :  { %v561_v32 = vadd.f32 %v529_v29, %v397_v30 }
  0xfe   :  { %592 = vst [vmem:[%s1395_s4 + $0xa8] sm:$0xff] %v560_v31 }
  0xff   :  { %593 = vst [vmem:[%s1395_s4 + $0xb0] sm:$0xff] %v561_v32  ;;  %v445_v33 = vpop.f32.mrf.mxu2 }
 0x100   :  { %v446_v34 = vadd.f32 %v445_v33, %v1169_v23  ;;  %v494_v35 = vpop.f32.mrf.mxu3  ;;  %v350_v36 = vpop.f32.mrf.mxu0 }
 0x101   :  { %v351_v38 = vadd.f32 %v350_v36, %v1163_v17  ;;  %v399_v39 = vpop.f32.mrf.mxu1 }
 0x102   :  { %v495_v40 = vadd.f32 %v494_v35, %v446_v34 }
 0x103   :  { %v400_v42 = vadd.f32 %v399_v39, %v351_v38 }
 0x104   :  { %v562_v43 = vadd.f32 %v530_v37, %v495_v40 }
 0x105   :  { %v563_v44 = vadd.f32 %v531_v41, %v400_v42 }
 0x106   :  { %594 = vst [vmem:[%s1395_s4 + $0xb8] sm:$0xff] %v562_v43 }
 0x107   :  { %595 = vst [vmem:[%s1395_s4 + $0xc0] sm:$0xff] %v563_v44  ;;  %v448_v45 = vpop.f32.mrf.mxu2 }
 0x108   :  { %v449_v46 = vadd.f32 %v448_v45, %v1169_v23  ;;  %v497_v47 = vpop.f32.mrf.mxu3  ;;  %v352_v48 = vpop.f32.mrf.mxu0 }
 0x109   :  { %v353_v50 = vadd.f32 %v352_v48, %v1163_v17  ;;  %v401_v51 = vpop.f32.mrf.mxu1 }
 0x10a   :  { %v498_v52 = vadd.f32 %v497_v47, %v449_v46 }
 0x10b   :  { %v402_v54 = vadd.f32 %v401_v51, %v353_v50 }
 0x10c   :  { %v564_v55 = vadd.f32 %v532_v49, %v498_v52 }
 0x10d   :  { %v565_v56 = vadd.f32 %v533_v53, %v402_v54 }
 0x10e   :  { %596 = vst [vmem:[%s1395_s4 + $0xc8] sm:$0xff] %v564_v55 }
 0x10f   :  { %597 = vst [vmem:[%s1395_s4 + $0xd0] sm:$0xff] %v565_v56  ;;  %v450_v57 = vpop.f32.mrf.mxu2 }
 0x110   :  { %v451_v58 = vadd.f32 %v450_v57, %v1169_v23  ;;  %v499_v59 = vpop.f32.mrf.mxu3  ;;  %v355_v60 = vpop.f32.mrf.mxu0 }
 0x111   :  { %v356_v62 = vadd.f32 %v355_v60, %v1163_v17  ;;  %v404_v63 = vpop.f32.mrf.mxu1 }
 0x112   :  { %v500_v0 = vadd.f32 %v499_v59, %v451_v58 }
 0x113   :  { %v405_v2 = vadd.f32 %v404_v63, %v356_v62 }
 0x114   :  { %v566_v3 = vadd.f32 %v534_v61, %v500_v0 }
 0x115   :  { %v567_v4 = vadd.f32 %v535_v1, %v405_v2 }
 0x116   :  { %598 = vst [vmem:[%s1395_s4 + $0xd8] sm:$0xff] %v566_v3 }
 0x117   :  { %599 = vst [vmem:[%s1395_s4 + $0xe0] sm:$0xff] %v567_v4  ;;  %v453_v5 = vpop.f32.mrf.mxu2 }
 0x118   :  { %v454_v6 = vadd.f32 %v453_v5, %v1169_v23  ;;  %v502_v7 = vpop.f32.mrf.mxu3  ;;  %v357_v8 = vpop.f32.mrf.mxu0 }
 0x119   :  { %v358_v10 = vadd.f32 %v357_v8, %v1163_v17  ;;  %v406_v12 = vpop.f32.mrf.mxu1 }
 0x11a   :  { %v503_v11 = vadd.f32 %v502_v7, %v454_v6 }
 0x11b   :  { %v407_v14 = vadd.f32 %v406_v12, %v358_v10 }
 0x11c   :  { %v568_v15 = vadd.f32 %v536_v9, %v503_v11 }
 0x11d   :  { %v569_v16 = vadd.f32 %v537_v13, %v407_v14 }
 0x11e   :  { %600 = vst [vmem:[%s1395_s4 + $0xe8] sm:$0xff] %v568_v15 }
 0x11f   :  { %601 = vst [vmem:[%s1395_s4 + $0xf0] sm:$0xff] %v569_v16  ;;  %v455_v18 = vpop.f32.mrf.mxu2 }
 0x120   :  { %v456_v17 = vadd.f32 %v455_v18, %v1169_v23  ;;  %v504_v19 = vpop.f32.mrf.mxu3 }
 0x122   :  { %v505_v21 = vadd.f32 %v504_v19, %v456_v17 }
 0x124   :  { %v570_v22 = vadd.f32 %v538_v20, %v505_v21 }
 0x126   :  { %602 = vst [vmem:[%s1395_s4 + $0xf8] sm:$0xff] %v570_v22 }

// kernel: gpt2_forward.12
= control target key start
LH: loop header
LB: loop body
LE: loop exit
PB: predicated region body
PF: predicated region fallthrough
CT: control target
= control target key end

     0   :  { %s4727_s24 = smov 0   ;;  %s4729_s25 = smov 0   ;;  %s6853_s0 = inlined_call_operand.vmem [shape: f32[128,256], index: 0, kind: input, shape index: {}]   ;;  %s6854_s1 = inlined_call_operand.vmem [shape: f32[1,256], index: 1, kind: input, shape index: {}]   ;;  %s6855_s2 = inlined_call_operand.vmem [shape: f32[1,256], index: 2, kind: input, shape index: {}]   ;;  %s6856_s3 = inlined_call_operand.vmem [shape: bf16[256,1024], index: 3, kind: input, shape index: {}]   ;;  %s6857_s4 = inlined_call_operand.vmem [shape: f32[1,1024], index: 4, kind: input, shape index: {}]   ;;  %s6858_s5 = inlined_call_operand.vmem [shape: bf16[1024,256], index: 5, kind: input, shape index: {}]   ;;  %s6859_s6 = inlined_call_operand.vmem [shape: f32[1,256], index: 6, kind: input, shape index: {}]   ;;  %s6860_s7 = inlined_call_operand.vmem [shape: f32[128,256], index: 7, kind: output, shape index: {}]  }
   0x1   :  { %s4731_s26 = smov 0   ;;  %s4733_s27 = smov 0  }
   0x2   :  { %s4735_s28 = smov 0  }
   0x3 LB: > { %s26_s29 = sadd.s32 1, %s4680_s27  ;;  %p111_p1 = scmp.ne.s32.totalorder %s4672_s25, %s4668_s24  ;;  %s4684_s28 = sphi %s4735_s28, %s17_s28   ;;  %s4680_s27 = sphi %s4733_s27, %s6864_s27   ;;  %s4676_s26 = sphi %s4731_s26, %s6863_s26   ;;  %s4672_s25 = sphi %s4729_s25, %s6862_s25   ;;  %s4668_s24 = sphi %s4727_s24, %s6861_s24  }
   0x4   : > { %p27_p0 = scmp.ge.s32.totalorder %s26_s29, 2  ;;  %p112_p2 = scmp.eq.s32.totalorder %s4684_s28, 0 }
   0x5   : > { %s104_s8 = sadd.s32 1, %s4672_s25  ;;  %p3704_p5 = scmp.ge.s32.totalorder %s4684_s28, 2 }
   0x6   : > { %s6866_s29 = smov (%p27_p0, %s26_s29), 0  ;;  %p113_p3 = por %p112_p2, %p111_p1 }
   0x7   : > { %s101_s30 = ssub.s32 %s4680_s27, %s6866_s29  ;;  %255 = sbr.rel (%p3704_p5) target bundleno = 80 (0x50), region = 32 }
   0x8   : > { %p102_p4 = scmp.eq.s32.totalorder %s101_s30, 0 }
   0xa   : > { %s4762_s9 = scalar_select %p102_p4, %s4672_s25, %s104_s8  }
   0xc   : > { %258 = sbr.rel (!%p113_p3) target bundleno = 80 (0x50), region = 36  ;;  %s260_s10 = sand.u32 (%p113_p3), 1, %s4672_s25  }
   0xd   : > { %s4296_s11 = sshll.u32 (%p113_p3), %s4680_s27, 4  ;;  %s3705_s12 = sshll.u32 (%p113_p3), %s260_s10, 9 }
   0xe   : > { %s4770_s15 = scalar_lea.vmem (%p113_p3), %s6856_s3, %s4296_s11  ;;  %s4775_s16 = scalar_lea.vmem (%p113_p3), [#allocation4], %s3705_s12 }
   0xf   : > { %v278_v0 = vld [vmem:[%s4770_s15] sm:$0xff] (%p113_p3)  ;;  %v280_v1 = vld [vmem:[%s4770_s15 + $0x8] sm:$0xff] (%p113_p3) }
  0x10   : > { %v282_v2 = vld [vmem:[%s4770_s15 + $0x20] sm:$0xff] (%p113_p3)  ;;  %279 = vst [vmem:[%s4775_s16] sm:$0xff] (%p113_p3), %v278_v0  ;;  %v284_v3 = vld [vmem:[%s4770_s15 + $0x28] sm:$0xff] (%p113_p3) }
  0x11   : > { %281 = vst [vmem:[%s4775_s16 + $0x8] sm:$0xff] %v280_v1  ;;  %v286_v4 = vld [vmem:[%s4770_s15 + $0x40] sm:$0xff]  ;;  %v288_v5 = vld [vmem:[%s4770_s15 + $0x48] sm:$0xff] }
  0x12   : > { %283 = vst [vmem:[%s4775_s16 + $0x10] sm:$0xff] %v282_v2  ;;  %v290_v6 = vld [vmem:[%s4770_s15 + $0x60] sm:$0xff]  ;;  %v292_v7 = vld [vmem:[%s4770_s15 + $0x68] sm:$0xff] }
  0x13   : > { %285 = vst [vmem:[%s4775_s16 + $0x18] sm:$0xff] %v284_v3  ;;  %v294_v8 = vld [vmem:[%s4770_s15 + $0x80] sm:$0xff]  ;;  %v296_v9 = vld [vmem:[%s4770_s15 + $0x88] sm:$0xff] }
  0x14   : > { %287 = vst [vmem:[%s4775_s16 + $0x20] sm:$0xff] %v286_v4  ;;  %v298_v10 = vld [vmem:[%s4770_s15 + $0xa0] sm:$0xff]  ;;  %v300_v11 = vld [vmem:[%s4770_s15 + $0xa8] sm:$0xff] }
  0x15   : > { %289 = vst [vmem:[%s4775_s16 + $0x28] sm:$0xff] %v288_v5  ;;  %v302_v12 = vld [vmem:[%s4770_s15 + $0xc0] sm:$0xff]  ;;  %v304_v13 = vld [vmem:[%s4770_s15 + $0xc8] sm:$0xff] }
  0x16   : > { %291 = vst [vmem:[%s4775_s16 + $0x30] sm:$0xff] %v290_v6  ;;  %v306_v14 = vld [vmem:[%s4770_s15 + $0xe0] sm:$0xff]  ;;  %v308_v15 = vld [vmem:[%s4770_s15 + $0xe8] sm:$0xff] }
  0x17   : > { %293 = vst [vmem:[%s4775_s16 + $0x38] sm:$0xff] %v292_v7  ;;  %v310_v16 = vld [vmem:[%s4770_s15 + $0x100] sm:$0xff]  ;;  %v312_v17 = vld [vmem:[%s4770_s15 + $0x108] sm:$0xff] }
  0x18   : > { %295 = vst [vmem:[%s4775_s16 + $0x40] sm:$0xff] %v294_v8  ;;  %v314_v18 = vld [vmem:[%s4770_s15 + $0x120] sm:$0xff]  ;;  %v316_v19 = vld [vmem:[%s4770_s15 + $0x128] sm:$0xff] }
  0x19   : > { %297 = vst [vmem:[%s4775_s16 + $0x48] sm:$0xff] %v296_v9  ;;  %v318_v20 = vld [vmem:[%s4770_s15 + $0x140] sm:$0xff]  ;;  %v320_v21 = vld [vmem:[%s4770_s15 + $0x148] sm:$0xff] }
  0x1a   : > { %299 = vst [vmem:[%s4775_s16 + $0x50] sm:$0xff] %v298_v10  ;;  %v322_v22 = vld [vmem:[%s4770_s15 + $0x160] sm:$0xff]  ;;  %v324_v23 = vld [vmem:[%s4770_s15 + $0x168] sm:$0xff] }
  0x1b   : > { %301 = vst [vmem:[%s4775_s16 + $0x58] sm:$0xff] %v300_v11  ;;  %v326_v24 = vld [vmem:[%s4770_s15 + $0x180] sm:$0xff]  ;;  %v328_v25 = vld [vmem:[%s4770_s15 + $0x188] sm:$0xff] }
  0x1c   : > { %303 = vst [vmem:[%s4775_s16 + $0x60] sm:$0xff] %v302_v12  ;;  %v330_v26 = vld [vmem:[%s4770_s15 + $0x1a0] sm:$0xff]  ;;  %v332_v27 = vld [vmem:[%s4770_s15 + $0x1a8] sm:$0xff] }
  0x1d   : > { %305 = vst [vmem:[%s4775_s16 + $0x68] sm:$0xff] %v304_v13  ;;  %v334_v28 = vld [vmem:[%s4770_s15 + $0x1c0] sm:$0xff]  ;;  %v336_v29 = vld [vmem:[%s4770_s15 + $0x1c8] sm:$0xff] }
  0x1e   : > { %307 = vst [vmem:[%s4775_s16 + $0x70] sm:$0xff] %v306_v14  ;;  %v338_v30 = vld [vmem:[%s4770_s15 + $0x1e0] sm:$0xff]  ;;  %v340_v31 = vld [vmem:[%s4770_s15 + $0x1e8] sm:$0xff] }
  0x1f   : > { %309 = vst [vmem:[%s4775_s16 + $0x78] sm:$0xff] %v308_v15  ;;  %v342_v32 = vld [vmem:[%s4770_s15 + $0x200] sm:$0xff]  ;;  %v344_v33 = vld [vmem:[%s4770_s15 + $0x208] sm:$0xff] }
  0x20   : > { %311 = vst [vmem:[%s4775_s16 + $0x80] sm:$0xff] %v310_v16  ;;  %v346_v34 = vld [vmem:[%s4770_s15 + $0x220] sm:$0xff]  ;;  %v348_v35 = vld [vmem:[%s4770_s15 + $0x228] sm:$0xff] }
  0x21   : > { %313 = vst [vmem:[%s4775_s16 + $0x88] sm:$0xff] %v312_v17  ;;  %v350_v36 = vld [vmem:[%s4770_s15 + $0x240] sm:$0xff]  ;;  %v352_v37 = vld [vmem:[%s4770_s15 + $0x248] sm:$0xff] }
  0x22   : > { %315 = vst [vmem:[%s4775_s16 + $0x90] sm:$0xff] %v314_v18  ;;  %v354_v38 = vld [vmem:[%s4770_s15 + $0x260] sm:$0xff]  ;;  %v356_v39 = vld [vmem:[%s4770_s15 + $0x268] sm:$0xff] }
  0x23   : > { %317 = vst [vmem:[%s4775_s16 + $0x98] sm:$0xff] %v316_v19  ;;  %v358_v40 = vld [vmem:[%s4770_s15 + $0x280] sm:$0xff]  ;;  %v360_v41 = vld [vmem:[%s4770_s15 + $0x288] sm:$0xff] }
  0x24   : > { %319 = vst [vmem:[%s4775_s16 + $0xa0] sm:$0xff] %v318_v20  ;;  %v362_v42 = vld [vmem:[%s4770_s15 + $0x2a0] sm:$0xff]  ;;  %v364_v43 = vld [vmem:[%s4770_s15 + $0x2a8] sm:$0xff] }
  0x25   : > { %321 = vst [vmem:[%s4775_s16 + $0xa8] sm:$0xff] %v320_v21  ;;  %v366_v44 = vld [vmem:[%s4770_s15 + $0x2c0] sm:$0xff]  ;;  %v368_v45 = vld [vmem:[%s4770_s15 + $0x2c8] sm:$0xff] }
  0x26   : > { %323 = vst [vmem:[%s4775_s16 + $0xb0] sm:$0xff] %v322_v22  ;;  %v370_v46 = vld [vmem:[%s4770_s15 + $0x2e0] sm:$0xff]  ;;  %v372_v47 = vld [vmem:[%s4770_s15 + $0x2e8] sm:$0xff] }
  0x27   : > { %325 = vst [vmem:[%s4775_s16 + $0xb8] sm:$0xff] %v324_v23  ;;  %v374_v48 = vld [vmem:[%s4770_s15 + $0x300] sm:$0xff]  ;;  %v376_v49 = vld [vmem:[%s4770_s15 + $0x308] sm:$0xff] }
  0x28   : > { %327 = vst [vmem:[%s4775_s16 + $0xc0] sm:$0xff] %v326_v24  ;;  %v378_v50 = vld [vmem:[%s4770_s15 + $0x320] sm:$0xff]  ;;  %v380_v51 = vld [vmem:[%s4770_s15 + $0x328] sm:$0xff] }
  0x29   : > { %329 = vst [vmem:[%s4775_s16 + $0xc8] sm:$0xff] %v328_v25  ;;  %v382_v52 = vld [vmem:[%s4770_s15 + $0x340] sm:$0xff]  ;;  %v384_v53 = vld [vmem:[%s4770_s15 + $0x348] sm:$0xff] }
  0x2a   : > { %331 = vst [vmem:[%s4775_s16 + $0xd0] sm:$0xff] %v330_v26  ;;  %v386_v54 = vld [vmem:[%s4770_s15 + $0x360] sm:$0xff]  ;;  %v388_v55 = vld [vmem:[%s4770_s15 + $0x368] sm:$0xff] }
  0x2b   : > { %333 = vst [vmem:[%s4775_s16 + $0xd8] sm:$0xff] %v332_v27  ;;  %v390_v56 = vld [vmem:[%s4770_s15 + $0x380] sm:$0xff]  ;;  %v392_v57 = vld [vmem:[%s4770_s15 + $0x388] sm:$0xff] }
  0x2c   : > { %335 = vst [vmem:[%s4775_s16 + $0xe0] sm:$0xff] %v334_v28  ;;  %v394_v58 = vld [vmem:[%s4770_s15 + $0x3a0] sm:$0xff]  ;;  %v396_v59 = vld [vmem:[%s4770_s15 + $0x3a8] sm:$0xff] }
  0x2d   : > { %337 = vst [vmem:[%s4775_s16 + $0xe8] sm:$0xff] %v336_v29  ;;  %v398_v60 = vld [vmem:[%s4770_s15 + $0x3c0] sm:$0xff]  ;;  %v400_v61 = vld [vmem:[%s4770_s15 + $0x3c8] sm:$0xff] }
  0x2e   : > { %339 = vst [vmem:[%s4775_s16 + $0xf0] sm:$0xff] %v338_v30  ;;  %v402_v62 = vld [vmem:[%s4770_s15 + $0x3e0] sm:$0xff]  ;;  %v404_v63 = vld [vmem:[%s4770_s15 + $0x3e8] sm:$0xff] }
  0x2f   : > { %341 = vst [vmem:[%s4775_s16 + $0xf8] sm:$0xff] %v340_v31 }
  0x30   : > { %343 = vst [vmem:[%s4775_s16 + $0x100] sm:$0xff] %v342_v32 }
  0x31   : > { %345 = vst [vmem:[%s4775_s16 + $0x108] sm:$0xff] %v344_v33 }
  0x32   : > { %347 = vst [vmem:[%s4775_s16 + $0x110] sm:$0xff] %v346_v34 }
  0x33   : > { %349 = vst [vmem:[%s4775_s16 + $0x118] sm:$0xff] %v348_v35 }
  0x34   : > { %351 = vst [vmem:[%s4775_s16 + $0x120] sm:$0xff] %v350_v36 }
  0x35   : > { %353 = vst [vmem:[%s4775_s16 + $0x128] sm:$0xff] %v352_v37 }
  0x36   : > { %355 = vst [vmem:[%s4775_s16 + $0x130] sm:$0xff] %v354_v38 }
  0x37   : > { %357 = vst [vmem:[%s4775_s16 + $0x138] sm:$0xff] %v356_v39 }
  0x38   : > { %359 = vst [vmem:[%s4775_s16 + $0x140] sm:$0xff] %v358_v40 }
  0x39   : > { %361 = vst [vmem:[%s4775_s16 + $0x148] sm:$0xff] %v360_v41 }
  0x3a   : > { %363 = vst [vmem:[%s4775_s16 + $0x150] sm:$0xff] %v362_v42 }
  0x3b   : > { %365 = vst [vmem:[%s4775_s16 + $0x158] sm:$0xff] %v364_v43 }
  0x3c   : > { %367 = vst [vmem:[%s4775_s16 + $0x160] sm:$0xff] %v366_v44 }
  0x3d   : > { %369 = vst [vmem:[%s4775_s16 + $0x168] sm:$0xff] %v368_v45 }
  0x3e   : > { %371 = vst [vmem:[%s4775_s16 + $0x170] sm:$0xff] %v370_v46 }
  0x3f   : > { %373 = vst [vmem:[%s4775_s16 + $0x178] sm:$0xff] %v372_v47 }
  0x40   : > { %375 = vst [vmem:[%s4775_s16 + $0x180] sm:$0xff] %v374_v48 }
  0x41   : > { %377 = vst [vmem:[%s4775_s16 + $0x188] sm:$0xff] %v376_v49 }
  0x42   : > { %379 = vst [vmem:[%s4775_s16 + $0x190] sm:$0xff] %v378_v50 }
  0x43   : > { %381 = vst [vmem:[%s4775_s16 + $0x198] sm:$0xff] %v380_v51 }
  0x44   : > { %383 = vst [vmem:[%s4775_s16 + $0x1a0] sm:$0xff] %v382_v52 }
  0x45   : > { %385 = vst [vmem:[%s4775_s16 + $0x1a8] sm:$0xff] %v384_v53 }
  0x46   : > { %387 = vst [vmem:[%s4775_s16 + $0x1b0] sm:$0xff] %v386_v54 }
  0x47   : > { %389 = vst [vmem:[%s4775_s16 + $0x1b8] sm:$0xff] %v388_v55 }
  0x48   : > { %391 = vst [vmem:[%s4775_s16 + $0x1c0] sm:$0xff] %v390_v56 }
  0x49   : > { %393 = vst [vmem:[%s4775_s16 + $0x1c8] sm:$0xff] %v392_v57 }
  0x4a   : > { %395 = vst [vmem:[%s4775_s16 + $0x1d0] sm:$0xff] %v394_v58 }
  0x4b   : > { %397 = vst [vmem:[%s4775_s16 + $0x1d8] sm:$0xff] %v396_v59 }
  0x4c   : > { %399 = vst [vmem:[%s4775_s16 + $0x1e0] sm:$0xff] %v398_v60 }
  0x4d   : > { %401 = vst [vmem:[%s4775_s16 + $0x1e8] sm:$0xff] %v400_v61 }
  0x4e   : > { %403 = vst [vmem:[%s4775_s16 + $0x1f0] sm:$0xff] %v402_v62 }
  0x4f   : > { %405 = vst [vmem:[%s4775_s16 + $0x1f8] sm:$0xff] %v404_v63 }
  0x50 PF: > { %p3708_p6 = scmp.ge.s32.totalorder %s4684_s28, 1  ;;  %p428_p7 = scmp.lt.s32.totalorder %s4684_s28, 3 }
  0x52   : > { %p429_p8 = pnand %p3708_p6, %p428_p7 }
  0x53   : > { %s435_s17 = sand.u32 (!%p429_p8), 1, %s4668_s24   ;;  %s3710_s18 = sshll.u32 (!%p429_p8), %s4676_s26, 2 }
  0x54   : > { %432 = sbr.rel (%p429_p8) target bundleno = 1204 (0x4b4), region = 67  ;;  %s3709_s19 = sshll.u32 (!%p429_p8), %s435_s17, 9 }
  0x55   : > { %p492_p9 = scmp.lt.s32.totalorder (!%p429_p8), %s3710_s18, 7  ;;  %s3711_s20 = sshll.u32 (!%p429_p8), %s4676_s26, 6 }
  0x56   : > { %p497_p10 = scmp.lt.s32.totalorder (!%p429_p8), %s3711_s20, 127  ;;  %s4917_s12 = scalar_lea.vmem (!%p429_p8), [#allocation4], %s3709_s19 }
  0x57   : > { %p3714_p11 = scmp.ne.s32.totalorder (!%p429_p8), %s4676_s26, 0 }
  0x59   : > { %s6868_s18 = smov (!%p492_p9, %s3710_s18), 7  ;;  %s6870_s20 = smov (!%p497_p10, %s3711_s20), 127 }
  0x5a   : > { %s4910_s23 = scalar_lea.vmem %s6857_s4, %s6868_s18  ;;  %s4297_s30 = sshll.u32 %s6870_s20, 3 }
  0x5b   : > { %s4915_s11 = scalar_lea.vmem %s6858_s5, %s4297_s30  ;;  %513 = sbr.rel (%p3714_p11) target bundleno = 454 (0x1c6), region = 75 }
  0x60   : > { %v4923_v0 = vld [vmem:[%s6853_s0 + $0x40] sm:$0xff]  ;;  %v4928_v1 = vld [vmem:[%s6853_s0 + $0x48] sm:$0xff]  ;;  %v4959_v9 = vld [vmem:[%s6853_s0 + $0x50] sm:$0xff]  ;;  %v4686_v48 = vmov 256.0  }
  0x61   : > { %v4933_v2 = vld [vmem:[%s6853_s0 + $0x20] sm:$0xff]  ;;  %v560_v3 = vadd.f32 %v4928_v1, %v4923_v0  ;;  %v4940_v4 = vld [vmem:[%s6853_s0 + $0x28] sm:$0xff]  ;;  %v4964_v10 = vld [vmem:[%s6853_s0 + $0x58] sm:$0xff]  ;;  %4483 = vrcp.f32 %v4686_v48 }
  0x62   : > { %v4945_v5 = vld [vmem:[%s6853_s0] sm:$0xff]  ;;  %v4950_v6 = vld [vmem:[%s6853_s0 + $0x8] sm:$0xff]  ;;  %v554_v7 = vadd.f32 %v4940_v4, %v4933_v2  ;;  %v4969_v11 = vld [vmem:[%s6853_s0 + $0x30] sm:$0xff]  ;;  %v563_v15 = vadd.f32 %v4964_v10, %v4959_v9 }
  0x63   : > { %v548_v8 = vadd.f32 %v4950_v6, %v4945_v5  ;;  %561 = vadd.xlane.f32.xlu2 %v560_v3  ;;  %v4974_v12 = vld [vmem:[%s6853_s0 + $0x38] sm:$0xff]  ;;  %v4979_v13 = vld [vmem:[%s6853_s0 + $0x10] sm:$0xff]  ;;  %v4995_v18 = vld [vmem:[%s6853_s0 + $0x80] sm:$0xff] }
  0x64   : > { %555 = vadd.xlane.f32.xlu1 %v554_v7  ;;  %v4984_v14 = vld [vmem:[%s6853_s0 + $0x18] sm:$0xff]  ;;  %v557_v16 = vadd.f32 %v4974_v12, %v4969_v11  ;;  %v5000_v19 = vld [vmem:[%s6853_s0 + $0x88] sm:$0xff]  ;;  %v5005_v20 = vld [vmem:[%s6853_s0 + $0x60] sm:$0xff] }
  0x65   : > { %549 = vadd.xlane.f32.xlu0 %v548_v8  ;;  %v551_v17 = vadd.f32 %v4984_v14, %v4979_v13  ;;  %v5010_v21 = vld [vmem:[%s6853_s0 + $0x68] sm:$0xff]  ;;  %v5015_v22 = vld [vmem:[%s6853_s0 + $0x70] sm:$0xff]  ;;  %v5020_v23 = vld [vmem:[%s6853_s0 + $0x78] sm:$0xff]  ;;  %v572_v24 = vadd.f32 %v5000_v19, %v4995_v18 }
  0x66   : > { %v566_v25 = vadd.f32 %v5010_v21, %v5005_v20  ;;  %v569_v26 = vadd.f32 %v5020_v23, %v5015_v22  ;;  %v5031_v27 = vld [vmem:[%s6853_s0 + $0xb0] sm:$0xff]  ;;  %v5036_v28 = vld [vmem:[%s6853_s0 + $0xb8] sm:$0xff]  ;;  %v5051_v31 = vld [vmem:[%s6853_s0 + $0xa0] sm:$0xff] }
  0x67   : > { %v5041_v29 = vld [vmem:[%s6853_s0 + $0x90] sm:$0xff]  ;;  %v5046_v30 = vld [vmem:[%s6853_s0 + $0x98] sm:$0xff]  ;;  %v5056_v32 = vld [vmem:[%s6853_s0 + $0xa8] sm:$0xff]  ;;  %v581_v33 = vadd.f32 %v5036_v28, %v5031_v27  ;;  %v4484_v49 = vpop.eup %4483 }
  0x68   : > { %v575_v34 = vadd.f32 %v5046_v30, %v5041_v29  ;;  %v578_v35 = vadd.f32 %v5056_v32, %v5051_v31  ;;  %v5067_v36 = vld [vmem:[%s6853_s0 + $0xe0] sm:$0xff]  ;;  %v5072_v37 = vld [vmem:[%s6853_s0 + $0xe8] sm:$0xff]  ;;  %v5087_v40 = vld [vmem:[%s6853_s0 + $0xd0] sm:$0xff]  ;;  %v597_v50 = vmul.f32 256.0, %v4484_v49  ;;  %vm601_vm0 = vweird.f32 %v4484_v49 }
  0x69   : > { %v5077_v38 = vld [vmem:[%s6853_s0 + $0xc0] sm:$0xff]  ;;  %v5082_v39 = vld [vmem:[%s6853_s0 + $0xc8] sm:$0xff]  ;;  %v5092_v41 = vld [vmem:[%s6853_s0 + $0xd8] sm:$0xff]  ;;  %v590_v42 = vadd.f32 %v5072_v37, %v5067_v36 }
  0x6a   : > { %v584_v43 = vadd.f32 %v5082_v39, %v5077_v38  ;;  %v587_v44 = vadd.f32 %v5092_v41, %v5087_v40  ;;  %v5103_v45 = vld [vmem:[%s6853_s0 + $0xf0] sm:$0xff]  ;;  %v5108_v46 = vld [vmem:[%s6853_s0 + $0xf8] sm:$0xff]  ;;  %v598_v51 = vsub.f32 1.0, %v597_v50 }
  0x6b   : > { %564 = vadd.xlane.f32.xlu2 %v563_v15  ;;  %v593_v47 = vadd.f32 %v5108_v46, %v5103_v45 }
  0x6c   : > { %558 = vadd.xlane.f32.xlu1 %v557_v16  ;;  %v599_v52 = vmul.f32 %v4484_v49, %v598_v51 }
  0x6d   : > { %552 = vadd.xlane.f32.xlu0 %v551_v17 }
  0x6e   : > { %v600_v53 = vadd.f32 %v4484_v49, %v599_v52 }
  0x70   : > { %v5112_v54 = vsel %vm601_vm0, %v4484_v49, %v600_v53 }
  0x73   : > { %573 = vadd.xlane.f32.xlu2 %v572_v24 }
  0x74   : > { %570 = vadd.xlane.f32.xlu1 %v569_v26 }
  0x75   : > { %567 = vadd.xlane.f32.xlu0 %v566_v25 }
  0x7b   : > { %582 = vadd.xlane.f32.xlu2 %v581_v33 }
  0x7c   : > { %579 = vadd.xlane.f32.xlu1 %v578_v35 }
  0x7d   : > { %576 = vadd.xlane.f32.xlu0 %v575_v34 }
  0x83   : > { %591 = vadd.xlane.f32.xlu2 %v590_v42 }
  0x84   : > { %588 = vadd.xlane.f32.xlu1 %v587_v44 }
  0x85   : > { %585 = vadd.xlane.f32.xlu0 %v584_v43 }
  0x8d   : > { %594 = vadd.xlane.f32.xlu0 %v593_v47 }
  0xd6   : > { %v562_v55 = vpop.xlane.xlu2 %561 }
  0xd7   : > { %v556_v56 = vpop.xlane.xlu1 %555  ;;  %v607_v44 = vmul.f32 %v5112_v54, %v562_v55 }
  0xd8   : > { %v550_v57 = vpop.xlane.xlu0 %549  ;;  %v605_v58 = vmul.f32 %v5112_v54, %v556_v56 }
  0xd9   : > { %v603_v59 = vmul.f32 %v5112_v54, %v550_v57  ;;  %v5171_v51 = vsub.f32 %v4923_v0, %v607_v44  ;;  %v5174_v52 = vsub.f32 %v4928_v1, %v607_v44 }
  0xda   : > { %v5117_v60 = vsub.f32 %v4933_v2, %v605_v58  ;;  %v5120_v61 = vsub.f32 %v4940_v4, %v605_v58 }
  0xdb   : > { %v5123_v62 = vsub.f32 %v4945_v5, %v603_v59  ;;  %v5126_v63 = vsub.f32 %v4950_v6, %v603_v59 }
  0xdc   : > { %v655_v3 = vmul.f32 %v5117_v60, %v5117_v60  ;;  %v656_v7 = vmul.f32 %v5120_v61, %v5120_v61 }
  0xdd   : > { %v651_v8 = vmul.f32 %v5123_v62, %v5123_v62  ;;  %v652_v2 = vmul.f32 %v5126_v63, %v5126_v63 }
  0xde   : > { %v565_v4 = vpop.xlane.xlu2 %564  ;;  %v689_v15 = vadd.f32 %v656_v7, %v655_v3 }
  0xdf   : > { %v683_v16 = vadd.f32 %v652_v2, %v651_v8  ;;  %v608_v5 = vmul.f32 %v5112_v54, %v565_v4  ;;  %v559_v17 = vpop.xlane.xlu1 %558 }
  0xe0   : > { %v553_v6 = vpop.xlane.xlu0 %552  ;;  %v606_v24 = vmul.f32 %v5112_v54, %v559_v17  ;;  %690 = vadd.xlane.f32.xlu0 %v689_v15 }
  0xe1   : > { %v604_v25 = vmul.f32 %v5112_v54, %v553_v6  ;;  %684 = vadd.xlane.f32.xlu1 %v683_v16  ;;  %v5140_v26 = vsub.f32 %v4959_v9, %v608_v5  ;;  %v5143_v33 = vsub.f32 %v4964_v10, %v608_v5 }
  0xe2   : > { %v5146_v34 = vsub.f32 %v4969_v11, %v606_v24  ;;  %v5149_v35 = vsub.f32 %v4974_v12, %v606_v24 }
  0xe3   : > { %v5152_v42 = vsub.f32 %v4979_v13, %v604_v25  ;;  %v5155_v43 = vsub.f32 %v4984_v14, %v604_v25  ;;  %v661_v9 = vmul.f32 %v5140_v26, %v5140_v26  ;;  %v662_v10 = vmul.f32 %v5143_v33, %v5143_v33 }
  0xe4   : > { %v657_v11 = vmul.f32 %v5146_v34, %v5146_v34  ;;  %v658_v12 = vmul.f32 %v5149_v35, %v5149_v35 }
  0xe5   : > { %v653_v13 = vmul.f32 %v5152_v42, %v5152_v42  ;;  %v654_v14 = vmul.f32 %v5155_v43, %v5155_v43  ;;  %v698_v47 = vadd.f32 %v662_v10, %v661_v9 }
  0xe6   : > { %v574_v48 = vpop.xlane.xlu2 %573  ;;  %v692_v49 = vadd.f32 %v658_v12, %v657_v11 }
  0xe7   : > { %v686_v50 = vadd.f32 %v654_v14, %v653_v13  ;;  %v611_v53 = vmul.f32 %v5112_v54, %v574_v48  ;;  %v571_v56 = vpop.xlane.xlu1 %570 }
  0xe8   : > { %v568_v55 = vpop.xlane.xlu0 %567  ;;  %699 = vadd.xlane.f32.xlu0 %v698_v47  ;;  %v610_v0 = vmul.f32 %v5112_v54, %v571_v56 }
  0xe9   : > { %v609_v57 = vmul.f32 %v5112_v54, %v568_v55  ;;  %693 = vadd.xlane.f32.xlu1 %v692_v49  ;;  %v5179_v58 = vsub.f32 %v4995_v18, %v611_v53  ;;  %v5182_v59 = vsub.f32 %v5000_v19, %v611_v53  ;;  %687 = vadd.xlane.f32.xlu2 %v686_v50 }
  0xea   : > { %v659_v18 = vmul.f32 %v5171_v51, %v5171_v51  ;;  %v660_v19 = vmul.f32 %v5174_v52, %v5174_v52  ;;  %v5207_v4 = vsub.f32 %v5020_v23, %v610_v0 }
  0xeb   : > { %v5186_v1 = vsub.f32 %v5005_v20, %v609_v57  ;;  %v5189_v3 = vsub.f32 %v5010_v21, %v609_v57  ;;  %v667_v7 = vmul.f32 %v5179_v58, %v5179_v58  ;;  %v668_v8 = vmul.f32 %v5182_v59, %v5182_v59 }
  0xec   : > { %v5204_v21 = vsub.f32 %v5015_v22, %v610_v0  ;;  %v695_v24 = vadd.f32 %v660_v19, %v659_v18  ;;  %v666_v11 = vmul.f32 %v5207_v4, %v5207_v4 }
  0xed   : > { %v663_v2 = vmul.f32 %v5186_v1, %v5186_v1  ;;  %v664_v20 = vmul.f32 %v5189_v3, %v5189_v3  ;;  %v707_v15 = vadd.f32 %v668_v8, %v667_v7 }
  0xee   : > { %v583_v16 = vpop.xlane.xlu2 %582  ;;  %v665_v10 = vmul.f32 %v5204_v21, %v5204_v21 }
  0xef   : > { %v701_v5 = vadd.f32 %v664_v20, %v663_v2  ;;  %v614_v17 = vmul.f32 %v5112_v54, %v583_v16  ;;  %v580_v25 = vpop.xlane.xlu1 %579 }
  0xf0   : > { %v577_v6 = vpop.xlane.xlu0 %576  ;;  %708 = vadd.xlane.f32.xlu0 %v707_v15  ;;  %v613_v9 = vmul.f32 %v5112_v54, %v580_v25  ;;  %v704_v49 = vadd.f32 %v666_v11, %v665_v10 }
  0xf1   : > { %v612_v44 = vmul.f32 %v5112_v54, %v577_v6  ;;  %702 = vadd.xlane.f32.xlu1 %v701_v5  ;;  %v5213_v22 = vsub.f32 %v5031_v27, %v614_v17  ;;  %v5216_v23 = vsub.f32 %v5036_v28, %v614_v17  ;;  %696 = vadd.xlane.f32.xlu2 %v695_v24 }
  0xf2   : > { %v5233_v14 = vsub.f32 %v5051_v31, %v613_v9 }
  0xf3   : > { %v5223_v12 = vsub.f32 %v5041_v29, %v612_v44  ;;  %v5226_v13 = vsub.f32 %v5046_v30, %v612_v44  ;;  %v673_v27 = vmul.f32 %v5213_v22, %v5213_v22  ;;  %v674_v28 = vmul.f32 %v5216_v23, %v5216_v23 }
  0xf4   : > { %v5240_v29 = vsub.f32 %v5056_v32, %v613_v9  ;;  %v671_v0 = vmul.f32 %v5233_v14, %v5233_v14 }
  0xf5   : > { %v669_v47 = vmul.f32 %v5223_v12, %v5223_v12  ;;  %v670_v48 = vmul.f32 %v5226_v13, %v5226_v13  ;;  %v716_v30 = vadd.f32 %v674_v28, %v673_v27 }
  0xf6   : > { %v592_v50 = vpop.xlane.xlu2 %591  ;;  %v672_v18 = vmul.f32 %v5240_v29, %v5240_v29 }
  0xf7   : > { %v710_v53 = vadd.f32 %v670_v48, %v669_v47  ;;  %v617_v55 = vmul.f32 %v5112_v54, %v592_v50  ;;  %v589_v57 = vpop.xlane.xlu1 %588 }
  0xf8   : > { %v586_v56 = vpop.xlane.xlu0 %585  ;;  %717 = vadd.xlane.f32.xlu0 %v716_v30  ;;  %v616_v8 = vmul.f32 %v5112_v54, %v589_v57  ;;  %v713_v5 = vadd.f32 %v672_v18, %v671_v0 }
  0xf9   : > { %v615_v31 = vmul.f32 %v5112_v54, %v586_v56  ;;  %711 = vadd.xlane.f32.xlu1 %v710_v53  ;;  %v5247_v7 = vsub.f32 %v5067_v36, %v617_v55  ;;  %v5250_v32 = vsub.f32 %v5072_v37, %v617_v55  ;;  %705 = vadd.xlane.f32.xlu2 %v704_v49 }
  0xfa   : > { %v5270_v16 = vsub.f32 %v5087_v40, %v616_v8 }
  0xfb   : > { %v5256_v19 = vsub.f32 %v5077_v38, %v615_v31  ;;  %v5259_v2 = vsub.f32 %v5082_v39, %v615_v31  ;;  %v679_v20 = vmul.f32 %v5247_v7, %v5247_v7  ;;  %v680_v36 = vmul.f32 %v5250_v32, %v5250_v32 }
  0xfc   : > { %v5273_v38 = vsub.f32 %v5092_v41, %v616_v8  ;;  %v677_v25 = vmul.f32 %v5270_v16, %v5270_v16 }
  0xfd   : > { %v675_v37 = vmul.f32 %v5256_v19, %v5256_v19  ;;  %v676_v15 = vmul.f32 %v5259_v2, %v5259_v2  ;;  %v725_v39 = vadd.f32 %v680_v36, %v679_v20 }
  0xfe   : > { %v678_v44 = vmul.f32 %v5273_v38, %v5273_v38 }
  0xff   : > { %v719_v17 = vadd.f32 %v676_v15, %v675_v37  ;;  %v546_v37 = vld [vmem:[%s6854_s1] sm:$0x3] }
 0x100   : > { %v595_v6 = vpop.xlane.xlu0 %594  ;;  %726 = vadd.xlane.f32.xlu0 %v725_v39  ;;  %v722_v11 = vadd.f32 %v678_v44, %v677_v25  ;;  %v547_v39 = vld [vmem:[%s6855_s2] sm:$0x3] }
 0x101   : > { %v618_v24 = vmul.f32 %v5112_v54, %v595_v6  ;;  %720 = vadd.xlane.f32.xlu1 %v719_v17  ;;  %714 = vadd.xlane.f32.xlu2 %v713_v5  ;;  %v5310_v6 = vperm.slane %v546_v37, 0 }
 0x103   : > { %v5281_v40 = vsub.f32 %v5103_v45, %v618_v24  ;;  %v5284_v41 = vsub.f32 %v5108_v46, %v618_v24  ;;  %v5312_v24 = vperm.slane %v546_v37, 1 }
 0x105   : > { %v681_v9 = vmul.f32 %v5281_v40, %v5281_v40  ;;  %v682_v10 = vmul.f32 %v5284_v41, %v5284_v41 }
 0x107   : > { %v728_v27 = vadd.f32 %v682_v10, %v681_v9  ;;  %v5314_v9 = vperm.slane %v547_v39, 0  ;;  %v5316_v10 = vperm.slane %v547_v39, 1 }
 0x109   : > { %729 = vadd.xlane.f32.xlu1 %v728_v27  ;;  %723 = vadd.xlane.f32.xlu2 %v722_v11 }
 0x153   : > { %v691_v47 = vpop.xlane.xlu0 %690 }
 0x154   : > { %v685_v28 = vpop.xlane.xlu1 %684  ;;  %v733_v45 = vmul.f32 %v691_v47, %v5112_v54 }
 0x155   : > { %v731_v48 = vmul.f32 %v685_v28, %v5112_v54 }
 0x156   : > { %v749_v49 = vadd.f32 1e-05, %v733_v45 }
 0x157   : > { %v747_v30 = vadd.f32 1e-05, %v731_v48 }
 0x158   : > { %vm789_vm3 = vweird.f32 %v749_v49 }
 0x159   : > { %4485 = vrsqrt.f32 %v747_v30  ;;  %vm769_vm1 = vweird.f32 %v747_v30 }
 0x15a   : > { %4487 = vrsqrt.f32 %v749_v49 }
 0x15b   : > { %v700_v50 = vpop.xlane.xlu0 %699 }
 0x15c   : > { %v694_v46 = vpop.xlane.xlu1 %693  ;;  %v688_v55 = vpop.xlane.xlu2 %687  ;;  %v736_v56 = vmul.f32 %v700_v50, %v5112_v54 }
 0x15d   : > { %v734_v53 = vmul.f32 %v694_v46, %v5112_v54  ;;  %v732_v57 = vmul.f32 %v688_v55, %v5112_v54 }
 0x15e   : > { %v5297_v8 = vadd.f32 1e-05, %v736_v56 }
 0x15f   : > { %v4486_v31 = vpop.eup %4485  ;;  %v5295_v0 = vadd.f32 1e-05, %v734_v53  ;;  %v5299_v36 = vadd.f32 1e-05, %v732_v57 }
 0x160   : > { %v4488_v18 = vpop.eup %4487  ;;  %v764_v20 = vmul.f32 %v4486_v31, %v747_v30  ;;  %vm770_vm2 = vweird.f32 %v4486_v31  ;;  %vm819_vm7 = vweird.f32 %v5297_v8 }
 0x161   : > { %v784_v15 = vmul.f32 %v4488_v18, %v749_v49  ;;  %4489 = vrsqrt.f32 %v5295_v0  ;;  %vm790_vm4 = vweird.f32 %v4488_v18  ;;  %vm799_vm5 = vweird.f32 %v5295_v0  ;;  %vm771_vm8 = vmor %vm769_vm1, %vm770_vm2 }
 0x162   : > { %v765_v5 = vmul.f32 %v4486_v31, %v764_v20  ;;  %4491 = vrsqrt.f32 %v5299_v36  ;;  %vm791_vm9 = vmor %vm789_vm3, %vm790_vm4  ;;  %vm779_vm13 = vweird.f32 %v5299_v36 }
 0x163   : > { %v785_v17 = vmul.f32 %v4488_v18, %v784_v15  ;;  %4493 = vrsqrt.f32 %v5297_v8  ;;  %v709_v47 = vpop.xlane.xlu0 %708 }
 0x164   : > { %v766_v25 = vmul.f32 0.5, %v765_v5  ;;  %v703_v44 = vpop.xlane.xlu1 %702  ;;  %v697_v27 = vpop.xlane.xlu2 %696  ;;  %v739_v20 = vmul.f32 %v709_v47, %v5112_v54 }
 0x165   : > { %v786_v11 = vmul.f32 0.5, %v785_v17  ;;  %v737_v28 = vmul.f32 %v703_v44, %v5112_v54  ;;  %v735_v45 = vmul.f32 %v697_v27, %v5112_v54 }
 0x166   : > { %v767_v48 = vsub.f32 1.5, %v766_v25 }
 0x167   : > { %v4490_v46 = vpop.eup %4489  ;;  %v787_v50 = vsub.f32 1.5, %v786_v11  ;;  %v5320_v53 = vadd.f32 1e-05, %v737_v28  ;;  %v5329_v5 = vadd.f32 1e-05, %v735_v45 }
 0x168   : > { %v4492_v55 = vpop.eup %4491  ;;  %v768_v56 = vmul.f32 %v4486_v31, %v767_v48  ;;  %v794_v57 = vmul.f32 %v4490_v46, %v5295_v0  ;;  %vm800_vm6 = vweird.f32 %v4490_v46 }
 0x169   : > { %v4494_v37 = vpop.eup %4493  ;;  %v788_v15 = vmul.f32 %v4488_v18, %v787_v50  ;;  %v774_v39 = vmul.f32 %v4492_v55, %v5299_v36  ;;  %4495 = vrsqrt.f32 %v5320_v53  ;;  %vm780_vm10 = vweird.f32 %v4492_v55  ;;  %vm801_vm12 = vmor %vm799_vm5, %vm800_vm6 }
 0x16a   : > { %v772_v17 = vsel %vm771_vm8, %v4486_v31, %v768_v56  ;;  %v795_v25 = vmul.f32 %v4490_v46, %v794_v57  ;;  %v814_v44 = vmul.f32 %v4494_v37, %v5297_v8  ;;  %4497 = vrsqrt.f32 %v5329_v5  ;;  %vm781_vm14 = vmor %vm779_vm13, %vm780_vm10 }
 0x16b   : > { %v923_v11 = vmul.f32 %v772_v17, %v5123_v62  ;;  %v924_v30 = vmul.f32 %v772_v17, %v5126_v63  ;;  %v792_v27 = vsel %vm791_vm9, %v4488_v18, %v788_v15  ;;  %v775_v28 = vmul.f32 %v4492_v55, %v774_v39 }
 0x16c   : > { %v927_v47 = vmul.f32 %v792_v27, %v5117_v60  ;;  %v928_v48 = vmul.f32 %v792_v27, %v5120_v61  ;;  %v796_v45 = vmul.f32 0.5, %v795_v25  ;;  %v815_v50 = vmul.f32 %v4494_v37, %v814_v44  ;;  %v5342_v57 = vpop.xlane.xlu1 %711  ;;  %v706_v25 = vpop.xlane.xlu2 %705 }
 0x16d   : > { %v960_v31 = vmul.f32 %v5310_v6, %v923_v11  ;;  %v961_v49 = vmul.f32 %v5312_v24, %v924_v30  ;;  %v776_v56 = vmul.f32 0.5, %v775_v28  ;;  %vm820_vm11 = vweird.f32 %v4494_v37 }
 0x16e   : > { %v964_v62 = vmul.f32 %v5310_v6, %v927_v47  ;;  %v965_v63 = vmul.f32 %v5312_v24, %v928_v48  ;;  %v797_v18 = vsub.f32 1.5, %v796_v45  ;;  %v816_v15 = vmul.f32 0.5, %v815_v50  ;;  %v718_v45 = vpop.xlane.xlu0 %717  ;;  %vm821_vm15 = vmor %vm819_vm7, %vm820_vm11 }
 0x16f   : > { %v5346_v60 = vpop.eup %4495  ;;  %v997_v61 = vadd.f32 %v5314_v9, %v960_v31  ;;  %v998_v39 = vadd.f32 %v5316_v10, %v961_v49  ;;  %v777_v17 = vsub.f32 1.5, %v776_v56  ;;  %v5359_v56 = vadd.f32 1e-05, %v739_v20 }
 0x170   : > { %v1001_v44 = vadd.f32 %v5314_v9, %v964_v62  ;;  %v1002_v11 = vadd.f32 %v5316_v10, %v965_v63  ;;  %v798_v30 = vmul.f32 %v4490_v46, %v797_v18  ;;  %v817_v27 = vsub.f32 1.5, %v816_v15  ;;  %v4498_v62 = vpop.eup %4497 }
 0x171   : > { %v1029_v28 = vpack.c.bf16 %v998_v39, %v997_v61  ;;  %v778_v47 = vmul.f32 %v4492_v55, %v777_v17  ;;  %v824_v48 = vmul.f32 %v5346_v60, %v5320_v53  ;;  %v804_v61 = vmul.f32 %v4498_v62, %v5329_v5 }
 0x172   : > { %v1031_v50 = vpack.c.bf16 %v1002_v11, %v1001_v44  ;;  %v802_v31 = vsel %vm801_vm12, %v4490_v46, %v798_v30  ;;  %v818_v49 = vmul.f32 %v4494_v37, %v817_v27  ;;  %vm809_vm0 = vweird.f32 %v5329_v5 }
 0x173   : > { %1045 = vst [vmem:[#allocation2] sm:$0xff] %v1029_v28  ;;  %v929_v63 = vmul.f32 %v802_v31, %v5146_v34  ;;  %v930_v0 = vmul.f32 %v802_v31, %v5149_v35  ;;  %v782_v18 = vsel %vm781_vm14, %v4492_v55, %v778_v47  ;;  %v825_v36 = vmul.f32 %v5346_v60, %v824_v48 }
 0x174   : > { %1047 = vst [vmem:[#allocation2 + $0x10] sm:$0xff] %v1031_v50  ;;  %v925_v46 = vmul.f32 %v782_v18, %v5152_v42  ;;  %v926_v15 = vmul.f32 %v782_v18, %v5155_v43  ;;  %v822_v20 = vsel %vm821_vm15, %v4494_v37, %v818_v49  ;;  %v805_v42 = vmul.f32 %v4498_v62, %v804_v61  ;;  %v721_v30 = vpop.xlane.xlu1 %720  ;;  %v715_v31 = vpop.xlane.xlu2 %714 }
 0x175   : > { %v966_v34 = vmul.f32 %v5310_v6, %v929_v63  ;;  %v967_v35 = vmul.f32 %v5312_v24, %v930_v0  ;;  %v933_v55 = vmul.f32 %v822_v20, %v5140_v26  ;;  %v934_v8 = vmul.f32 %v822_v20, %v5143_v33 }
 0x176   : > { %v962_v39 = vmul.f32 %v5310_v6, %v925_v46  ;;  %v963_v17 = vmul.f32 %v5312_v24, %v926_v15  ;;  %vm830_vm1 = vweird.f32 %v5346_v60  ;;  %v806_v27 = vmul.f32 0.5, %v805_v42  ;;  %v727_v15 = vpop.xlane.xlu0 %726 }
 0x177   : > { %v1003_v43 = vadd.f32 %v5314_v9, %v966_v34  ;;  %v1004_v37 = vadd.f32 %v5316_v10, %v967_v35  ;;  %v970_v44 = vmul.f32 %v5310_v6, %v933_v55  ;;  %v971_v11 = vmul.f32 %v5312_v24, %v934_v8 }
 0x178   : > { %v999_v26 = vadd.f32 %v5314_v9, %v962_v39  ;;  %v1000_v33 = vadd.f32 %v5316_v10, %v963_v17  ;;  %v826_v28 = vmul.f32 0.5, %v825_v36  ;;  %4499 = vrsqrt.f32 %v5359_v56 }
 0x179   : > { %v1032_v47 = vpack.c.bf16 %v1004_v37, %v1003_v43  ;;  %v1007_v48 = vadd.f32 %v5314_v9, %v970_v44  ;;  %v1008_v50 = vadd.f32 %v5316_v10, %v971_v11  ;;  %v807_v63 = vsub.f32 1.5, %v806_v27 }
 0x17a   : > { %v1030_v49 = vpack.c.bf16 %v1000_v33, %v999_v26  ;;  %vm810_vm2 = vweird.f32 %v4498_v62  ;;  %v827_v0 = vsub.f32 1.5, %v826_v28  ;;  %vm829_vm3 = vweird.f32 %v5320_v53 }
 0x17b   : > { %1048 = vst [vmem:[#allocation2 + $0x18] sm:$0xff] %v1032_v47  ;;  %v1034_v18 = vpack.c.bf16 %v1008_v50, %v1007_v48  ;;  %v738_v46 = vmul.f32 %v706_v25, %v5112_v54  ;;  %v740_v36 = vmul.f32 %v5342_v57, %v5112_v54  ;;  %v808_v20 = vmul.f32 %v4498_v62, %v807_v63  ;;  %vm831_vm4 = vmor %vm829_vm3, %vm830_vm1 }
 0x17c   : > { %1046 = vst [vmem:[#allocation2 + $0x8] sm:$0xff] %v1030_v49  ;;  %v828_v61 = vmul.f32 %v5346_v60, %v827_v0  ;;  %v742_v34 = vmul.f32 %v718_v45, %v5112_v54  ;;  %v741_v35 = vmul.f32 %v715_v31, %v5112_v54  ;;  %vm811_vm5 = vmor %vm809_vm0, %vm810_vm2  ;;  %v743_v57 = vmul.f32 %v721_v30, %v5112_v54  ;;  %v730_v30 = vpop.xlane.xlu1 %729  ;;  %v724_v28 = vpop.xlane.xlu2 %723 }
 0x17d   : > { %1050 = vst [vmem:[#allocation2 + $0x28] sm:$0xff] %v1034_v18  ;;  %v5399_v53 = vadd.f32 1e-05, %v738_v46  ;;  %v812_v25 = vsel %vm811_vm5, %v4498_v62, %v808_v20  ;;  %v5403_v8 = vadd.f32 1e-05, %v740_v36  ;;  %v745_v39 = vmul.f32 %v727_v15, %v5112_v54 }
 0x17e   : > { %v832_v55 = vsel %vm831_vm4, %v5346_v60, %v828_v61  ;;  %v4500_v17 = vpop.eup %4499  ;;  %v931_v45 = vmul.f32 %v812_v25, %v5171_v51  ;;  %v932_v42 = vmul.f32 %v812_v25, %v5174_v52  ;;  %v5412_v62 = vadd.f32 1e-05, %v742_v34 }
 0x17f   : > { %v935_v43 = vmul.f32 %v832_v55, %v5186_v1  ;;  %v936_v5 = vmul.f32 %v832_v55, %v5189_v3  ;;  %v844_v37 = vmul.f32 %v4500_v17, %v5359_v56  ;;  %4501 = vrsqrt.f32 %v5399_v53 }
 0x180   : > { %v5414_v60 = vadd.f32 1e-05, %v741_v35  ;;  %v968_v44 = vmul.f32 %v5310_v6, %v931_v45  ;;  %v969_v11 = vmul.f32 %v5312_v24, %v932_v42  ;;  %vm849_vm6 = vweird.f32 %v5359_v56 }
 0x181   : > { %v972_v51 = vmul.f32 %v5310_v6, %v935_v43  ;;  %v973_v52 = vmul.f32 %v5312_v24, %v936_v5  ;;  %v845_v1 = vmul.f32 %v4500_v17, %v844_v37  ;;  %4503 = vrsqrt.f32 %v5403_v8 }
 0x182   : > { %v1005_v3 = vadd.f32 %v5314_v9, %v968_v44  ;;  %v1006_v26 = vadd.f32 %v5316_v10, %v969_v11  ;;  %4505 = vrsqrt.f32 %v5412_v62  ;;  %v5427_v48 = vadd.f32 1e-05, %v743_v57 }
 0x183   : > { %v1009_v33 = vadd.f32 %v5314_v9, %v972_v51  ;;  %v1010_v27 = vadd.f32 %v5316_v10, %v973_v52  ;;  %v846_v47 = vmul.f32 0.5, %v845_v1  ;;  %v746_v50 = vmul.f32 %v730_v30, %v5112_v54 }
 0x184   : > { %v1033_v31 = vpack.c.bf16 %v1006_v26, %v1005_v3  ;;  %4507 = vrsqrt.f32 %v5414_v60  ;;  %v5431_v63 = vadd.f32 1e-05, %v745_v39  ;;  %vm850_vm7 = vweird.f32 %v4500_v17 }
 0x185   : > { %v1035_v49 = vpack.c.bf16 %v1010_v27, %v1009_v33  ;;  %v4502_v0 = vpop.eup %4501  ;;  %v847_v18 = vsub.f32 1.5, %v846_v47  ;;  %4509 = vrsqrt.f32 %v5427_v48  ;;  %v744_v46 = vmul.f32 %v724_v28, %v5112_v54  ;;  %vm851_vm9 = vmor %vm849_vm6, %vm850_vm7 }
 0x186   : > { %1049 = vst [vmem:[#allocation2 + $0x20] sm:$0xff] %v1033_v31  ;;  %v834_v36 = vmul.f32 %v4502_v0, %v5399_v53  ;;  %4511 = vrsqrt.f32 %v5431_v63  ;;  %vm839_vm8 = vweird.f32 %v5399_v53  ;;  %vm840_vm10 = vweird.f32 %v4502_v0 }
 0x187   : > { %v4504_v15 = vpop.eup %4503  ;;  %1051 = vst [vmem:[#allocation2 + $0x30] sm:$0xff] %v1035_v49  ;;  %v848_v20 = vmul.f32 %v4500_v17, %v847_v18  ;;  %v5438_v61 = vadd.f32 1e-05, %v744_v46  ;;  %vm859_vm11 = vweird.f32 %v5403_v8  ;;  %vm879_vm13 = vweird.f32 %v5412_v62  ;;  %vm841_vm3 = vmor %vm839_vm8, %vm840_vm10 }
 0x188   : > { %v835_v34 = vmul.f32 %v4502_v0, %v834_v36  ;;  %v854_v35 = vmul.f32 %v4504_v15, %v5403_v8  ;;  %v5444_v54 = vpop.eup %4505  ;;  %vm860_vm12 = vweird.f32 %v4504_v15  ;;  %v5448_v25 = vadd.f32 1e-05, %v746_v50 }
 0x189   : > { %v852_v57 = vsel %vm851_vm9, %v4500_v17, %v848_v20  ;;  %4513 = vrsqrt.f32 %v5438_v61  ;;  %v874_v5 = vmul.f32 %v5444_v54, %v5412_v62  ;;  %vm880_vm14 = vweird.f32 %v5444_v54  ;;  %vm861_vm6 = vmor %vm859_vm11, %vm860_vm12 }
 0x18a   : > { %v4508_v55 = vpop.eup %4507  ;;  %v939_v56 = vmul.f32 %v852_v57, %v5179_v58  ;;  %v940_v39 = vmul.f32 %v852_v57, %v5182_v59  ;;  %v836_v45 = vmul.f32 0.5, %v835_v34  ;;  %v855_v42 = vmul.f32 %v4504_v15, %v854_v35  ;;  %vm881_vm7 = vmor %vm879_vm13, %vm880_vm14 }
 0x18b   : > { %v5452_v43 = vpop.eup %4509  ;;  %v864_v17 = vmul.f32 %v4508_v55, %v5414_v60  ;;  %vm870_vm15 = vweird.f32 %v4508_v55  ;;  %vm869_vm0 = vweird.f32 %v5414_v60  ;;  %v875_v51 = vmul.f32 %v5444_v54, %v874_v5 }
 0x18c   : > { %v5458_v37 = vpop.eup %4511  ;;  %v976_v44 = vmul.f32 %v5310_v6, %v939_v56  ;;  %v977_v58 = vmul.f32 %v5312_v24, %v940_v39  ;;  %v837_v11 = vsub.f32 1.5, %v836_v45  ;;  %v856_v59 = vmul.f32 0.5, %v855_v42  ;;  %vm871_vm8 = vmor %vm869_vm0, %vm870_vm15 }
 0x18d   : > { %v865_v52 = vmul.f32 %v4508_v55, %v864_v17  ;;  %v884_v30 = vmul.f32 %v5452_v43, %v5427_v48  ;;  %vm890_vm1 = vweird.f32 %v5452_v43  ;;  %vm889_vm2 = vweird.f32 %v5427_v48 }
 0x18e   : > { %v1013_v1 = vadd.f32 %v5314_v9, %v976_v44  ;;  %v1014_v3 = vadd.f32 %v5316_v10, %v977_v58  ;;  %v838_v26 = vmul.f32 %v4502_v0, %v837_v11  ;;  %v857_v33 = vsub.f32 1.5, %v856_v59  ;;  %vm891_vm9 = vmor %vm889_vm2, %vm890_vm1 }
 0x18f   : > { %v5470_v27 = vpop.eup %4513  ;;  %v876_v28 = vmul.f32 0.5, %v875_v51  ;;  %v866_v47 = vmul.f32 0.5, %v865_v52  ;;  %v885_v50 = vmul.f32 %v5452_v43, %v884_v30  ;;  %v904_v31 = vmul.f32 %v5458_v37, %v5431_v63 }
 0x190   : > { %v1037_v49 = vpack.c.bf16 %v1014_v3, %v1013_v1  ;;  %v842_v18 = vsel %vm841_vm3, %v4502_v0, %v838_v26  ;;  %v858_v46 = vmul.f32 %v4504_v15, %v857_v33  ;;  %vm909_vm4 = vweird.f32 %v5431_v63  ;;  %v1061_v63 = vld [vmem:[%s6859_s6] sm:$0x3] }
 0x191   : > { %vm910_vm5 = vweird.f32 %v5458_v37  ;;  %v937_v36 = vmul.f32 %v842_v18, %v5204_v21  ;;  %v938_v20 = vmul.f32 %v842_v18, %v5207_v4  ;;  %v877_v53 = vsub.f32 1.5, %v876_v28 }
 0x192   : > { %v867_v34 = vsub.f32 1.5, %v866_v47  ;;  %1053 = vst [vmem:[#allocation2 + $0x40] sm:$0xff] %v1037_v49  ;;  %v862_v35 = vsel %vm861_vm6, %v4504_v15, %v858_v46  ;;  %v886_v57 = vmul.f32 0.5, %v885_v50  ;;  %v905_v0 = vmul.f32 %v5458_v37, %v904_v31  ;;  %vm911_vm10 = vmor %vm909_vm4, %vm910_vm5 }
 0x193   : > { %v894_v56 = vmul.f32 %v5470_v27, %v5438_v61  ;;  %v974_v39 = vmul.f32 %v5310_v6, %v937_v36  ;;  %v975_v21 = vmul.f32 %v5312_v24, %v938_v20  ;;  %v941_v4 = vmul.f32 %v862_v35, %v5223_v12 }
 0x194   : > { %v942_v45 = vmul.f32 %v862_v35, %v5226_v13  ;;  %v878_v8 = vmul.f32 %v5444_v54, %v877_v53  ;;  %v868_v15 = vmul.f32 %v4508_v55, %v867_v34  ;;  %v887_v42 = vsub.f32 1.5, %v886_v57 }
 0x195   : > { %v906_v5 = vmul.f32 0.5, %v905_v0  ;;  %v1011_v17 = vadd.f32 %v5314_v9, %v974_v39  ;;  %v1012_v44 = vadd.f32 %v5316_v10, %v975_v21  ;;  %v978_v58 = vmul.f32 %v5310_v6, %v941_v4 }
 0x196   : > { %v979_v12 = vmul.f32 %v5312_v24, %v942_v45  ;;  %v882_v13 = vsel %vm881_vm7, %v5444_v54, %v878_v8  ;;  %v872_v11 = vsel %vm871_vm8, %v4508_v55, %v868_v15  ;;  %v888_v62 = vmul.f32 %v5452_v43, %v887_v42 }
 0x197   : > { %v907_v59 = vsub.f32 1.5, %v906_v5  ;;  %v1036_v51 = vpack.c.bf16 %v1012_v44, %v1011_v17  ;;  %v1015_v52 = vadd.f32 %v5314_v9, %v978_v58  ;;  %v945_v1 = vmul.f32 %v882_v13, %v5213_v22 }
 0x198   : > { %v1016_v30 = vadd.f32 %v5316_v10, %v979_v12  ;;  %v946_v60 = vmul.f32 %v882_v13, %v5216_v23  ;;  %v943_v54 = vmul.f32 %v872_v11, %v5233_v14  ;;  %v944_v55 = vmul.f32 %v872_v11, %v5240_v29 }
 0x199   : > { %v892_v3 = vsel %vm891_vm9, %v5452_v43, %v888_v62  ;;  %1052 = vst [vmem:[#allocation2 + $0x38] sm:$0xff] %v1036_v51  ;;  %v982_v33 = vmul.f32 %v5310_v6, %v945_v1  ;;  %v908_v14 = vmul.f32 %v5458_v37, %v907_v59  ;;  %4515 = vrsqrt.f32 %v5448_v25 }
 0x19a   : > { %v1038_v26 = vpack.c.bf16 %v1016_v30, %v1015_v52  ;;  %v947_v28 = vmul.f32 %v892_v3, %v5256_v19  ;;  %v948_v22 = vmul.f32 %v892_v3, %v5259_v2  ;;  %v983_v47 = vmul.f32 %v5312_v24, %v946_v60 }
 0x19b   : > { %v980_v48 = vmul.f32 %v5310_v6, %v943_v54  ;;  %v981_v23 = vmul.f32 %v5312_v24, %v944_v55  ;;  %v1019_v29 = vadd.f32 %v5314_v9, %v982_v33  ;;  %v895_v19 = vmul.f32 %v5470_v27, %v894_v56 }
 0x19c   : > { %1054 = vst [vmem:[#allocation2 + $0x48] sm:$0xff] %v1038_v26  ;;  %v984_v43 = vmul.f32 %v5310_v6, %v947_v28  ;;  %v985_v50 = vmul.f32 %v5312_v24, %v948_v22  ;;  %v1020_v2 = vadd.f32 %v5316_v10, %v983_v47  ;;  %v912_v18 = vsel %vm911_vm10, %v5458_v37, %v908_v14 }
 0x19d   : > { %v1017_v31 = vadd.f32 %v5314_v9, %v980_v48  ;;  %v1018_v49 = vadd.f32 %v5316_v10, %v981_v23  ;;  %v951_v20 = vmul.f32 %v912_v18, %v5247_v7  ;;  %v952_v53 = vmul.f32 %v912_v18, %v5250_v32 }
 0x19e   : > { %v1021_v46 = vadd.f32 %v5314_v9, %v984_v43  ;;  %v1022_v36 = vadd.f32 %v5316_v10, %v985_v50  ;;  %v1040_v34 = vpack.c.bf16 %v1020_v2, %v1019_v29  ;;  %v896_v57 = vmul.f32 0.5, %v895_v19 }
 0x19f   : > { %v1039_v35 = vpack.c.bf16 %v1018_v49, %v1017_v31  ;;  %v988_v56 = vmul.f32 %v5310_v6, %v951_v20  ;;  %v989_v37 = vmul.f32 %v5312_v24, %v952_v53  ;;  %vm900_vm11 = vweird.f32 %v5470_v27  ;;  %v4516_v42 = vpop.eup %4515 }
 0x1a0   : > { %v1041_v0 = vpack.c.bf16 %v1022_v36, %v1021_v46  ;;  %1056 = vst [vmem:[#allocation2 + $0x58] sm:$0xff] %v1040_v34  ;;  %v897_v39 = vsub.f32 1.5, %v896_v57  ;;  %v5547_v7 = vperm.slane %v1061_v63, 0  ;;  %v5549_v32 = vperm.slane %v1061_v63, 1 }
 0x1a1   : > { %1055 = vst [vmem:[#allocation2 + $0x50] sm:$0xff] %v1039_v35  ;;  %v1025_v21 = vadd.f32 %v5314_v9, %v988_v56  ;;  %v1026_v4 = vadd.f32 %v5316_v10, %v989_v37  ;;  %vm899_vm12 = vweird.f32 %v5438_v61  ;;  %v914_v44 = vmul.f32 %v4516_v42, %v5448_v25 }
 0x1a2   : > { %1057 = vst [vmem:[#allocation2 + $0x60] sm:$0xff] %v1041_v0  ;;  %v898_v45 = vmul.f32 %v5470_v27, %v897_v39  ;;  %vm901_vm13 = vmor %vm899_vm12, %vm900_vm11  ;;  %vm920_vm14 = vweird.f32 %v4516_v42  ;;  %vm919_vm15 = vweird.f32 %v5448_v25 }
 0x1a3   : > { %v1043_v8 = vpack.c.bf16 %v1026_v4, %v1025_v21  ;;  %1069 = vst [vmem:[#allocation3 + $0xb0] sm:$0xff] %v5547_v7  ;;  %v915_v12 = vmul.f32 %v4516_v42, %v914_v44  ;;  %vm921_vm0 = vmor %vm919_vm15, %vm920_vm14 }
 0x1a4   : > { %v902_v15 = vsel %vm901_vm13, %v5470_v27, %v898_v45  ;;  %1070 = vst [vmem:[#allocation3] sm:$0xff] %v5549_v32 }
 0x1a5   : > { %1059 = vst [vmem:[#allocation2 + $0x70] sm:$0xff] %v1043_v8  ;;  %v949_v5 = vmul.f32 %v902_v15, %v5270_v16  ;;  %v950_v17 = vmul.f32 %v902_v15, %v5273_v38  ;;  %v916_v16 = vmul.f32 0.5, %v915_v12 }
 0x1a6   : > { %1071 = vst [vmem:[#allocation3 + $0xd8] sm:$0xff] %v5547_v7 }
 0x1a7   : > { %v986_v61 = vmul.f32 %v5310_v6, %v949_v5  ;;  %v987_v58 = vmul.f32 %v5312_v24, %v950_v17  ;;  %1072 = vst [vmem:[#allocation3 + $0x18] sm:$0xff] %v5549_v32  ;;  %v917_v11 = vsub.f32 1.5, %v916_v16 }
 0x1a8   : > { %1073 = vst [vmem:[#allocation3 + $0x50] sm:$0xff] %v5547_v7 }
 0x1a9   : > { %v1023_v27 = vadd.f32 %v5314_v9, %v986_v61  ;;  %v1024_v13 = vadd.f32 %v5316_v10, %v987_v58  ;;  %1074 = vst [vmem:[#allocation3 + $0x68] sm:$0xff] %v5549_v32  ;;  %v918_v62 = vmul.f32 %v4516_v42, %v917_v11 }
 0x1aa   : > { %1075 = vst [vmem:[#allocation3 + $0x30] sm:$0xff] %v5547_v7 }
 0x1ab   : > { %v1042_v38 = vpack.c.bf16 %v1024_v13, %v1023_v27  ;;  %1076 = vst [vmem:[#allocation3 + $0x48] sm:$0xff] %v5549_v32  ;;  %v922_v59 = vsel %vm921_vm0, %v4516_v42, %v918_v62 }
 0x1ac   : > { %1077 = vst [vmem:[#allocation3 + $0x80] sm:$0xff] %v5547_v7  ;;  %v953_v51 = vmul.f32 %v922_v59, %v5281_v40  ;;  %v954_v52 = vmul.f32 %v922_v59, %v5284_v41 }
 0x1ad   : > { %1058 = vst [vmem:[#allocation2 + $0x68] sm:$0xff] %v1042_v38 }
 0x1ae   : > { %1078 = vst [vmem:[#allocation3 + $0x88] sm:$0xff] %v5549_v32  ;;  %v990_v30 = vmul.f32 %v5310_v6, %v953_v51  ;;  %v991_v25 = vmul.f32 %v5312_v24, %v954_v52 }
 0x1af   : > { %1079 = vst [vmem:[#allocation3 + $0xe8] sm:$0xff] %v5547_v7 }
 0x1b0   : > { %1080 = vst [vmem:[#allocation3 + $0xb8] sm:$0xff] %v5549_v32  ;;  %v1027_v1 = vadd.f32 %v5314_v9, %v990_v30  ;;  %v1028_v60 = vadd.f32 %v5316_v10, %v991_v25 }
 0x1b1   : > { %1081 = vst [vmem:[#allocation3 + $0x60] sm:$0xff] %v5547_v7 }
 0x1b2   : > { %1082 = vst [vmem:[#allocation3 + $0xf0] sm:$0xff] %v5549_v32  ;;  %v1044_v40 = vpack.c.bf16 %v1028_v60, %v1027_v1 }
 0x1b3   : > { %1083 = vst [vmem:[#allocation3 + $0x8] sm:$0xff] %v5547_v7 }
 0x1b4   : > { %1084 = vst [vmem:[#allocation3 + $0x78] sm:$0xff] %v5549_v32 }
 0x1b5   : > { %1085 = vst [vmem:[#allocation3 + $0x38] sm:$0xff] %v5547_v7 }
 0x1b6   : > { %1086 = vst [vmem:[#allocation3 + $0x58] sm:$0xff] %v5549_v32 }
 0x1b7   : > { %1087 = vst [vmem:[#allocation3 + $0x40] sm:$0xff] %v5547_v7 }
 0x1b8   : > { %1088 = vst [vmem:[#allocation3 + $0xc8] sm:$0xff] %v5549_v32 }
 0x1b9   : > { %1060 = vst [vmem:[#allocation2 + $0x78] sm:$0xff] %v1044_v40 }
 0x1ba   : > { %1089 = vst [vmem:[#allocation3 + $0xe0] sm:$0xff] %v5547_v7 }
 0x1bb   : > { %1090 = vst [vmem:[#allocation3 + $0x90] sm:$0xff] %v5549_v32 }
 0x1bc   : > { %1091 = vst [vmem:[#allocation3 + $0x70] sm:$0xff] %v5547_v7 }
 0x1bd   : > { %1092 = vst [vmem:[#allocation3 + $0xc0] sm:$0xff] %v5549_v32 }
 0x1be   : > { %1093 = vst [vmem:[#allocation3 + $0xa8] sm:$0xff] %v5547_v7 }
 0x1bf   : > { %1094 = vst [vmem:[#allocation3 + $0xd0] sm:$0xff] %v5549_v32 }
 0x1c0   : > { %1095 = vst [vmem:[#allocation3 + $0x10] sm:$0xff] %v5547_v7 }
 0x1c1   : > { %1096 = vst [vmem:[#allocation3 + $0x28] sm:$0xff] %v5549_v32 }
 0x1c2   : > { %1097 = vst [vmem:[#allocation3 + $0xa0] sm:$0xff] %v5547_v7 }
 0x1c3   : > { %1098 = vst [vmem:[#allocation3 + $0xf8] sm:$0xff] %v5549_v32 }
 0x1c4   : > { %1099 = vst [vmem:[#allocation3 + $0x20] sm:$0xff] %v5547_v7 }
 0x1c5   : > { %1100 = vst [vmem:[#allocation3 + $0x98] sm:$0xff] %v5549_v32 }
 0x1c6 PF: > { %v3893_v41 = vld [vmem:[%s4917_s12 + $0xe0] sm:$0xf]  ;;  %v4344_v6 = vld [vmem:[%s4917_s12 + $0xec] sm:$0xf0]  ;;  %v4342_v54 = vld [vmem:[%s4917_s12 + $0xe4] sm:$0xf] }
 0x1c7   : > { %v4021_v24 = vld [vmem:[%s4917_s12 + $0x1e0] sm:$0xf]  ;;  %v3894_v9 = vor.u32 %v4344_v6, %v3893_v41  ;;  %v4376_v10 = vld [vmem:[%s4917_s12 + $0x1ec] sm:$0xf0]  ;;  %v3895_v55 = vld [vmem:[%s4917_s12 + $0xf0] sm:$0xf0] }
 0x1c8   : > { %v4022_v3 = vor.u32 %v4376_v10, %v4021_v24  ;;  %v3898_v26 = vor.u32 %v4342_v54, %v3895_v55  ;;  %v4374_v33 = vld [vmem:[%s4917_s12 + $0x1e4] sm:$0xf]  ;;  %v4023_v28 = vld [vmem:[%s4917_s12 + $0x1f0] sm:$0xf0]  ;;  %v3877_v22 = vld [vmem:[%s4917_s12 + $0xc0] sm:$0xf] }
 0x1c9   : > { %1591 = vmatpush.bf16.msra.mxu0 %v3894_v9  ;;  %v4026_v47 = vor.u32 %v4374_v33, %v4023_v28  ;;  %v4340_v48 = vld [vmem:[%s4917_s12 + $0xcc] sm:$0xf0]  ;;  %v4005_v23 = vld [vmem:[%s4917_s12 + $0x1c0] sm:$0xf]  ;;  %v4338_v50 = vld [vmem:[%s4917_s12 + $0xc4] sm:$0xf] }
 0x1ca   : > { %v4372_v14 = vld [vmem:[%s4917_s12 + $0x1cc] sm:$0xf0]  ;;  %1640 = vmatpush.bf16.msra.mxu1 %v4022_v3  ;;  %1689 = vmatpush.bf16.msra.mxu2 %v3898_v26  ;;  %v3878_v29 = vor.u32 %v4340_v48, %v3877_v22  ;;  %v3879_v19 = vld [vmem:[%s4917_s12 + $0xd0] sm:$0xf0]  ;;  %v4370_v2 = vld [vmem:[%s4917_s12 + $0x1c4] sm:$0xf] }
 0x1cb   : > { %v4006_v43 = vor.u32 %v4372_v14, %v4005_v23  ;;  %1738 = vmatpush.bf16.msra.mxu3 %v4026_v47  ;;  %v3882_v31 = vor.u32 %v4338_v50, %v3879_v19  ;;  %v4007_v49 = vld [vmem:[%s4917_s12 + $0x1d0] sm:$0xf0]  ;;  %v3861_v18 = vld [vmem:[%s4917_s12 + $0xa0] sm:$0xf]  ;;  %v4336_v46 = vld [vmem:[%s4917_s12 + $0xac] sm:$0xf0] }
 0x1cc   : > { %v4010_v36 = vor.u32 %v4370_v2, %v4007_v49  ;;  %v3989_v20 = vld [vmem:[%s4917_s12 + $0x1a0] sm:$0xf]  ;;  %v4368_v53 = vld [vmem:[%s4917_s12 + $0x1ac] sm:$0xf0]  ;;  %v4334_v63 = vld [vmem:[%s4917_s12 + $0xa4] sm:$0xf]  ;;  %v3862_v34 = vor.u32 %v4336_v46, %v3861_v18 }
 0x1cd   : > { %1592 = vmatpush.bf16.msra.mxu0 %v3878_v29  ;;  %v3863_v35 = vld [vmem:[%s4917_s12 + $0xb0] sm:$0xf0]  ;;  %v4366_v57 = vld [vmem:[%s4917_s12 + $0x1a4] sm:$0xf]  ;;  %v3990_v56 = vor.u32 %v4368_v53, %v3989_v20  ;;  %v3845_v39 = vld [vmem:[%s4917_s12 + $0x80] sm:$0xf] }
 0x1ce   : > { %v3991_v0 = vld [vmem:[%s4917_s12 + $0x1b0] sm:$0xf0]  ;;  %1641 = vmatpush.bf16.msra.mxu1 %v4006_v43  ;;  %1690 = vmatpush.bf16.msra.mxu2 %v3882_v31  ;;  %v3866_v37 = vor.u32 %v4334_v63, %v3863_v35  ;;  %v4332_v7 = vld [vmem:[%s4917_s12 + $0x8c] sm:$0xf0]  ;;  %v3973_v32 = vld [vmem:[%s4917_s12 + $0x180] sm:$0xf] }
 0x1cf   : > { %1739 = vmatpush.bf16.msra.mxu3 %v4010_v36  ;;  %v3994_v21 = vor.u32 %v4366_v57, %v3991_v0  ;;  %v4364_v4 = vld [vmem:[%s4917_s12 + $0x18c] sm:$0xf0]  ;;  %v4330_v45 = vld [vmem:[%s4917_s12 + $0x84] sm:$0xf]  ;;  %v3847_v8 = vld [vmem:[%s4917_s12 + $0x90] sm:$0xf0]  ;;  %v3846_v5 = vor.u32 %v4332_v7, %v3845_v39 }
 0x1d0   : > { %v4362_v15 = vld [vmem:[%s4917_s12 + $0x184] sm:$0xf]  ;;  %v3975_v42 = vld [vmem:[%s4917_s12 + $0x190] sm:$0xf0]  ;;  %v3974_v17 = vor.u32 %v4364_v4, %v3973_v32  ;;  %v3850_v44 = vor.u32 %v4330_v45, %v3847_v8  ;;  %v3829_v61 = vld [vmem:[%s4917_s12 + $0x60] sm:$0xf] }
 0x1d1   : > { %1593 = vmatpush.bf16.msra.mxu0 %v3862_v34  ;;  %v4328_v58 = vld [vmem:[%s4917_s12 + $0x6c] sm:$0xf0]  ;;  %v3957_v12 = vld [vmem:[%s4917_s12 + $0x160] sm:$0xf]  ;;  %v3978_v27 = vor.u32 %v4362_v15, %v3975_v42  ;;  %v4326_v16 = vld [vmem:[%s4917_s12 + $0x64] sm:$0xf] }
 0x1d2   : > { %1642 = vmatpush.bf16.msra.mxu1 %v3990_v56  ;;  %1691 = vmatpush.bf16.msra.mxu2 %v3866_v37  ;;  %v4360_v13 = vld [vmem:[%s4917_s12 + $0x16c] sm:$0xf0]  ;;  %v3831_v38 = vld [vmem:[%s4917_s12 + $0x70] sm:$0xf0]  ;;  %v4358_v11 = vld [vmem:[%s4917_s12 + $0x164] sm:$0xf]  ;;  %v3830_v59 = vor.u32 %v4328_v58, %v3829_v61 }
 0x1d3   : > { %1740 = vmatpush.bf16.msra.mxu3 %v3994_v21  ;;  %v3959_v62 = vld [vmem:[%s4917_s12 + $0x170] sm:$0xf0]  ;;  %v3958_v51 = vor.u32 %v4360_v13, %v3957_v12  ;;  %v3834_v52 = vor.u32 %v4326_v16, %v3831_v38  ;;  %v3813_v30 = vld [vmem:[%s4917_s12 + $0x40] sm:$0xf]  ;;  %v4324_v25 = vld [vmem:[%s4917_s12 + $0x4c] sm:$0xf0] }
 0x1d4   : > { %v3941_v1 = vld [vmem:[%s4917_s12 + $0x140] sm:$0xf]  ;;  %v3962_v60 = vor.u32 %v4358_v11, %v3959_v62  ;;  %v4356_v40 = vld [vmem:[%s4917_s12 + $0x14c] sm:$0xf0]  ;;  %v4322_v41 = vld [vmem:[%s4917_s12 + $0x44] sm:$0xf]  ;;  %v3814_v10 = vor.u32 %v4324_v25, %v3813_v30 }
 0x1d5   : > { %1594 = vmatpush.bf16.msra.mxu0 %v3846_v5  ;;  %v3815_v6 = vld [vmem:[%s4917_s12 + $0x50] sm:$0xf0]  ;;  %v4354_v24 = vld [vmem:[%s4917_s12 + $0x144] sm:$0xf]  ;;  %v3942_v54 = vor.u32 %v4356_v40, %v3941_v1  ;;  %v3797_v3 = vld [vmem:[%s4917_s12 + $0x20] sm:$0xf] }
 0x1d6   : > { %1643 = vmatpush.bf16.msra.mxu1 %v3974_v17  ;;  %1692 = vmatpush.bf16.msra.mxu2 %v3850_v44  ;;  %v3943_v9 = vld [vmem:[%s4917_s12 + $0x150] sm:$0xf0]  ;;  %v3818_v55 = vor.u32 %v4322_v41, %v3815_v6  ;;  %v4320_v26 = vld [vmem:[%s4917_s12 + $0x2c] sm:$0xf0]  ;;  %v3925_v33 = vld [vmem:[%s4917_s12 + $0x120] sm:$0xf] }
 0x1d7   : > { %1741 = vmatpush.bf16.msra.mxu3 %v3978_v27  ;;  %v3946_v28 = vor.u32 %v4354_v24, %v3943_v9  ;;  %v4352_v22 = vld [vmem:[%s4917_s12 + $0x12c] sm:$0xf0]  ;;  %v4318_v47 = vld [vmem:[%s4917_s12 + $0x24] sm:$0xf]  ;;  %v3799_v48 = vld [vmem:[%s4917_s12 + $0x30] sm:$0xf0]  ;;  %v3798_v29 = vor.u32 %v4320_v26, %v3797_v3 }
 0x1d8   : > { %v4350_v23 = vld [vmem:[%s4917_s12 + $0x124] sm:$0xf]  ;;  %v3927_v14 = vld [vmem:[%s4917_s12 + $0x130] sm:$0xf0]  ;;  %v3781_v43 = vld [vmem:[%s4917_s12] sm:$0xf]  ;;  %v3926_v19 = vor.u32 %v4352_v22, %v3925_v33  ;;  %v3802_v2 = vor.u32 %v4318_v47, %v3799_v48 }
 0x1d9   : > { %1595 = vmatpush.bf16.msra.mxu0 %v3830_v59  ;;  %v4316_v50 = vld [vmem:[%s4917_s12 + $0xc] sm:$0xf0]  ;;  %v3909_v31 = vld [vmem:[%s4917_s12 + $0x100] sm:$0xf]  ;;  %v4314_v18 = vld [vmem:[%s4917_s12 + $0x4] sm:$0xf]  ;;  %v3930_v46 = vor.u32 %v4350_v23, %v3927_v14 }
 0x1da   : > { %1644 = vmatpush.bf16.msra.mxu1 %v3958_v51  ;;  %1693 = vmatpush.bf16.msra.mxu2 %v3834_v52  ;;  %v4348_v49 = vld [vmem:[%s4917_s12 + $0x10c] sm:$0xf0]  ;;  %v3783_v36 = vld [vmem:[%s4917_s12 + $0x10] sm:$0xf0]  ;;  %v4346_v20 = vld [vmem:[%s4917_s12 + $0x104] sm:$0xf]  ;;  %v3782_v57 = vor.u32 %v4316_v50, %v3781_v43 }
 0x1db   : > { %1742 = vmatpush.bf16.msra.mxu3 %v3962_v60  ;;  %v3911_v53 = vld [vmem:[%s4917_s12 + $0x110] sm:$0xf0]  ;;  %v3717_v63 = vld [vmem:[#allocation2] sm:$0xf]  ;;  %v4343_v34 = vld [vmem:[%s4917_s12 + $0xec] sm:$0xf]  ;;  %v3910_v39 = vor.u32 %v4348_v49, %v3909_v31  ;;  %v3786_v7 = vor.u32 %v4314_v18, %v3783_v36 }
 0x1dc   : > { %v3903_v35 = vld [vmem:[%s4917_s12 + $0xf8] sm:$0xf0]  ;;  %v4299_v0 = vld [vmem:[#allocation2 + $0x4] sm:$0xf0]  ;;  %v4375_v56 = vld [vmem:[%s4917_s12 + $0x1ec] sm:$0xf]  ;;  %v3914_v4 = vor.u32 %v4346_v20, %v3911_v53 }
 0x1dd   : > { %1596 = vmatpush.bf16.msra.mxu0 %v3814_v10  ;;  %v4031_v37 = vld [vmem:[%s4917_s12 + $0x1f8] sm:$0xf0]  ;;  %v4298_v32 = vld [vmem:[#allocation2 + $0x4] sm:$0xf]  ;;  %v3719_v21 = vld [vmem:[#allocation2 + $0x8] sm:$0xf0]  ;;  %v3906_v45 = vor.u32 %v4343_v34, %v3903_v35  ;;  %v5673_v5 = vor.u32 %v4299_v0, %v3717_v63 }
 0x1de   : > { %1645 = vmatpush.bf16.msra.mxu1 %v3942_v54  ;;  %1694 = vmatpush.bf16.msra.mxu2 %v3818_v55  ;;  %v3901_v8 = vld [vmem:[%s4917_s12 + $0xe8] sm:$0xf]  ;;  %v4345_v15 = vld [vmem:[%s4917_s12 + $0xf4] sm:$0xf0]  ;;  %v4034_v17 = vor.u32 %v4375_v56, %v4031_v37  ;;  %v4339_v61 = vld [vmem:[%s4917_s12 + $0xcc] sm:$0xf]  ;;  %v5678_v12 = vor.u32 %v4298_v32, %v3719_v21 }
 0x1df   : > { %1743 = vmatpush.bf16.msra.mxu3 %v3946_v28  ;;  %v4029_v42 = vld [vmem:[%s4917_s12 + $0x1e8] sm:$0xf]  ;;  %v4377_v44 = vld [vmem:[%s4917_s12 + $0x1f4] sm:$0xf0]  ;;  %v3887_v58 = vld [vmem:[%s4917_s12 + $0xd8] sm:$0xf0]  ;;  %v3902_v16 = vor.u32 %v4345_v15, %v3901_v8 }
 0x1e0   : > { %v4371_v27 = vld [vmem:[%s4917_s12 + $0x1cc] sm:$0xf]  ;;  %v4015_v13 = vld [vmem:[%s4917_s12 + $0x1d8] sm:$0xf0]  ;;  %v4030_v38 = vor.u32 %v4377_v44, %v4029_v42  ;;  %v3890_v11 = vor.u32 %v4339_v61, %v3887_v58  ;;  %v3885_v62 = vld [vmem:[%s4917_s12 + $0xc8] sm:$0xf] }
 0x1e1   : > { %1597 = vmatpush.bf16.msra.mxu0 %v3798_v29  ;;  %v4341_v59 = vld [vmem:[%s4917_s12 + $0xd4] sm:$0xf0]  ;;  %v4018_v51 = vor.u32 %v4371_v27, %v4015_v13  ;;  %v4013_v52 = vld [vmem:[%s4917_s12 + $0x1c8] sm:$0xf]  ;;  %v4335_v1 = vld [vmem:[%s4917_s12 + $0xac] sm:$0xf] }
 0x1e2   : > { %1646 = vmatpush.bf16.msra.mxu1 %v3926_v19  ;;  %1695 = vmatpush.bf16.msra.mxu2 %v3802_v2  ;;  %v4373_v30 = vld [vmem:[%s4917_s12 + $0x1d4] sm:$0xf0]  ;;  %v3886_v25 = vor.u32 %v4341_v59, %v3885_v62  ;;  %v3871_v60 = vld [vmem:[%s4917_s12 + $0xb8] sm:$0xf0]  ;;  %v4367_v40 = vld [vmem:[%s4917_s12 + $0x1ac] sm:$0xf] }
 0x1e3   : > { %1744 = vmatpush.bf16.msra.mxu3 %v3930_v46  ;;  %v4014_v41 = vor.u32 %v4373_v30, %v4013_v52  ;;  %v3874_v6 = vor.u32 %v4335_v1, %v3871_v60  ;;  %v3999_v24 = vld [vmem:[%s4917_s12 + $0x1b8] sm:$0xf0]  ;;  %v3869_v9 = vld [vmem:[%s4917_s12 + $0xa8] sm:$0xf]  ;;  %v4337_v10 = vld [vmem:[%s4917_s12 + $0xb4] sm:$0xf0] }
 0x1e4   : > { %v4002_v54 = vor.u32 %v4367_v40, %v3999_v24  ;;  %v3997_v55 = vld [vmem:[%s4917_s12 + $0x1a8] sm:$0xf]  ;;  %v4369_v3 = vld [vmem:[%s4917_s12 + $0x1b4] sm:$0xf0]  ;;  %v3870_v26 = vor.u32 %v4337_v10, %v3869_v9  ;;  %v3725_v28 = vld [vmem:[#allocation2 + $0x10] sm:$0xf] }
 0x1e5   : > { %1598 = vmatpush.bf16.msra.mxu0 %v3782_v57  ;;  %v3998_v33 = vor.u32 %v4369_v3, %v3997_v55  ;;  %v4301_v22 = vld [vmem:[#allocation2 + $0x14] sm:$0xf0]  ;;  %v4300_v47 = vld [vmem:[#allocation2 + $0x14] sm:$0xf]  ;;  %v3727_v48 = vld [vmem:[#allocation2 + $0x18] sm:$0xf0] }
 0x1e6   : > { %1647 = vmatpush.bf16.msra.mxu1 %v3910_v39  ;;  %1696 = vmatpush.bf16.msra.mxu2 %v3786_v7  ;;  %v5698_v23 = vor.u32 %v4301_v22, %v3725_v28  ;;  %v5700_v14 = vor.u32 %v4300_v47, %v3727_v48  ;;  %v4331_v29 = vld [vmem:[%s4917_s12 + $0x8c] sm:$0xf]  ;;  %v3855_v43 = vld [vmem:[%s4917_s12 + $0x98] sm:$0xf0]  ;;  %v3853_v31 = vld [vmem:[%s4917_s12 + $0x88] sm:$0xf] }
 0x1e7   : > { %1745 = vmatpush.bf16.msra.mxu3 %v3914_v4  ;;  %v4363_v50 = vld [vmem:[%s4917_s12 + $0x18c] sm:$0xf]  ;;  %v3858_v19 = vor.u32 %v4331_v29, %v3855_v43  ;;  %v3983_v2 = vld [vmem:[%s4917_s12 + $0x198] sm:$0xf0]  ;;  %v4333_v49 = vld [vmem:[%s4917_s12 + $0x94] sm:$0xf0] }
 0x1e8   : > { %1599 = vmatmul.bf16.vlgmr.msra.gmra.mxu0 %v5673_v5  ;;  %v3986_v18 = vor.u32 %v4363_v50, %v3983_v2  ;;  %v3854_v46 = vor.u32 %v4333_v49, %v3853_v31  ;;  %v3981_v36 = vld [vmem:[%s4917_s12 + $0x188] sm:$0xf]  ;;  %v4365_v20 = vld [vmem:[%s4917_s12 + $0x194] sm:$0xf0]  ;;  %v3733_v63 = vld [vmem:[#allocation2 + $0x20] sm:$0xf] }
 0x1e9   : > { %1648 = vmatmul.bf16.vlgmr.msra.gmra.mxu1 %v5678_v12  ;;  %1697 = vmatmul.bf16.vlgmr.msra.gmra.mxu2 %v5673_v5  ;;  %v3982_v53 = vor.u32 %v4365_v20, %v3981_v36  ;;  %v4303_v34 = vld [vmem:[#allocation2 + $0x24] sm:$0xf0]  ;;  %v4302_v35 = vld [vmem:[#allocation2 + $0x24] sm:$0xf]  ;;  %v3735_v57 = vld [vmem:[#allocation2 + $0x28] sm:$0xf0] }
 0x1ea   : > { %1885 = vmatpush.bf16.msrb.mxu2 %v3906_v45  ;;  %1746 = vmatmul.bf16.vlgmr.msra.gmra.mxu3 %v5678_v12  ;;  %v5714_v0 = vor.u32 %v4303_v34, %v3733_v63  ;;  %v5716_v56 = vor.u32 %v4302_v35, %v3735_v57  ;;  %v4327_v37 = vld [vmem:[%s4917_s12 + $0x6c] sm:$0xf]  ;;  %v3839_v39 = vld [vmem:[%s4917_s12 + $0x78] sm:$0xf0]  ;;  %v3837_v4 = vld [vmem:[%s4917_s12 + $0x68] sm:$0xf] }
 0x1eb   : > { %1934 = vmatpush.bf16.msrb.mxu3 %v4034_v17  ;;  %1787 = vmatpush.bf16.msrb.mxu0 %v3902_v16  ;;  %v4359_v7 = vld [vmem:[%s4917_s12 + $0x16c] sm:$0xf]  ;;  %v3842_v32 = vor.u32 %v4327_v37, %v3839_v39  ;;  %v3967_v21 = vld [vmem:[%s4917_s12 + $0x178] sm:$0xf0]  ;;  %v4329_v45 = vld [vmem:[%s4917_s12 + $0x74] sm:$0xf0] }
 0x1ec   : > { %1836 = vmatpush.bf16.msrb.mxu1 %v4030_v38  ;;  %v3970_v8 = vor.u32 %v4359_v7, %v3967_v21  ;;  %v3838_v15 = vor.u32 %v4329_v45, %v3837_v4  ;;  %v3965_v42 = vld [vmem:[%s4917_s12 + $0x168] sm:$0xf]  ;;  %v4361_v17 = vld [vmem:[%s4917_s12 + $0x174] sm:$0xf0]  ;;  %v3741_v61 = vld [vmem:[#allocation2 + $0x30] sm:$0xf] }
 0x1ed   : > { %v3966_v44 = vor.u32 %v4361_v17, %v3965_v42  ;;  %v4305_v58 = vld [vmem:[#allocation2 + $0x34] sm:$0xf0]  ;;  %v4304_v27 = vld [vmem:[#allocation2 + $0x34] sm:$0xf]  ;;  %v3743_v13 = vld [vmem:[#allocation2 + $0x38] sm:$0xf0] }
 0x1ee   : > { %1886 = vmatpush.bf16.msrb.mxu2 %v3890_v11  ;;  %v5730_v16 = vor.u32 %v4305_v58, %v3741_v61  ;;  %v5732_v38 = vor.u32 %v4304_v27, %v3743_v13  ;;  %v4323_v11 = vld [vmem:[%s4917_s12 + $0x4c] sm:$0xf]  ;;  %v3823_v62 = vld [vmem:[%s4917_s12 + $0x58] sm:$0xf0]  ;;  %v3821_v30 = vld [vmem:[%s4917_s12 + $0x48] sm:$0xf] }
 0x1ef   : > { %1935 = vmatpush.bf16.msrb.mxu3 %v4018_v51  ;;  %1788 = vmatpush.bf16.msrb.mxu0 %v3886_v25  ;;  %v4355_v59 = vld [vmem:[%s4917_s12 + $0x14c] sm:$0xf]  ;;  %v3826_v51 = vor.u32 %v4323_v11, %v3823_v62  ;;  %v3951_v52 = vld [vmem:[%s4917_s12 + $0x158] sm:$0xf0]  ;;  %v4325_v25 = vld [vmem:[%s4917_s12 + $0x54] sm:$0xf0] }
 0x1f0   : > { %1837 = vmatpush.bf16.msrb.mxu1 %v4014_v41  ;;  %v3954_v1 = vor.u32 %v4355_v59, %v3951_v52  ;;  %v3822_v60 = vor.u32 %v4325_v25, %v3821_v30  ;;  %v3949_v40 = vld [vmem:[%s4917_s12 + $0x148] sm:$0xf]  ;;  %v4357_v41 = vld [vmem:[%s4917_s12 + $0x154] sm:$0xf0]  ;;  %v3749_v24 = vld [vmem:[#allocation2 + $0x40] sm:$0xf] }
 0x1f1   : > { %v4307_v9 = vld [vmem:[#allocation2 + $0x44] sm:$0xf0]  ;;  %v4306_v10 = vld [vmem:[#allocation2 + $0x44] sm:$0xf]  ;;  %v4351_v28 = vld [vmem:[%s4917_s12 + $0x12c] sm:$0xf] }
 0x1f2   : > { %1887 = vmatpush.bf16.msrb.mxu2 %v3874_v6  ;;  %v3950_v6 = vor.u32 %v4357_v41, %v3949_v40  ;;  %v5746_v55 = vor.u32 %v4307_v9, %v3749_v24  ;;  %v3935_v47 = vld [vmem:[%s4917_s12 + $0x138] sm:$0xf0]  ;;  %v3805_v48 = vld [vmem:[%s4917_s12 + $0x28] sm:$0xf]  ;;  %v4321_v29 = vld [vmem:[%s4917_s12 + $0x34] sm:$0xf0] }
 0x1f3   : > { %1936 = vmatpush.bf16.msrb.mxu3 %v4002_v54  ;;  %1789 = vmatpush.bf16.msrb.mxu0 %v3870_v26  ;;  %v3751_v54 = vld [vmem:[#allocation2 + $0x48] sm:$0xf0]  ;;  %v3938_v43 = vor.u32 %v4351_v28, %v3935_v47  ;;  %v3806_v50 = vor.u32 %v4321_v29, %v3805_v48  ;;  %v4353_v2 = vld [vmem:[%s4917_s12 + $0x134] sm:$0xf0]  ;;  %v3757_v49 = vld [vmem:[#allocation2 + $0x50] sm:$0xf] }
 0x1f4   : > { %1838 = vmatpush.bf16.msrb.mxu1 %v3998_v33  ;;  %v5748_v3 = vor.u32 %v4306_v10, %v3751_v54  ;;  %v4319_v26 = vld [vmem:[%s4917_s12 + $0x2c] sm:$0xf]  ;;  %v3807_v33 = vld [vmem:[%s4917_s12 + $0x38] sm:$0xf0]  ;;  %v3789_v39 = vld [vmem:[%s4917_s12 + $0x8] sm:$0xf] }
 0x1f5   : > { %v3810_v22 = vor.u32 %v4319_v26, %v3807_v33  ;;  %v3759_v36 = vld [vmem:[#allocation2 + $0x58] sm:$0xf0]  ;;  %v4315_v63 = vld [vmem:[%s4917_s12 + $0xc] sm:$0xf]  ;;  %v4317_v7 = vld [vmem:[%s4917_s12 + $0x14] sm:$0xf0] }
 0x1f6   : > { %1888 = vmatpush.bf16.msrb.mxu2 %v3858_v19  ;;  %v3933_v19 = vld [vmem:[%s4917_s12 + $0x128] sm:$0xf]  ;;  %v3791_v34 = vld [vmem:[%s4917_s12 + $0x18] sm:$0xf0]  ;;  %v4347_v35 = vld [vmem:[%s4917_s12 + $0x10c] sm:$0xf]  ;;  %v3790_v21 = vor.u32 %v4317_v7, %v3789_v39 }
 0x1f7   : > { %1937 = vmatpush.bf16.msrb.mxu3 %v3986_v18  ;;  %1790 = vmatpush.bf16.msrb.mxu0 %v3854_v46  ;;  %v3934_v31 = vor.u32 %v4353_v2, %v3933_v19  ;;  %v4309_v18 = vld [vmem:[#allocation2 + $0x54] sm:$0xf0]  ;;  %v4308_v46 = vld [vmem:[#allocation2 + $0x54] sm:$0xf]  ;;  %v3794_v57 = vor.u32 %v4315_v63, %v3791_v34  ;;  %v3919_v37 = vld [vmem:[%s4917_s12 + $0x118] sm:$0xf0] }
 0x1f8   : > { %1604 = vmatmul.bf16.gmra.mxu0 %v5698_v23  ;;  %1839 = vmatpush.bf16.msrb.mxu1 %v3982_v53  ;;  %v5762_v20 = vor.u32 %v4309_v18, %v3757_v49  ;;  %v5764_v53 = vor.u32 %v4308_v46, %v3759_v36  ;;  %v3917_v4 = vld [vmem:[%s4917_s12 + $0x108] sm:$0xf]  ;;  %v4349_v45 = vld [vmem:[%s4917_s12 + $0x114] sm:$0xf0]  ;;  %v4310_v17 = vld [vmem:[#allocation2 + $0x64] sm:$0xf] }
 0x1f9   : > { %1653 = vmatmul.bf16.gmra.mxu1 %v5700_v14  ;;  %1702 = vmatmul.bf16.gmra.mxu2 %v5698_v23  ;;  %v4311_v42 = vld [vmem:[#allocation2 + $0x64] sm:$0xf0]  ;;  %v3773_v27 = vld [vmem:[#allocation2 + $0x70] sm:$0xf]  ;;  %v4313_v13 = vld [vmem:[#allocation2 + $0x74] sm:$0xf0] }
 0x1fa   : > { %1751 = vmatmul.bf16.gmra.mxu3 %v5700_v14  ;;  %1889 = vmatpush.bf16.msrb.mxu2 %v3842_v32  ;;  %v3922_v32 = vor.u32 %v4347_v35, %v3919_v37  ;;  %v4312_v11 = vld [vmem:[#allocation2 + $0x74] sm:$0xf]  ;;  %v3775_v62 = vld [vmem:[#allocation2 + $0x78] sm:$0xf0]  ;;  %v5786_v59 = vor.u32 %v4313_v13, %v3773_v27  ;;  %v5795_v52 = vld [vmem:[%s4910_s23] sm:$0xf] }
 0x1fb   : > { %1938 = vmatpush.bf16.msrb.mxu3 %v3970_v8  ;;  %1791 = vmatpush.bf16.msrb.mxu0 %v3838_v15  ;;  %v3918_v8 = vor.u32 %v4349_v45, %v3917_v4  ;;  %v3765_v15 = vld [vmem:[#allocation2 + $0x60] sm:$0xf]  ;;  %v5798_v30 = vperm.slane %v5795_v52, 0  ;;  %v5807_v41 = vperm.slane %v5795_v52, 1  ;;  %v4425_v49 = vld [vmem:[%s4915_s11 + $0x174] sm:$0xf0] }
 0x1fc   : > { %1840 = vmatpush.bf16.msrb.mxu1 %v3966_v44  ;;  %v3767_v44 = vld [vmem:[#allocation2 + $0x68] sm:$0xf0]  ;;  %v5778_v61 = vor.u32 %v4311_v42, %v3765_v15  ;;  %v4285_v18 = vld [vmem:[%s4915_s11 + $0x1f0] sm:$0xf]  ;;  %v4393_v39 = vld [vmem:[%s4915_s11 + $0x74] sm:$0xf0] }
 0x1fd   : > { %v5780_v58 = vor.u32 %v4310_v17, %v3767_v44  ;;  %v4093_v37 = vld [vmem:[%s4915_s11 + $0x70] sm:$0xf]  ;;  %v4409_v15 = vld [vmem:[%s4915_s11 + $0xf4] sm:$0xf0]  ;;  %p4291_p12 = scmp.ne.s32.totalorder %s4676_s26, 1 }
 0x1fe   : > { %1890 = vmatpush.bf16.msrb.mxu2 %v3826_v51  ;;  %v5788_v51 = vor.u32 %v4312_v11, %v3775_v62  ;;  %v4094_v45 = vor.u32 %v4393_v39, %v4093_v37  ;;  %v4423_v37 = vld [vmem:[%s4915_s11 + $0x164] sm:$0xf0]  ;;  %v4277_v39 = vld [vmem:[%s4915_s11 + $0x1e0] sm:$0xf] }
 0x1ff   : > { %1939 = vmatpush.bf16.msrb.mxu3 %v3954_v1  ;;  %1792 = vmatpush.bf16.msrb.mxu0 %v3822_v60 }
 0x200   : > { %1841 = vmatpush.bf16.msrb.mxu1 %v3950_v6 }
 0x202   : > { %1891 = vmatpush.bf16.msrb.mxu2 %v3810_v22 }
 0x203   : > { %1940 = vmatpush.bf16.msrb.mxu3 %v3938_v43  ;;  %1793 = vmatpush.bf16.msrb.mxu0 %v3806_v50 }
 0x204   : > { %1842 = vmatpush.bf16.msrb.mxu1 %v3934_v31  ;;  %v4221_v31 = vld [vmem:[%s4915_s11 + $0x170] sm:$0xf] }
 0x205   : > { %v4222_v35 = vor.u32 %v4425_v49, %v4221_v31 }
 0x206   : > { %1892 = vmatpush.bf16.msrb.mxu2 %v3794_v57  ;;  %v4441_v57 = vld [vmem:[%s4915_s11 + $0x1f4] sm:$0xf0] }
 0x207   : > { %1941 = vmatpush.bf16.msrb.mxu3 %v3922_v32  ;;  %1794 = vmatpush.bf16.msrb.mxu0 %v3790_v21  ;;  %v4286_v4 = vor.u32 %v4441_v57, %v4285_v18  ;;  %v4213_v57 = vld [vmem:[%s4915_s11 + $0x160] sm:$0xf] }
 0x208   : > { %1609 = vmatmul.bf16.gmra.mxu0 %v5714_v0  ;;  %1843 = vmatpush.bf16.msrb.mxu1 %v3918_v8  ;;  %v4157_v8 = vld [vmem:[%s4915_s11 + $0xf0] sm:$0xf] }
 0x209   : > { %1658 = vmatmul.bf16.gmra.mxu1 %v5716_v56  ;;  %1707 = vmatmul.bf16.gmra.mxu2 %v5714_v0  ;;  %v4158_v44 = vor.u32 %v4409_v15, %v4157_v8  ;;  %v4085_v8 = vld [vmem:[%s4915_s11 + $0x60] sm:$0xf]  ;;  %v4391_v15 = vld [vmem:[%s4915_s11 + $0x64] sm:$0xf0] }
 0x20a   : > { %1756 = vmatmul.bf16.gmra.mxu3 %v5716_v56  ;;  %3105 = vmatpush.bf16.msra.mxu2 %v4222_v35 }
 0x20b   : > { %3154 = vmatpush.bf16.msra.mxu3 %v4286_v4  ;;  %3007 = vmatpush.bf16.msra.mxu0 %v4094_v45  ;;  %v4214_v4 = vor.u32 %v4423_v37, %v4213_v57  ;;  %v4439_v45 = vld [vmem:[%s4915_s11 + $0x1e4] sm:$0xf0] }
 0x20c   : > { %3056 = vmatpush.bf16.msra.mxu1 %v4158_v44 }
 0x20e   : > { %3106 = vmatpush.bf16.msra.mxu2 %v4214_v4 }
 0x218   : > { %1614 = vmatmul.bf16.gmra.mxu0 %v5730_v16 }
 0x219   : > { %1663 = vmatmul.bf16.gmra.mxu1 %v5732_v38  ;;  %1712 = vmatmul.bf16.gmra.mxu2 %v5730_v16 }
 0x21a   : > { %1761 = vmatmul.bf16.gmra.mxu3 %v5732_v38 }
 0x228   : > { %1619 = vmatmul.bf16.gmra.mxu0 %v5746_v55 }
 0x229   : > { %1668 = vmatmul.bf16.gmra.mxu1 %v5748_v3  ;;  %1717 = vmatmul.bf16.gmra.mxu2 %v5746_v55 }
 0x22a   : > { %1766 = vmatmul.bf16.gmra.mxu3 %v5748_v3 }
 0x238   : > { %1624 = vmatmul.bf16.gmra.mxu0 %v5762_v20 }
 0x239   : > { %1673 = vmatmul.bf16.gmra.mxu1 %v5764_v53  ;;  %1722 = vmatmul.bf16.gmra.mxu2 %v5762_v20 }
 0x23a   : > { %1771 = vmatmul.bf16.gmra.mxu3 %v5764_v53 }
 0x248   : > { %1629 = vmatmul.bf16.gmra.mxu0 %v5778_v61 }
 0x249   : > { %1678 = vmatmul.bf16.gmra.mxu1 %v5780_v58  ;;  %1727 = vmatmul.bf16.gmra.mxu2 %v5778_v61 }
 0x24a   : > { %1776 = vmatmul.bf16.gmra.mxu3 %v5780_v58 }
 0x258   : > { %1634 = vmatmul.bf16.gmra.mxu0 %v5786_v59 }
 0x259   : > { %1683 = vmatmul.bf16.gmra.mxu1 %v5788_v51  ;;  %1732 = vmatmul.bf16.gmra.mxu2 %v5786_v59 }
 0x25a   : > { %1781 = vmatmul.bf16.gmra.mxu3 %v5788_v51 }
 0x265   : > { %v1600_v25 = vpop.f32.mrf.mxu0 }
 0x266   : > { %v1601_v1 = vadd.f32 %v1600_v25, %v5798_v30  ;;  %v1649_v60 = vpop.f32.mrf.mxu1 }
 0x268   : > { %v5801_v40 = vadd.f32 %v1649_v60, %v1601_v1  ;;  %1795 = vmatmul.bf16.vlgmr.msrb.gmra.mxu0 %v5673_v5 }
 0x269   : > { %1844 = vmatmul.bf16.vlgmr.msrb.gmra.mxu1 %v5678_v12  ;;  %1893 = vmatmul.bf16.vlgmr.msrb.gmra.mxu2 %v5673_v5 }
 0x26a   : > { %v2047_v6 = vmul.f32 0.044715, %v5801_v40  ;;  %1942 = vmatmul.bf16.vlgmr.msrb.gmra.mxu3 %v5678_v12  ;;  %v1983_v31 = vmul.f32 0.5, %v5801_v40 }
 0x26c   : > { %v2111_v24 = vmul.f32 %v2047_v6, %v5801_v40  ;;  %v1698_v9 = vpop.f32.mrf.mxu2 }
 0x26d   : > { %v1699_v10 = vadd.f32 %v1698_v9, %v5807_v41  ;;  %v1747_v54 = vpop.f32.mrf.mxu3  ;;  %v1602_v26 = vpop.f32.mrf.mxu0 }
 0x26e   : > { %v2175_v33 = vmul.f32 %v2111_v24, %v5801_v40  ;;  %v1603_v5 = vadd.f32 %v1602_v26, %v5798_v30  ;;  %v1651_v28 = vpop.f32.mrf.mxu1 }
 0x26f   : > { %v5815_v22 = vadd.f32 %v1747_v54, %v1699_v10 }
 0x270   : > { %v2239_v47 = vadd.f32 %v2175_v33, %v5801_v40  ;;  %v5818_v12 = vadd.f32 %v1651_v28, %v1603_v5 }
 0x271   : > { %v2048_v48 = vmul.f32 0.044715, %v5815_v22 }
 0x272   : > { %v2051_v29 = vmul.f32 0.044715, %v5818_v12  ;;  %v2303_v43 = vmul.f32 0.7978846, %v2239_v47 }
 0x273   : > { %v2112_v50 = vmul.f32 %v2048_v48, %v5815_v22 }
 0x274   : > { %v2115_v19 = vmul.f32 %v2051_v29, %v5818_v12  ;;  %v1700_v2 = vpop.f32.mrf.mxu2  ;;  %4517 = vtanh.f32 %v2303_v43 }
 0x275   : > { %v2176_v46 = vmul.f32 %v2112_v50, %v5815_v22  ;;  %v1701_v36 = vadd.f32 %v1700_v2, %v5807_v41  ;;  %v1749_v63 = vpop.f32.mrf.mxu3  ;;  %v1605_v34 = vpop.f32.mrf.mxu0 }
 0x276   : > { %v2179_v7 = vmul.f32 %v2115_v19, %v5818_v12  ;;  %v1606_v32 = vadd.f32 %v1605_v34, %v5798_v30  ;;  %v1654_v21 = vpop.f32.mrf.mxu1 }
 0x277   : > { %v2240_v42 = vadd.f32 %v2176_v46, %v5815_v22  ;;  %v5837_v17 = vadd.f32 %v1749_v63, %v1701_v36  ;;  %v1987_v46 = vmul.f32 0.5, %v5818_v12 }
 0x278   : > { %v2243_v27 = vadd.f32 %v2179_v7, %v5818_v12  ;;  %v5840_v13 = vadd.f32 %v1654_v21, %v1606_v32  ;;  %1800 = vmatmul.bf16.gmra.mxu0 %v5698_v23 }
 0x279   : > { %v2052_v11 = vmul.f32 0.044715, %v5837_v17  ;;  %1849 = vmatmul.bf16.gmra.mxu1 %v5700_v14  ;;  %1898 = vmatmul.bf16.gmra.mxu2 %v5698_v23  ;;  %v2304_v1 = vmul.f32 0.7978846, %v2240_v42 }
 0x27a   : > { %v2307_v62 = vmul.f32 0.7978846, %v2243_v27  ;;  %v2055_v25 = vmul.f32 0.044715, %v5840_v13  ;;  %1947 = vmatmul.bf16.gmra.mxu3 %v5700_v14  ;;  %v4518_v9 = vpop.eup %4517 }
 0x27b   : > { %v2116_v60 = vmul.f32 %v2052_v11, %v5837_v17  ;;  %v2431_v48 = vadd.f32 1.0, %v4518_v9 }
 0x27c   : > { %4519 = vtanh.f32 %v2307_v62  ;;  %v2119_v6 = vmul.f32 %v2055_v25, %v5840_v13  ;;  %v1703_v24 = vpop.f32.mrf.mxu2  ;;  %v4278_v62 = vor.u32 %v4439_v45, %v4277_v39  ;;  %v4086_v25 = vor.u32 %v4391_v15, %v4085_v8 }
 0x27d   : > { %v2180_v10 = vmul.f32 %v2116_v60, %v5837_v17  ;;  %v1704_v54 = vadd.f32 %v1703_v24, %v5807_v41  ;;  %v1752_v23 = vpop.f32.mrf.mxu3  ;;  %v1607_v26 = vpop.f32.mrf.mxu0  ;;  %4521 = vtanh.f32 %v2304_v1  ;;  %v2495_v7 = vmul.f32 %v2431_v48, %v1983_v31  ;;  %v4149_v1 = vld [vmem:[%s4915_s11 + $0xe0] sm:$0xf]  ;;  %v4407_v60 = vld [vmem:[%s4915_s11 + $0xe4] sm:$0xf0] }
 0x27e   : > { %v1608_v33 = vadd.f32 %v1607_v26, %v5798_v30  ;;  %v1656_v5 = vpop.f32.mrf.mxu1  ;;  %v2183_v14 = vmul.f32 %v2119_v6, %v5840_v13  ;;  %v4150_v9 = vor.u32 %v4407_v60, %v4149_v1  ;;  %3155 = vmatpush.bf16.msra.mxu3 %v4278_v62  ;;  %3008 = vmatpush.bf16.msra.mxu0 %v4086_v25  ;;  %v1991_v15 = vmul.f32 0.5, %v5840_v13  ;;  %v4205_v1 = vld [vmem:[%s4915_s11 + $0x150] sm:$0xf]  ;;  %v4421_v60 = vld [vmem:[%s4915_s11 + $0x154] sm:$0xf0] }
 0x27f   : > { %v2244_v28 = vadd.f32 %v2180_v10, %v5837_v17  ;;  %v5855_v47 = vadd.f32 %v1752_v23, %v1704_v54 }
 0x280   : > { %v5857_v29 = vadd.f32 %v1656_v5, %v1608_v33  ;;  %v2247_v43 = vadd.f32 %v2183_v14, %v5840_v13  ;;  %v1984_v14 = vmul.f32 0.5, %v5815_v22  ;;  %3057 = vmatpush.bf16.msra.mxu1 %v4150_v9 }
 0x281   : > { %v2308_v50 = vmul.f32 0.7978846, %v2244_v28  ;;  %v2056_v19 = vmul.f32 0.044715, %v5855_v47 }
 0x282   : > { %v4520_v2 = vpop.eup %4519  ;;  %v2059_v49 = vmul.f32 0.044715, %v5857_v29  ;;  %v2311_v18 = vmul.f32 0.7978846, %v2247_v43  ;;  %v1988_v43 = vmul.f32 0.5, %v5837_v17 }
 0x283   : > { %4523 = vtanh.f32 %v2308_v50  ;;  %v2120_v36 = vmul.f32 %v2056_v19, %v5855_v47  ;;  %v2435_v63 = vadd.f32 1.0, %v4520_v2  ;;  %v4522_v40 = vpop.eup %4521 }
 0x284   : > { %v2123_v34 = vmul.f32 %v2059_v49, %v5857_v29  ;;  %v1705_v35 = vpop.f32.mrf.mxu2  ;;  %4525 = vtanh.f32 %v2311_v18  ;;  %v2432_v23 = vadd.f32 1.0, %v4522_v40 }
 0x285   : > { %v1706_v12 = vadd.f32 %v1705_v35, %v5807_v41  ;;  %v1754_v32 = vpop.f32.mrf.mxu3  ;;  %v1610_v21 = vpop.f32.mrf.mxu0  ;;  %v2499_v42 = vmul.f32 %v2435_v63, %v1987_v46  ;;  %v2184_v44 = vmul.f32 %v2120_v36, %v5855_v47 }
 0x286   : > { %v1611_v27 = vadd.f32 %v1610_v21, %v5798_v30  ;;  %v1659_v11 = vpop.f32.mrf.mxu1  ;;  %v2187_v6 = vmul.f32 %v2123_v34, %v5857_v29  ;;  %v2496_v46 = vmul.f32 %v2432_v23, %v1984_v14  ;;  %v4077_v14 = vld [vmem:[%s4915_s11 + $0x50] sm:$0xf] }
 0x287   : > { %v5878_v24 = vadd.f32 %v1754_v32, %v1706_v12  ;;  %v5880_v10 = vpack.c.bf16 %v2499_v42, %v2495_v7  ;;  %v2248_v54 = vadd.f32 %v2184_v44, %v5855_v47 }
 0x288   : > { %v5883_v26 = vadd.f32 %v1659_v11, %v1611_v27  ;;  %1805 = vmatmul.bf16.gmra.mxu0 %v5714_v0  ;;  %v2251_v33 = vadd.f32 %v2187_v6, %v5857_v29  ;;  %v1995_v27 = vmul.f32 0.5, %v5857_v29  ;;  %v4269_v6 = vld [vmem:[%s4915_s11 + $0x1d0] sm:$0xf]  ;;  %v4206_v29 = vor.u32 %v4421_v60, %v4205_v1 }
 0x289   : > { %v4524_v5 = vpop.eup %4523  ;;  %v2060_v28 = vmul.f32 0.044715, %v5878_v24  ;;  %1854 = vmatmul.bf16.gmra.mxu1 %v5716_v56  ;;  %1903 = vmatmul.bf16.gmra.mxu2 %v5714_v0  ;;  %v2312_v22 = vmul.f32 0.7978846, %v2248_v54 }
 0x28a   : > { %v4526_v48 = vpop.eup %4525  ;;  %v2063_v50 = vmul.f32 0.044715, %v5883_v26  ;;  %1952 = vmatmul.bf16.gmra.mxu3 %v5716_v56  ;;  %v2436_v19 = vadd.f32 1.0, %v4524_v5  ;;  %v2315_v2 = vmul.f32 0.7978846, %v2251_v33  ;;  %3107 = vmatpush.bf16.msra.mxu2 %v4206_v29 }
 0x28b   : > { %v2124_v31 = vmul.f32 %v2060_v28, %v5878_v24  ;;  %v2439_v12 = vadd.f32 1.0, %v4526_v48  ;;  %v4437_v5 = vld [vmem:[%s4915_s11 + $0x1d4] sm:$0xf0] }
 0x28c   : > { %v2127_v49 = vmul.f32 %v2063_v50, %v5883_v26  ;;  %v1708_v18 = vpop.f32.mrf.mxu2  ;;  %v2500_v36 = vmul.f32 %v2436_v19, %v1988_v43  ;;  %4527 = vtanh.f32 %v2315_v2  ;;  %v4389_v28 = vld [vmem:[%s4915_s11 + $0x54] sm:$0xf0]  ;;  %v4270_v2 = vor.u32 %v4437_v5, %v4269_v6 }
 0x28d   : > { %v1709_v0 = vadd.f32 %v1708_v18, %v5807_v41  ;;  %v1757_v17 = vpop.f32.mrf.mxu3  ;;  %v1612_v63 = vpop.f32.mrf.mxu0  ;;  %v2188_v34 = vmul.f32 %v2124_v31, %v5878_v24  ;;  %4529 = vtanh.f32 %v2312_v22  ;;  %v2503_v9 = vmul.f32 %v2439_v12, %v1991_v15  ;;  %v4141_v22 = vld [vmem:[%s4915_s11 + $0xd0] sm:$0xf] }
 0x28e   : > { %v1613_v56 = vadd.f32 %v1612_v63, %v5798_v30  ;;  %v1661_v35 = vpop.f32.mrf.mxu1  ;;  %v5899_v57 = vpack.c.bf16 %v2500_v36, %v2496_v46  ;;  %v2191_v37 = vmul.f32 %v2127_v49, %v5883_v26  ;;  %v4078_v31 = vor.u32 %v4389_v28, %v4077_v14  ;;  %v4405_v49 = vld [vmem:[%s4915_s11 + $0xd4] sm:$0xf0]  ;;  %3156 = vmatpush.bf16.msra.mxu3 %v4270_v2 }
 0x28f   : > { %v5902_v39 = vadd.f32 %v1757_v17, %v1709_v0  ;;  %v2252_v7 = vadd.f32 %v2188_v34, %v5878_v24  ;;  %v4142_v36 = vor.u32 %v4405_v49, %v4141_v22  ;;  %v1999_v28 = vmul.f32 0.5, %v5883_v26  ;;  %v4197_v22 = vld [vmem:[%s4915_s11 + $0x140] sm:$0xf]  ;;  %v4419_v49 = vld [vmem:[%s4915_s11 + $0x144] sm:$0xf0] }
 0x290   : > { %v5905_v40 = vadd.f32 %v1661_v35, %v1613_v56  ;;  %v2255_v32 = vadd.f32 %v2191_v37, %v5883_v26  ;;  %3009 = vmatpush.bf16.msra.mxu0 %v4078_v31 }
 0x291   : > { %v2064_v21 = vmul.f32 0.044715, %v5902_v39  ;;  %v2316_v4 = vmul.f32 0.7978846, %v2252_v7  ;;  %v1992_v7 = vmul.f32 0.5, %v5855_v47  ;;  %3058 = vmatpush.bf16.msra.mxu1 %v4142_v36 }
 0x292   : > { %v4528_v45 = vpop.eup %4527  ;;  %v2067_v8 = vmul.f32 0.044715, %v5905_v40  ;;  %v2319_v42 = vmul.f32 0.7978846, %v2255_v32 }
 0x293   : > { %v2128_v44 = vmul.f32 %v2064_v21, %v5902_v39  ;;  %v2443_v11 = vadd.f32 1.0, %v4528_v45  ;;  %4531 = vtanh.f32 %v2316_v4  ;;  %v4530_v13 = vpop.eup %4529  ;;  %v1996_v21 = vmul.f32 0.5, %v5878_v24 }
 0x294   : > { %v2131_v62 = vmul.f32 %v2067_v8, %v5905_v40  ;;  %v1710_v25 = vpop.f32.mrf.mxu2  ;;  %4533 = vtanh.f32 %v2319_v42  ;;  %v2440_v34 = vadd.f32 1.0, %v4530_v13 }
 0x295   : > { %v1711_v54 = vadd.f32 %v1710_v25, %v5807_v41  ;;  %v1759_v23 = vpop.f32.mrf.mxu3  ;;  %v1615_v33 = vpop.f32.mrf.mxu0  ;;  %v2507_v48 = vmul.f32 %v2443_v11, %v1995_v27  ;;  %v2192_v43 = vmul.f32 %v2128_v44, %v5902_v39 }
 0x296   : > { %v1616_v50 = vadd.f32 %v1615_v33, %v5798_v30  ;;  %v1664_v19 = vpop.f32.mrf.mxu1  ;;  %v2195_v18 = vmul.f32 %v2131_v62, %v5905_v40 }
 0x297   : > { %v5926_v46 = vadd.f32 %v1759_v23, %v1711_v54  ;;  %v5928_v0 = vpack.c.bf16 %v2507_v48, %v2503_v9  ;;  %v2256_v17 = vadd.f32 %v2192_v43, %v5902_v39  ;;  %v2003_v48 = vmul.f32 0.5, %v5905_v40 }
 0x298   : > { %v5931_v63 = vadd.f32 %v1664_v19, %v1616_v50  ;;  %1810 = vmatmul.bf16.gmra.mxu0 %v5730_v16  ;;  %v2259_v56 = vadd.f32 %v2195_v18, %v5905_v40  ;;  %v4261_v18 = vld [vmem:[%s4915_s11 + $0x1c0] sm:$0xf] }
 0x299   : > { %v4532_v35 = vpop.eup %4531  ;;  %v2068_v37 = vmul.f32 0.044715, %v5926_v46  ;;  %1859 = vmatmul.bf16.gmra.mxu1 %v5732_v38  ;;  %1908 = vmatmul.bf16.gmra.mxu2 %v5730_v16  ;;  %v2320_v15 = vmul.f32 0.7978846, %v2256_v17  ;;  %v2504_v16 = vmul.f32 %v2440_v34, %v1992_v7  ;;  %v4387_v7 = vld [vmem:[%s4915_s11 + $0x44] sm:$0xf0] }
 0x29a   : > { %v4534_v12 = vpop.eup %4533  ;;  %v2071_v32 = vmul.f32 0.044715, %v5931_v63  ;;  %1957 = vmatmul.bf16.gmra.mxu3 %v5732_v38  ;;  %v2444_v4 = vadd.f32 1.0, %v4532_v35  ;;  %v2323_v45 = vmul.f32 0.7978846, %v2259_v56  ;;  %v4198_v56 = vor.u32 %v4419_v49, %v4197_v22 }
 0x29b   : > { %v2132_v8 = vmul.f32 %v2068_v37, %v5926_v46  ;;  %v2447_v54 = vadd.f32 1.0, %v4534_v12  ;;  %v4435_v35 = vld [vmem:[%s4915_s11 + $0x1c4] sm:$0xf0]  ;;  %v4069_v37 = vld [vmem:[%s4915_s11 + $0x40] sm:$0xf] }
 0x29c   : > { %v2135_v42 = vmul.f32 %v2071_v32, %v5931_v63  ;;  %v1713_v44 = vpop.f32.mrf.mxu2  ;;  %v2508_v27 = vmul.f32 %v2444_v4, %v1996_v21  ;;  %4535 = vtanh.f32 %v2323_v45  ;;  %v4262_v45 = vor.u32 %v4435_v35, %v4261_v18  ;;  %3108 = vmatpush.bf16.msra.mxu2 %v4198_v56 }
 0x29d   : > { %v1714_v47 = vadd.f32 %v1713_v44, %v5807_v41  ;;  %v1762_v11 = vpop.f32.mrf.mxu3  ;;  %v1617_v62 = vpop.f32.mrf.mxu0  ;;  %v2196_v38 = vmul.f32 %v2132_v8, %v5926_v46  ;;  %4537 = vtanh.f32 %v2320_v15  ;;  %v2511_v36 = vmul.f32 %v2447_v54, %v1999_v28  ;;  %v4133_v15 = vld [vmem:[%s4915_s11 + $0xc0] sm:$0xf] }
 0x29e   : > { %v1618_v24 = vadd.f32 %v1617_v62, %v5798_v30  ;;  %v1666_v25 = vpop.f32.mrf.mxu1  ;;  %v5947_v1 = vpack.c.bf16 %v2508_v27, %v2504_v16  ;;  %v2199_v60 = vmul.f32 %v2135_v42, %v5931_v63  ;;  %v4070_v8 = vor.u32 %v4387_v7, %v4069_v37  ;;  %v4403_v42 = vld [vmem:[%s4915_s11 + $0xc4] sm:$0xf0]  ;;  %3157 = vmatpush.bf16.msra.mxu3 %v4262_v45  ;;  %v4189_v45 = vld [vmem:[%s4915_s11 + $0x130] sm:$0xf] }
 0x29f   : > { %v5950_v6 = vadd.f32 %v1762_v11, %v1714_v47  ;;  %v2260_v9 = vadd.f32 %v2196_v38, %v5926_v46  ;;  %v4134_v27 = vor.u32 %v4403_v42, %v4133_v15  ;;  %v2007_v37 = vmul.f32 0.5, %v5931_v63  ;;  %v4253_v15 = vld [vmem:[%s4915_s11 + $0x1b0] sm:$0xf] }
 0x2a0   : > { %v5953_v13 = vadd.f32 %v1666_v25, %v1618_v24  ;;  %v2263_v23 = vadd.f32 %v2199_v60, %v5931_v63  ;;  %3010 = vmatpush.bf16.msra.mxu0 %v4070_v8  ;;  %v4417_v8 = vld [vmem:[%s4915_s11 + $0x134] sm:$0xf0] }
 0x2a1   : > { %v2072_v33 = vmul.f32 0.044715, %v5950_v6  ;;  %v2324_v29 = vmul.f32 0.7978846, %v2260_v9  ;;  %v2000_v9 = vmul.f32 0.5, %v5902_v39  ;;  %3059 = vmatpush.bf16.msra.mxu1 %v4134_v27  ;;  %v4190_v63 = vor.u32 %v4417_v8, %v4189_v45 }
 0x2a2   : > { %v4536_v5 = vpop.eup %4535  ;;  %v2075_v14 = vmul.f32 0.044715, %v5953_v13  ;;  %v2327_v19 = vmul.f32 0.7978846, %v2263_v23  ;;  %v2004_v23 = vmul.f32 0.5, %v5926_v46  ;;  %v2011_v7 = vmul.f32 0.5, %v5953_v13 }
 0x2a3   : > { %v2136_v43 = vmul.f32 %v2072_v33, %v5950_v6  ;;  %v2451_v50 = vadd.f32 1.0, %v4536_v5  ;;  %4539 = vtanh.f32 %v2324_v29  ;;  %v4538_v26 = vpop.eup %4537  ;;  %3109 = vmatpush.bf16.msra.mxu2 %v4190_v63  ;;  %v4109_v63 = vld [vmem:[%s4915_s11 + $0x90] sm:$0xf] }
 0x2a4   : > { %v2139_v2 = vmul.f32 %v2075_v14, %v5953_v13  ;;  %v1715_v31 = vpop.f32.mrf.mxu2  ;;  %v2448_v38 = vadd.f32 1.0, %v4538_v26  ;;  %4541 = vtanh.f32 %v2327_v19 }
 0x2a5   : > { %v1716_v40 = vadd.f32 %v1715_v31, %v5807_v41  ;;  %v1764_v17 = vpop.f32.mrf.mxu3  ;;  %v1620_v34 = vpop.f32.mrf.mxu0  ;;  %v2515_v12 = vmul.f32 %v2451_v50, %v2003_v48  ;;  %v2200_v32 = vmul.f32 %v2136_v43, %v5950_v6 }
 0x2a6   : > { %v1621_v21 = vadd.f32 %v1620_v34, %v5798_v30  ;;  %v1669_v4 = vpop.f32.mrf.mxu1  ;;  %v2203_v44 = vmul.f32 %v2139_v2, %v5953_v13  ;;  %v2512_v43 = vmul.f32 %v2448_v38, %v2000_v9  ;;  %v4061_v38 = vld [vmem:[%s4915_s11 + $0x30] sm:$0xf] }
 0x2a7   : > { %v5974_v16 = vadd.f32 %v1764_v17, %v1716_v40  ;;  %v5976_v47 = vpack.c.bf16 %v2515_v12, %v2511_v36  ;;  %v2264_v11 = vadd.f32 %v2200_v32, %v5950_v6 }
 0x2a8   : > { %v5979_v62 = vadd.f32 %v1669_v4, %v1621_v21  ;;  %1815 = vmatmul.bf16.gmra.mxu0 %v5746_v55  ;;  %v2267_v24 = vadd.f32 %v2203_v44, %v5953_v13  ;;  %v4385_v13 = vld [vmem:[%s4915_s11 + $0x34] sm:$0xf0] }
 0x2a9   : > { %v4540_v25 = vpop.eup %4539  ;;  %v2076_v60 = vmul.f32 0.044715, %v5974_v16  ;;  %1864 = vmatmul.bf16.gmra.mxu1 %v5748_v3  ;;  %1913 = vmatmul.bf16.gmra.mxu2 %v5746_v55  ;;  %v2328_v14 = vmul.f32 0.7978846, %v2264_v11  ;;  %v4433_v11 = vld [vmem:[%s4915_s11 + $0x1b4] sm:$0xf0] }
 0x2aa   : > { %v2079_v54 = vmul.f32 0.044715, %v5979_v62  ;;  %1962 = vmatmul.bf16.gmra.mxu3 %v5748_v3  ;;  %v2452_v33 = vadd.f32 1.0, %v4540_v25  ;;  %v2331_v29 = vmul.f32 0.7978846, %v2267_v24  ;;  %v4542_v2 = vpop.eup %4541 }
 0x2ab   : > { %v2140_v5 = vmul.f32 %v2076_v60, %v5974_v16  ;;  %v2455_v17 = vadd.f32 1.0, %v4542_v2 }
 0x2ac   : > { %v2143_v28 = vmul.f32 %v2079_v54, %v5979_v62  ;;  %v1718_v48 = vpop.f32.mrf.mxu2  ;;  %v2516_v55 = vmul.f32 %v2452_v33, %v2004_v23  ;;  %4543 = vtanh.f32 %v2331_v29  ;;  %v4254_v54 = vor.u32 %v4433_v11, %v4253_v15  ;;  %v4125_v33 = vld [vmem:[%s4915_s11 + $0xb0] sm:$0xf]  ;;  %v4401_v29 = vld [vmem:[%s4915_s11 + $0xb4] sm:$0xf0] }
 0x2ad   : > { %v1719_v39 = vadd.f32 %v1718_v48, %v5807_v41  ;;  %v1767_v50 = vpop.f32.mrf.mxu3  ;;  %v1622_v19 = vpop.f32.mrf.mxu0  ;;  %v2204_v3 = vmul.f32 %v2140_v5, %v5974_v16  ;;  %4545 = vtanh.f32 %v2328_v14  ;;  %v2519_v24 = vmul.f32 %v2455_v17, %v2007_v37  ;;  %v4117_v17 = vld [vmem:[%s4915_s11 + $0xa0] sm:$0xf] }
 0x2ae   : > { %v1623_v46 = vadd.f32 %v1622_v19, %v5798_v30  ;;  %v1671_v31 = vpop.f32.mrf.mxu1  ;;  %v5995_v22 = vpack.c.bf16 %v2516_v55, %v2512_v43  ;;  %v2207_v49 = vmul.f32 %v2143_v28, %v5979_v62  ;;  %v4062_v23 = vor.u32 %v4385_v13, %v4061_v38  ;;  %3158 = vmatpush.bf16.msra.mxu3 %v4254_v54  ;;  %v4397_v13 = vld [vmem:[%s4915_s11 + $0x94] sm:$0xf0] }
 0x2af   : > { %v5998_v18 = vadd.f32 %v1767_v50, %v1719_v39  ;;  %v2268_v36 = vadd.f32 %v2204_v3, %v5974_v16  ;;  %v4126_v14 = vor.u32 %v4401_v29, %v4125_v33  ;;  %v2008_v50 = vmul.f32 0.5, %v5950_v6 }
 0x2b0   : > { %v6001_v26 = vadd.f32 %v1671_v31, %v1623_v46  ;;  %v2271_v40 = vadd.f32 %v2207_v49, %v5979_v62  ;;  %3011 = vmatpush.bf16.msra.mxu0 %v4062_v23  ;;  %v2012_v3 = vmul.f32 0.5, %v5974_v16  ;;  %v2015_v54 = vmul.f32 0.5, %v5979_v62  ;;  %v4037_v62 = vld [vmem:[%s4915_s11] sm:$0xf] }
 0x2b1   : > { %v2332_v34 = vmul.f32 0.7978846, %v2268_v36  ;;  %3060 = vmatpush.bf16.msra.mxu1 %v4126_v14  ;;  %v4053_v36 = vld [vmem:[%s4915_s11 + $0x20] sm:$0xf] }
 0x2b2   : > { %v4544_v56 = vpop.eup %4543  ;;  %v2083_v35 = vmul.f32 0.044715, %v6001_v26  ;;  %v2335_v32 = vmul.f32 0.7978846, %v2271_v40  ;;  %v4383_v40 = vld [vmem:[%s4915_s11 + $0x24] sm:$0xf0] }
 0x2b3   : > { %v2459_v12 = vadd.f32 1.0, %v4544_v56  ;;  %4547 = vtanh.f32 %v2332_v34  ;;  %v4546_v42 = vpop.eup %4545  ;;  %v4054_v56 = vor.u32 %v4383_v40, %v4053_v36  ;;  %v2019_v23 = vmul.f32 0.5, %v6001_v26 }
 0x2b4   : > { %v2147_v21 = vmul.f32 %v2083_v35, %v6001_v26  ;;  %v6008_v4 = vpop.f32.mrf.mxu2  ;;  %v2456_v43 = vadd.f32 1.0, %v4546_v42  ;;  %4549 = vtanh.f32 %v2335_v32  ;;  %v4399_v35 = vld [vmem:[%s4915_s11 + $0xa4] sm:$0xf0]  ;;  %v4045_v42 = vld [vmem:[%s4915_s11 + $0x10] sm:$0xf] }
 0x2b5   : > { %v6013_v44 = vpop.f32.mrf.mxu3  ;;  %v1625_v27 = vpop.f32.mrf.mxu0  ;;  %v2523_v25 = vmul.f32 %v2459_v12, %v2011_v7  ;;  %v4118_v32 = vor.u32 %v4399_v35, %v4117_v17  ;;  %3012 = vmatpush.bf16.msra.mxu0 %v4054_v56 }
 0x2b6   : > { %v1626_v60 = vadd.f32 %v1625_v27, %v5798_v30  ;;  %v1674_v9 = vpop.f32.mrf.mxu1  ;;  %v2211_v5 = vmul.f32 %v2147_v21, %v6001_v26  ;;  %v4381_v27 = vld [vmem:[%s4915_s11 + $0x14] sm:$0xf0] }
 0x2b7   : > { %v6022_v28 = vpack.c.bf16 %v2523_v25, %v2519_v24  ;;  %3061 = vmatpush.bf16.msra.mxu1 %v4118_v32  ;;  %v4046_v38 = vor.u32 %v4381_v27, %v4045_v42 }
 0x2b8   : > { %v6024_v48 = vadd.f32 %v1674_v9, %v1626_v60  ;;  %1820 = vmatmul.bf16.gmra.mxu0 %v5762_v20  ;;  %v2275_v55 = vadd.f32 %v2211_v5, %v6001_v26  ;;  %v4110_v9 = vor.u32 %v4397_v13, %v4109_v63 }
 0x2b9   : > { %v4548_v39 = vpop.eup %4547  ;;  %1869 = vmatmul.bf16.gmra.mxu1 %v5764_v53  ;;  %1918 = vmatmul.bf16.gmra.mxu2 %v5762_v20  ;;  %v2520_v20 = vmul.f32 %v2456_v43, %v2008_v50  ;;  %v4181_v43 = vld [vmem:[%s4915_s11 + $0x120] sm:$0xf] }
 0x2ba   : > { %v2087_v19 = vmul.f32 0.044715, %v6024_v48  ;;  %1967 = vmatmul.bf16.gmra.mxu3 %v5764_v53  ;;  %v2460_v2 = vadd.f32 1.0, %v4548_v39  ;;  %v2339_v46 = vmul.f32 0.7978846, %v2275_v55  ;;  %v4550_v37 = vpop.eup %4549  ;;  %3013 = vmatpush.bf16.msra.mxu0 %v4046_v38 }
 0x2bb   : > { %v2463_v24 = vadd.f32 1.0, %v4550_v37  ;;  %v4415_v55 = vld [vmem:[%s4915_s11 + $0x124] sm:$0xf0]  ;;  %v4245_v39 = vld [vmem:[%s4915_s11 + $0x1a0] sm:$0xf]  ;;  %3062 = vmatpush.bf16.msra.mxu1 %v4110_v9 }
 0x2bc   : > { %v2151_v31 = vmul.f32 %v2087_v19, %v6024_v48  ;;  %v1723_v49 = vpop.f32.mrf.mxu2  ;;  %v2524_v34 = vmul.f32 %v2460_v2, %v2012_v3  ;;  %4551 = vtanh.f32 %v2339_v46  ;;  %v4182_v3 = vor.u32 %v4415_v55, %v4181_v43  ;;  %v4431_v2 = vld [vmem:[%s4915_s11 + $0x1a4] sm:$0xf0] }
 0x2bd   : > { %v1724_v6 = vadd.f32 %v1723_v49, %v5807_v41  ;;  %v1772_v53 = vpop.f32.mrf.mxu3  ;;  %v1627_v16 = vpop.f32.mrf.mxu0  ;;  %v4379_v46 = vld [vmem:[%s4915_s11 + $0x4] sm:$0xf0]  ;;  %v2527_v26 = vmul.f32 %v2463_v24, %v2015_v54  ;;  %v4246_v40 = vor.u32 %v4431_v2, %v4245_v39  ;;  %v2023_v54 = vmul.f32 0.5, %v6024_v48 }
 0x2be   : > { %v1628_v7 = vadd.f32 %v1627_v16, %v5798_v30  ;;  %v1676_v12 = vpop.f32.mrf.mxu1  ;;  %v6041_v21 = vpack.c.bf16 %v2524_v34, %v2520_v20  ;;  %v2215_v45 = vmul.f32 %v2151_v31, %v6024_v48  ;;  %v4038_v17 = vor.u32 %v4379_v46, %v4037_v62  ;;  %v4101_v20 = vld [vmem:[%s4915_s11 + $0x80] sm:$0xf]  ;;  %v4395_v34 = vld [vmem:[%s4915_s11 + $0x84] sm:$0xf0]  ;;  %3110 = vmatpush.bf16.msra.mxu2 %v4182_v3 }
 0x2bf   : > { %v6044_v8 = vadd.f32 %v1772_v53, %v1724_v6  ;;  %v4102_v6 = vor.u32 %v4395_v34, %v4101_v20  ;;  %3159 = vmatpush.bf16.msra.mxu3 %v4246_v40 }
 0x2c0   : > { %v6046_v15 = vadd.f32 %v1676_v12, %v1628_v7  ;;  %v2279_v11 = vadd.f32 %v2215_v45, %v6024_v48  ;;  %3014 = vmatpush.bf16.msra.mxu0 %v4038_v17 }
 0x2c1   : > { %3063 = vmatpush.bf16.msra.mxu1 %v4102_v6 }
 0x2c2   : > { %v4552_v25 = vpop.eup %4551  ;;  %v2091_v60 = vmul.f32 0.044715, %v6046_v15  ;;  %v2343_v29 = vmul.f32 0.7978846, %v2279_v11 }
 0x2c3   : > { %v2467_v33 = vadd.f32 1.0, %v4552_v25 }
 0x2c4   : > { %v2155_v5 = vmul.f32 %v2091_v60, %v6046_v15  ;;  %v6057_v14 = vpop.f32.mrf.mxu2  ;;  %4553 = vtanh.f32 %v2343_v29  ;;  %v2027_v29 = vmul.f32 0.5, %v6046_v15 }
 0x2c5   : > { %v6062_v50 = vpop.f32.mrf.mxu3  ;;  %v1630_v19 = vpop.f32.mrf.mxu0  ;;  %v2531_v31 = vmul.f32 %v2467_v33, %v2019_v23 }
 0x2c6   : > { %v1631_v49 = vadd.f32 %v1630_v19, %v5798_v30  ;;  %v1679_v36 = vpop.f32.mrf.mxu1  ;;  %v2219_v16 = vmul.f32 %v2155_v5, %v6046_v15 }
 0x2c7   : > { %v6070_v53 = vpack.c.bf16 %v2531_v31, %v2527_v26 }
 0x2c8   : > { %v6073_v56 = vadd.f32 %v1679_v36, %v1631_v49  ;;  %1825 = vmatmul.bf16.gmra.mxu0 %v5778_v61  ;;  %v2283_v35 = vadd.f32 %v2219_v16, %v6046_v15 }
 0x2c9   : > { %1874 = vmatmul.bf16.gmra.mxu1 %v5780_v58  ;;  %1923 = vmatmul.bf16.gmra.mxu2 %v5778_v61 }
 0x2ca   : > { %v2095_v37 = vmul.f32 0.044715, %v6073_v56  ;;  %1972 = vmatmul.bf16.gmra.mxu3 %v5780_v58  ;;  %v2347_v7 = vmul.f32 0.7978846, %v2283_v35  ;;  %v4554_v38 = vpop.eup %4553 }
 0x2cb   : > { %v2471_v60 = vadd.f32 1.0, %v4554_v38 }
 0x2cc   : > { %v2159_v12 = vmul.f32 %v2095_v37, %v6073_v56  ;;  %v1728_v32 = vpop.f32.mrf.mxu2  ;;  %4555 = vtanh.f32 %v2347_v7  ;;  %v6113_v7 = vperm.slane %v5795_v52, 2 }
 0x2cd   : > { %v1729_v45 = vadd.f32 %v1728_v32, %v5807_v41  ;;  %v1777_v42 = vpop.f32.mrf.mxu3  ;;  %v1632_v27 = vpop.f32.mrf.mxu0  ;;  %v2535_v2 = vmul.f32 %v2471_v60, %v2023_v54  ;;  %v4413_v32 = vld [vmem:[%s4915_s11 + $0x114] sm:$0xf0]  ;;  %v1721_v60 = vadd.f32 %v6008_v4, %v5807_v41  ;;  %v4165_v54 = vld [vmem:[%s4915_s11 + $0x100] sm:$0xf] }
 0x2ce   : > { %v1633_v61 = vadd.f32 %v1632_v27, %v5798_v30  ;;  %v1681_v63 = vpop.f32.mrf.mxu1  ;;  %v2223_v11 = vmul.f32 %v2159_v12, %v6073_v56  ;;  %v4173_v12 = vld [vmem:[%s4915_s11 + $0x110] sm:$0xf] }
 0x2cf   : > { %v6085_v13 = vadd.f32 %v1777_v42, %v1729_v45  ;;  %v2031_v45 = vmul.f32 0.5, %v6073_v56 }
 0x2d0   : > { %v1682_v58 = vadd.f32 %v1681_v63, %v1633_v61  ;;  %v2287_v24 = vadd.f32 %v2223_v11, %v6073_v56  ;;  %v4174_v61 = vor.u32 %v4413_v32, %v4173_v12  ;;  %v4237_v63 = vld [vmem:[%s4915_s11 + $0x190] sm:$0xf]  ;;  %v4429_v11 = vld [vmem:[%s4915_s11 + $0x194] sm:$0xf0] }
 0x2d1   : > { %v4238_v38 = vor.u32 %v4429_v11, %v4237_v63 }
 0x2d2   : > { %v2099_v25 = vmul.f32 0.044715, %v1682_v58  ;;  %v4556_v9 = vpop.eup %4555  ;;  %v2351_v43 = vmul.f32 0.7978846, %v2287_v24  ;;  %v2035_v24 = vmul.f32 0.5, %v1682_v58  ;;  %3111 = vmatpush.bf16.msra.mxu2 %v4174_v61 }
 0x2d3   : > { %v2475_v5 = vadd.f32 1.0, %v4556_v9  ;;  %3160 = vmatpush.bf16.msra.mxu3 %v4238_v38 }
 0x2d4   : > { %v2163_v23 = vmul.f32 %v2099_v25, %v1682_v58  ;;  %v6089_v33 = vpop.f32.mrf.mxu2  ;;  %4557 = vtanh.f32 %v2351_v43 }
 0x2d5   : > { %v6092_v55 = vpop.f32.mrf.mxu3  ;;  %v1635_v39 = vpop.f32.mrf.mxu0  ;;  %v2539_v62 = vmul.f32 %v2475_v5, %v2027_v29  ;;  %v4229_v29 = vld [vmem:[%s4915_s11 + $0x180] sm:$0xf] }
 0x2d6   : > { %v1636_v19 = vadd.f32 %v1635_v39, %v5798_v30  ;;  %v1684_v3 = vpop.f32.mrf.mxu1  ;;  %v2227_v46 = vmul.f32 %v2163_v23, %v1682_v58  ;;  %v4411_v23 = vld [vmem:[%s4915_s11 + $0x104] sm:$0xf0] }
 0x2d7   : > { %v6098_v48 = vpack.c.bf16 %v2539_v62, %v2535_v2  ;;  %v4166_v39 = vor.u32 %v4411_v23, %v4165_v54 }
 0x2d8   : > { %v6095_v26 = vadd.f32 %v1684_v3, %v1636_v19  ;;  %1830 = vmatmul.bf16.gmra.mxu0 %v5786_v59  ;;  %v2291_v31 = vadd.f32 %v2227_v46, %v1682_v58  ;;  %v4427_v58 = vld [vmem:[%s4915_s11 + $0x184] sm:$0xf0] }
 0x2d9   : > { %1879 = vmatmul.bf16.gmra.mxu1 %v5788_v51  ;;  %1928 = vmatmul.bf16.gmra.mxu2 %v5786_v59  ;;  %v4230_v62 = vor.u32 %v4427_v58, %v4229_v29 }
 0x2da   : > { %v2103_v15 = vmul.f32 0.044715, %v6095_v26  ;;  %1977 = vmatmul.bf16.gmra.mxu3 %v5788_v51  ;;  %v2355_v49 = vmul.f32 0.7978846, %v2291_v31  ;;  %v4558_v6 = vpop.eup %4557  ;;  %3112 = vmatpush.bf16.msra.mxu2 %v4166_v39  ;;  %v2039_v29 = vmul.f32 0.5, %v6095_v26 }
 0x2db   : > { %v2479_v42 = vadd.f32 1.0, %v4558_v6  ;;  %3161 = vmatpush.bf16.msra.mxu3 %v4230_v62  ;;  %v4223_v62 = vld [vmem:[%s4915_s11 + $0x178] sm:$0xf0] }
 0x2dc   : > { %v2167_v36 = vmul.f32 %v2103_v15, %v6095_v26  ;;  %v1733_v40 = vpop.f32.mrf.mxu2  ;;  %4559 = vtanh.f32 %v2355_v49  ;;  %v2080_v49 = vmul.f32 0.044715, %v5998_v18 }
 0x2dd   : > { %v1734_v17 = vadd.f32 %v1733_v40, %v5807_v41  ;;  %v1782_v20 = vpop.f32.mrf.mxu3  ;;  %v1637_v34 = vpop.f32.mrf.mxu0  ;;  %v2543_v19 = vmul.f32 %v2479_v42, %v2031_v45 }
 0x2de   : > { %v1638_v59 = vadd.f32 %v1637_v34, %v5798_v30  ;;  %v1686_v16 = vpop.f32.mrf.mxu1  ;;  %v2231_v51 = vmul.f32 %v2167_v36, %v6095_v26  ;;  %v6139_v36 = vadd.f32 %v6013_v44, %v1721_v60  ;;  %v2144_v44 = vmul.f32 %v2080_v49, %v5998_v18 }
 0x2df   : > { %v6107_v35 = vadd.f32 %v1782_v20, %v1734_v17  ;;  %v4645_v17 = vld [vmem:[%s4910_s23] sm:$0xf] }
 0x2e0   : > { %v6110_v37 = vadd.f32 %v1686_v16, %v1638_v59  ;;  %v2295_v52 = vadd.f32 %v2231_v51, %v6095_v26  ;;  %v6146_v20 = vperm.slane %v4645_v17, 3  ;;  %v2084_v16 = vmul.f32 0.044715, %v6139_v36 }
 0x2e2   : > { %v4560_v27 = vpop.eup %4559  ;;  %v2107_v30 = vmul.f32 0.044715, %v6110_v37  ;;  %v2359_v15 = vmul.f32 0.7978846, %v2295_v52  ;;  %v2148_v38 = vmul.f32 %v2084_v16, %v6139_v36  ;;  %v2208_v52 = vmul.f32 %v2144_v44, %v5998_v18  ;;  %v4095_v44 = vld [vmem:[%s4915_s11 + $0x78] sm:$0xf0] }
 0x2e3   : > { %v2483_v25 = vadd.f32 1.0, %v4560_v27 }
 0x2e4   : > { %v2171_v56 = vmul.f32 %v2107_v30, %v6110_v37  ;;  %v6125_v9 = vpop.f32.mrf.mxu2  ;;  %4561 = vtanh.f32 %v2359_v15  ;;  %v2212_v15 = vmul.f32 %v2148_v38, %v6139_v36  ;;  %v2272_v26 = vadd.f32 %v2208_v52, %v5998_v18 }
 0x2e5   : > { %v6130_v5 = vpop.f32.mrf.mxu3  ;;  %v1796_v43 = vpop.f32.mrf.mxu0  ;;  %v2547_v3 = vmul.f32 %v2483_v25, %v2035_v24 }
 0x2e6   : > { %v1797_v2 = vadd.f32 %v1796_v43, %v6113_v7  ;;  %v1845_v4 = vpop.f32.mrf.mxu1  ;;  %v2235_v31 = vmul.f32 %v2171_v56, %v6110_v37  ;;  %v2043_v43 = vmul.f32 0.5, %v6110_v37 }
 0x2e7   : > { %v6134_v46 = vpack.c.bf16 %v2547_v3, %v2543_v19  ;;  %v1726_v19 = vadd.f32 %v6057_v14, %v5807_v41 }
 0x2e8   : > { %v6141_v40 = vadd.f32 %v1845_v4, %v1797_v2  ;;  %3015 = vmatmul.bf16.vlgmr.msra.gmra.mxu0 %v5880_v10  ;;  %v2299_v34 = vadd.f32 %v2235_v31, %v6110_v37  ;;  %v4424_v4 = vld [vmem:[%s4915_s11 + $0x174] sm:$0xf] }
 0x2e9   : > { %3064 = vmatmul.bf16.vlgmr.msra.gmra.mxu1 %v5899_v57  ;;  %v4440_v31 = vld [vmem:[%s4915_s11 + $0x1f4] sm:$0xf] }
 0x2ea   : > { %v2049_v6 = vmul.f32 0.044715, %v6141_v40  ;;  %v2363_v59 = vmul.f32 0.7978846, %v2299_v34  ;;  %v4562_v11 = vpop.eup %4561  ;;  %v4226_v34 = vor.u32 %v4424_v4, %v4223_v62 }
 0x2eb   : > { %v2487_v39 = vadd.f32 1.0, %v4562_v11 }
 0x2ec   : > { %v2113_v51 = vmul.f32 %v2049_v6, %v6141_v40  ;;  %v1894_v12 = vpop.f32.mrf.mxu2  ;;  %4563 = vtanh.f32 %v2363_v59  ;;  %v4287_v6 = vld [vmem:[%s4915_s11 + $0x1f8] sm:$0xf0]  ;;  %v4392_v59 = vld [vmem:[%s4915_s11 + $0x74] sm:$0xf]  ;;  %3301 = vmatpush.bf16.msrb.mxu2 %v4226_v34 }
 0x2ed   : > { %v1895_v32 = vadd.f32 %v1894_v12, %v6146_v20  ;;  %v1943_v45 = vpop.f32.mrf.mxu3  ;;  %v1798_v42 = vpop.f32.mrf.mxu0 }
 0x2ee   : > { %v2177_v27 = vmul.f32 %v2113_v51, %v6141_v40  ;;  %v1799_v30 = vadd.f32 %v1798_v42, %v6113_v7  ;;  %v1847_v61 = vpop.f32.mrf.mxu1  ;;  %v4408_v42 = vld [vmem:[%s4915_s11 + $0xf4] sm:$0xf] }
 0x2ef   : > { %v6156_v63 = vadd.f32 %v1943_v45, %v1895_v32  ;;  %v4290_v32 = vor.u32 %v4440_v31, %v4287_v6  ;;  %v4098_v45 = vor.u32 %v4392_v59, %v4095_v44 }
 0x2f0   : > { %v2241_v24 = vadd.f32 %v2177_v27, %v6141_v40  ;;  %v6160_v25 = vadd.f32 %v1847_v61, %v1799_v30  ;;  %v4159_v27 = vld [vmem:[%s4915_s11 + $0xf8] sm:$0xf0] }
 0x2f1   : > { %v2050_v60 = vmul.f32 0.044715, %v6156_v63  ;;  %v4162_v11 = vor.u32 %v4408_v42, %v4159_v27  ;;  %3350 = vmatpush.bf16.msrb.mxu3 %v4290_v32  ;;  %3203 = vmatpush.bf16.msrb.mxu0 %v4098_v45 }
 0x2f2   : > { %v2305_v56 = vmul.f32 0.7978846, %v2241_v24  ;;  %v2053_v54 = vmul.f32 0.044715, %v6160_v25  ;;  %v4564_v58 = vpop.eup %4563  ;;  %v6189_v24 = vadd.f32 %v6062_v50, %v1726_v19  ;;  %v2088_v50 = vmul.f32 0.044715, %v6044_v8 }
 0x2f3   : > { %v2114_v23 = vmul.f32 %v2050_v60, %v6156_v63  ;;  %v2491_v38 = vadd.f32 1.0, %v4564_v58  ;;  %3252 = vmatpush.bf16.msrb.mxu1 %v4162_v11 }
 0x2f4   : > { %v2117_v3 = vmul.f32 %v2053_v54, %v6160_v25  ;;  %v1896_v2 = vpop.f32.mrf.mxu2  ;;  %4565 = vtanh.f32 %v2305_v56  ;;  %v2336_v56 = vmul.f32 0.7978846, %v2272_v26  ;;  %v2152_v34 = vmul.f32 %v2088_v50, %v6044_v8 }
 0x2f5   : > { %v2178_v37 = vmul.f32 %v2114_v23, %v6156_v63  ;;  %v1897_v49 = vadd.f32 %v1896_v2, %v6146_v20  ;;  %v1945_v17 = vpop.f32.mrf.mxu3  ;;  %v1801_v14 = vpop.f32.mrf.mxu0  ;;  %v2276_v23 = vadd.f32 %v2212_v15, %v6139_v36  ;;  %v2555_v58 = vmul.f32 %v2491_v38, %v2043_v43 }
 0x2f6   : > { %v2181_v16 = vmul.f32 %v2117_v3, %v6160_v25  ;;  %v1802_v51 = vadd.f32 %v1801_v14, %v6113_v7  ;;  %v1850_v12 = vpop.f32.mrf.mxu1  ;;  %v2551_v3 = vmul.f32 %v2487_v39, %v2039_v29  ;;  %v6222_v38 = vmul.f32 0.5, %v6139_v36 }
 0x2f7   : > { %v2242_v30 = vadd.f32 %v2178_v37, %v6156_v63  ;;  %v6186_v61 = vadd.f32 %v1945_v17, %v1897_v49  ;;  %v2092_v37 = vmul.f32 0.044715, %v6189_v24  ;;  %v2340_v14 = vmul.f32 0.7978846, %v2276_v23 }
 0x2f8   : > { %v2245_v52 = vadd.f32 %v2181_v16, %v6160_v25  ;;  %v6192_v60 = vadd.f32 %v1850_v12, %v1802_v51  ;;  %3020 = vmatmul.bf16.gmra.mxu0 %v5928_v0  ;;  %v6201_v26 = vpack.c.bf16 %v2555_v58, %v2551_v3  ;;  %v6214_v12 = vmul.f32 0.5, %v5998_v18 }
 0x2f9   : > { %v2054_v54 = vmul.f32 0.044715, %v6186_v61  ;;  %3069 = vmatmul.bf16.gmra.mxu1 %v5947_v1  ;;  %v2306_v62 = vmul.f32 0.7978846, %v2242_v30  ;;  %v2156_v32 = vmul.f32 %v2092_v37, %v6189_v24  ;;  %v1985_v18 = vmul.f32 0.5, %v6141_v40 }
 0x2fa   : > { %v2309_v19 = vmul.f32 0.7978846, %v2245_v52  ;;  %v2057_v2 = vmul.f32 0.044715, %v6192_v60  ;;  %v4566_v4 = vpop.eup %4565  ;;  %v2216_v23 = vmul.f32 %v2152_v34, %v6044_v8  ;;  %v1989_v3 = vmul.f32 0.5, %v6160_v25 }
 0x2fb   : > { %v2118_v31 = vmul.f32 %v2054_v54, %v6186_v61  ;;  %v2433_v45 = vadd.f32 1.0, %v4566_v4  ;;  %v4422_v40 = vld [vmem:[%s4915_s11 + $0x164] sm:$0xf]  ;;  %v2220_v37 = vmul.f32 %v2156_v32, %v6189_v24 }
 0x2fc   : > { %4567 = vtanh.f32 %v2309_v19  ;;  %v2121_v49 = vmul.f32 %v2057_v2, %v6192_v60  ;;  %v1899_v15 = vpop.f32.mrf.mxu2  ;;  %v4390_v34 = vld [vmem:[%s4915_s11 + $0x64] sm:$0xf] }
 0x2fd   : > { %v2182_v29 = vmul.f32 %v2118_v31, %v6186_v61  ;;  %v1900_v43 = vadd.f32 %v1899_v15, %v6146_v20  ;;  %v1948_v39 = vpop.f32.mrf.mxu3  ;;  %v1803_v17 = vpop.f32.mrf.mxu0  ;;  %4569 = vtanh.f32 %v2336_v56  ;;  %v2497_v4 = vmul.f32 %v2433_v45, %v1985_v18  ;;  %v4438_v31 = vld [vmem:[%s4915_s11 + $0x1e4] sm:$0xf] }
 0x2fe   : > { %v1804_v6 = vadd.f32 %v1803_v17, %v6113_v7  ;;  %v1852_v59 = vpop.f32.mrf.mxu1  ;;  %v2185_v44 = vmul.f32 %v2121_v49, %v6192_v60  ;;  %4571 = vtanh.f32 %v2306_v62  ;;  %v4215_v62 = vld [vmem:[%s4915_s11 + $0x168] sm:$0xf0] }
 0x2ff   : > { %v2246_v16 = vadd.f32 %v2182_v29, %v6186_v61  ;;  %v6211_v51 = vadd.f32 %v1948_v39, %v1900_v43  ;;  %4573 = vtanh.f32 %v2340_v14  ;;  %v4218_v39 = vor.u32 %v4422_v40, %v4215_v62  ;;  %v4279_v14 = vld [vmem:[%s4915_s11 + $0x1e8] sm:$0xf0] }
 0x300   : > { %v6217_v42 = vadd.f32 %v1852_v59, %v1804_v6  ;;  %v2249_v27 = vadd.f32 %v2185_v44, %v6192_v60  ;;  %v4087_v6 = vld [vmem:[%s4915_s11 + $0x68] sm:$0xf0]  ;;  %v4282_v32 = vor.u32 %v4438_v31, %v4279_v14  ;;  %v1731_v40 = vadd.f32 %v6089_v33, %v5807_v41 }
 0x301   : > { %v2310_v30 = vmul.f32 0.7978846, %v2246_v16  ;;  %v2058_v11 = vmul.f32 0.044715, %v6211_v51  ;;  %v4090_v45 = vor.u32 %v4390_v34, %v4087_v6  ;;  %3302 = vmatpush.bf16.msrb.mxu2 %v4218_v39  ;;  %v2280_v31 = vadd.f32 %v2216_v23, %v6044_v8 }
 0x302   : > { %v4568_v52 = vpop.eup %4567  ;;  %v2061_v56 = vmul.f32 0.044715, %v6217_v42  ;;  %v2313_v54 = vmul.f32 0.7978846, %v2249_v27  ;;  %v4406_v27 = vld [vmem:[%s4915_s11 + $0xe4] sm:$0xf]  ;;  %3351 = vmatpush.bf16.msrb.mxu3 %v4282_v32  ;;  %v2284_v39 = vadd.f32 %v2220_v37, %v6189_v24 }
 0x303   : > { %4575 = vtanh.f32 %v2310_v30  ;;  %v2122_v58 = vmul.f32 %v2058_v11, %v6211_v51  ;;  %v2437_v50 = vadd.f32 1.0, %v4568_v52  ;;  %v4570_v36 = vpop.eup %4569  ;;  %v4151_v30 = vld [vmem:[%s4915_s11 + $0xe8] sm:$0xf0]  ;;  %3204 = vmatpush.bf16.msrb.mxu0 %v4090_v45 }
 0x304   : > { %v2125_v19 = vmul.f32 %v2061_v56, %v6217_v42  ;;  %v1901_v2 = vpop.f32.mrf.mxu2  ;;  %4577 = vtanh.f32 %v2313_v54  ;;  %v4572_v25 = vpop.eup %4571  ;;  %v4154_v54 = vor.u32 %v4406_v27, %v4151_v30  ;;  %v2344_v30 = vmul.f32 0.7978846, %v2280_v31 }
 0x305   : > { %v1902_v49 = vadd.f32 %v1901_v2, %v6146_v20  ;;  %v1950_v15 = vpop.f32.mrf.mxu3  ;;  %v1806_v29 = vpop.f32.mrf.mxu0  ;;  %v2501_v43 = vmul.f32 %v2437_v50, %v1989_v3  ;;  %v2186_v17 = vmul.f32 %v2122_v58, %v6211_v51  ;;  %v2434_v3 = vadd.f32 1.0, %v4572_v25 }
 0x306   : > { %v1807_v59 = vadd.f32 %v1806_v29, %v6113_v7  ;;  %v1855_v44 = vpop.f32.mrf.mxu1  ;;  %v2189_v16 = vmul.f32 %v2125_v19, %v6217_v42  ;;  %v4574_v11 = vpop.eup %4573  ;;  %v2464_v19 = vadd.f32 1.0, %v4570_v36  ;;  %3253 = vmatpush.bf16.msrb.mxu1 %v4154_v54 }
 0x307   : > { %v6243_v52 = vadd.f32 %v1950_v15, %v1902_v49  ;;  %v6245_v18 = vpack.c.bf16 %v2501_v43, %v2497_v4  ;;  %v2250_v56 = vadd.f32 %v2186_v17, %v6211_v51  ;;  %v1986_v4 = vmul.f32 0.5, %v6156_v63 }
 0x308   : > { %v6248_v58 = vadd.f32 %v1855_v44, %v1807_v59  ;;  %3025 = vmatmul.bf16.gmra.mxu0 %v5976_v47  ;;  %v2253_v50 = vadd.f32 %v2189_v16, %v6217_v42  ;;  %v1990_v49 = vmul.f32 0.5, %v6186_v61  ;;  %v6263_v43 = vmul.f32 0.5, %v6044_v8 }
 0x309   : > { %v4576_v2 = vpop.eup %4575  ;;  %v2062_v62 = vmul.f32 0.044715, %v6243_v52  ;;  %3074 = vmatmul.bf16.gmra.mxu1 %v5995_v22  ;;  %3113 = vmatmul.bf16.vlgmr.msra.gmra.mxu2 %v6245_v18  ;;  %v2314_v63 = vmul.f32 0.7978846, %v2250_v56  ;;  %v2498_v14 = vmul.f32 %v2434_v3, %v1986_v4  ;;  %v6268_v61 = vadd.f32 %v6092_v55, %v1731_v40 }
 0x30a   : > { %v4578_v25 = vpop.eup %4577  ;;  %v2065_v15 = vmul.f32 0.044715, %v6248_v58  ;;  %v2438_v36 = vadd.f32 1.0, %v4576_v2  ;;  %v2317_v29 = vmul.f32 0.7978846, %v2253_v50  ;;  %v2468_v32 = vadd.f32 1.0, %v4574_v11 }
 0x30b   : > { %v2126_v33 = vmul.f32 %v2062_v62, %v6243_v52  ;;  %v2096_v56 = vmul.f32 0.044715, %v6085_v13  ;;  %v2441_v11 = vadd.f32 1.0, %v4578_v25  ;;  %v6284_v2 = vmul.f32 0.7978846, %v2284_v39 }
 0x30c   : > { %v2129_v17 = vmul.f32 %v2065_v15, %v6248_v58  ;;  %v1904_v23 = vpop.f32.mrf.mxu2  ;;  %v2502_v34 = vmul.f32 %v2438_v36, %v1990_v49  ;;  %4579 = vtanh.f32 %v2317_v29  ;;  %v2100_v40 = vmul.f32 0.044715, %v6268_v61 }
 0x30d   : > { %v1905_v6 = vadd.f32 %v1904_v23, %v6146_v20  ;;  %v1953_v59 = vpop.f32.mrf.mxu3  ;;  %v1808_v44 = vpop.f32.mrf.mxu0  ;;  %v2190_v16 = vmul.f32 %v2126_v33, %v6243_v52  ;;  %4581 = vtanh.f32 %v2314_v63  ;;  %v2528_v31 = vmul.f32 %v2464_v19, %v6214_v12  ;;  %v4420_v23 = vld [vmem:[%s4915_s11 + $0x154] sm:$0xf] }
 0x30e   : > { %v1809_v8 = vadd.f32 %v1808_v44, %v6113_v7  ;;  %v1857_v45 = vpop.f32.mrf.mxu1  ;;  %v6273_v37 = vpack.c.bf16 %v2502_v34, %v2498_v14  ;;  %v2193_v27 = vmul.f32 %v2129_v17, %v6248_v58  ;;  %v1993_v36 = vmul.f32 0.5, %v6192_v60  ;;  %v4207_v60 = vld [vmem:[%s4915_s11 + $0x158] sm:$0xf0]  ;;  %v4436_v14 = vld [vmem:[%s4915_s11 + $0x1d4] sm:$0xf] }
 0x30f   : > { %v6277_v54 = vadd.f32 %v1953_v59, %v1905_v6  ;;  %v2254_v55 = vadd.f32 %v2190_v16, %v6243_v52  ;;  %4583 = vtanh.f32 %v2344_v30  ;;  %v1997_v33 = vmul.f32 0.5, %v6217_v42  ;;  %v4079_v30 = vld [vmem:[%s4915_s11 + $0x58] sm:$0xf0] }
 0x310   : > { %v6280_v3 = vadd.f32 %v1857_v45, %v1809_v8  ;;  %3162 = vmatmul.bf16.vlgmr.msra.gmra.mxu3 %v6273_v37  ;;  %v2257_v50 = vadd.f32 %v2193_v27, %v6248_v58  ;;  %v2505_v19 = vmul.f32 %v2441_v11, %v1993_v36  ;;  %v2532_v17 = vmul.f32 %v2468_v32, %v6222_v38  ;;  %v4271_v45 = vld [vmem:[%s4915_s11 + $0x1d8] sm:$0xf0]  ;;  %v4388_v27 = vld [vmem:[%s4915_s11 + $0x54] sm:$0xf] }
 0x311   : > { %v2066_v4 = vmul.f32 0.044715, %v6277_v54  ;;  %v2318_v62 = vmul.f32 0.7978846, %v2254_v55  ;;  %v4210_v16 = vor.u32 %v4420_v23, %v4207_v60  ;;  %v4274_v11 = vor.u32 %v4436_v14, %v4271_v45 }
 0x312   : > { %v4580_v49 = vpop.eup %4579  ;;  %v2069_v15 = vmul.f32 0.044715, %v6280_v3  ;;  %v2321_v25 = vmul.f32 0.7978846, %v2257_v50  ;;  %v4082_v50 = vor.u32 %v4388_v27, %v4079_v30  ;;  %v2164_v60 = vmul.f32 %v2100_v40, %v6268_v61 }
 0x313   : > { %v2130_v29 = vmul.f32 %v2066_v4, %v6277_v54  ;;  %v2445_v63 = vadd.f32 1.0, %v4580_v49  ;;  %4585 = vtanh.f32 %v2318_v62  ;;  %v4582_v34 = vpop.eup %4581  ;;  %v4404_v4 = vld [vmem:[%s4915_s11 + $0xd4] sm:$0xf]  ;;  %v4143_v62 = vld [vmem:[%s4915_s11 + $0xd8] sm:$0xf0]  ;;  %3303 = vmatpush.bf16.msrb.mxu2 %v4210_v16  ;;  %3352 = vmatpush.bf16.msrb.mxu3 %v4274_v11  ;;  %v6328_v40 = vpack.c.bf16 %v2532_v17, %v2528_v31 }
 0x314   : > { %v2133_v39 = vmul.f32 %v2069_v15, %v6280_v3  ;;  %v1906_v12 = vpop.f32.mrf.mxu2  ;;  %4587 = vtanh.f32 %v2321_v25  ;;  %v4146_v25 = vor.u32 %v4404_v4, %v4143_v62  ;;  %3205 = vmatpush.bf16.msrb.mxu0 %v4082_v50  ;;  %v2228_v4 = vmul.f32 %v2164_v60, %v6268_v61 }
 0x315   : > { %v1907_v42 = vadd.f32 %v1906_v12, %v6146_v20  ;;  %v1955_v6 = vpop.f32.mrf.mxu3  ;;  %v1811_v59 = vpop.f32.mrf.mxu0  ;;  %v2509_v44 = vmul.f32 %v2445_v63, %v1997_v33  ;;  %v2194_v8 = vmul.f32 %v2130_v29, %v6277_v54  ;;  %v2442_v63 = vadd.f32 1.0, %v4582_v34 }
 0x316   : > { %v1812_v38 = vadd.f32 %v1811_v59, %v6113_v7  ;;  %v1860_v32 = vpop.f32.mrf.mxu1  ;;  %v2197_v55 = vmul.f32 %v2133_v39, %v6280_v3  ;;  %v4584_v29 = vpop.eup %4583  ;;  %v6317_v12 = vmul.f32 0.5, %v6189_v24  ;;  %v1998_v59 = vmul.f32 0.5, %v6243_v52  ;;  %3254 = vmatpush.bf16.msrb.mxu1 %v4146_v25 }
 0x317   : > { %v6307_v49 = vadd.f32 %v1955_v6, %v1907_v42  ;;  %v6309_v15 = vpack.c.bf16 %v2509_v44, %v2505_v19  ;;  %v2258_v36 = vadd.f32 %v2194_v8, %v6277_v54  ;;  %v2160_v19 = vmul.f32 %v2096_v56, %v6085_v13 }
 0x318   : > { %v6312_v33 = vadd.f32 %v1860_v32, %v1812_v38  ;;  %3030 = vmatmul.bf16.gmra.mxu0 %v6022_v28  ;;  %v2261_v39 = vadd.f32 %v2197_v55, %v6280_v3  ;;  %v1994_v42 = vmul.f32 0.5, %v6211_v51  ;;  %4589 = vtanh.f32 %v6284_v2 }
 0x319   : > { %v4586_v23 = vpop.eup %4585  ;;  %v2070_v14 = vmul.f32 0.044715, %v6307_v49  ;;  %3079 = vmatmul.bf16.gmra.mxu1 %v6041_v21  ;;  %3118 = vmatmul.bf16.gmra.mxu2 %v6309_v15  ;;  %v2322_v16 = vmul.f32 0.7978846, %v2258_v36  ;;  %v2472_v55 = vadd.f32 1.0, %v4584_v29  ;;  %v2224_v11 = vmul.f32 %v2160_v19, %v6085_v13 }
 0x31a   : > { %v4588_v34 = vpop.eup %4587  ;;  %v2073_v6 = vmul.f32 0.044715, %v6312_v33  ;;  %v2446_v24 = vadd.f32 1.0, %v4586_v23  ;;  %v2325_v44 = vmul.f32 0.7978846, %v2261_v39  ;;  %v2506_v51 = vmul.f32 %v2442_v63, %v1994_v42 }
 0x31b   : > { %v2134_v56 = vmul.f32 %v2070_v14, %v6307_v49  ;;  %v6344_v25 = vmul.f32 0.5, %v6085_v13  ;;  %v1736_v29 = vadd.f32 %v6125_v9, %v5807_v41  ;;  %v2449_v39 = vadd.f32 1.0, %v4588_v34 }
 0x31c   : > { %v2137_v8 = vmul.f32 %v2073_v6, %v6312_v33  ;;  %v1909_v45 = vpop.f32.mrf.mxu2  ;;  %v2510_v27 = vmul.f32 %v2446_v24, %v1998_v59  ;;  %4591 = vtanh.f32 %v2325_v44  ;;  %v6354_v42 = vmul.f32 %v2472_v55, %v6263_v43 }
 0x31d   : > { %v1910_v30 = vadd.f32 %v1909_v45, %v6146_v20  ;;  %v1958_v52 = vpop.f32.mrf.mxu3  ;;  %v1813_v38 = vpop.f32.mrf.mxu0  ;;  %v2198_v32 = vmul.f32 %v2134_v56, %v6307_v49  ;;  %4593 = vtanh.f32 %v2322_v16  ;;  %v2288_v6 = vadd.f32 %v2224_v11, %v6085_v13  ;;  %v4263_v11 = vld [vmem:[%s4915_s11 + $0x1c8] sm:$0xf0] }
 0x31e   : > { %v1814_v31 = vadd.f32 %v1813_v38, %v6113_v7  ;;  %v1862_v17 = vpop.f32.mrf.mxu1  ;;  %v6336_v50 = vpack.c.bf16 %v2510_v27, %v2506_v51  ;;  %v2201_v2 = vmul.f32 %v2137_v8, %v6312_v33  ;;  %v4590_v19 = vpop.eup %4589  ;;  %v2001_v9 = vmul.f32 0.5, %v6248_v58  ;;  %v4418_v58 = vld [vmem:[%s4915_s11 + $0x144] sm:$0xf]  ;;  %v4199_v51 = vld [vmem:[%s4915_s11 + $0x148] sm:$0xf0] }
 0x31f   : > { %v6340_v62 = vadd.f32 %v1958_v52, %v1910_v30  ;;  %v2262_v36 = vadd.f32 %v2198_v32, %v6307_v49  ;;  %v2292_v24 = vadd.f32 %v2228_v4, %v6268_v61  ;;  %v2005_v56 = vmul.f32 0.5, %v6280_v3  ;;  %v4434_v27 = vld [vmem:[%s4915_s11 + $0x1c4] sm:$0xf] }
 0x320   : > { %v6348_v63 = vadd.f32 %v1862_v17, %v1814_v31  ;;  %3167 = vmatmul.bf16.gmra.mxu3 %v6336_v50  ;;  %v2265_v23 = vadd.f32 %v2201_v2, %v6312_v33  ;;  %v6363_v43 = vadd.f32 %v6130_v5, %v1736_v29  ;;  %v2513_v45 = vmul.f32 %v2449_v39, %v2001_v9  ;;  %v4386_v31 = vld [vmem:[%s4915_s11 + $0x44] sm:$0xf]  ;;  %v4071_v17 = vld [vmem:[%s4915_s11 + $0x48] sm:$0xf0] }
 0x321   : > { %v2074_v60 = vmul.f32 0.044715, %v6340_v62  ;;  %v2326_v14 = vmul.f32 0.7978846, %v2262_v36  ;;  %v4202_v5 = vor.u32 %v4418_v58, %v4199_v51  ;;  %v4266_v29 = vor.u32 %v4434_v27, %v4263_v11 }
 0x322   : > { %v4592_v59 = vpop.eup %4591  ;;  %v2077_v41 = vmul.f32 0.044715, %v6348_v63  ;;  %v2329_v34 = vmul.f32 0.7978846, %v2265_v23  ;;  %v4074_v39 = vor.u32 %v4386_v31, %v4071_v17  ;;  %v4402_v23 = vld [vmem:[%s4915_s11 + $0xc4] sm:$0xf] }
 0x323   : > { %v2138_v44 = vmul.f32 %v2074_v60, %v6340_v62  ;;  %v2453_v16 = vadd.f32 1.0, %v4592_v59  ;;  %4595 = vtanh.f32 %v2326_v14  ;;  %v4594_v30 = vpop.eup %4593  ;;  %v4135_v60 = vld [vmem:[%s4915_s11 + $0xc8] sm:$0xf0]  ;;  %3304 = vmatpush.bf16.msrb.mxu2 %v4202_v5  ;;  %3353 = vmatpush.bf16.msrb.mxu3 %v4266_v29  ;;  %v2476_v58 = vadd.f32 1.0, %v4590_v19 }
 0x324   : > { %v2141_v13 = vmul.f32 %v2077_v41, %v6348_v63  ;;  %v1911_v8 = vpop.f32.mrf.mxu2  ;;  %4597 = vtanh.f32 %v2329_v34  ;;  %v4138_v9 = vor.u32 %v4402_v23, %v4135_v60  ;;  %v2104_v34 = vmul.f32 0.044715, %v6107_v35  ;;  %3206 = vmatpush.bf16.msrb.mxu0 %v4074_v39 }
 0x325   : > { %v1912_v3 = vadd.f32 %v1911_v8, %v6146_v20  ;;  %v1960_v52 = vpop.f32.mrf.mxu3  ;;  %v1816_v38 = vpop.f32.mrf.mxu0  ;;  %v2517_v32 = vmul.f32 %v2453_v16, %v2005_v56  ;;  %v2202_v55 = vmul.f32 %v2138_v44, %v6340_v62  ;;  %v2450_v56 = vadd.f32 1.0, %v4594_v30 }
 0x326   : > { %v1817_v2 = vadd.f32 %v1816_v38, %v6113_v7  ;;  %v1865_v4 = vpop.f32.mrf.mxu1  ;;  %v2205_v36 = vmul.f32 %v2141_v13, %v6348_v63  ;;  %v2356_v51 = vmul.f32 0.7978846, %v2292_v24  ;;  %3255 = vmatpush.bf16.msrb.mxu1 %v4138_v9  ;;  %v2352_v11 = vmul.f32 0.7978846, %v2288_v6 }
 0x327   : > { %v6378_v14 = vadd.f32 %v1960_v52, %v1912_v3  ;;  %v6380_v59 = vpack.c.bf16 %v2517_v32, %v2513_v45  ;;  %v2266_v41 = vadd.f32 %v2202_v55, %v6340_v62  ;;  %v2002_v45 = vmul.f32 0.5, %v6277_v54 }
 0x328   : > { %v6384_v44 = vadd.f32 %v1865_v4, %v1817_v2  ;;  %3035 = vmatmul.bf16.gmra.mxu0 %v6070_v53  ;;  %v2269_v16 = vadd.f32 %v2205_v36, %v6348_v63  ;;  %v2006_v52 = vmul.f32 0.5, %v6307_v49  ;;  %v2108_v32 = vmul.f32 0.044715, %v6363_v43 }
 0x329   : > { %v4596_v13 = vpop.eup %4595  ;;  %v2078_v8 = vmul.f32 0.044715, %v6378_v14  ;;  %3084 = vmatmul.bf16.gmra.mxu1 %v6328_v40  ;;  %3123 = vmatmul.bf16.gmra.mxu2 %v6380_v59  ;;  %v2330_v55 = vmul.f32 0.7978846, %v2266_v41  ;;  %v2514_v19 = vmul.f32 %v2450_v56, %v2002_v45  ;;  %v2168_v17 = vmul.f32 %v2104_v34, %v6107_v35 }
 0x32a   : > { %v4598_v27 = vpop.eup %4597  ;;  %v2081_v3 = vmul.f32 0.044715, %v6384_v44  ;;  %v2454_v30 = vadd.f32 1.0, %v4596_v13  ;;  %v2333_v38 = vmul.f32 0.7978846, %v2269_v16  ;;  %v2540_v36 = vmul.f32 %v2476_v58, %v6317_v12 }
 0x32b   : > { %v2142_v5 = vmul.f32 %v2078_v8, %v6378_v14  ;;  %v6409_v34 = vmul.f32 0.5, %v6268_v61  ;;  %v2172_v12 = vmul.f32 %v2108_v32, %v6363_v43  ;;  %v2457_v16 = vadd.f32 1.0, %v4598_v27 }
 0x32c   : > { %v2145_v31 = vmul.f32 %v2081_v3, %v6384_v44  ;;  %v1914_v54 = vpop.f32.mrf.mxu2  ;;  %v2518_v24 = vmul.f32 %v2454_v30, %v2006_v52  ;;  %4599 = vtanh.f32 %v2333_v38  ;;  %v6418_v45 = vpack.c.bf16 %v2540_v36, %v6354_v42 }
 0x32d   : > { %v1915_v49 = vadd.f32 %v1914_v54, %v6146_v20  ;;  %v1963_v2 = vpop.f32.mrf.mxu3  ;;  %v1818_v4 = vpop.f32.mrf.mxu0  ;;  %v2206_v29 = vmul.f32 %v2142_v5, %v6378_v14  ;;  %4601 = vtanh.f32 %v2356_v51  ;;  %v2009_v3 = vmul.f32 0.5, %v6312_v33  ;;  %v4191_v33 = vld [vmem:[%s4915_s11 + $0x138] sm:$0xf0]  ;;  %v4432_v54 = vld [vmem:[%s4915_s11 + $0x1b4] sm:$0xf] }
 0x32e   : > { %v1819_v39 = vadd.f32 %v1818_v4, %v6113_v7  ;;  %v1867_v23 = vpop.f32.mrf.mxu1  ;;  %v6402_v6 = vpack.c.bf16 %v2518_v24, %v2514_v19  ;;  %v2209_v60 = vmul.f32 %v2145_v31, %v6384_v44  ;;  %4603 = vtanh.f32 %v2330_v55  ;;  %v4416_v31 = vld [vmem:[%s4915_s11 + $0x134] sm:$0xf] }
 0x32f   : > { %v6405_v41 = vadd.f32 %v1963_v2, %v1915_v49  ;;  %v2270_v9 = vadd.f32 %v2206_v29, %v6378_v14  ;;  %4605 = vtanh.f32 %v2352_v11  ;;  %v2232_v27 = vmul.f32 %v2168_v17, %v6107_v35  ;;  %v4255_v29 = vld [vmem:[%s4915_s11 + $0x1b8] sm:$0xf0] }
 0x330   : > { %v6412_v56 = vadd.f32 %v1867_v23, %v1819_v39  ;;  %3172 = vmatmul.bf16.gmra.mxu3 %v6402_v6  ;;  %v2273_v13 = vadd.f32 %v2209_v60, %v6384_v44  ;;  %v2013_v38 = vmul.f32 0.5, %v6348_v63  ;;  %v2521_v11 = vmul.f32 %v2457_v16, %v2009_v3  ;;  %v4384_v39 = vld [vmem:[%s4915_s11 + $0x34] sm:$0xf]  ;;  %v4063_v23 = vld [vmem:[%s4915_s11 + $0x38] sm:$0xf0] }
 0x331   : > { %v2082_v8 = vmul.f32 0.044715, %v6405_v41  ;;  %v2334_v58 = vmul.f32 0.7978846, %v2270_v9  ;;  %v2236_v19 = vmul.f32 %v2172_v12, %v6363_v43  ;;  %v4194_v4 = vor.u32 %v4416_v31, %v4191_v33 }
 0x332   : > { %v4600_v61 = vpop.eup %4599  ;;  %v2085_v51 = vmul.f32 0.044715, %v6412_v56  ;;  %v2337_v52 = vmul.f32 0.7978846, %v2273_v13  ;;  %v4258_v12 = vor.u32 %v4432_v54, %v4255_v29  ;;  %v4066_v13 = vor.u32 %v4384_v39, %v4063_v23 }
 0x333   : > { %v2146_v30 = vmul.f32 %v2082_v8, %v6405_v41  ;;  %v2461_v32 = vadd.f32 1.0, %v4600_v61  ;;  %4607 = vtanh.f32 %v2334_v58  ;;  %v4602_v42 = vpop.eup %4601  ;;  %v4400_v8 = vld [vmem:[%s4915_s11 + $0xb4] sm:$0xf]  ;;  %v4127_v58 = vld [vmem:[%s4915_s11 + $0xb8] sm:$0xf0]  ;;  %3305 = vmatpush.bf16.msrb.mxu2 %v4194_v4  ;;  %v2300_v29 = vadd.f32 %v2236_v19, %v6363_v43 }
 0x334   : > { %v2149_v5 = vmul.f32 %v2085_v51, %v6412_v56  ;;  %v1916_v55 = vpop.f32.mrf.mxu2  ;;  %4609 = vtanh.f32 %v2337_v52  ;;  %v4604_v24 = vpop.eup %4603  ;;  %3354 = vmatpush.bf16.msrb.mxu3 %v4258_v12  ;;  %v2484_v54 = vadd.f32 1.0, %v4602_v42  ;;  %3207 = vmatpush.bf16.msrb.mxu0 %v4066_v13 }
 0x335   : > { %v1917_v63 = vadd.f32 %v1916_v55, %v6146_v20  ;;  %v1965_v17 = vpop.f32.mrf.mxu3  ;;  %v1821_v49 = vpop.f32.mrf.mxu0  ;;  %v2525_v2 = vmul.f32 %v2461_v32, %v2013_v38  ;;  %v2210_v36 = vmul.f32 %v2146_v30, %v6405_v41  ;;  %v4130_v30 = vor.u32 %v4400_v8, %v4127_v58 }
 0x336   : > { %v1822_v60 = vadd.f32 %v1821_v49, %v6113_v7  ;;  %v1870_v9 = vpop.f32.mrf.mxu1  ;;  %v2213_v16 = vmul.f32 %v2149_v5, %v6412_v56  ;;  %v4606_v61 = vpop.eup %4605  ;;  %v2458_v32 = vadd.f32 1.0, %v4604_v24  ;;  %v2296_v55 = vadd.f32 %v2232_v27, %v6107_v35 }
 0x337   : > { %v6439_v51 = vadd.f32 %v1965_v17, %v1917_v63  ;;  %v6441_v3 = vpack.c.bf16 %v2525_v2, %v2521_v11  ;;  %v2274_v52 = vadd.f32 %v2210_v36, %v6405_v41  ;;  %v2010_v11 = vmul.f32 0.5, %v6340_v62  ;;  %3256 = vmatpush.bf16.msrb.mxu1 %v4130_v30 }
 0x338   : > { %v6444_v38 = vadd.f32 %v1870_v9, %v1822_v60  ;;  %3040 = vmatmul.bf16.gmra.mxu0 %v6098_v48  ;;  %v2277_v5 = vadd.f32 %v2213_v16, %v6412_v56  ;;  %v2014_v24 = vmul.f32 0.5, %v6378_v14  ;;  %v2480_v36 = vadd.f32 1.0, %v4606_v61 }
 0x339   : > { %v4608_v31 = vpop.eup %4607  ;;  %v2086_v33 = vmul.f32 0.044715, %v6439_v51  ;;  %3089 = vmatmul.bf16.gmra.mxu1 %v6418_v45  ;;  %3128 = vmatmul.bf16.gmra.mxu2 %v6441_v3  ;;  %v2338_v63 = vmul.f32 0.7978846, %v2274_v52  ;;  %v2522_v42 = vmul.f32 %v2458_v32, %v2010_v11  ;;  %v2548_v16 = vmul.f32 %v2484_v54, %v6409_v34 }
 0x33a   : > { %v4610_v17 = vpop.eup %4609  ;;  %v2089_v49 = vmul.f32 0.044715, %v6444_v38  ;;  %v2462_v2 = vadd.f32 1.0, %v4608_v31  ;;  %v2341_v4 = vmul.f32 0.7978846, %v2277_v5  ;;  %v2544_v30 = vmul.f32 %v2480_v36, %v6344_v25 }
 0x33b   : > { %v2150_v27 = vmul.f32 %v2086_v33, %v6439_v51  ;;  %4611 = vtanh.f32 %v2338_v63  ;;  %v2360_v13 = vmul.f32 0.7978846, %v2296_v55  ;;  %v2465_v34 = vadd.f32 1.0, %v4610_v17 }
 0x33c   : > { %v2153_v39 = vmul.f32 %v2089_v49, %v6444_v38  ;;  %v1919_v62 = vpop.f32.mrf.mxu2  ;;  %v2526_v23 = vmul.f32 %v2462_v2, %v2014_v24  ;;  %4613 = vtanh.f32 %v2341_v4  ;;  %v2364_v31 = vmul.f32 0.7978846, %v2300_v29  ;;  %v4382_v29 = vld [vmem:[%s4915_s11 + $0x24] sm:$0xf] }
 0x33d   : > { %v1920_v60 = vadd.f32 %v1919_v62, %v6146_v20  ;;  %v1968_v9 = vpop.f32.mrf.mxu3  ;;  %v1823_v14 = vpop.f32.mrf.mxu0  ;;  %v2214_v12 = vmul.f32 %v2150_v27, %v6439_v51  ;;  %v6474_v54 = vpack.c.bf16 %v2548_v16, %v2544_v30  ;;  %4615 = vtanh.f32 %v2360_v13  ;;  %v4430_v30 = vld [vmem:[%s4915_s11 + $0x1a4] sm:$0xf] }
 0x33e   : > { %v1824_v8 = vadd.f32 %v1823_v14, %v6113_v7  ;;  %v1872_v58 = vpop.f32.mrf.mxu1  ;;  %v6462_v61 = vpack.c.bf16 %v2526_v23, %v2522_v42  ;;  %v2217_v19 = vmul.f32 %v2153_v39, %v6444_v38  ;;  %v2017_v24 = vmul.f32 0.5, %v6384_v44  ;;  %v4055_v39 = vld [vmem:[%s4915_s11 + $0x28] sm:$0xf0] }
 0x33f   : > { %v6465_v52 = vadd.f32 %v1968_v9, %v1920_v60  ;;  %v2278_v32 = vadd.f32 %v2214_v12, %v6439_v51  ;;  %v2021_v17 = vmul.f32 0.5, %v6412_v56  ;;  %v4058_v44 = vor.u32 %v4382_v29, %v4055_v39  ;;  %v4398_v60 = vld [vmem:[%s4915_s11 + $0xa4] sm:$0xf]  ;;  %v4119_v9 = vld [vmem:[%s4915_s11 + $0xa8] sm:$0xf0] }
 0x340   : > { %v6469_v5 = vadd.f32 %v1872_v58, %v1824_v8  ;;  %3177 = vmatmul.bf16.gmra.mxu3 %v6462_v61  ;;  %v2281_v55 = vadd.f32 %v2217_v19, %v6444_v38  ;;  %v2529_v23 = vmul.f32 %v2465_v34, %v2017_v24  ;;  %v4414_v56 = vld [vmem:[%s4915_s11 + $0x124] sm:$0xf]  ;;  %v4122_v8 = vor.u32 %v4398_v60, %v4119_v9  ;;  %v4183_v58 = vld [vmem:[%s4915_s11 + $0x128] sm:$0xf0]  ;;  %v4111_v39 = vld [vmem:[%s4915_s11 + $0x98] sm:$0xf0] }
 0x341   : > { %v4612_v33 = vpop.eup %4611  ;;  %v2090_v11 = vmul.f32 0.044715, %v6465_v52  ;;  %v2342_v63 = vmul.f32 0.7978846, %v2278_v32  ;;  %v4247_v32 = vld [vmem:[%s4915_s11 + $0x1a8] sm:$0xf0]  ;;  %3208 = vmatpush.bf16.msrb.mxu0 %v4058_v44 }
 0x342   : > { %v4614_v25 = vpop.eup %4613  ;;  %v2093_v49 = vmul.f32 0.044715, %v6469_v5  ;;  %v2345_v2 = vmul.f32 0.7978846, %v2281_v55  ;;  %v2466_v36 = vadd.f32 1.0, %v4612_v33  ;;  %v4186_v33 = vor.u32 %v4414_v56, %v4183_v58  ;;  %3257 = vmatpush.bf16.msrb.mxu1 %v4122_v8 }
 0x343   : > { %v2154_v4 = vmul.f32 %v2090_v11, %v6465_v52  ;;  %v2469_v27 = vadd.f32 1.0, %v4614_v25  ;;  %4617 = vtanh.f32 %v2342_v63  ;;  %v4250_v11 = vor.u32 %v4430_v30, %v4247_v32  ;;  %v4380_v63 = vld [vmem:[%s4915_s11 + $0x14] sm:$0xf]  ;;  %v4047_v25 = vld [vmem:[%s4915_s11 + $0x18] sm:$0xf0]  ;;  %v4616_v24 = vpop.eup %4615 }
 0x344   : > { %v2157_v62 = vmul.f32 %v2093_v49, %v6469_v5  ;;  %v1921_v42 = vpop.f32.mrf.mxu2  ;;  %4619 = vtanh.f32 %v2364_v31  ;;  %v4396_v49 = vld [vmem:[%s4915_s11 + $0x94] sm:$0xf]  ;;  %v4050_v29 = vor.u32 %v4380_v63, %v4047_v25  ;;  %3306 = vmatpush.bf16.msrb.mxu2 %v4186_v33  ;;  %v4039_v30 = vld [vmem:[%s4915_s11 + $0x8] sm:$0xf0] }
 0x345   : > { %v1922_v14 = vadd.f32 %v1921_v42, %v6146_v20  ;;  %v1970_v16 = vpop.f32.mrf.mxu3  ;;  %v1826_v12 = vpop.f32.mrf.mxu0  ;;  %v2533_v13 = vmul.f32 %v2469_v27, %v2021_v17  ;;  %v2218_v19 = vmul.f32 %v2154_v4, %v6465_v52  ;;  %4621 = vtanh.f32 %v2345_v2  ;;  %3355 = vmatpush.bf16.msrb.mxu3 %v4250_v11 }
 0x346   : > { %v1827_v34 = vadd.f32 %v1826_v12, %v6113_v7  ;;  %v1875_v31 = vpop.f32.mrf.mxu1  ;;  %v2221_v55 = vmul.f32 %v2157_v62, %v6469_v5  ;;  %v4114_v44 = vor.u32 %v4396_v49, %v4111_v39  ;;  %3209 = vmatpush.bf16.msrb.mxu0 %v4050_v29 }
 0x347   : > { %v6496_v17 = vadd.f32 %v1970_v16, %v1922_v14  ;;  %v6498_v27 = vpack.c.bf16 %v2533_v13, %v2529_v23  ;;  %v2282_v4 = vadd.f32 %v2218_v19, %v6465_v52  ;;  %v2018_v23 = vmul.f32 0.5, %v6405_v41  ;;  %v4378_v19 = vld [vmem:[%s4915_s11 + $0x4] sm:$0xf] }
 0x348   : > { %v6502_v42 = vadd.f32 %v1875_v31, %v1827_v34  ;;  %3045 = vmatmul.bf16.gmra.mxu0 %v6134_v46  ;;  %v2285_v62 = vadd.f32 %v2221_v55, %v6469_v5  ;;  %v2022_v16 = vmul.f32 0.5, %v6439_v51  ;;  %3258 = vmatpush.bf16.msrb.mxu1 %v4114_v44  ;;  %v4042_v31 = vor.u32 %v4378_v19, %v4039_v30  ;;  %v4394_v51 = vld [vmem:[%s4915_s11 + $0x84] sm:$0xf]  ;;  %v4103_v55 = vld [vmem:[%s4915_s11 + $0x88] sm:$0xf0] }
 0x349   : > { %v4618_v60 = vpop.eup %4617  ;;  %v2094_v9 = vmul.f32 0.044715, %v6496_v17  ;;  %3094 = vmatmul.bf16.gmra.mxu1 %v6474_v54  ;;  %3133 = vmatmul.bf16.gmra.mxu2 %v6498_v27  ;;  %v2530_v8 = vmul.f32 %v2466_v36, %v2018_v23  ;;  %v2346_v58 = vmul.f32 0.7978846, %v2282_v4  ;;  %v4106_v25 = vor.u32 %v4394_v51, %v4103_v55  ;;  %v4239_v19 = vld [vmem:[%s4915_s11 + $0x198] sm:$0xf0] }
 0x34a   : > { %v4620_v56 = vpop.eup %4619  ;;  %v2097_v14 = vmul.f32 0.044715, %v6502_v42  ;;  %v2470_v2 = vadd.f32 1.0, %v4618_v60  ;;  %v2349_v12 = vmul.f32 0.7978846, %v2285_v62  ;;  %3210 = vmatpush.bf16.msrb.mxu0 %v4042_v31  ;;  %v2040_v31 = vmul.f32 0.5, %v6107_v35 }
 0x34b   : > { %v2158_v13 = vmul.f32 %v2094_v9, %v6496_v17  ;;  %v4622_v49 = vpop.eup %4621  ;;  %v2492_v62 = vadd.f32 1.0, %v4620_v56  ;;  %v2044_v9 = vmul.f32 0.5, %v6363_v43  ;;  %v2025_v55 = vmul.f32 0.5, %v6444_v38 }
 0x34c   : > { %v2161_v41 = vmul.f32 %v2097_v14, %v6502_v42  ;;  %v1924_v32 = vpop.f32.mrf.mxu2  ;;  %v2534_v34 = vmul.f32 %v2470_v2, %v2022_v16  ;;  %4623 = vtanh.f32 %v2349_v12  ;;  %3259 = vmatpush.bf16.msrb.mxu1 %v4106_v25  ;;  %v4412_v14 = vld [vmem:[%s4915_s11 + $0x114] sm:$0xf]  ;;  %v4175_v16 = vld [vmem:[%s4915_s11 + $0x118] sm:$0xf0]  ;;  %v2488_v12 = vadd.f32 1.0, %v4616_v24 }
 0x34d   : > { %v1925_v33 = vadd.f32 %v1924_v32, %v6146_v20  ;;  %v1973_v63 = vpop.f32.mrf.mxu3  ;;  %v1828_v11 = vpop.f32.mrf.mxu0  ;;  %v2222_v36 = vmul.f32 %v2158_v13, %v6496_v17  ;;  %4625 = vtanh.f32 %v2346_v58  ;;  %v4178_v13 = vor.u32 %v4412_v14, %v4175_v16 }
 0x34e   : > { %v1829_v4 = vadd.f32 %v1828_v11, %v6113_v7  ;;  %v1877_v29 = vpop.f32.mrf.mxu1  ;;  %v6521_v39 = vpack.c.bf16 %v2534_v34, %v2530_v8  ;;  %v2225_v44 = vmul.f32 %v2161_v41, %v6502_v42  ;;  %v4428_v8 = vld [vmem:[%s4915_s11 + $0x194] sm:$0xf]  ;;  %v2473_v41 = vadd.f32 1.0, %v4622_v49 }
 0x34f   : > { %v6524_v60 = vadd.f32 %v1973_v63, %v1925_v33  ;;  %v2286_v23 = vadd.f32 %v2222_v36, %v6496_v17  ;;  %v4242_v32 = vor.u32 %v4428_v8, %v4239_v19  ;;  %v2556_v51 = vmul.f32 %v2492_v62, %v2044_v9  ;;  %3307 = vmatpush.bf16.msrb.mxu2 %v4178_v13 }
 0x350   : > { %v6530_v2 = vadd.f32 %v1877_v29, %v1829_v4  ;;  %3182 = vmatmul.bf16.gmra.mxu3 %v6521_v39  ;;  %v2289_v56 = vadd.f32 %v2225_v44, %v6502_v42  ;;  %v2029_v33 = vmul.f32 0.5, %v6469_v5  ;;  %v2552_v25 = vmul.f32 %v2488_v12, %v2040_v31 }
 0x351   : > { %v2098_v30 = vmul.f32 0.044715, %v6524_v60  ;;  %v2350_v43 = vmul.f32 0.7978846, %v2286_v23  ;;  %3356 = vmatpush.bf16.msrb.mxu3 %v4242_v32  ;;  %v2537_v44 = vmul.f32 %v2473_v41, %v2025_v55  ;;  %v2026_v32 = vmul.f32 0.5, %v6465_v52 }
 0x352   : > { %v4624_v34 = vpop.eup %4623  ;;  %v2101_v58 = vmul.f32 0.044715, %v6530_v2  ;;  %v2353_v49 = vmul.f32 0.7978846, %v2289_v56  ;;  %v6549_v13 = vpack.c.bf16 %v2556_v51, %v2552_v25 }
 0x353   : > { %v2162_v24 = vmul.f32 %v2098_v30, %v6524_v60  ;;  %v2477_v63 = vadd.f32 1.0, %v4624_v34  ;;  %4627 = vtanh.f32 %v2350_v43  ;;  %v4626_v4 = vpop.eup %4625 }
 0x354   : > { %v2165_v11 = vmul.f32 %v2101_v58, %v6530_v2  ;;  %v1926_v36 = vpop.f32.mrf.mxu2  ;;  %v2474_v19 = vadd.f32 1.0, %v4626_v4  ;;  %4629 = vtanh.f32 %v2353_v49  ;;  %v2030_v58 = vmul.f32 0.5, %v6496_v17 }
 0x355   : > { %v1927_v29 = vadd.f32 %v1926_v36, %v6146_v20  ;;  %v1975_v35 = vpop.f32.mrf.mxu3  ;;  %v1831_v62 = vpop.f32.mrf.mxu0  ;;  %v2541_v38 = vmul.f32 %v2477_v63, %v2029_v33  ;;  %v2226_v9 = vmul.f32 %v2162_v24, %v6524_v60 }
 0x356   : > { %v1832_v23 = vadd.f32 %v1831_v62, %v6113_v7  ;;  %v1880_v5 = vpop.f32.mrf.mxu1  ;;  %v2229_v14 = vmul.f32 %v2165_v11, %v6530_v2  ;;  %v2538_v11 = vmul.f32 %v2474_v19, %v2026_v32 }
 0x357   : > { %v6547_v16 = vadd.f32 %v1975_v35, %v1927_v29  ;;  %v6551_v12 = vpack.c.bf16 %v2541_v38, %v2537_v44  ;;  %v2290_v56 = vadd.f32 %v2226_v9, %v6524_v60 }
 0x358   : > { %v6554_v8 = vadd.f32 %v1880_v5, %v1832_v23  ;;  %3050 = vmatmul.bf16.gmra.mxu0 %v6201_v26  ;;  %v2293_v30 = vadd.f32 %v2229_v14, %v6530_v2  ;;  %v4410_v23 = vld [vmem:[%s4915_s11 + $0x104] sm:$0xf]  ;;  %v4167_v5 = vld [vmem:[%s4915_s11 + $0x108] sm:$0xf0] }
 0x359   : > { %v4628_v41 = vpop.eup %4627  ;;  %v2102_v43 = vmul.f32 0.044715, %v6547_v16  ;;  %3099 = vmatmul.bf16.gmra.mxu1 %v6549_v13  ;;  %3138 = vmatmul.bf16.gmra.mxu2 %v6551_v12  ;;  %v2354_v24 = vmul.f32 0.7978846, %v2290_v56  ;;  %v4170_v19 = vor.u32 %v4410_v23, %v4167_v5 }
 0x35a   : > { %v2105_v34 = vmul.f32 0.044715, %v6554_v8  ;;  %v2478_v31 = vadd.f32 1.0, %v4628_v41  ;;  %v2357_v51 = vmul.f32 0.7978846, %v2293_v30  ;;  %v4630_v4 = vpop.eup %4629 }
 0x35b   : > { %v2166_v55 = vmul.f32 %v2102_v43, %v6547_v16  ;;  %v4426_v30 = vld [vmem:[%s4915_s11 + $0x184] sm:$0xf]  ;;  %v2481_v43 = vadd.f32 1.0, %v4630_v4  ;;  %3308 = vmatpush.bf16.msrb.mxu2 %v4170_v19 }
 0x35c   : > { %v2169_v33 = vmul.f32 %v2105_v34, %v6554_v8  ;;  %v1929_v63 = vpop.f32.mrf.mxu2  ;;  %v2542_v36 = vmul.f32 %v2478_v31, %v2030_v58  ;;  %4631 = vtanh.f32 %v2357_v51  ;;  %v2033_v51 = vmul.f32 0.5, %v6502_v42 }
 0x35d   : > { %v1930_v25 = vadd.f32 %v1929_v63, %v6146_v20  ;;  %v1978_v52 = vpop.f32.mrf.mxu3  ;;  %v1833_v49 = vpop.f32.mrf.mxu0  ;;  %v2230_v17 = vmul.f32 %v2166_v55, %v6547_v16  ;;  %4633 = vtanh.f32 %v2354_v24  ;;  %v2037_v24 = vmul.f32 0.5, %v6530_v2 }
 0x35e   : > { %v1834_v29 = vadd.f32 %v1833_v49, %v6113_v7  ;;  %v1882_v35 = vpop.f32.mrf.mxu1  ;;  %v6569_v62 = vpack.c.bf16 %v2542_v36, %v2538_v11  ;;  %v2233_v44 = vmul.f32 %v2169_v33, %v6554_v8  ;;  %v4231_v7 = vld [vmem:[%s4915_s11 + $0x188] sm:$0xf0] }
 0x35f   : > { %v6572_v38 = vadd.f32 %v1978_v52, %v1930_v25  ;;  %v2294_v9 = vadd.f32 %v2230_v17, %v6547_v16  ;;  %v4234_v34 = vor.u32 %v4426_v30, %v4231_v7  ;;  %v2545_v17 = vmul.f32 %v2481_v43, %v2033_v51 }
 0x360   : > { %v1883_v14 = vadd.f32 %v1882_v35, %v1834_v29  ;;  %3187 = vmatmul.bf16.gmra.mxu3 %v6569_v62  ;;  %v2297_v56 = vadd.f32 %v2233_v44, %v6554_v8  ;;  %v2034_v30 = vmul.f32 0.5, %v6524_v60  ;;  %v2038_v7 = vmul.f32 0.5, %v6547_v16 }
 0x361   : > { %v2106_v41 = vmul.f32 0.044715, %v6572_v38  ;;  %v2358_v32 = vmul.f32 0.7978846, %v2294_v9  ;;  %3357 = vmatpush.bf16.msrb.mxu3 %v4234_v34 }
 0x362   : > { %v4632_v58 = vpop.eup %4631  ;;  %v2109_v31 = vmul.f32 0.044715, %v1883_v14  ;;  %v2361_v36 = vmul.f32 0.7978846, %v2297_v56 }
 0x363   : > { %v2170_v55 = vmul.f32 %v2106_v41, %v6572_v38  ;;  %v2485_v33 = vadd.f32 1.0, %v4632_v58  ;;  %4635 = vtanh.f32 %v2358_v32  ;;  %v4634_v25 = vpop.eup %4633 }
 0x364   : > { %v2173_v63 = vmul.f32 %v2109_v31, %v1883_v14  ;;  %v1931_v11 = vpop.f32.mrf.mxu2  ;;  %v2482_v5 = vadd.f32 1.0, %v4634_v25  ;;  %4637 = vtanh.f32 %v2361_v36  ;;  %v2045_v36 = vmul.f32 0.5, %v1883_v14 }
 0x365   : > { %v1932_v52 = vadd.f32 %v1931_v11, %v6146_v20  ;;  %v6586_v49 = vpop.f32.mrf.mxu0  ;;  %v2549_v4 = vmul.f32 %v2485_v33, %v2037_v24  ;;  %v2234_v42 = vmul.f32 %v2170_v55, %v6572_v38  ;;  %v1980_v29 = vpop.f32.mrf.mxu3  ;;  %v2041_v11 = vmul.f32 0.5, %v6554_v8 }
 0x366   : > { %v6589_v35 = vpop.f32.mrf.mxu1  ;;  %v2237_v44 = vmul.f32 %v2173_v63, %v1883_v14  ;;  %v2546_v58 = vmul.f32 %v2482_v5, %v2034_v30  ;;  %v2042_v8 = vmul.f32 0.5, %v6572_v38 }
 0x367   : > { %v1981_v2 = vadd.f32 %v1980_v29, %v1932_v52  ;;  %v6591_v9 = vpack.c.bf16 %v2549_v4, %v2545_v17  ;;  %v2298_v23 = vadd.f32 %v2234_v42, %v6572_v38 }
 0x368   : > { %3211 = vmatmul.bf16.vlgmr.msrb.gmra.mxu0 %v5880_v10  ;;  %v2301_v56 = vadd.f32 %v2237_v44, %v1883_v14 }
 0x369   : > { %v4636_v20 = vpop.eup %4635  ;;  %v2110_v19 = vmul.f32 0.044715, %v1981_v2  ;;  %3260 = vmatmul.bf16.vlgmr.msrb.gmra.mxu1 %v5899_v57  ;;  %3143 = vmatmul.bf16.gmra.mxu2 %v6591_v9  ;;  %v2362_v34 = vmul.f32 0.7978846, %v2298_v23  ;;  %v2046_v14 = vmul.f32 0.5, %v1981_v2 }
 0x36a   : > { %v2486_v41 = vadd.f32 1.0, %v4636_v20  ;;  %v2365_v43 = vmul.f32 0.7978846, %v2301_v56  ;;  %v4638_v55 = vpop.eup %4637 }
 0x36b   : > { %v2174_v32 = vmul.f32 %v2110_v19, %v1981_v2  ;;  %v2489_v60 = vadd.f32 1.0, %v4638_v55 }
 0x36c   : > { %v2550_v31 = vmul.f32 %v2486_v41, %v2038_v7  ;;  %4639 = vtanh.f32 %v2365_v43 }
 0x36d   : > { %v3018_v10 = vpop.f32.mrf.mxu0  ;;  %v2238_v51 = vmul.f32 %v2174_v32, %v1981_v2  ;;  %4641 = vtanh.f32 %v2362_v34  ;;  %v2553_v4 = vmul.f32 %v2489_v60, %v2041_v11  ;;  %v3066_v32 = vadd.f32 %v6589_v35, %v6586_v49  ;;  %v2561_v49 = vld [vmem:[#allocation3 + $0xd8] sm:$0xff] }
 0x36e   : > { %v3067_v24 = vpop.f32.mrf.mxu1  ;;  %v6599_v33 = vpack.c.bf16 %v2550_v31, %v2546_v58  ;;  %v2559_v58 = vld [vmem:[#allocation3 + $0xb0] sm:$0xff] }
 0x36f   : > { %v2302_v57 = vadd.f32 %v2238_v51, %v1981_v2 }
 0x370   : > { %3192 = vmatmul.bf16.gmra.mxu3 %v6599_v33 }
 0x371   : > { %v2366_v63 = vmul.f32 0.7978846, %v2302_v57 }
 0x372   : > { %v4640_v16 = vpop.eup %4639 }
 0x373   : > { %v2493_v25 = vadd.f32 1.0, %v4640_v16  ;;  %4643 = vtanh.f32 %v2366_v63  ;;  %v4642_v52 = vpop.eup %4641 }
 0x374   : > { %v2490_v23 = vadd.f32 1.0, %v4642_v52 }
 0x375   : > { %v3021_v17 = vpop.f32.mrf.mxu0  ;;  %v2557_v42 = vmul.f32 %v2493_v25, %v2045_v36 }
 0x376   : > { %v3070_v29 = vpop.f32.mrf.mxu1  ;;  %v2554_v20 = vmul.f32 %v2490_v23, %v2042_v8 }
 0x377   : > { %v6603_v44 = vpack.c.bf16 %v2557_v42, %v2553_v4  ;;  %v3071_v25 = vadd.f32 %v3070_v29, %v3021_v17  ;;  %v2565_v29 = vld [vmem:[#allocation3 + $0x30] sm:$0xff] }
 0x378   : > { %3216 = vmatmul.bf16.gmra.mxu0 %v5928_v0 }
 0x379   : > { %v4644_v5 = vpop.eup %4643  ;;  %3265 = vmatmul.bf16.gmra.mxu1 %v5947_v1  ;;  %3148 = vmatmul.bf16.gmra.mxu2 %v6603_v44 }
 0x37a   : > { %v2494_v56 = vadd.f32 1.0, %v4644_v5 }
 0x37c   : > { %v2558_v19 = vmul.f32 %v2494_v56, %v2046_v14 }
 0x37d   : > { %v3023_v30 = vpop.f32.mrf.mxu0 }
 0x37e   : > { %v3072_v7 = vpop.f32.mrf.mxu1  ;;  %v6609_v41 = vpack.c.bf16 %v2558_v19, %v2554_v20 }
 0x37f   : > { %v3073_v23 = vadd.f32 %v3072_v7, %v3023_v30  ;;  %v2567_v7 = vld [vmem:[#allocation3 + $0x80] sm:$0xff] }
 0x380   : > { %3197 = vmatmul.bf16.gmra.mxu3 %v6609_v41 }
 0x385   : > { %v3026_v43 = vpop.f32.mrf.mxu0 }
 0x386   : > { %v3075_v0 = vpop.f32.mrf.mxu1 }
 0x387   : > { %v3076_v19 = vadd.f32 %v3075_v0, %v3026_v43  ;;  %v2569_v0 = vld [vmem:[#allocation3 + $0xe8] sm:$0xff] }
 0x388   : > { %3221 = vmatmul.bf16.gmra.mxu0 %v5976_v47 }
 0x389   : > { %3270 = vmatmul.bf16.gmra.mxu1 %v5995_v22  ;;  %3309 = vmatmul.bf16.vlgmr.msrb.gmra.mxu2 %v6245_v18  ;;  %v3068_v22 = vadd.f32 %v3067_v24, %v3018_v10  ;;  %v2563_v24 = vld [vmem:[#allocation3 + $0x50] sm:$0xff] }
 0x38c   : > { %v3114_v1 = vpop.f32.mrf.mxu2 }
 0x38d   : > { %v3028_v38 = vpop.f32.mrf.mxu0  ;;  %v3115_v34 = vadd.f32 %v3114_v1, %v3066_v32 }
 0x38e   : > { %v3077_v2 = vpop.f32.mrf.mxu1 }
 0x390   : > { %3358 = vmatmul.bf16.vlgmr.msrb.gmra.mxu3 %v6273_v37 }
 0x393   : > { %v3163_v31 = vpop.f32.mrf.mxu3 }
 0x394   : > { %v3164_v51 = vadd.f32 %v3163_v31, %v3115_v34  ;;  %v3116_v55 = vpop.f32.mrf.mxu2 }
 0x395   : > { %v6618_v57 = vpop.f32.mrf.mxu0  ;;  %v3117_v18 = vadd.f32 %v3116_v55, %v3068_v22 }
 0x396   : > { %v3399_v47 = vadd.f32 %v3164_v51, %v2559_v58  ;;  %v3080_v60 = vpop.f32.mrf.mxu1  ;;  %v3078_v58 = vadd.f32 %v3077_v2, %v3028_v38  ;;  %v2571_v2 = vld [vmem:[#allocation3 + $0x60] sm:$0xff] }
 0x398   : > { %3431 = vst [vmem:[#allocation3 + $0xb0] sm:$0xff] %v3399_v47  ;;  %3226 = vmatmul.bf16.gmra.mxu0 %v6022_v28 }
 0x399   : > { %3275 = vmatmul.bf16.gmra.mxu1 %v6041_v21  ;;  %3314 = vmatmul.bf16.gmra.mxu2 %v6309_v15 }
 0x39b   : > { %v3165_v37 = vpop.f32.mrf.mxu3 }
 0x39c   : > { %v3166_v35 = vadd.f32 %v3165_v37, %v3117_v18  ;;  %v3119_v63 = vpop.f32.mrf.mxu2  ;;  %v3081_v18 = vadd.f32 %v3080_v60, %v6618_v57  ;;  %v2573_v60 = vld [vmem:[#allocation3 + $0x8] sm:$0xff] }
 0x39d   : > { %v3033_v16 = vpop.f32.mrf.mxu0  ;;  %v3120_v10 = vadd.f32 %v3119_v63, %v3071_v25 }
 0x39e   : > { %v3401_v11 = vadd.f32 %v3166_v35, %v2561_v49  ;;  %v3082_v36 = vpop.f32.mrf.mxu1 }
 0x39f   : > { %v3083_v63 = vadd.f32 %v3082_v36, %v3033_v16  ;;  %v2575_v36 = vld [vmem:[#allocation3 + $0x38] sm:$0xff] }
 0x3a0   : > { %3433 = vst [vmem:[#allocation3 + $0xd8] sm:$0xff] %v3401_v11  ;;  %3363 = vmatmul.bf16.gmra.mxu3 %v6336_v50 }
 0x3a3   : > { %v3168_v52 = vpop.f32.mrf.mxu3 }
 0x3a4   : > { %v3169_v28 = vadd.f32 %v3168_v52, %v3120_v10  ;;  %v3121_v4 = vpop.f32.mrf.mxu2 }
 0x3a5   : > { %v3036_v21 = vpop.f32.mrf.mxu0  ;;  %v3122_v17 = vadd.f32 %v3121_v4, %v3073_v23 }
 0x3a6   : > { %v3403_v42 = vadd.f32 %v3169_v28, %v2563_v24  ;;  %v3085_v15 = vpop.f32.mrf.mxu1 }
 0x3a7   : > { %v3086_v24 = vadd.f32 %v3085_v15, %v3036_v21 }
 0x3a8   : > { %3435 = vst [vmem:[#allocation3 + $0x50] sm:$0xff] %v3403_v42  ;;  %3231 = vmatmul.bf16.gmra.mxu0 %v6070_v53 }
 0x3a9   : > { %3280 = vmatmul.bf16.gmra.mxu1 %v6328_v40  ;;  %3319 = vmatmul.bf16.gmra.mxu2 %v6380_v59 }
 0x3ab   : > { %v3170_v5 = vpop.f32.mrf.mxu3 }
 0x3ac   : > { %v3171_v50 = vadd.f32 %v3170_v5, %v3122_v17  ;;  %v3124_v8 = vpop.f32.mrf.mxu2  ;;  %v2577_v17 = vld [vmem:[#allocation3 + $0x40] sm:$0xff] }
 0x3ad   : > { %v3038_v14 = vpop.f32.mrf.mxu0  ;;  %v3125_v30 = vadd.f32 %v3124_v8, %v3076_v19 }
 0x3ae   : > { %v3405_v56 = vadd.f32 %v3171_v50, %v2565_v29  ;;  %v3087_v20 = vpop.f32.mrf.mxu1 }
 0x3af   : > { %v3088_v23 = vadd.f32 %v3087_v20, %v3038_v14 }
 0x3b0   : > { %3437 = vst [vmem:[#allocation3 + $0x30] sm:$0xff] %v3405_v56  ;;  %3368 = vmatmul.bf16.gmra.mxu3 %v6402_v6  ;;  %v2579_v56 = vld [vmem:[#allocation3 + $0xe0] sm:$0xff] }
 0x3b3   : > { %v3173_v1 = vpop.f32.mrf.mxu3 }
 0x3b4   : > { %v3174_v53 = vadd.f32 %v3173_v1, %v3125_v30  ;;  %v3126_v32 = vpop.f32.mrf.mxu2 }
 0x3b5   : > { %v3041_v40 = vpop.f32.mrf.mxu0  ;;  %v3127_v43 = vadd.f32 %v3126_v32, %v3078_v58 }
 0x3b6   : > { %v3407_v34 = vadd.f32 %v3174_v53, %v2567_v7  ;;  %v3090_v59 = vpop.f32.mrf.mxu1  ;;  %v2581_v53 = vld [vmem:[#allocation3 + $0x70] sm:$0xff] }
 0x3b7   : > { %v3091_v8 = vadd.f32 %v3090_v59, %v3041_v40 }
 0x3b8   : > { %3439 = vst [vmem:[#allocation3 + $0x80] sm:$0xff] %v3407_v34  ;;  %3236 = vmatmul.bf16.gmra.mxu0 %v6098_v48 }
 0x3b9   : > { %3285 = vmatmul.bf16.gmra.mxu1 %v6418_v45  ;;  %3324 = vmatmul.bf16.gmra.mxu2 %v6441_v3 }
 0x3bb   : > { %v3175_v31 = vpop.f32.mrf.mxu3 }
 0x3bc   : > { %v3176_v6 = vadd.f32 %v3175_v31, %v3127_v43  ;;  %v3129_v51 = vpop.f32.mrf.mxu2  ;;  %v2583_v31 = vld [vmem:[#allocation3 + $0xa8] sm:$0xff] }
 0x3bd   : > { %v3043_v55 = vpop.f32.mrf.mxu0  ;;  %v3130_v38 = vadd.f32 %v3129_v51, %v3081_v18 }
 0x3be   : > { %v3409_v47 = vadd.f32 %v3176_v6, %v2569_v0  ;;  %v3092_v22 = vpop.f32.mrf.mxu1 }
 0x3bf   : > { %v3093_v7 = vadd.f32 %v3092_v22, %v3043_v55 }
 0x3c0   : > { %3441 = vst [vmem:[#allocation3 + $0xe8] sm:$0xff] %v3409_v47  ;;  %3373 = vmatmul.bf16.gmra.mxu3 %v6462_v61 }
 0x3c3   : > { %v3178_v48 = vpop.f32.mrf.mxu3 }
 0x3c4   : > { %v3179_v49 = vadd.f32 %v3178_v48, %v3130_v38  ;;  %v3131_v45 = vpop.f32.mrf.mxu2 }
 0x3c5   : > { %v3046_v3 = vpop.f32.mrf.mxu0  ;;  %v3132_v57 = vadd.f32 %v3131_v45, %v3083_v63 }
 0x3c6   : > { %v3411_v37 = vadd.f32 %v3179_v49, %v2571_v2  ;;  %v3095_v35 = vpop.f32.mrf.mxu1  ;;  %v2585_v2 = vld [vmem:[#allocation3 + $0x10] sm:$0xff] }
 0x3c7   : > { %v3096_v43 = vadd.f32 %v3095_v35, %v3046_v3 }
 0x3c8   : > { %3443 = vst [vmem:[#allocation3 + $0x60] sm:$0xff] %v3411_v37  ;;  %3241 = vmatmul.bf16.gmra.mxu0 %v6134_v46 }
 0x3c9   : > { %3290 = vmatmul.bf16.gmra.mxu1 %v6474_v54  ;;  %3329 = vmatmul.bf16.gmra.mxu2 %v6498_v27 }
 0x3cb   : > { %v3180_v11 = vpop.f32.mrf.mxu3 }
 0x3cc   : > { %v3181_v61 = vadd.f32 %v3180_v11, %v3132_v57  ;;  %v3134_v25 = vpop.f32.mrf.mxu2  ;;  %v2587_v57 = vld [vmem:[#allocation3 + $0xa0] sm:$0xff] }
 0x3cd   : > { %v3048_v52 = vpop.f32.mrf.mxu0  ;;  %v3135_v16 = vadd.f32 %v3134_v25, %v3086_v24  ;;  %v2589_v24 = vld [vmem:[#allocation3 + $0x20] sm:$0xff] }
 0x3ce   : > { %v3413_v10 = vadd.f32 %v3181_v61, %v2573_v60  ;;  %v3097_v28 = vpop.f32.mrf.mxu1 }
 0x3cf   : > { %v3098_v22 = vadd.f32 %v3097_v28, %v3048_v52 }
 0x3d0   : > { %3445 = vst [vmem:[#allocation3 + $0x8] sm:$0xff] %v3413_v10  ;;  %3378 = vmatmul.bf16.gmra.mxu3 %v6521_v39 }
 0x3d3   : > { %v3183_v4 = vpop.f32.mrf.mxu3 }
 0x3d4   : > { %v3184_v46 = vadd.f32 %v3183_v4, %v3135_v16  ;;  %v3136_v42 = vpop.f32.mrf.mxu2 }
 0x3d5   : > { %v3137_v27 = vadd.f32 %v3136_v42, %v3088_v23  ;;  %v3051_v21 = vpop.f32.mrf.mxu0 }
 0x3d6   : > { %v3415_v54 = vadd.f32 %v3184_v46, %v2575_v36  ;;  %v3100_v15 = vpop.f32.mrf.mxu1 }
 0x3d7   : > { %v3101_v3 = vadd.f32 %v3100_v15, %v3051_v21 }
 0x3d8   : > { %3447 = vst [vmem:[#allocation3 + $0x38] sm:$0xff] %v3415_v54  ;;  %3246 = vmatmul.bf16.gmra.mxu0 %v6201_v26  ;;  %v2560_v54 = vld [vmem:[#allocation3] sm:$0xff] }
 0x3d9   : > { %3295 = vmatmul.bf16.gmra.mxu1 %v6549_v13  ;;  %3334 = vmatmul.bf16.gmra.mxu2 %v6551_v12 }
 0x3db   : > { %v3185_v39 = vpop.f32.mrf.mxu3 }
 0x3dc   : > { %v3186_v29 = vadd.f32 %v3185_v39, %v3137_v27  ;;  %v3139_v5 = vpop.f32.mrf.mxu2 }
 0x3dd   : > { %v3140_v14 = vadd.f32 %v3139_v5, %v3091_v8  ;;  %v3053_v26 = vpop.f32.mrf.mxu0 }
 0x3de   : > { %v3417_v50 = vadd.f32 %v3186_v29, %v2577_v17  ;;  %v3102_v30 = vpop.f32.mrf.mxu1 }
 0x3df   : > { %v3103_v10 = vadd.f32 %v3102_v30, %v3053_v26 }
 0x3e0   : > { %3449 = vst [vmem:[#allocation3 + $0x40] sm:$0xff] %v3417_v50  ;;  %3383 = vmatmul.bf16.gmra.mxu3 %v6569_v62  ;;  %v2562_v50 = vld [vmem:[#allocation3 + $0x18] sm:$0xff] }
 0x3e3   : > { %v3188_v20 = vpop.f32.mrf.mxu3 }
 0x3e4   : > { %v3189_v19 = vadd.f32 %v3188_v20, %v3140_v14  ;;  %v3141_v13 = vpop.f32.mrf.mxu2 }
 0x3e5   : > { %v3142_v1 = vadd.f32 %v3141_v13, %v3093_v7  ;;  %v3212_v59 = vpop.f32.mrf.mxu0 }
 0x3e6   : > { %v3419_v12 = vadd.f32 %v3189_v19, %v2579_v56  ;;  %v3261_v62 = vpop.f32.mrf.mxu1 }
 0x3e7   : > { %v3262_v42 = vadd.f32 %v3261_v62, %v3212_v59  ;;  %v2566_v62 = vld [vmem:[#allocation3 + $0x48] sm:$0xff] }
 0x3e8   : > { %3451 = vst [vmem:[#allocation3 + $0xe0] sm:$0xff] %v3419_v12  ;;  %v2564_v12 = vld [vmem:[#allocation3 + $0x68] sm:$0xff] }
 0x3e9   : > { %3339 = vmatmul.bf16.gmra.mxu2 %v6591_v9 }
 0x3eb   : > { %v3190_v32 = vpop.f32.mrf.mxu3 }
 0x3ec   : > { %v3191_v34 = vadd.f32 %v3190_v32, %v3142_v1  ;;  %v3144_v40 = vpop.f32.mrf.mxu2 }
 0x3ed   : > { %v3145_v0 = vadd.f32 %v3144_v40, %v3096_v43  ;;  %v3214_v9 = vpop.f32.mrf.mxu0 }
 0x3ee   : > { %v3421_v58 = vadd.f32 %v3191_v34, %v2581_v53  ;;  %v3263_v18 = vpop.f32.mrf.mxu1 }
 0x3ef   : > { %v3264_v29 = vadd.f32 %v3263_v18, %v3214_v9 }
 0x3f0   : > { %3453 = vst [vmem:[#allocation3 + $0x70] sm:$0xff] %v3421_v58  ;;  %3388 = vmatmul.bf16.gmra.mxu3 %v6599_v33 }
 0x3f3   : > { %v3193_v6 = vpop.f32.mrf.mxu3 }
 0x3f4   : > { %v3194_v51 = vadd.f32 %v3193_v6, %v3145_v0  ;;  %v3146_v55 = vpop.f32.mrf.mxu2 }
 0x3f5   : > { %v3147_v38 = vadd.f32 %v3146_v55, %v3098_v22  ;;  %v3217_v33 = vpop.f32.mrf.mxu0 }
 0x3f6   : > { %v3423_v47 = vadd.f32 %v3194_v51, %v2583_v31  ;;  %v3266_v63 = vpop.f32.mrf.mxu1 }
 0x3f7   : > { %v3267_v26 = vadd.f32 %v3266_v63, %v3217_v33 }
 0x3f8   : > { %3455 = vst [vmem:[#allocation3 + $0xa8] sm:$0xff] %v3423_v47  ;;  %v2568_v47 = vld [vmem:[#allocation3 + $0x88] sm:$0xff] }
 0x3f9   : > { %3344 = vmatmul.bf16.gmra.mxu2 %v6603_v44 }
 0x3fb   : > { %v3195_v48 = vpop.f32.mrf.mxu3 }
 0x3fc   : > { %v3196_v49 = vadd.f32 %v3195_v48, %v3147_v38  ;;  %v3149_v45 = vpop.f32.mrf.mxu2 }
 0x3fd   : > { %v3150_v35 = vadd.f32 %v3149_v45, %v3101_v3  ;;  %v3219_v28 = vpop.f32.mrf.mxu0 }
 0x3fe   : > { %v3425_v37 = vadd.f32 %v3196_v49, %v2585_v2  ;;  %v3268_v4 = vpop.f32.mrf.mxu1 }
 0x3ff   : > { %v3269_v34 = vadd.f32 %v3268_v4, %v3219_v28 }
 0x400   : > { %3457 = vst [vmem:[#allocation3 + $0x10] sm:$0xff] %v3425_v37  ;;  %3393 = vmatmul.bf16.gmra.mxu3 %v6609_v41  ;;  %v2570_v37 = vld [vmem:[#allocation3 + $0xb8] sm:$0xff] }
 0x403   : > { %v3198_v60 = vpop.f32.mrf.mxu3 }
 0x404   : > { %v3199_v11 = vadd.f32 %v3198_v60, %v3150_v35  ;;  %v3151_v61 = vpop.f32.mrf.mxu2 }
 0x405   : > { %v3152_v44 = vadd.f32 %v3151_v61, %v3103_v10  ;;  %v3222_v15 = vpop.f32.mrf.mxu0 }
 0x406   : > { %v3427_v25 = vadd.f32 %v3199_v11, %v2587_v57  ;;  %v3271_v39 = vpop.f32.mrf.mxu1 }
 0x407   : > { %v3272_v51 = vadd.f32 %v3271_v39, %v3222_v15  ;;  %v2576_v39 = vld [vmem:[#allocation3 + $0x58] sm:$0xff] }
 0x408   : > { %3459 = vst [vmem:[#allocation3 + $0xa0] sm:$0xff] %v3427_v25  ;;  %v2572_v25 = vld [vmem:[#allocation3 + $0xf0] sm:$0xff] }
 0x40b   : > { %v3200_v52 = vpop.f32.mrf.mxu3 }
 0x40c   : > { %v3201_v16 = vadd.f32 %v3200_v52, %v3152_v44  ;;  %v3310_v36 = vpop.f32.mrf.mxu2 }
 0x40d   : > { %v3311_v41 = vadd.f32 %v3310_v36, %v3262_v42  ;;  %v3224_v19 = vpop.f32.mrf.mxu0 }
 0x40e   : > { %v3429_v46 = vadd.f32 %v3201_v16, %v2589_v24  ;;  %v3273_v13 = vpop.f32.mrf.mxu1 }
 0x40f   : > { %v3274_v49 = vadd.f32 %v3273_v13, %v3224_v19 }
 0x410   : > { %3461 = vst [vmem:[#allocation3 + $0x20] sm:$0xff] %v3429_v46  ;;  %v2574_v46 = vld [vmem:[#allocation3 + $0x78] sm:$0xff] }
 0x413   : > { %v3359_v23 = vpop.f32.mrf.mxu3 }
 0x414   : > { %v3360_v27 = vadd.f32 %v3359_v23, %v3311_v41  ;;  %v3312_v21 = vpop.f32.mrf.mxu2 }
 0x415   : > { %v3313_v5 = vadd.f32 %v3312_v21, %v3264_v29  ;;  %v3227_v40 = vpop.f32.mrf.mxu0 }
 0x416   : > { %v3400_v17 = vadd.f32 %v3360_v27, %v2560_v54  ;;  %v3276_v58 = vpop.f32.mrf.mxu1 }
 0x417   : > { %v3277_v11 = vadd.f32 %v3276_v58, %v3227_v40 }
 0x418   : > { %3432 = vst [vmem:[#allocation3] sm:$0xff] %v3400_v17 }
 0x41b   : > { %v3361_v8 = vpop.f32.mrf.mxu3 }
 0x41c   : > { %v3362_v14 = vadd.f32 %v3361_v8, %v3313_v5  ;;  %v3315_v56 = vpop.f32.mrf.mxu2 }
 0x41d   : > { %v3316_v30 = vadd.f32 %v3315_v56, %v3267_v26  ;;  %v3229_v9 = vpop.f32.mrf.mxu0 }
 0x41e   : > { %v3402_v20 = vadd.f32 %v3362_v14, %v2562_v50  ;;  %v3278_v2 = vpop.f32.mrf.mxu1 }
 0x41f   : > { %v3279_v28 = vadd.f32 %v3278_v2, %v3229_v9 }
 0x420   : > { %3434 = vst [vmem:[#allocation3 + $0x18] sm:$0xff] %v3402_v20  ;;  %v2578_v20 = vld [vmem:[#allocation3 + $0xc8] sm:$0xff] }
 0x423   : > { %v3364_v7 = vpop.f32.mrf.mxu3 }
 0x424   : > { %v3365_v1 = vadd.f32 %v3364_v7, %v3316_v30  ;;  %v3317_v53 = vpop.f32.mrf.mxu2 }
 0x425   : > { %v3318_v59 = vadd.f32 %v3317_v53, %v3269_v34  ;;  %v3232_v63 = vpop.f32.mrf.mxu0 }
 0x426   : > { %v3404_v32 = vadd.f32 %v3365_v1, %v2564_v12  ;;  %v3281_v60 = vpop.f32.mrf.mxu1 }
 0x427   : > { %v3282_v27 = vadd.f32 %v3281_v60, %v3232_v63  ;;  %v2586_v60 = vld [vmem:[#allocation3 + $0x28] sm:$0xff] }
 0x428   : > { %3436 = vst [vmem:[#allocation3 + $0x68] sm:$0xff] %v3404_v32  ;;  %v2580_v32 = vld [vmem:[#allocation3 + $0x90] sm:$0xff] }
 0x42b   : > { %v3366_v43 = vpop.f32.mrf.mxu3 }
 0x42c   : > { %v3367_v0 = vadd.f32 %v3366_v43, %v3318_v59  ;;  %v3320_v31 = vpop.f32.mrf.mxu2 }
 0x42d   : > { %v3321_v55 = vadd.f32 %v3320_v31, %v3272_v51  ;;  %v3234_v16 = vpop.f32.mrf.mxu0 }
 0x42e   : > { %v3406_v6 = vadd.f32 %v3367_v0, %v2566_v62  ;;  %v3283_v36 = vpop.f32.mrf.mxu1 }
 0x42f   : > { %v3284_v14 = vadd.f32 %v3283_v36, %v3234_v16 }
 0x430   : > { %3438 = vst [vmem:[#allocation3 + $0x48] sm:$0xff] %v3406_v6  ;;  %v2582_v6 = vld [vmem:[#allocation3 + $0xc0] sm:$0xff] }
 0x433   : > { %v3369_v22 = vpop.f32.mrf.mxu3 }
 0x434   : > { %v3370_v18 = vadd.f32 %v3369_v22, %v3321_v55  ;;  %v3322_v38 = vpop.f32.mrf.mxu2 }
 0x435   : > { %v3323_v45 = vadd.f32 %v3322_v38, %v3274_v49  ;;  %v3237_v21 = vpop.f32.mrf.mxu0 }
 0x436   : > { %v3408_v48 = vadd.f32 %v3370_v18, %v2568_v47  ;;  %v3286_v17 = vpop.f32.mrf.mxu1 }
 0x437   : > { %v3287_v1 = vadd.f32 %v3286_v17, %v3237_v21 }
 0x438   : > { %3440 = vst [vmem:[#allocation3 + $0x88] sm:$0xff] %v3408_v48  ;;  %v2584_v48 = vld [vmem:[#allocation3 + $0xd0] sm:$0xff] }
 0x43b   : > { %v3371_v3 = vpop.f32.mrf.mxu3 }
 0x43c   : > { %v3372_v33 = vadd.f32 %v3371_v3, %v3323_v45  ;;  %v3325_v35 = vpop.f32.mrf.mxu2 }
 0x43d   : > { %v3326_v61 = vadd.f32 %v3325_v35, %v3277_v11  ;;  %v3239_v19 = vpop.f32.mrf.mxu0 }
 0x43e   : > { %v3410_v57 = vadd.f32 %v3372_v33, %v2570_v37  ;;  %v3288_v12 = vpop.f32.mrf.mxu1 }
 0x43f   : > { %v3289_v0 = vadd.f32 %v3288_v12, %v3239_v19 }
 0x440   : > { %3442 = vst [vmem:[#allocation3 + $0xb8] sm:$0xff] %v3410_v57 }
 0x443   : > { %v3374_v10 = vpop.f32.mrf.mxu3 }
 0x444   : > { %v3375_v44 = vadd.f32 %v3374_v10, %v3326_v61  ;;  %v3327_v24 = vpop.f32.mrf.mxu2 }
 0x445   : > { %v3328_v4 = vadd.f32 %v3327_v24, %v3279_v28  ;;  %v3242_v58 = vpop.f32.mrf.mxu0 }
 0x446   : > { %v3412_v52 = vadd.f32 %v3375_v44, %v2572_v25  ;;  %v3291_v43 = vpop.f32.mrf.mxu1 }
 0x447   : > { %v3292_v9 = vadd.f32 %v3291_v43, %v3242_v58 }
 0x448   : > { %3444 = vst [vmem:[#allocation3 + $0xf0] sm:$0xff] %v3412_v52  ;;  %v2588_v52 = vld [vmem:[#allocation3 + $0xf8] sm:$0xff] }
 0x44b   : > { %v3376_v42 = vpop.f32.mrf.mxu3 }
 0x44c   : > { %v3377_v41 = vadd.f32 %v3376_v42, %v3328_v4  ;;  %v3330_v54 = vpop.f32.mrf.mxu2 }
 0x44d   : > { %v3331_v15 = vadd.f32 %v3330_v54, %v3282_v27  ;;  %v3244_v18 = vpop.f32.mrf.mxu0 }
 0x44e   : > { %v3414_v23 = vadd.f32 %v3377_v41, %v2574_v46  ;;  %v3293_v38 = vpop.f32.mrf.mxu1 }
 0x44f   : > { %v3294_v33 = vadd.f32 %v3293_v38, %v3244_v18 }
 0x450   : > { %3446 = vst [vmem:[#allocation3 + $0x78] sm:$0xff] %v3414_v23  ;;  %v2590_v23 = vld [vmem:[#allocation3 + $0x98] sm:$0xff] }
 0x453   : > { %v3379_v29 = vpop.f32.mrf.mxu3 }
 0x454   : > { %v3380_v5 = vadd.f32 %v3379_v29, %v3331_v15  ;;  %v3332_v50 = vpop.f32.mrf.mxu2 }
 0x455   : > { %v3333_v56 = vadd.f32 %v3332_v50, %v3284_v14  ;;  %v3247_v35 = vpop.f32.mrf.mxu0 }
 0x456   : > { %v3416_v8 = vadd.f32 %v3380_v5, %v2576_v39  ;;  %v3296_v57 = vpop.f32.mrf.mxu1 }
 0x457   : > { %v3297_v44 = vadd.f32 %v3296_v57, %v3247_v35 }
 0x458   : > { %3448 = vst [vmem:[#allocation3 + $0x58] sm:$0xff] %v3416_v8 }
 0x45b   : > { %v3381_v26 = vpop.f32.mrf.mxu3 }
 0x45c   : > { %v3382_v13 = vadd.f32 %v3381_v26, %v3333_v56  ;;  %v3335_v30 = vpop.f32.mrf.mxu2 }
 0x45d   : > { %v3336_v53 = vadd.f32 %v3335_v30, %v3287_v1  ;;  %v3249_v36 = vpop.f32.mrf.mxu0 }
 0x45e   : > { %v3418_v7 = vadd.f32 %v3382_v13, %v2578_v20  ;;  %v3298_v4 = vpop.f32.mrf.mxu1 }
 0x45f   : > { %v3299_v41 = vadd.f32 %v3298_v4, %v3249_v36 }
 0x460   : > { %3450 = vst [vmem:[#allocation3 + $0xc8] sm:$0xff] %v3418_v7 }
 0x463   : > { %v3384_v34 = vpop.f32.mrf.mxu3 }
 0x464   : > { %v3385_v40 = vadd.f32 %v3384_v34, %v3336_v53  ;;  %v3337_v59 = vpop.f32.mrf.mxu2 }
 0x465   : > { %v3338_v31 = vadd.f32 %v3337_v59, %v3289_v0 }
 0x466   : > { %v3420_v62 = vadd.f32 %v3385_v40, %v2580_v32 }
 0x468   : > { %3452 = vst [vmem:[#allocation3 + $0x90] sm:$0xff] %v3420_v62 }
 0x46b   : > { %v3386_v51 = vpop.f32.mrf.mxu3 }
 0x46c   : > { %v3387_v55 = vadd.f32 %v3386_v51, %v3338_v31  ;;  %v3340_v47 = vpop.f32.mrf.mxu2 }
 0x46d   : > { %v3341_v2 = vadd.f32 %v3340_v47, %v3292_v9 }
 0x46e   : > { %v3422_v22 = vadd.f32 %v3387_v55, %v2582_v6 }
 0x470   : > { %3454 = vst [vmem:[#allocation3 + $0xc0] sm:$0xff] %v3422_v22 }
 0x473   : > { %v3389_v49 = vpop.f32.mrf.mxu3 }
 0x474   : > { %v3390_v45 = vadd.f32 %v3389_v49, %v3341_v2  ;;  %v3342_v37 = vpop.f32.mrf.mxu2 }
 0x475   : > { %v3343_v63 = vadd.f32 %v3342_v37, %v3294_v33 }
 0x476   : > { %v3424_v3 = vadd.f32 %v3390_v45, %v2584_v48 }
 0x478   : > { %3456 = vst [vmem:[#allocation3 + $0xd0] sm:$0xff] %v3424_v3 }
 0x47b   : > { %v3391_v11 = vpop.f32.mrf.mxu3 }
 0x47c   : > { %v3392_v61 = vadd.f32 %v3391_v11, %v3343_v63  ;;  %v3345_v25 = vpop.f32.mrf.mxu2 }
 0x47d   : > { %v3346_v24 = vadd.f32 %v3345_v25, %v3297_v44 }
 0x47e   : > { %v3426_v10 = vadd.f32 %v3392_v61, %v2586_v60 }
 0x480   : > { %3458 = vst [vmem:[#allocation3 + $0x28] sm:$0xff] %v3426_v10 }
 0x483   : > { %v3394_v28 = vpop.f32.mrf.mxu3 }
 0x484   : > { %v3395_v16 = vadd.f32 %v3394_v28, %v3346_v24  ;;  %v3347_v42 = vpop.f32.mrf.mxu2 }
 0x485   : > { %v3348_v54 = vadd.f32 %v3347_v42, %v3299_v41 }
 0x486   : > { %v3428_v46 = vadd.f32 %v3395_v16, %v2588_v52 }
 0x488   : > { %3460 = vst [vmem:[#allocation3 + $0xf8] sm:$0xff] %v3428_v46 }
 0x48b   : > { %v3396_v27 = vpop.f32.mrf.mxu3 }
 0x48c   : > { %v3397_v21 = vadd.f32 %v3396_v27, %v3348_v54  ;;  %3466 = sbr.rel (%p4291_p12) target bundleno = 1204 (0x4b4), region = 79 }
 0x48e   : > { %v3430_v15 = vadd.f32 %v3397_v21, %v2590_v23 }
 0x490   : > { %3462 = vst [vmem:[#allocation3 + $0x98] sm:$0xff] %v3430_v15 }
 0x491   : > { %v3467_v17 = vld [vmem:[#allocation3 + $0xb0] sm:$0xff]  ;;  %v3499_v39 = vld [vmem:[%s6853_s0] sm:$0xff]  ;;  %v3500_v50 = vld [vmem:[%s6853_s0 + $0x8] sm:$0xff] }
 0x492   : > { %v3468_v29 = vld [vmem:[#allocation3] sm:$0xff]  ;;  %v3531_v5 = vadd.f32 %v3499_v39, %v3467_v17  ;;  %v3469_v8 = vld [vmem:[#allocation3 + $0xd8] sm:$0xff]  ;;  %v3501_v14 = vld [vmem:[%s6853_s0 + $0x10] sm:$0xff] }
 0x493   : > { %v3532_v56 = vadd.f32 %v3500_v50, %v3468_v29  ;;  %v3533_v20 = vadd.f32 %v3501_v14, %v3469_v8  ;;  %v3470_v26 = vld [vmem:[#allocation3 + $0x18] sm:$0xff]  ;;  %v3471_v13 = vld [vmem:[#allocation3 + $0x50] sm:$0xff]  ;;  %v3503_v12 = vld [vmem:[%s6853_s0 + $0x20] sm:$0xff] }
 0x494   : > { %v3502_v19 = vld [vmem:[%s6853_s0 + $0x18] sm:$0xff]  ;;  %3563 = vst [vmem:[%s6860_s7] sm:$0xff] %v3531_v5  ;;  %v3472_v7 = vld [vmem:[#allocation3 + $0x68] sm:$0xff]  ;;  %v3535_v53 = vadd.f32 %v3503_v12, %v3471_v13  ;;  %v3473_v34 = vld [vmem:[#allocation3 + $0x30] sm:$0xff] }
 0x495   : > { %v3534_v30 = vadd.f32 %v3502_v19, %v3470_v26  ;;  %v3504_v1 = vld [vmem:[%s6853_s0 + $0x28] sm:$0xff]  ;;  %3564 = vst [vmem:[%s6860_s7 + $0x8] sm:$0xff] %v3532_v56  ;;  %v3505_v40 = vld [vmem:[%s6853_s0 + $0x30] sm:$0xff]  ;;  %v3506_v62 = vld [vmem:[%s6853_s0 + $0x38] sm:$0xff] }
 0x496   : > { %v3536_v32 = vadd.f32 %v3504_v1, %v3472_v7  ;;  %v3474_v59 = vld [vmem:[#allocation3 + $0x48] sm:$0xff]  ;;  %3565 = vst [vmem:[%s6860_s7 + $0x10] sm:$0xff] %v3533_v20  ;;  %v3537_v58 = vadd.f32 %v3505_v40, %v3473_v34  ;;  %v3475_v43 = vld [vmem:[#allocation3 + $0x80] sm:$0xff]  ;;  %v3509_v22 = vld [vmem:[%s6853_s0 + $0x50] sm:$0xff] }
 0x497   : > { %v3507_v0 = vld [vmem:[%s6853_s0 + $0x40] sm:$0xff]  ;;  %3566 = vst [vmem:[%s6860_s7 + $0x18] sm:$0xff] %v3534_v30  ;;  %v3538_v31 = vadd.f32 %v3506_v62, %v3474_v59  ;;  %v3476_v6 = vld [vmem:[#allocation3 + $0x88] sm:$0xff]  ;;  %v3478_v9 = vld [vmem:[#allocation3 + $0xb8] sm:$0xff] }
 0x498   : > { %v3508_v51 = vld [vmem:[%s6853_s0 + $0x48] sm:$0xff]  ;;  %3567 = vst [vmem:[%s6860_s7 + $0x20] sm:$0xff] %v3535_v53  ;;  %v3539_v47 = vadd.f32 %v3507_v0, %v3475_v43  ;;  %v3510_v18 = vld [vmem:[%s6853_s0 + $0x58] sm:$0xff]  ;;  %v3479_v2 = vld [vmem:[#allocation3 + $0x60] sm:$0xff] }
 0x499   : > { %v3477_v55 = vld [vmem:[#allocation3 + $0xe8] sm:$0xff]  ;;  %3568 = vst [vmem:[%s6860_s7 + $0x28] sm:$0xff] %v3536_v32  ;;  %v3540_v38 = vadd.f32 %v3508_v51, %v3476_v6  ;;  %v3511_v48 = vld [vmem:[%s6853_s0 + $0x60] sm:$0xff]  ;;  %v3480_v45 = vld [vmem:[#allocation3 + $0xf0] sm:$0xff]  ;;  %v3542_v3 = vadd.f32 %v3510_v18, %v3478_v9 }
 0x49a   : > { %3569 = vst [vmem:[%s6860_s7 + $0x30] sm:$0xff] %v3537_v58  ;;  %v3541_v49 = vadd.f32 %v3509_v22, %v3477_v55  ;;  %v3512_v37 = vld [vmem:[%s6853_s0 + $0x68] sm:$0xff]  ;;  %v3513_v35 = vld [vmem:[%s6853_s0 + $0x70] sm:$0xff]  ;;  %v3543_v63 = vadd.f32 %v3511_v48, %v3479_v2  ;;  %v3482_v57 = vld [vmem:[#allocation3 + $0x78] sm:$0xff] }
 0x49b   : > { %3570 = vst [vmem:[%s6860_s7 + $0x38] sm:$0xff] %v3538_v31  ;;  %v3481_v33 = vld [vmem:[#allocation3 + $0x8] sm:$0xff]  ;;  %v3514_v60 = vld [vmem:[%s6853_s0 + $0x78] sm:$0xff]  ;;  %v3544_v11 = vadd.f32 %v3512_v37, %v3480_v45  ;;  %v3515_v25 = vld [vmem:[%s6853_s0 + $0x80] sm:$0xff] }
 0x49c   : > { %3571 = vst [vmem:[%s6860_s7 + $0x40] sm:$0xff] %v3539_v47  ;;  %v3483_v61 = vld [vmem:[#allocation3 + $0x38] sm:$0xff]  ;;  %v3545_v10 = vadd.f32 %v3513_v35, %v3481_v33  ;;  %v3516_v24 = vld [vmem:[%s6853_s0 + $0x88] sm:$0xff]  ;;  %v3546_v52 = vadd.f32 %v3514_v60, %v3482_v57  ;;  %v3485_v28 = vld [vmem:[#allocation3 + $0x40] sm:$0xff] }
 0x49d   : > { %3572 = vst [vmem:[%s6860_s7 + $0x48] sm:$0xff] %v3540_v38  ;;  %v3484_v44 = vld [vmem:[#allocation3 + $0x58] sm:$0xff]  ;;  %v3517_v16 = vld [vmem:[%s6853_s0 + $0x90] sm:$0xff]  ;;  %v3547_v36 = vadd.f32 %v3515_v25, %v3483_v61  ;;  %v3486_v4 = vld [vmem:[#allocation3 + $0xc8] sm:$0xff] }
 0x49e   : > { %3573 = vst [vmem:[%s6860_s7 + $0x50] sm:$0xff] %v3541_v49  ;;  %v3518_v46 = vld [vmem:[%s6853_s0 + $0x98] sm:$0xff]  ;;  %v3548_v42 = vadd.f32 %v3516_v24, %v3484_v44  ;;  %v3487_v41 = vld [vmem:[#allocation3 + $0xe0] sm:$0xff]  ;;  %v3549_v23 = vadd.f32 %v3517_v16, %v3485_v28  ;;  %v3488_v27 = vld [vmem:[#allocation3 + $0x90] sm:$0xff] }
 0x49f   : > { %3574 = vst [vmem:[%s6860_s7 + $0x58] sm:$0xff] %v3542_v3  ;;  %v3519_v54 = vld [vmem:[%s6853_s0 + $0xa0] sm:$0xff]  ;;  %v3520_v21 = vld [vmem:[%s6853_s0 + $0xa8] sm:$0xff]  ;;  %v3550_v15 = vadd.f32 %v3518_v46, %v3486_v4  ;;  %v3489_v17 = vld [vmem:[#allocation3 + $0x70] sm:$0xff] }
 0x4a0   : > { %3575 = vst [vmem:[%s6860_s7 + $0x60] sm:$0xff] %v3543_v63  ;;  %v3521_v39 = vld [vmem:[%s6853_s0 + $0xb0] sm:$0xff]  ;;  %v3551_v29 = vadd.f32 %v3519_v54, %v3487_v41  ;;  %v3490_v5 = vld [vmem:[#allocation3 + $0xc0] sm:$0xff]  ;;  %v3522_v50 = vld [vmem:[%s6853_s0 + $0xb8] sm:$0xff]  ;;  %v3552_v8 = vadd.f32 %v3520_v21, %v3488_v27 }
 0x4a1   : > { %3576 = vst [vmem:[%s6860_s7 + $0x68] sm:$0xff] %v3544_v11  ;;  %v3491_v14 = vld [vmem:[#allocation3 + $0xa8] sm:$0xff]  ;;  %v3523_v56 = vld [vmem:[%s6853_s0 + $0xc0] sm:$0xff]  ;;  %v3553_v20 = vadd.f32 %v3521_v39, %v3489_v17  ;;  %v3492_v26 = vld [vmem:[#allocation3 + $0xd0] sm:$0xff]  ;;  %v3554_v13 = vadd.f32 %v3522_v50, %v3490_v5 }
 0x4a2   : > { %3577 = vst [vmem:[%s6860_s7 + $0x70] sm:$0xff] %v3545_v10  ;;  %v3524_v19 = vld [vmem:[%s6853_s0 + $0xc8] sm:$0xff]  ;;  %v3493_v30 = vld [vmem:[#allocation3 + $0x10] sm:$0xff]  ;;  %v3555_v7 = vadd.f32 %v3523_v56, %v3491_v14  ;;  %v3526_v53 = vld [vmem:[%s6853_s0 + $0xd8] sm:$0xff] }
 0x4a3   : > { %3578 = vst [vmem:[%s6860_s7 + $0x78] sm:$0xff] %v3546_v52  ;;  %v3525_v12 = vld [vmem:[%s6853_s0 + $0xd0] sm:$0xff]  ;;  %v3494_v1 = vld [vmem:[#allocation3 + $0x28] sm:$0xff]  ;;  %v3556_v32 = vadd.f32 %v3524_v19, %v3492_v26  ;;  %v3495_v34 = vld [vmem:[#allocation3 + $0xa0] sm:$0xff] }
 0x4a4   : > { %3579 = vst [vmem:[%s6860_s7 + $0x80] sm:$0xff] %v3547_v36  ;;  %v3527_v40 = vld [vmem:[%s6853_s0 + $0xe0] sm:$0xff]  ;;  %v3557_v59 = vadd.f32 %v3525_v12, %v3493_v30  ;;  %v3496_v58 = vld [vmem:[#allocation3 + $0xf8] sm:$0xff]  ;;  %v3528_v62 = vld [vmem:[%s6853_s0 + $0xe8] sm:$0xff]  ;;  %v3558_v43 = vadd.f32 %v3526_v53, %v3494_v1 }
 0x4a5   : > { %3580 = vst [vmem:[%s6860_s7 + $0x88] sm:$0xff] %v3548_v42  ;;  %v3497_v0 = vld [vmem:[#allocation3 + $0x20] sm:$0xff]  ;;  %v3529_v31 = vld [vmem:[%s6853_s0 + $0xf0] sm:$0xff]  ;;  %v3559_v6 = vadd.f32 %v3527_v40, %v3495_v34  ;;  %v3498_v51 = vld [vmem:[#allocation3 + $0x98] sm:$0xff]  ;;  %v3560_v47 = vadd.f32 %v3528_v62, %v3496_v58 }
 0x4a6   : > { %3581 = vst [vmem:[%s6860_s7 + $0x90] sm:$0xff] %v3549_v23  ;;  %v3530_v55 = vld [vmem:[%s6853_s0 + $0xf8] sm:$0xff]  ;;  %v3561_v22 = vadd.f32 %v3529_v31, %v3497_v0 }
 0x4a7   : > { %3582 = vst [vmem:[%s6860_s7 + $0x98] sm:$0xff] %v3550_v15  ;;  %v3562_v9 = vadd.f32 %v3530_v55, %v3498_v51 }
 0x4a8   : > { %3583 = vst [vmem:[%s6860_s7 + $0xa0] sm:$0xff] %v3551_v29 }
 0x4a9   : > { %3584 = vst [vmem:[%s6860_s7 + $0xa8] sm:$0xff] %v3552_v8 }
 0x4aa   : > { %3585 = vst [vmem:[%s6860_s7 + $0xb0] sm:$0xff] %v3553_v20 }
 0x4ab   : > { %3586 = vst [vmem:[%s6860_s7 + $0xb8] sm:$0xff] %v3554_v13 }
 0x4ac   : > { %3587 = vst [vmem:[%s6860_s7 + $0xc0] sm:$0xff] %v3555_v7 }
 0x4ad   : > { %3588 = vst [vmem:[%s6860_s7 + $0xc8] sm:$0xff] %v3556_v32 }
 0x4ae   : > { %3589 = vst [vmem:[%s6860_s7 + $0xd0] sm:$0xff] %v3557_v59 }
 0x4af   : > { %3590 = vst [vmem:[%s6860_s7 + $0xd8] sm:$0xff] %v3558_v43 }
 0x4b0   : > { %3591 = vst [vmem:[%s6860_s7 + $0xe0] sm:$0xff] %v3559_v6 }
 0x4b1   : > { %3592 = vst [vmem:[%s6860_s7 + $0xe8] sm:$0xff] %v3560_v47 }
 0x4b2   : > { %3593 = vst [vmem:[%s6860_s7 + $0xf0] sm:$0xff] %v3561_v22 }
 0x4b3   : > { %3594 = vst [vmem:[%s6860_s7 + $0xf8] sm:$0xff] %v3562_v9 }
 0x4b4 PF: > { %s17_s28 = sadd.s32 1, %s4684_s28   ;;  %s6861_s24 = smov %s4672_s25 }
 0x4b5   : > { %p14_p13 = scmp.ge.s32.totalorder %s17_s28, 4   ;;  %s6862_s25 = smov %s4762_s9 }
 0x4b6   : > { %s6863_s26 = smov %s4680_s27  ;;  %s6864_s27 = smov %s6866_s29 }
 0x4b7   :  { %16 = sbr.rel (!%p14_p13) target bundleno = 3 (0x3), region = 123 }

// kernel: gpt2_forward.17
= control target key start
LH: loop header
LB: loop body
LE: loop exit
PB: predicated region body
PF: predicated region fallthrough
CT: control target
= control target key end

     0   :  { %10 = vsyncpa [#allocation5], 0  ;;  %s3941_s0 = inlined_call_operand.vmem [shape: f32[128,256], index: 0, kind: input, shape index: {}]   ;;  %s3942_s1 = inlined_call_operand.vmem [shape: f32[1,256], index: 1, kind: input, shape index: {}]   ;;  %s3943_s2 = inlined_call_operand.vmem [shape: f32[1,256], index: 2, kind: input, shape index: {}]   ;;  %s3944_s3 = inlined_call_operand.vmem [shape: bf16[256,1024], index: 3, kind: input, shape index: {}]   ;;  %s3945_s4 = inlined_call_operand.vmem [shape: f32[1,1024], index: 4, kind: input, shape index: {}]   ;;  %s3946_s5 = inlined_call_operand.hbm [shape: f32[128,1024], index: 5, kind: output, shape index: {}]  }
   0x1   :  { %12 = vsyncpa [#allocation5 + $0x1], 0  ;;  %s2676_s18 = smov 0   ;;  %s2678_s19 = smov 0  }
   0x2   :  { %s2680_s20 = smov 0   ;;  %s2682_s21 = smov 0  }
   0x3   :  { %s2684_s22 = smov 0   ;;  %s2686_s23 = smov 0  }
   0x4 LB: > { %s2049_s24 = sadd.s32 4294967295, %s2640_s23   ;;  %s2050_s25 = sadd.s32 4294967294, %s2640_s23   ;;  %s2640_s23 = sphi %s2686_s23, %s18_s23   ;;  %s2636_s22 = sphi %s2684_s22, %s3953_s22   ;;  %s2632_s21 = sphi %s2682_s21, %s3952_s21   ;;  %s2628_s20 = sphi %s2680_s20, %s3951_s20   ;;  %s2624_s19 = sphi %s2678_s19, %s3950_s19   ;;  %s2620_s18 = sphi %s2676_s18, %s3949_s18  }
   0x5   : > { %s27_s26 = sadd.s32 1, %s2636_s22  ;;  %s105_s27 = sadd.s32 1, %s2628_s20 }
   0x6   : > { %p28_p0 = scmp.ge.s32.totalorder %s27_s26, 2  ;;  %p112_p1 = scmp.ne.s32.totalorder %s2628_s20, %s2624_s19 }
   0x7   : > { %p113_p2 = scmp.eq.s32.totalorder %s2640_s23, 0  ;;  %p170_p3 = scmp.eq.s32.totalorder %s2049_s24, 1 }
   0x8   : > { %s3955_s26 = smov (%p28_p0, %s27_s26), 0  ;;  %p175_p6 = scmp.ne.s32.totalorder %s2624_s19, %s2620_s18 }
   0x9   : > { %p114_p4 = por %p113_p2, %p112_p1  ;;  %p2715_p5 = por %p170_p3, %p112_p1 }
   0xa   : > { %s102_s29 = ssub.s32 %s2636_s22, %s3955_s26  ;;  %p176_p8 = scmp.eq.s32.totalorder %s2050_s25, 1 }
   0xb   : > { %p103_p7 = scmp.eq.s32.totalorder %s102_s29, 0  ;;  %p2053_p10 = scmp.ge.s32.totalorder %s2640_s23, 2 }
   0xc   : > { %p2726_p9 = por %p176_p8, %p175_p6 }
   0xd   : > { %s2724_s30 = scalar_select %p103_p7, %s2628_s20, %s105_s27  }
   0xe   : > { %208 = sbr.rel (%p2053_p10) target bundleno = 87 (0x57), region = 28 }
  0x13   : > { %211 = sbr.rel (!%p114_p4) target bundleno = 87 (0x57), region = 32  ;;  %s213_s7 = sand.u32 (%p114_p4), 1, %s2628_s20  }
  0x14   : > { %s2387_s8 = sshll.u32 (%p114_p4), %s2636_s22, 4  ;;  %s2054_s9 = sshll.u32 (%p114_p4), %s213_s7, 9 }
  0x15   : > { %s2738_s12 = scalar_lea.vmem (%p114_p4), %s3944_s3, %s2387_s8  ;;  %s2743_s13 = scalar_lea.vmem (%p114_p4), [#allocation3], %s2054_s9 }
  0x16   : > { %v231_v0 = vld [vmem:[%s2738_s12] sm:$0xff] (%p114_p4)  ;;  %v233_v1 = vld [vmem:[%s2738_s12 + $0x8] sm:$0xff] (%p114_p4) }
  0x17   : > { %v235_v2 = vld [vmem:[%s2738_s12 + $0x20] sm:$0xff] (%p114_p4)  ;;  %232 = vst [vmem:[%s2743_s13] sm:$0xff] (%p114_p4), %v231_v0  ;;  %v237_v3 = vld [vmem:[%s2738_s12 + $0x28] sm:$0xff] (%p114_p4) }
  0x18   : > { %234 = vst [vmem:[%s2743_s13 + $0x8] sm:$0xff] %v233_v1  ;;  %v239_v4 = vld [vmem:[%s2738_s12 + $0x40] sm:$0xff]  ;;  %v241_v5 = vld [vmem:[%s2738_s12 + $0x48] sm:$0xff] }
  0x19   : > { %236 = vst [vmem:[%s2743_s13 + $0x10] sm:$0xff] %v235_v2  ;;  %v243_v6 = vld [vmem:[%s2738_s12 + $0x60] sm:$0xff]  ;;  %v245_v7 = vld [vmem:[%s2738_s12 + $0x68] sm:$0xff] }
  0x1a   : > { %238 = vst [vmem:[%s2743_s13 + $0x18] sm:$0xff] %v237_v3  ;;  %v247_v8 = vld [vmem:[%s2738_s12 + $0x80] sm:$0xff]  ;;  %v249_v9 = vld [vmem:[%s2738_s12 + $0x88] sm:$0xff] }
  0x1b   : > { %240 = vst [vmem:[%s2743_s13 + $0x20] sm:$0xff] %v239_v4  ;;  %v251_v10 = vld [vmem:[%s2738_s12 + $0xa0] sm:$0xff]  ;;  %v253_v11 = vld [vmem:[%s2738_s12 + $0xa8] sm:$0xff] }
  0x1c   : > { %242 = vst [vmem:[%s2743_s13 + $0x28] sm:$0xff] %v241_v5  ;;  %v255_v12 = vld [vmem:[%s2738_s12 + $0xc0] sm:$0xff]  ;;  %v257_v13 = vld [vmem:[%s2738_s12 + $0xc8] sm:$0xff] }
  0x1d   : > { %244 = vst [vmem:[%s2743_s13 + $0x30] sm:$0xff] %v243_v6  ;;  %v259_v14 = vld [vmem:[%s2738_s12 + $0xe0] sm:$0xff]  ;;  %v261_v15 = vld [vmem:[%s2738_s12 + $0xe8] sm:$0xff] }
  0x1e   : > { %246 = vst [vmem:[%s2743_s13 + $0x38] sm:$0xff] %v245_v7  ;;  %v263_v16 = vld [vmem:[%s2738_s12 + $0x100] sm:$0xff]  ;;  %v265_v17 = vld [vmem:[%s2738_s12 + $0x108] sm:$0xff] }
  0x1f   : > { %248 = vst [vmem:[%s2743_s13 + $0x40] sm:$0xff] %v247_v8  ;;  %v267_v18 = vld [vmem:[%s2738_s12 + $0x120] sm:$0xff]  ;;  %v269_v19 = vld [vmem:[%s2738_s12 + $0x128] sm:$0xff] }
  0x20   : > { %250 = vst [vmem:[%s2743_s13 + $0x48] sm:$0xff] %v249_v9  ;;  %v271_v20 = vld [vmem:[%s2738_s12 + $0x140] sm:$0xff]  ;;  %v273_v21 = vld [vmem:[%s2738_s12 + $0x148] sm:$0xff] }
  0x21   : > { %252 = vst [vmem:[%s2743_s13 + $0x50] sm:$0xff] %v251_v10  ;;  %v275_v22 = vld [vmem:[%s2738_s12 + $0x160] sm:$0xff]  ;;  %v277_v23 = vld [vmem:[%s2738_s12 + $0x168] sm:$0xff] }
  0x22   : > { %254 = vst [vmem:[%s2743_s13 + $0x58] sm:$0xff] %v253_v11  ;;  %v279_v24 = vld [vmem:[%s2738_s12 + $0x180] sm:$0xff]  ;;  %v281_v25 = vld [vmem:[%s2738_s12 + $0x188] sm:$0xff] }
  0x23   : > { %256 = vst [vmem:[%s2743_s13 + $0x60] sm:$0xff] %v255_v12  ;;  %v283_v26 = vld [vmem:[%s2738_s12 + $0x1a0] sm:$0xff]  ;;  %v285_v27 = vld [vmem:[%s2738_s12 + $0x1a8] sm:$0xff] }
  0x24   : > { %258 = vst [vmem:[%s2743_s13 + $0x68] sm:$0xff] %v257_v13  ;;  %v287_v28 = vld [vmem:[%s2738_s12 + $0x1c0] sm:$0xff]  ;;  %v289_v29 = vld [vmem:[%s2738_s12 + $0x1c8] sm:$0xff] }
  0x25   : > { %260 = vst [vmem:[%s2743_s13 + $0x70] sm:$0xff] %v259_v14  ;;  %v291_v30 = vld [vmem:[%s2738_s12 + $0x1e0] sm:$0xff]  ;;  %v293_v31 = vld [vmem:[%s2738_s12 + $0x1e8] sm:$0xff] }
  0x26   : > { %262 = vst [vmem:[%s2743_s13 + $0x78] sm:$0xff] %v261_v15  ;;  %v295_v32 = vld [vmem:[%s2738_s12 + $0x200] sm:$0xff]  ;;  %v297_v33 = vld [vmem:[%s2738_s12 + $0x208] sm:$0xff] }
  0x27   : > { %264 = vst [vmem:[%s2743_s13 + $0x80] sm:$0xff] %v263_v16  ;;  %v299_v34 = vld [vmem:[%s2738_s12 + $0x220] sm:$0xff]  ;;  %v301_v35 = vld [vmem:[%s2738_s12 + $0x228] sm:$0xff] }
  0x28   : > { %266 = vst [vmem:[%s2743_s13 + $0x88] sm:$0xff] %v265_v17  ;;  %v303_v36 = vld [vmem:[%s2738_s12 + $0x240] sm:$0xff]  ;;  %v305_v37 = vld [vmem:[%s2738_s12 + $0x248] sm:$0xff] }
  0x29   : > { %268 = vst [vmem:[%s2743_s13 + $0x90] sm:$0xff] %v267_v18  ;;  %v307_v38 = vld [vmem:[%s2738_s12 + $0x260] sm:$0xff]  ;;  %v309_v39 = vld [vmem:[%s2738_s12 + $0x268] sm:$0xff] }
  0x2a   : > { %270 = vst [vmem:[%s2743_s13 + $0x98] sm:$0xff] %v269_v19  ;;  %v311_v40 = vld [vmem:[%s2738_s12 + $0x280] sm:$0xff]  ;;  %v313_v41 = vld [vmem:[%s2738_s12 + $0x288] sm:$0xff] }
  0x2b   : > { %272 = vst [vmem:[%s2743_s13 + $0xa0] sm:$0xff] %v271_v20  ;;  %v315_v42 = vld [vmem:[%s2738_s12 + $0x2a0] sm:$0xff]  ;;  %v317_v43 = vld [vmem:[%s2738_s12 + $0x2a8] sm:$0xff] }
  0x2c   : > { %274 = vst [vmem:[%s2743_s13 + $0xa8] sm:$0xff] %v273_v21  ;;  %v319_v44 = vld [vmem:[%s2738_s12 + $0x2c0] sm:$0xff]  ;;  %v321_v45 = vld [vmem:[%s2738_s12 + $0x2c8] sm:$0xff] }
  0x2d   : > { %276 = vst [vmem:[%s2743_s13 + $0xb0] sm:$0xff] %v275_v22  ;;  %v323_v46 = vld [vmem:[%s2738_s12 + $0x2e0] sm:$0xff]  ;;  %v325_v47 = vld [vmem:[%s2738_s12 + $0x2e8] sm:$0xff] }
  0x2e   : > { %278 = vst [vmem:[%s2743_s13 + $0xb8] sm:$0xff] %v277_v23  ;;  %v327_v48 = vld [vmem:[%s2738_s12 + $0x300] sm:$0xff]  ;;  %v329_v49 = vld [vmem:[%s2738_s12 + $0x308] sm:$0xff] }
  0x2f   : > { %280 = vst [vmem:[%s2743_s13 + $0xc0] sm:$0xff] %v279_v24  ;;  %v331_v50 = vld [vmem:[%s2738_s12 + $0x320] sm:$0xff]  ;;  %v333_v51 = vld [vmem:[%s2738_s12 + $0x328] sm:$0xff] }
  0x30   : > { %282 = vst [vmem:[%s2743_s13 + $0xc8] sm:$0xff] %v281_v25  ;;  %v335_v52 = vld [vmem:[%s2738_s12 + $0x340] sm:$0xff]  ;;  %v337_v53 = vld [vmem:[%s2738_s12 + $0x348] sm:$0xff] }
  0x31   : > { %284 = vst [vmem:[%s2743_s13 + $0xd0] sm:$0xff] %v283_v26  ;;  %v339_v54 = vld [vmem:[%s2738_s12 + $0x360] sm:$0xff]  ;;  %v341_v55 = vld [vmem:[%s2738_s12 + $0x368] sm:$0xff] }
  0x32   : > { %286 = vst [vmem:[%s2743_s13 + $0xd8] sm:$0xff] %v285_v27  ;;  %v343_v56 = vld [vmem:[%s2738_s12 + $0x380] sm:$0xff]  ;;  %v345_v57 = vld [vmem:[%s2738_s12 + $0x388] sm:$0xff] }
  0x33   : > { %288 = vst [vmem:[%s2743_s13 + $0xe0] sm:$0xff] %v287_v28  ;;  %v347_v58 = vld [vmem:[%s2738_s12 + $0x3a0] sm:$0xff]  ;;  %v349_v59 = vld [vmem:[%s2738_s12 + $0x3a8] sm:$0xff] }
  0x34   : > { %290 = vst [vmem:[%s2743_s13 + $0xe8] sm:$0xff] %v289_v29  ;;  %v351_v60 = vld [vmem:[%s2738_s12 + $0x3c0] sm:$0xff]  ;;  %v353_v61 = vld [vmem:[%s2738_s12 + $0x3c8] sm:$0xff] }
  0x35   : > { %292 = vst [vmem:[%s2743_s13 + $0xf0] sm:$0xff] %v291_v30  ;;  %v355_v62 = vld [vmem:[%s2738_s12 + $0x3e0] sm:$0xff]  ;;  %v357_v63 = vld [vmem:[%s2738_s12 + $0x3e8] sm:$0xff] }
  0x36   : > { %294 = vst [vmem:[%s2743_s13 + $0xf8] sm:$0xff] %v293_v31 }
  0x37   : > { %296 = vst [vmem:[%s2743_s13 + $0x100] sm:$0xff] %v295_v32 }
  0x38   : > { %298 = vst [vmem:[%s2743_s13 + $0x108] sm:$0xff] %v297_v33 }
  0x39   : > { %300 = vst [vmem:[%s2743_s13 + $0x110] sm:$0xff] %v299_v34 }
  0x3a   : > { %302 = vst [vmem:[%s2743_s13 + $0x118] sm:$0xff] %v301_v35 }
  0x3b   : > { %304 = vst [vmem:[%s2743_s13 + $0x120] sm:$0xff] %v303_v36 }
  0x3c   : > { %306 = vst [vmem:[%s2743_s13 + $0x128] sm:$0xff] %v305_v37 }
  0x3d   : > { %308 = vst [vmem:[%s2743_s13 + $0x130] sm:$0xff] %v307_v38 }
  0x3e   : > { %310 = vst [vmem:[%s2743_s13 + $0x138] sm:$0xff] %v309_v39 }
  0x3f   : > { %312 = vst [vmem:[%s2743_s13 + $0x140] sm:$0xff] %v311_v40 }
  0x40   : > { %314 = vst [vmem:[%s2743_s13 + $0x148] sm:$0xff] %v313_v41 }
  0x41   : > { %316 = vst [vmem:[%s2743_s13 + $0x150] sm:$0xff] %v315_v42 }
  0x42   : > { %318 = vst [vmem:[%s2743_s13 + $0x158] sm:$0xff] %v317_v43 }
  0x43   : > { %320 = vst [vmem:[%s2743_s13 + $0x160] sm:$0xff] %v319_v44 }
  0x44   : > { %322 = vst [vmem:[%s2743_s13 + $0x168] sm:$0xff] %v321_v45 }
  0x45   : > { %324 = vst [vmem:[%s2743_s13 + $0x170] sm:$0xff] %v323_v46 }
  0x46   : > { %326 = vst [vmem:[%s2743_s13 + $0x178] sm:$0xff] %v325_v47 }
  0x47   : > { %328 = vst [vmem:[%s2743_s13 + $0x180] sm:$0xff] %v327_v48 }
  0x48   : > { %330 = vst [vmem:[%s2743_s13 + $0x188] sm:$0xff] %v329_v49 }
  0x49   : > { %332 = vst [vmem:[%s2743_s13 + $0x190] sm:$0xff] %v331_v50 }
  0x4a   : > { %334 = vst [vmem:[%s2743_s13 + $0x198] sm:$0xff] %v333_v51 }
  0x4b   : > { %336 = vst [vmem:[%s2743_s13 + $0x1a0] sm:$0xff] %v335_v52 }
  0x4c   : > { %338 = vst [vmem:[%s2743_s13 + $0x1a8] sm:$0xff] %v337_v53 }
  0x4d   : > { %340 = vst [vmem:[%s2743_s13 + $0x1b0] sm:$0xff] %v339_v54 }
  0x4e   : > { %342 = vst [vmem:[%s2743_s13 + $0x1b8] sm:$0xff] %v341_v55 }
  0x4f   : > { %344 = vst [vmem:[%s2743_s13 + $0x1c0] sm:$0xff] %v343_v56 }
  0x50   : > { %346 = vst [vmem:[%s2743_s13 + $0x1c8] sm:$0xff] %v345_v57 }
  0x51   : > { %348 = vst [vmem:[%s2743_s13 + $0x1d0] sm:$0xff] %v347_v58 }
  0x52   : > { %350 = vst [vmem:[%s2743_s13 + $0x1d8] sm:$0xff] %v349_v59 }
  0x53   : > { %352 = vst [vmem:[%s2743_s13 + $0x1e0] sm:$0xff] %v351_v60 }
  0x54   : > { %354 = vst [vmem:[%s2743_s13 + $0x1e8] sm:$0xff] %v353_v61 }
  0x55   : > { %356 = vst [vmem:[%s2743_s13 + $0x1f0] sm:$0xff] %v355_v62 }
  0x56   : > { %358 = vst [vmem:[%s2743_s13 + $0x1f8] sm:$0xff] %v357_v63 }
  0x57 PF: > { %p2057_p11 = scmp.ge.s32.totalorder %s2640_s23, 1  ;;  %p371_p12 = scmp.lt.s32.totalorder %s2640_s23, 3 }
  0x59   : > { %p372_p13 = pnand %p2057_p11, %p371_p12 }
  0x5a   : > { %s378_s14 = sand.u32 (!%p372_p13), 1, %s2624_s19   ;;  %s2060_s15 = sshll.u32 (!%p372_p13), %s2632_s21, 2 }
  0x5b   : > { %375 = sbr.rel (%p372_p13) target bundleno = 865 (0x361), region = 59  ;;  %s2058_s16 = sshll.u32 (!%p372_p13), %s378_s14, 9 }
  0x5c   : > { %p424_p0 = scmp.lt.s32.totalorder (!%p372_p13), %s2060_s15, 7  ;;  %s2882_s27 = scalar_lea.vmem (!%p372_p13), [#allocation3], %s2058_s16 }
  0x5d   : > { %s2884_s29 = scalar_lea.vmem (!%p372_p13), [#allocation4], %s2058_s16  ;;  %p2061_p1 = scmp.ne.s32.totalorder (!%p372_p13), %s2632_s21, 0 }
  0x60   : > { %s3957_s15 = smov (!%p424_p0, %s2060_s15), 7  ;;  %433 = sbr.rel (%p2061_p1) target bundleno = 441 (0x1b9), region = 67 }
  0x61   : > { %s426_s25 = scalar_lea.vmem %s3945_s4, %s3957_s15 }
  0x65   : > { %v2890_v0 = vld [vmem:[%s3941_s0 + $0x40] sm:$0xff]  ;;  %v2895_v1 = vld [vmem:[%s3941_s0 + $0x48] sm:$0xff]  ;;  %v2926_v9 = vld [vmem:[%s3941_s0 + $0x50] sm:$0xff]  ;;  %v2642_v48 = vmov 256.0  }
  0x66   : > { %v2900_v2 = vld [vmem:[%s3941_s0 + $0x20] sm:$0xff]  ;;  %v480_v3 = vadd.f32 %v2895_v1, %v2890_v0  ;;  %v2907_v4 = vld [vmem:[%s3941_s0 + $0x28] sm:$0xff]  ;;  %v2931_v10 = vld [vmem:[%s3941_s0 + $0x58] sm:$0xff]  ;;  %2528 = vrcp.f32 %v2642_v48 }
  0x67   : > { %v2912_v5 = vld [vmem:[%s3941_s0] sm:$0xff]  ;;  %v2917_v6 = vld [vmem:[%s3941_s0 + $0x8] sm:$0xff]  ;;  %v474_v7 = vadd.f32 %v2907_v4, %v2900_v2  ;;  %v2936_v11 = vld [vmem:[%s3941_s0 + $0x30] sm:$0xff]  ;;  %v483_v15 = vadd.f32 %v2931_v10, %v2926_v9 }
  0x68   : > { %v468_v8 = vadd.f32 %v2917_v6, %v2912_v5  ;;  %481 = vadd.xlane.f32.xlu2 %v480_v3  ;;  %v2941_v12 = vld [vmem:[%s3941_s0 + $0x38] sm:$0xff]  ;;  %v2946_v13 = vld [vmem:[%s3941_s0 + $0x10] sm:$0xff]  ;;  %v2962_v18 = vld [vmem:[%s3941_s0 + $0x80] sm:$0xff] }
  0x69   : > { %475 = vadd.xlane.f32.xlu1 %v474_v7  ;;  %v2951_v14 = vld [vmem:[%s3941_s0 + $0x18] sm:$0xff]  ;;  %v477_v16 = vadd.f32 %v2941_v12, %v2936_v11  ;;  %v2967_v19 = vld [vmem:[%s3941_s0 + $0x88] sm:$0xff]  ;;  %v2972_v20 = vld [vmem:[%s3941_s0 + $0x60] sm:$0xff] }
  0x6a   : > { %469 = vadd.xlane.f32.xlu0 %v468_v8  ;;  %v471_v17 = vadd.f32 %v2951_v14, %v2946_v13  ;;  %v2977_v21 = vld [vmem:[%s3941_s0 + $0x68] sm:$0xff]  ;;  %v2982_v22 = vld [vmem:[%s3941_s0 + $0x70] sm:$0xff]  ;;  %v2987_v23 = vld [vmem:[%s3941_s0 + $0x78] sm:$0xff]  ;;  %v492_v24 = vadd.f32 %v2967_v19, %v2962_v18 }
  0x6b   : > { %v486_v25 = vadd.f32 %v2977_v21, %v2972_v20  ;;  %v489_v26 = vadd.f32 %v2987_v23, %v2982_v22  ;;  %v2998_v27 = vld [vmem:[%s3941_s0 + $0xb0] sm:$0xff]  ;;  %v3003_v28 = vld [vmem:[%s3941_s0 + $0xb8] sm:$0xff]  ;;  %v3018_v31 = vld [vmem:[%s3941_s0 + $0xa0] sm:$0xff] }
  0x6c   : > { %v3008_v29 = vld [vmem:[%s3941_s0 + $0x90] sm:$0xff]  ;;  %v3013_v30 = vld [vmem:[%s3941_s0 + $0x98] sm:$0xff]  ;;  %v3023_v32 = vld [vmem:[%s3941_s0 + $0xa8] sm:$0xff]  ;;  %v501_v33 = vadd.f32 %v3003_v28, %v2998_v27  ;;  %v2529_v49 = vpop.eup %2528 }
  0x6d   : > { %v495_v34 = vadd.f32 %v3013_v30, %v3008_v29  ;;  %v498_v35 = vadd.f32 %v3023_v32, %v3018_v31  ;;  %v3034_v36 = vld [vmem:[%s3941_s0 + $0xe0] sm:$0xff]  ;;  %v3039_v37 = vld [vmem:[%s3941_s0 + $0xe8] sm:$0xff]  ;;  %v3054_v40 = vld [vmem:[%s3941_s0 + $0xd0] sm:$0xff]  ;;  %v517_v50 = vmul.f32 256.0, %v2529_v49  ;;  %vm521_vm0 = vweird.f32 %v2529_v49 }
  0x6e   : > { %v3044_v38 = vld [vmem:[%s3941_s0 + $0xc0] sm:$0xff]  ;;  %v3049_v39 = vld [vmem:[%s3941_s0 + $0xc8] sm:$0xff]  ;;  %v3059_v41 = vld [vmem:[%s3941_s0 + $0xd8] sm:$0xff]  ;;  %v510_v42 = vadd.f32 %v3039_v37, %v3034_v36 }
  0x6f   : > { %v504_v43 = vadd.f32 %v3049_v39, %v3044_v38  ;;  %v507_v44 = vadd.f32 %v3059_v41, %v3054_v40  ;;  %v3070_v45 = vld [vmem:[%s3941_s0 + $0xf0] sm:$0xff]  ;;  %v3075_v46 = vld [vmem:[%s3941_s0 + $0xf8] sm:$0xff]  ;;  %v518_v51 = vsub.f32 1.0, %v517_v50 }
  0x70   : > { %484 = vadd.xlane.f32.xlu2 %v483_v15  ;;  %v513_v47 = vadd.f32 %v3075_v46, %v3070_v45 }
  0x71   : > { %478 = vadd.xlane.f32.xlu1 %v477_v16  ;;  %v519_v52 = vmul.f32 %v2529_v49, %v518_v51 }
  0x72   : > { %472 = vadd.xlane.f32.xlu0 %v471_v17 }
  0x73   : > { %v520_v53 = vadd.f32 %v2529_v49, %v519_v52 }
  0x75   : > { %v3079_v54 = vsel %vm521_vm0, %v2529_v49, %v520_v53 }
  0x78   : > { %493 = vadd.xlane.f32.xlu2 %v492_v24 }
  0x79   : > { %490 = vadd.xlane.f32.xlu1 %v489_v26 }
  0x7a   : > { %487 = vadd.xlane.f32.xlu0 %v486_v25 }
  0x80   : > { %502 = vadd.xlane.f32.xlu2 %v501_v33 }
  0x81   : > { %499 = vadd.xlane.f32.xlu1 %v498_v35 }
  0x82   : > { %496 = vadd.xlane.f32.xlu0 %v495_v34 }
  0x88   : > { %511 = vadd.xlane.f32.xlu2 %v510_v42 }
  0x89   : > { %508 = vadd.xlane.f32.xlu1 %v507_v44 }
  0x8a   : > { %505 = vadd.xlane.f32.xlu0 %v504_v43 }
  0x92   : > { %514 = vadd.xlane.f32.xlu0 %v513_v47 }
  0xdb   : > { %v482_v55 = vpop.xlane.xlu2 %481 }
  0xdc   : > { %v476_v56 = vpop.xlane.xlu1 %475  ;;  %v527_v44 = vmul.f32 %v3079_v54, %v482_v55 }
  0xdd   : > { %v470_v57 = vpop.xlane.xlu0 %469  ;;  %v525_v58 = vmul.f32 %v3079_v54, %v476_v56 }
  0xde   : > { %v523_v59 = vmul.f32 %v3079_v54, %v470_v57  ;;  %v3138_v51 = vsub.f32 %v2890_v0, %v527_v44  ;;  %v3141_v52 = vsub.f32 %v2895_v1, %v527_v44 }
  0xdf   : > { %v3084_v60 = vsub.f32 %v2900_v2, %v525_v58  ;;  %v3087_v61 = vsub.f32 %v2907_v4, %v525_v58 }
  0xe0   : > { %v3090_v62 = vsub.f32 %v2912_v5, %v523_v59  ;;  %v3093_v63 = vsub.f32 %v2917_v6, %v523_v59 }
  0xe1   : > { %v575_v3 = vmul.f32 %v3084_v60, %v3084_v60  ;;  %v576_v7 = vmul.f32 %v3087_v61, %v3087_v61 }
  0xe2   : > { %v571_v8 = vmul.f32 %v3090_v62, %v3090_v62  ;;  %v572_v2 = vmul.f32 %v3093_v63, %v3093_v63 }
  0xe3   : > { %v485_v4 = vpop.xlane.xlu2 %484  ;;  %v609_v15 = vadd.f32 %v576_v7, %v575_v3 }
  0xe4   : > { %v603_v16 = vadd.f32 %v572_v2, %v571_v8  ;;  %v528_v5 = vmul.f32 %v3079_v54, %v485_v4  ;;  %v479_v17 = vpop.xlane.xlu1 %478 }
  0xe5   : > { %v473_v6 = vpop.xlane.xlu0 %472  ;;  %v526_v24 = vmul.f32 %v3079_v54, %v479_v17  ;;  %610 = vadd.xlane.f32.xlu0 %v609_v15 }
  0xe6   : > { %v524_v25 = vmul.f32 %v3079_v54, %v473_v6  ;;  %604 = vadd.xlane.f32.xlu1 %v603_v16  ;;  %v3107_v26 = vsub.f32 %v2926_v9, %v528_v5  ;;  %v3110_v33 = vsub.f32 %v2931_v10, %v528_v5 }
  0xe7   : > { %v3113_v34 = vsub.f32 %v2936_v11, %v526_v24  ;;  %v3116_v35 = vsub.f32 %v2941_v12, %v526_v24 }
  0xe8   : > { %v3119_v42 = vsub.f32 %v2946_v13, %v524_v25  ;;  %v3122_v43 = vsub.f32 %v2951_v14, %v524_v25  ;;  %v581_v9 = vmul.f32 %v3107_v26, %v3107_v26  ;;  %v582_v10 = vmul.f32 %v3110_v33, %v3110_v33 }
  0xe9   : > { %v577_v11 = vmul.f32 %v3113_v34, %v3113_v34  ;;  %v578_v12 = vmul.f32 %v3116_v35, %v3116_v35 }
  0xea   : > { %v573_v13 = vmul.f32 %v3119_v42, %v3119_v42  ;;  %v574_v14 = vmul.f32 %v3122_v43, %v3122_v43  ;;  %v618_v47 = vadd.f32 %v582_v10, %v581_v9 }
  0xeb   : > { %v494_v48 = vpop.xlane.xlu2 %493  ;;  %v612_v49 = vadd.f32 %v578_v12, %v577_v11 }
  0xec   : > { %v606_v50 = vadd.f32 %v574_v14, %v573_v13  ;;  %v531_v53 = vmul.f32 %v3079_v54, %v494_v48  ;;  %v491_v56 = vpop.xlane.xlu1 %490 }
  0xed   : > { %v488_v55 = vpop.xlane.xlu0 %487  ;;  %619 = vadd.xlane.f32.xlu0 %v618_v47  ;;  %v530_v0 = vmul.f32 %v3079_v54, %v491_v56 }
  0xee   : > { %v529_v57 = vmul.f32 %v3079_v54, %v488_v55  ;;  %613 = vadd.xlane.f32.xlu1 %v612_v49  ;;  %v3146_v58 = vsub.f32 %v2962_v18, %v531_v53  ;;  %v3149_v59 = vsub.f32 %v2967_v19, %v531_v53  ;;  %607 = vadd.xlane.f32.xlu2 %v606_v50 }
  0xef   : > { %v579_v18 = vmul.f32 %v3138_v51, %v3138_v51  ;;  %v580_v19 = vmul.f32 %v3141_v52, %v3141_v52  ;;  %v3174_v4 = vsub.f32 %v2987_v23, %v530_v0 }
  0xf0   : > { %v3153_v1 = vsub.f32 %v2972_v20, %v529_v57  ;;  %v3156_v3 = vsub.f32 %v2977_v21, %v529_v57  ;;  %v587_v7 = vmul.f32 %v3146_v58, %v3146_v58  ;;  %v588_v8 = vmul.f32 %v3149_v59, %v3149_v59 }
  0xf1   : > { %v3171_v21 = vsub.f32 %v2982_v22, %v530_v0  ;;  %v615_v24 = vadd.f32 %v580_v19, %v579_v18  ;;  %v586_v11 = vmul.f32 %v3174_v4, %v3174_v4 }
  0xf2   : > { %v583_v2 = vmul.f32 %v3153_v1, %v3153_v1  ;;  %v584_v20 = vmul.f32 %v3156_v3, %v3156_v3  ;;  %v627_v15 = vadd.f32 %v588_v8, %v587_v7 }
  0xf3   : > { %v503_v16 = vpop.xlane.xlu2 %502  ;;  %v585_v10 = vmul.f32 %v3171_v21, %v3171_v21 }
  0xf4   : > { %v621_v5 = vadd.f32 %v584_v20, %v583_v2  ;;  %v534_v17 = vmul.f32 %v3079_v54, %v503_v16  ;;  %v500_v25 = vpop.xlane.xlu1 %499 }
  0xf5   : > { %v497_v6 = vpop.xlane.xlu0 %496  ;;  %628 = vadd.xlane.f32.xlu0 %v627_v15  ;;  %v533_v9 = vmul.f32 %v3079_v54, %v500_v25  ;;  %v624_v49 = vadd.f32 %v586_v11, %v585_v10 }
  0xf6   : > { %v532_v44 = vmul.f32 %v3079_v54, %v497_v6  ;;  %622 = vadd.xlane.f32.xlu1 %v621_v5  ;;  %v3180_v22 = vsub.f32 %v2998_v27, %v534_v17  ;;  %v3183_v23 = vsub.f32 %v3003_v28, %v534_v17  ;;  %616 = vadd.xlane.f32.xlu2 %v615_v24 }
  0xf7   : > { %v3200_v14 = vsub.f32 %v3018_v31, %v533_v9 }
  0xf8   : > { %v3190_v12 = vsub.f32 %v3008_v29, %v532_v44  ;;  %v3193_v13 = vsub.f32 %v3013_v30, %v532_v44  ;;  %v593_v27 = vmul.f32 %v3180_v22, %v3180_v22  ;;  %v594_v28 = vmul.f32 %v3183_v23, %v3183_v23 }
  0xf9   : > { %v3207_v29 = vsub.f32 %v3023_v32, %v533_v9  ;;  %v591_v0 = vmul.f32 %v3200_v14, %v3200_v14 }
  0xfa   : > { %v589_v47 = vmul.f32 %v3190_v12, %v3190_v12  ;;  %v590_v48 = vmul.f32 %v3193_v13, %v3193_v13  ;;  %v636_v30 = vadd.f32 %v594_v28, %v593_v27 }
  0xfb   : > { %v512_v50 = vpop.xlane.xlu2 %511  ;;  %v592_v18 = vmul.f32 %v3207_v29, %v3207_v29 }
  0xfc   : > { %v630_v53 = vadd.f32 %v590_v48, %v589_v47  ;;  %v537_v55 = vmul.f32 %v3079_v54, %v512_v50  ;;  %v509_v57 = vpop.xlane.xlu1 %508 }
  0xfd   : > { %v506_v56 = vpop.xlane.xlu0 %505  ;;  %637 = vadd.xlane.f32.xlu0 %v636_v30  ;;  %v536_v8 = vmul.f32 %v3079_v54, %v509_v57  ;;  %v633_v5 = vadd.f32 %v592_v18, %v591_v0 }
  0xfe   : > { %v535_v31 = vmul.f32 %v3079_v54, %v506_v56  ;;  %631 = vadd.xlane.f32.xlu1 %v630_v53  ;;  %v3214_v7 = vsub.f32 %v3034_v36, %v537_v55  ;;  %v3217_v32 = vsub.f32 %v3039_v37, %v537_v55  ;;  %625 = vadd.xlane.f32.xlu2 %v624_v49 }
  0xff   : > { %v3237_v16 = vsub.f32 %v3054_v40, %v536_v8 }
 0x100   : > { %v3223_v19 = vsub.f32 %v3044_v38, %v535_v31  ;;  %v3226_v2 = vsub.f32 %v3049_v39, %v535_v31  ;;  %v599_v20 = vmul.f32 %v3214_v7, %v3214_v7  ;;  %v600_v36 = vmul.f32 %v3217_v32, %v3217_v32 }
 0x101   : > { %v3240_v38 = vsub.f32 %v3059_v41, %v536_v8  ;;  %v597_v25 = vmul.f32 %v3237_v16, %v3237_v16 }
 0x102   : > { %v595_v37 = vmul.f32 %v3223_v19, %v3223_v19  ;;  %v596_v15 = vmul.f32 %v3226_v2, %v3226_v2  ;;  %v645_v39 = vadd.f32 %v600_v36, %v599_v20 }
 0x103   : > { %v598_v44 = vmul.f32 %v3240_v38, %v3240_v38 }
 0x104   : > { %v639_v17 = vadd.f32 %v596_v15, %v595_v37  ;;  %v466_v37 = vld [vmem:[%s3942_s1] sm:$0x3] }
 0x105   : > { %v515_v6 = vpop.xlane.xlu0 %514  ;;  %646 = vadd.xlane.f32.xlu0 %v645_v39  ;;  %v642_v11 = vadd.f32 %v598_v44, %v597_v25  ;;  %v467_v39 = vld [vmem:[%s3943_s2] sm:$0x3] }
 0x106   : > { %v538_v24 = vmul.f32 %v3079_v54, %v515_v6  ;;  %640 = vadd.xlane.f32.xlu1 %v639_v17  ;;  %634 = vadd.xlane.f32.xlu2 %v633_v5  ;;  %v3277_v6 = vperm.slane %v466_v37, 0 }
 0x108   : > { %v3248_v40 = vsub.f32 %v3070_v45, %v538_v24  ;;  %v3251_v41 = vsub.f32 %v3075_v46, %v538_v24  ;;  %v3279_v24 = vperm.slane %v466_v37, 1 }
 0x10a   : > { %v601_v9 = vmul.f32 %v3248_v40, %v3248_v40  ;;  %v602_v10 = vmul.f32 %v3251_v41, %v3251_v41 }
 0x10c   : > { %v648_v27 = vadd.f32 %v602_v10, %v601_v9  ;;  %v3281_v9 = vperm.slane %v467_v39, 0  ;;  %v3283_v10 = vperm.slane %v467_v39, 1 }
 0x10e   : > { %649 = vadd.xlane.f32.xlu1 %v648_v27  ;;  %643 = vadd.xlane.f32.xlu2 %v642_v11 }
 0x158   : > { %v611_v47 = vpop.xlane.xlu0 %610 }
 0x159   : > { %v605_v28 = vpop.xlane.xlu1 %604  ;;  %v653_v45 = vmul.f32 %v611_v47, %v3079_v54 }
 0x15a   : > { %v651_v48 = vmul.f32 %v605_v28, %v3079_v54 }
 0x15b   : > { %v669_v49 = vadd.f32 1e-05, %v653_v45 }
 0x15c   : > { %v667_v30 = vadd.f32 1e-05, %v651_v48 }
 0x15d   : > { %vm709_vm3 = vweird.f32 %v669_v49 }
 0x15e   : > { %2530 = vrsqrt.f32 %v667_v30  ;;  %vm689_vm1 = vweird.f32 %v667_v30 }
 0x15f   : > { %2532 = vrsqrt.f32 %v669_v49 }
 0x160   : > { %v620_v50 = vpop.xlane.xlu0 %619 }
 0x161   : > { %v614_v46 = vpop.xlane.xlu1 %613  ;;  %v608_v55 = vpop.xlane.xlu2 %607  ;;  %v656_v56 = vmul.f32 %v620_v50, %v3079_v54 }
 0x162   : > { %v654_v53 = vmul.f32 %v614_v46, %v3079_v54  ;;  %v652_v57 = vmul.f32 %v608_v55, %v3079_v54 }
 0x163   : > { %v3264_v8 = vadd.f32 1e-05, %v656_v56 }
 0x164   : > { %v2531_v31 = vpop.eup %2530  ;;  %v3262_v0 = vadd.f32 1e-05, %v654_v53  ;;  %v3266_v36 = vadd.f32 1e-05, %v652_v57 }
 0x165   : > { %v2533_v18 = vpop.eup %2532  ;;  %v684_v20 = vmul.f32 %v2531_v31, %v667_v30  ;;  %vm690_vm2 = vweird.f32 %v2531_v31  ;;  %vm739_vm7 = vweird.f32 %v3264_v8 }
 0x166   : > { %v704_v15 = vmul.f32 %v2533_v18, %v669_v49  ;;  %2534 = vrsqrt.f32 %v3262_v0  ;;  %vm710_vm4 = vweird.f32 %v2533_v18  ;;  %vm719_vm5 = vweird.f32 %v3262_v0  ;;  %vm691_vm8 = vmor %vm689_vm1, %vm690_vm2 }
 0x167   : > { %v685_v5 = vmul.f32 %v2531_v31, %v684_v20  ;;  %2536 = vrsqrt.f32 %v3266_v36  ;;  %vm711_vm9 = vmor %vm709_vm3, %vm710_vm4  ;;  %vm699_vm13 = vweird.f32 %v3266_v36 }
 0x168   : > { %v705_v17 = vmul.f32 %v2533_v18, %v704_v15  ;;  %2538 = vrsqrt.f32 %v3264_v8  ;;  %v629_v47 = vpop.xlane.xlu0 %628 }
 0x169   : > { %v686_v25 = vmul.f32 0.5, %v685_v5  ;;  %v623_v44 = vpop.xlane.xlu1 %622  ;;  %v617_v27 = vpop.xlane.xlu2 %616  ;;  %v659_v20 = vmul.f32 %v629_v47, %v3079_v54 }
 0x16a   : > { %v706_v11 = vmul.f32 0.5, %v705_v17  ;;  %v657_v28 = vmul.f32 %v623_v44, %v3079_v54  ;;  %v655_v45 = vmul.f32 %v617_v27, %v3079_v54 }
 0x16b   : > { %v687_v48 = vsub.f32 1.5, %v686_v25 }
 0x16c   : > { %v2535_v46 = vpop.eup %2534  ;;  %v707_v50 = vsub.f32 1.5, %v706_v11  ;;  %v3287_v53 = vadd.f32 1e-05, %v657_v28  ;;  %v3296_v5 = vadd.f32 1e-05, %v655_v45 }
 0x16d   : > { %v2537_v55 = vpop.eup %2536  ;;  %v688_v56 = vmul.f32 %v2531_v31, %v687_v48  ;;  %v714_v57 = vmul.f32 %v2535_v46, %v3262_v0  ;;  %vm720_vm6 = vweird.f32 %v2535_v46 }
 0x16e   : > { %v2539_v37 = vpop.eup %2538  ;;  %v708_v15 = vmul.f32 %v2533_v18, %v707_v50  ;;  %v694_v39 = vmul.f32 %v2537_v55, %v3266_v36  ;;  %2540 = vrsqrt.f32 %v3287_v53  ;;  %vm700_vm10 = vweird.f32 %v2537_v55  ;;  %vm721_vm12 = vmor %vm719_vm5, %vm720_vm6 }
 0x16f   : > { %v692_v17 = vsel %vm691_vm8, %v2531_v31, %v688_v56  ;;  %v715_v25 = vmul.f32 %v2535_v46, %v714_v57  ;;  %v734_v44 = vmul.f32 %v2539_v37, %v3264_v8  ;;  %2542 = vrsqrt.f32 %v3296_v5  ;;  %vm701_vm14 = vmor %vm699_vm13, %vm700_vm10 }
 0x170   : > { %v843_v11 = vmul.f32 %v692_v17, %v3090_v62  ;;  %v844_v30 = vmul.f32 %v692_v17, %v3093_v63  ;;  %v712_v27 = vsel %vm711_vm9, %v2533_v18, %v708_v15  ;;  %v695_v28 = vmul.f32 %v2537_v55, %v694_v39 }
 0x171   : > { %v847_v47 = vmul.f32 %v712_v27, %v3084_v60  ;;  %v848_v48 = vmul.f32 %v712_v27, %v3087_v61  ;;  %v716_v45 = vmul.f32 0.5, %v715_v25  ;;  %v735_v50 = vmul.f32 %v2539_v37, %v734_v44  ;;  %v3309_v57 = vpop.xlane.xlu1 %631  ;;  %v626_v25 = vpop.xlane.xlu2 %625 }
 0x172   : > { %v880_v31 = vmul.f32 %v3277_v6, %v843_v11  ;;  %v881_v49 = vmul.f32 %v3279_v24, %v844_v30  ;;  %v696_v56 = vmul.f32 0.5, %v695_v28  ;;  %vm740_vm11 = vweird.f32 %v2539_v37 }
 0x173   : > { %v884_v62 = vmul.f32 %v3277_v6, %v847_v47  ;;  %v885_v63 = vmul.f32 %v3279_v24, %v848_v48  ;;  %v717_v18 = vsub.f32 1.5, %v716_v45  ;;  %v736_v15 = vmul.f32 0.5, %v735_v50  ;;  %v638_v45 = vpop.xlane.xlu0 %637  ;;  %vm741_vm15 = vmor %vm739_vm7, %vm740_vm11 }
 0x174   : > { %v3313_v60 = vpop.eup %2540  ;;  %v917_v61 = vadd.f32 %v3281_v9, %v880_v31  ;;  %v918_v39 = vadd.f32 %v3283_v10, %v881_v49  ;;  %v697_v17 = vsub.f32 1.5, %v696_v56  ;;  %v3326_v56 = vadd.f32 1e-05, %v659_v20 }
 0x175   : > { %v921_v44 = vadd.f32 %v3281_v9, %v884_v62  ;;  %v922_v11 = vadd.f32 %v3283_v10, %v885_v63  ;;  %v718_v30 = vmul.f32 %v2535_v46, %v717_v18  ;;  %v737_v27 = vsub.f32 1.5, %v736_v15  ;;  %v2543_v62 = vpop.eup %2542 }
 0x176   : > { %v949_v28 = vpack.c.bf16 %v918_v39, %v917_v61  ;;  %v698_v47 = vmul.f32 %v2537_v55, %v697_v17  ;;  %v744_v48 = vmul.f32 %v3313_v60, %v3287_v53  ;;  %v724_v61 = vmul.f32 %v2543_v62, %v3296_v5 }
 0x177   : > { %v951_v50 = vpack.c.bf16 %v922_v11, %v921_v44  ;;  %v722_v31 = vsel %vm721_vm12, %v2535_v46, %v718_v30  ;;  %v738_v49 = vmul.f32 %v2539_v37, %v737_v27  ;;  %vm729_vm0 = vweird.f32 %v3296_v5 }
 0x178   : > { %965 = vst [vmem:[#allocation2] sm:$0xff] %v949_v28  ;;  %v849_v63 = vmul.f32 %v722_v31, %v3113_v34  ;;  %v850_v0 = vmul.f32 %v722_v31, %v3116_v35  ;;  %v702_v18 = vsel %vm701_vm14, %v2537_v55, %v698_v47  ;;  %v745_v36 = vmul.f32 %v3313_v60, %v744_v48 }
 0x179   : > { %967 = vst [vmem:[#allocation2 + $0x10] sm:$0xff] %v951_v50  ;;  %v845_v46 = vmul.f32 %v702_v18, %v3119_v42  ;;  %v846_v15 = vmul.f32 %v702_v18, %v3122_v43  ;;  %v742_v20 = vsel %vm741_vm15, %v2539_v37, %v738_v49  ;;  %v725_v42 = vmul.f32 %v2543_v62, %v724_v61  ;;  %v641_v30 = vpop.xlane.xlu1 %640  ;;  %v635_v31 = vpop.xlane.xlu2 %634 }
 0x17a   : > { %v886_v34 = vmul.f32 %v3277_v6, %v849_v63  ;;  %v887_v35 = vmul.f32 %v3279_v24, %v850_v0  ;;  %v853_v55 = vmul.f32 %v742_v20, %v3107_v26  ;;  %v854_v8 = vmul.f32 %v742_v20, %v3110_v33 }
 0x17b   : > { %v882_v39 = vmul.f32 %v3277_v6, %v845_v46  ;;  %v883_v17 = vmul.f32 %v3279_v24, %v846_v15  ;;  %vm750_vm1 = vweird.f32 %v3313_v60  ;;  %v726_v27 = vmul.f32 0.5, %v725_v42  ;;  %v647_v15 = vpop.xlane.xlu0 %646 }
 0x17c   : > { %v923_v43 = vadd.f32 %v3281_v9, %v886_v34  ;;  %v924_v37 = vadd.f32 %v3283_v10, %v887_v35  ;;  %v890_v44 = vmul.f32 %v3277_v6, %v853_v55  ;;  %v891_v11 = vmul.f32 %v3279_v24, %v854_v8 }
 0x17d   : > { %v919_v26 = vadd.f32 %v3281_v9, %v882_v39  ;;  %v920_v33 = vadd.f32 %v3283_v10, %v883_v17  ;;  %v746_v28 = vmul.f32 0.5, %v745_v36  ;;  %2544 = vrsqrt.f32 %v3326_v56 }
 0x17e   : > { %v952_v47 = vpack.c.bf16 %v924_v37, %v923_v43  ;;  %v927_v48 = vadd.f32 %v3281_v9, %v890_v44  ;;  %v928_v50 = vadd.f32 %v3283_v10, %v891_v11  ;;  %v727_v63 = vsub.f32 1.5, %v726_v27 }
 0x17f   : > { %v950_v49 = vpack.c.bf16 %v920_v33, %v919_v26  ;;  %vm730_vm2 = vweird.f32 %v2543_v62  ;;  %v747_v0 = vsub.f32 1.5, %v746_v28  ;;  %vm749_vm3 = vweird.f32 %v3287_v53 }
 0x180   : > { %968 = vst [vmem:[#allocation2 + $0x18] sm:$0xff] %v952_v47  ;;  %v954_v18 = vpack.c.bf16 %v928_v50, %v927_v48  ;;  %v658_v46 = vmul.f32 %v626_v25, %v3079_v54  ;;  %v660_v36 = vmul.f32 %v3309_v57, %v3079_v54  ;;  %v728_v20 = vmul.f32 %v2543_v62, %v727_v63  ;;  %vm751_vm4 = vmor %vm749_vm3, %vm750_vm1 }
 0x181   : > { %966 = vst [vmem:[#allocation2 + $0x8] sm:$0xff] %v950_v49  ;;  %v748_v61 = vmul.f32 %v3313_v60, %v747_v0  ;;  %v662_v34 = vmul.f32 %v638_v45, %v3079_v54  ;;  %v661_v35 = vmul.f32 %v635_v31, %v3079_v54  ;;  %vm731_vm5 = vmor %vm729_vm0, %vm730_vm2  ;;  %v663_v57 = vmul.f32 %v641_v30, %v3079_v54  ;;  %v650_v30 = vpop.xlane.xlu1 %649  ;;  %v644_v28 = vpop.xlane.xlu2 %643 }
 0x182   : > { %970 = vst [vmem:[#allocation2 + $0x28] sm:$0xff] %v954_v18  ;;  %v3366_v53 = vadd.f32 1e-05, %v658_v46  ;;  %v732_v25 = vsel %vm731_vm5, %v2543_v62, %v728_v20  ;;  %v3370_v8 = vadd.f32 1e-05, %v660_v36  ;;  %v665_v39 = vmul.f32 %v647_v15, %v3079_v54 }
 0x183   : > { %v752_v55 = vsel %vm751_vm4, %v3313_v60, %v748_v61  ;;  %v2545_v17 = vpop.eup %2544  ;;  %v851_v45 = vmul.f32 %v732_v25, %v3138_v51  ;;  %v852_v42 = vmul.f32 %v732_v25, %v3141_v52  ;;  %v3379_v62 = vadd.f32 1e-05, %v662_v34 }
 0x184   : > { %v855_v43 = vmul.f32 %v752_v55, %v3153_v1  ;;  %v856_v5 = vmul.f32 %v752_v55, %v3156_v3  ;;  %v764_v37 = vmul.f32 %v2545_v17, %v3326_v56  ;;  %2546 = vrsqrt.f32 %v3366_v53 }
 0x185   : > { %v3381_v60 = vadd.f32 1e-05, %v661_v35  ;;  %v888_v44 = vmul.f32 %v3277_v6, %v851_v45  ;;  %v889_v11 = vmul.f32 %v3279_v24, %v852_v42  ;;  %vm769_vm6 = vweird.f32 %v3326_v56 }
 0x186   : > { %v892_v51 = vmul.f32 %v3277_v6, %v855_v43  ;;  %v893_v52 = vmul.f32 %v3279_v24, %v856_v5  ;;  %v765_v1 = vmul.f32 %v2545_v17, %v764_v37  ;;  %2548 = vrsqrt.f32 %v3370_v8 }
 0x187   : > { %v925_v3 = vadd.f32 %v3281_v9, %v888_v44  ;;  %v926_v26 = vadd.f32 %v3283_v10, %v889_v11  ;;  %2550 = vrsqrt.f32 %v3379_v62  ;;  %v3394_v48 = vadd.f32 1e-05, %v663_v57 }
 0x188   : > { %v929_v33 = vadd.f32 %v3281_v9, %v892_v51  ;;  %v930_v27 = vadd.f32 %v3283_v10, %v893_v52  ;;  %v766_v47 = vmul.f32 0.5, %v765_v1  ;;  %v666_v50 = vmul.f32 %v650_v30, %v3079_v54 }
 0x189   : > { %v953_v31 = vpack.c.bf16 %v926_v26, %v925_v3  ;;  %2552 = vrsqrt.f32 %v3381_v60  ;;  %v3398_v63 = vadd.f32 1e-05, %v665_v39  ;;  %vm770_vm7 = vweird.f32 %v2545_v17 }
 0x18a   : > { %v955_v49 = vpack.c.bf16 %v930_v27, %v929_v33  ;;  %v2547_v0 = vpop.eup %2546  ;;  %v767_v18 = vsub.f32 1.5, %v766_v47  ;;  %2554 = vrsqrt.f32 %v3394_v48  ;;  %v664_v46 = vmul.f32 %v644_v28, %v3079_v54  ;;  %vm771_vm9 = vmor %vm769_vm6, %vm770_vm7 }
 0x18b   : > { %969 = vst [vmem:[#allocation2 + $0x20] sm:$0xff] %v953_v31  ;;  %v754_v36 = vmul.f32 %v2547_v0, %v3366_v53  ;;  %2556 = vrsqrt.f32 %v3398_v63  ;;  %vm759_vm8 = vweird.f32 %v3366_v53  ;;  %vm760_vm10 = vweird.f32 %v2547_v0 }
 0x18c   : > { %v2549_v15 = vpop.eup %2548  ;;  %971 = vst [vmem:[#allocation2 + $0x30] sm:$0xff] %v955_v49  ;;  %v768_v20 = vmul.f32 %v2545_v17, %v767_v18  ;;  %v3405_v61 = vadd.f32 1e-05, %v664_v46  ;;  %vm779_vm11 = vweird.f32 %v3370_v8  ;;  %vm799_vm13 = vweird.f32 %v3379_v62  ;;  %vm761_vm3 = vmor %vm759_vm8, %vm760_vm10 }
 0x18d   : > { %v755_v34 = vmul.f32 %v2547_v0, %v754_v36  ;;  %v774_v35 = vmul.f32 %v2549_v15, %v3370_v8  ;;  %v3411_v54 = vpop.eup %2550  ;;  %vm780_vm12 = vweird.f32 %v2549_v15  ;;  %v3415_v25 = vadd.f32 1e-05, %v666_v50 }
 0x18e   : > { %v772_v57 = vsel %vm771_vm9, %v2545_v17, %v768_v20  ;;  %2558 = vrsqrt.f32 %v3405_v61  ;;  %v794_v5 = vmul.f32 %v3411_v54, %v3379_v62  ;;  %vm800_vm14 = vweird.f32 %v3411_v54  ;;  %vm781_vm6 = vmor %vm779_vm11, %vm780_vm12 }
 0x18f   : > { %v2553_v55 = vpop.eup %2552  ;;  %v859_v56 = vmul.f32 %v772_v57, %v3146_v58  ;;  %v860_v39 = vmul.f32 %v772_v57, %v3149_v59  ;;  %v756_v45 = vmul.f32 0.5, %v755_v34  ;;  %v775_v42 = vmul.f32 %v2549_v15, %v774_v35  ;;  %vm801_vm7 = vmor %vm799_vm13, %vm800_vm14 }
 0x190   : > { %v3419_v43 = vpop.eup %2554  ;;  %v784_v17 = vmul.f32 %v2553_v55, %v3381_v60  ;;  %vm790_vm15 = vweird.f32 %v2553_v55  ;;  %vm789_vm0 = vweird.f32 %v3381_v60  ;;  %v795_v51 = vmul.f32 %v3411_v54, %v794_v5 }
 0x191   : > { %v3425_v37 = vpop.eup %2556  ;;  %v896_v44 = vmul.f32 %v3277_v6, %v859_v56  ;;  %v897_v58 = vmul.f32 %v3279_v24, %v860_v39  ;;  %v757_v11 = vsub.f32 1.5, %v756_v45  ;;  %v776_v59 = vmul.f32 0.5, %v775_v42  ;;  %vm791_vm8 = vmor %vm789_vm0, %vm790_vm15 }
 0x192   : > { %v785_v52 = vmul.f32 %v2553_v55, %v784_v17  ;;  %v804_v30 = vmul.f32 %v3419_v43, %v3394_v48  ;;  %vm810_vm1 = vweird.f32 %v3419_v43  ;;  %vm809_vm2 = vweird.f32 %v3394_v48 }
 0x193   : > { %v933_v1 = vadd.f32 %v3281_v9, %v896_v44  ;;  %v934_v3 = vadd.f32 %v3283_v10, %v897_v58  ;;  %v758_v26 = vmul.f32 %v2547_v0, %v757_v11  ;;  %v777_v33 = vsub.f32 1.5, %v776_v59  ;;  %vm811_vm9 = vmor %vm809_vm2, %vm810_vm1 }
 0x194   : > { %v3437_v27 = vpop.eup %2558  ;;  %v796_v28 = vmul.f32 0.5, %v795_v51  ;;  %v786_v47 = vmul.f32 0.5, %v785_v52  ;;  %v805_v50 = vmul.f32 %v3419_v43, %v804_v30  ;;  %v824_v31 = vmul.f32 %v3425_v37, %v3398_v63 }
 0x195   : > { %v957_v49 = vpack.c.bf16 %v934_v3, %v933_v1  ;;  %v762_v18 = vsel %vm761_vm3, %v2547_v0, %v758_v26  ;;  %v778_v46 = vmul.f32 %v2549_v15, %v777_v33  ;;  %vm829_vm4 = vweird.f32 %v3398_v63 }
 0x196   : > { %vm830_vm5 = vweird.f32 %v3425_v37  ;;  %v857_v36 = vmul.f32 %v762_v18, %v3171_v21  ;;  %v858_v20 = vmul.f32 %v762_v18, %v3174_v4  ;;  %v797_v53 = vsub.f32 1.5, %v796_v28 }
 0x197   : > { %v787_v34 = vsub.f32 1.5, %v786_v47  ;;  %973 = vst [vmem:[#allocation2 + $0x40] sm:$0xff] %v957_v49  ;;  %v782_v35 = vsel %vm781_vm6, %v2549_v15, %v778_v46  ;;  %v806_v57 = vmul.f32 0.5, %v805_v50  ;;  %v825_v0 = vmul.f32 %v3425_v37, %v824_v31  ;;  %vm831_vm10 = vmor %vm829_vm4, %vm830_vm5 }
 0x198   : > { %v814_v56 = vmul.f32 %v3437_v27, %v3405_v61  ;;  %v894_v39 = vmul.f32 %v3277_v6, %v857_v36  ;;  %v895_v21 = vmul.f32 %v3279_v24, %v858_v20  ;;  %v861_v4 = vmul.f32 %v782_v35, %v3190_v12 }
 0x199   : > { %v862_v45 = vmul.f32 %v782_v35, %v3193_v13  ;;  %v798_v8 = vmul.f32 %v3411_v54, %v797_v53  ;;  %v788_v15 = vmul.f32 %v2553_v55, %v787_v34  ;;  %v807_v42 = vsub.f32 1.5, %v806_v57 }
 0x19a   : > { %v826_v5 = vmul.f32 0.5, %v825_v0  ;;  %v931_v17 = vadd.f32 %v3281_v9, %v894_v39  ;;  %v932_v44 = vadd.f32 %v3283_v10, %v895_v21  ;;  %v898_v58 = vmul.f32 %v3277_v6, %v861_v4 }
 0x19b   : > { %v899_v12 = vmul.f32 %v3279_v24, %v862_v45  ;;  %v802_v13 = vsel %vm801_vm7, %v3411_v54, %v798_v8  ;;  %v792_v11 = vsel %vm791_vm8, %v2553_v55, %v788_v15  ;;  %v808_v62 = vmul.f32 %v3419_v43, %v807_v42 }
 0x19c   : > { %v827_v59 = vsub.f32 1.5, %v826_v5  ;;  %v956_v51 = vpack.c.bf16 %v932_v44, %v931_v17  ;;  %v935_v52 = vadd.f32 %v3281_v9, %v898_v58  ;;  %v865_v1 = vmul.f32 %v802_v13, %v3180_v22 }
 0x19d   : > { %v936_v30 = vadd.f32 %v3283_v10, %v899_v12  ;;  %v866_v60 = vmul.f32 %v802_v13, %v3183_v23  ;;  %v863_v54 = vmul.f32 %v792_v11, %v3200_v14  ;;  %v864_v55 = vmul.f32 %v792_v11, %v3207_v29 }
 0x19e   : > { %v812_v3 = vsel %vm811_vm9, %v3419_v43, %v808_v62  ;;  %972 = vst [vmem:[#allocation2 + $0x38] sm:$0xff] %v956_v51  ;;  %v902_v33 = vmul.f32 %v3277_v6, %v865_v1  ;;  %v828_v14 = vmul.f32 %v3425_v37, %v827_v59  ;;  %2560 = vrsqrt.f32 %v3415_v25 }
 0x19f   : > { %v958_v26 = vpack.c.bf16 %v936_v30, %v935_v52  ;;  %v867_v28 = vmul.f32 %v812_v3, %v3223_v19  ;;  %v868_v22 = vmul.f32 %v812_v3, %v3226_v2  ;;  %v903_v47 = vmul.f32 %v3279_v24, %v866_v60 }
 0x1a0   : > { %v900_v48 = vmul.f32 %v3277_v6, %v863_v54  ;;  %v901_v23 = vmul.f32 %v3279_v24, %v864_v55  ;;  %v939_v29 = vadd.f32 %v3281_v9, %v902_v33  ;;  %v815_v19 = vmul.f32 %v3437_v27, %v814_v56 }
 0x1a1   : > { %974 = vst [vmem:[#allocation2 + $0x48] sm:$0xff] %v958_v26  ;;  %v904_v43 = vmul.f32 %v3277_v6, %v867_v28  ;;  %v905_v50 = vmul.f32 %v3279_v24, %v868_v22  ;;  %v940_v2 = vadd.f32 %v3283_v10, %v903_v47  ;;  %v832_v18 = vsel %vm831_vm10, %v3425_v37, %v828_v14 }
 0x1a2   : > { %v937_v31 = vadd.f32 %v3281_v9, %v900_v48  ;;  %v938_v49 = vadd.f32 %v3283_v10, %v901_v23  ;;  %v871_v20 = vmul.f32 %v832_v18, %v3214_v7  ;;  %v872_v53 = vmul.f32 %v832_v18, %v3217_v32 }
 0x1a3   : > { %v941_v46 = vadd.f32 %v3281_v9, %v904_v43  ;;  %v942_v36 = vadd.f32 %v3283_v10, %v905_v50  ;;  %v960_v63 = vpack.c.bf16 %v940_v2, %v939_v29  ;;  %v816_v35 = vmul.f32 0.5, %v815_v19 }
 0x1a4   : > { %v959_v34 = vpack.c.bf16 %v938_v49, %v937_v31  ;;  %v908_v0 = vmul.f32 %v3277_v6, %v871_v20  ;;  %v909_v56 = vmul.f32 %v3279_v24, %v872_v53  ;;  %vm820_vm11 = vweird.f32 %v3437_v27  ;;  %v2561_v45 = vpop.eup %2560 }
 0x1a5   : > { %v961_v57 = vpack.c.bf16 %v942_v36, %v941_v46  ;;  %976 = vst [vmem:[#allocation2 + $0x58] sm:$0xff] %v960_v63  ;;  %v817_v37 = vsub.f32 1.5, %v816_v35  ;;  %vm819_vm12 = vweird.f32 %v3405_v61  ;;  %v834_v42 = vmul.f32 %v2561_v45, %v3415_v25 }
 0x1a6   : > { %975 = vst [vmem:[#allocation2 + $0x50] sm:$0xff] %v959_v34  ;;  %v945_v39 = vadd.f32 %v3281_v9, %v908_v0  ;;  %v946_v7 = vadd.f32 %v3283_v10, %v909_v56  ;;  %vm821_vm13 = vmor %vm819_vm12, %vm820_vm11  ;;  %vm840_vm14 = vweird.f32 %v2561_v45  ;;  %vm839_vm15 = vweird.f32 %v3415_v25 }
 0x1a7   : > { %977 = vst [vmem:[#allocation2 + $0x60] sm:$0xff] %v961_v57  ;;  %v818_v32 = vmul.f32 %v3437_v27, %v817_v37  ;;  %v835_v44 = vmul.f32 %v2561_v45, %v834_v42  ;;  %vm841_vm0 = vmor %vm839_vm15, %vm840_vm14 }
 0x1a8   : > { %v963_v21 = vpack.c.bf16 %v946_v7, %v945_v39 }
 0x1a9   : > { %v822_v4 = vsel %vm821_vm13, %v3437_v27, %v818_v32  ;;  %v836_v12 = vmul.f32 0.5, %v835_v44 }
 0x1aa   : > { %979 = vst [vmem:[#allocation2 + $0x70] sm:$0xff] %v963_v21  ;;  %v869_v8 = vmul.f32 %v822_v4, %v3237_v16  ;;  %v870_v15 = vmul.f32 %v822_v4, %v3240_v38 }
 0x1ab   : > { %v837_v27 = vsub.f32 1.5, %v836_v12 }
 0x1ac   : > { %v906_v5 = vmul.f32 %v3277_v6, %v869_v8  ;;  %v907_v17 = vmul.f32 %v3279_v24, %v870_v15 }
 0x1ad   : > { %v838_v11 = vmul.f32 %v2561_v45, %v837_v27 }
 0x1ae   : > { %v943_v58 = vadd.f32 %v3281_v9, %v906_v5  ;;  %v944_v61 = vadd.f32 %v3283_v10, %v907_v17 }
 0x1af   : > { %v842_v16 = vsel %vm841_vm0, %v2561_v45, %v838_v11 }
 0x1b0   : > { %v962_v13 = vpack.c.bf16 %v944_v61, %v943_v58  ;;  %v873_v38 = vmul.f32 %v842_v16, %v3248_v40  ;;  %v874_v62 = vmul.f32 %v842_v16, %v3251_v41 }
 0x1b2   : > { %978 = vst [vmem:[#allocation2 + $0x68] sm:$0xff] %v962_v13  ;;  %v910_v59 = vmul.f32 %v3277_v6, %v873_v38  ;;  %v911_v51 = vmul.f32 %v3279_v24, %v874_v62 }
 0x1b4   : > { %v947_v52 = vadd.f32 %v3281_v9, %v910_v59  ;;  %v948_v30 = vadd.f32 %v3283_v10, %v911_v51 }
 0x1b6   : > { %v964_v1 = vpack.c.bf16 %v948_v30, %v947_v52 }
 0x1b8   : > { %980 = vst [vmem:[#allocation2 + $0x78] sm:$0xff] %v964_v1 }
 0x1b9 PF: > { %v2240_v40 = vld [vmem:[%s2882_s27 + $0xe0] sm:$0xf]  ;;  %v2434_v41 = vld [vmem:[%s2882_s27 + $0xec] sm:$0xf0]  ;;  %v2432_v10 = vld [vmem:[%s2882_s27 + $0xe4] sm:$0xf] }
 0x1ba   : > { %v2368_v6 = vld [vmem:[%s2882_s27 + $0x1e0] sm:$0xf]  ;;  %v2241_v24 = vor.u32 %v2434_v41, %v2240_v40  ;;  %v2466_v9 = vld [vmem:[%s2882_s27 + $0x1ec] sm:$0xf0]  ;;  %v2242_v25 = vld [vmem:[%s2882_s27 + $0xf0] sm:$0xf0] }
 0x1bb   : > { %v2369_v60 = vor.u32 %v2466_v9, %v2368_v6  ;;  %v2245_v54 = vor.u32 %v2432_v10, %v2242_v25  ;;  %v2464_v55 = vld [vmem:[%s2882_s27 + $0x1e4] sm:$0xf]  ;;  %v2370_v3 = vld [vmem:[%s2882_s27 + $0x1f0] sm:$0xf0]  ;;  %v2224_v26 = vld [vmem:[%s2882_s27 + $0xc0] sm:$0xf] }
 0x1bc   : > { %1471 = vmatpush.bf16.msra.mxu0 %v2241_v24  ;;  %v2373_v33 = vor.u32 %v2464_v55, %v2370_v3  ;;  %v2430_v28 = vld [vmem:[%s2882_s27 + $0xcc] sm:$0xf0]  ;;  %v2352_v22 = vld [vmem:[%s2882_s27 + $0x1c0] sm:$0xf]  ;;  %v2428_v14 = vld [vmem:[%s2882_s27 + $0xc4] sm:$0xf] }
 0x1bd   : > { %v2462_v47 = vld [vmem:[%s2882_s27 + $0x1cc] sm:$0xf0]  ;;  %1520 = vmatpush.bf16.msra.mxu1 %v2369_v60  ;;  %1569 = vmatpush.bf16.msra.mxu2 %v2245_v54  ;;  %v2225_v48 = vor.u32 %v2430_v28, %v2224_v26  ;;  %v2226_v29 = vld [vmem:[%s2882_s27 + $0xd0] sm:$0xf0]  ;;  %v2460_v43 = vld [vmem:[%s2882_s27 + $0x1c4] sm:$0xf] }
 0x1be   : > { %v2353_v23 = vor.u32 %v2462_v47, %v2352_v22  ;;  %1618 = vmatpush.bf16.msra.mxu3 %v2373_v33  ;;  %v2229_v50 = vor.u32 %v2428_v14, %v2226_v29  ;;  %v2354_v19 = vld [vmem:[%s2882_s27 + $0x1d0] sm:$0xf0]  ;;  %v2208_v2 = vld [vmem:[%s2882_s27 + $0xa0] sm:$0xf]  ;;  %v2426_v31 = vld [vmem:[%s2882_s27 + $0xac] sm:$0xf0] }
 0x1bf   : > { %v2357_v49 = vor.u32 %v2460_v43, %v2354_v19  ;;  %v2336_v18 = vld [vmem:[%s2882_s27 + $0x1a0] sm:$0xf]  ;;  %v2458_v46 = vld [vmem:[%s2882_s27 + $0x1ac] sm:$0xf0]  ;;  %v2424_v36 = vld [vmem:[%s2882_s27 + $0xa4] sm:$0xf]  ;;  %v2209_v20 = vor.u32 %v2426_v31, %v2208_v2 }
 0x1c0   : > { %1472 = vmatpush.bf16.msra.mxu0 %v2225_v48  ;;  %v2210_v53 = vld [vmem:[%s2882_s27 + $0xb0] sm:$0xf0]  ;;  %v2456_v63 = vld [vmem:[%s2882_s27 + $0x1a4] sm:$0xf]  ;;  %v2337_v35 = vor.u32 %v2458_v46, %v2336_v18  ;;  %v2192_v0 = vld [vmem:[%s2882_s27 + $0x80] sm:$0xf] }
 0x1c1   : > { %v2338_v34 = vld [vmem:[%s2882_s27 + $0x1b0] sm:$0xf0]  ;;  %1521 = vmatpush.bf16.msra.mxu1 %v2353_v23  ;;  %1570 = vmatpush.bf16.msra.mxu2 %v2229_v50  ;;  %v2213_v57 = vor.u32 %v2424_v36, %v2210_v53  ;;  %v2422_v56 = vld [vmem:[%s2882_s27 + $0x8c] sm:$0xf0]  ;;  %v2320_v37 = vld [vmem:[%s2882_s27 + $0x180] sm:$0xf] }
 0x1c2   : > { %1619 = vmatpush.bf16.msra.mxu3 %v2357_v49  ;;  %v2341_v39 = vor.u32 %v2456_v63, %v2338_v34  ;;  %v2454_v7 = vld [vmem:[%s2882_s27 + $0x18c] sm:$0xf0]  ;;  %v2420_v32 = vld [vmem:[%s2882_s27 + $0x84] sm:$0xf]  ;;  %v2194_v21 = vld [vmem:[%s2882_s27 + $0x90] sm:$0xf0]  ;;  %v2193_v8 = vor.u32 %v2422_v56, %v2192_v0 }
 0x1c3   : > { %v2452_v4 = vld [vmem:[%s2882_s27 + $0x184] sm:$0xf]  ;;  %v2322_v45 = vld [vmem:[%s2882_s27 + $0x190] sm:$0xf0]  ;;  %v2321_v15 = vor.u32 %v2454_v7, %v2320_v37  ;;  %v2197_v42 = vor.u32 %v2420_v32, %v2194_v21  ;;  %v2176_v5 = vld [vmem:[%s2882_s27 + $0x60] sm:$0xf] }
 0x1c4   : > { %1473 = vmatpush.bf16.msra.mxu0 %v2209_v20  ;;  %v2418_v17 = vld [vmem:[%s2882_s27 + $0x6c] sm:$0xf0]  ;;  %v2304_v44 = vld [vmem:[%s2882_s27 + $0x160] sm:$0xf]  ;;  %v2325_v58 = vor.u32 %v2452_v4, %v2322_v45  ;;  %v2416_v12 = vld [vmem:[%s2882_s27 + $0x64] sm:$0xf] }
 0x1c5   : > { %1522 = vmatpush.bf16.msra.mxu1 %v2337_v35  ;;  %1571 = vmatpush.bf16.msra.mxu2 %v2213_v57  ;;  %v2450_v61 = vld [vmem:[%s2882_s27 + $0x16c] sm:$0xf0]  ;;  %v2178_v13 = vld [vmem:[%s2882_s27 + $0x70] sm:$0xf0]  ;;  %v2448_v27 = vld [vmem:[%s2882_s27 + $0x164] sm:$0xf]  ;;  %v2177_v16 = vor.u32 %v2418_v17, %v2176_v5 }
 0x1c6   : > { %1620 = vmatpush.bf16.msra.mxu3 %v2341_v39  ;;  %v2306_v11 = vld [vmem:[%s2882_s27 + $0x170] sm:$0xf0]  ;;  %v2305_v38 = vor.u32 %v2450_v61, %v2304_v44  ;;  %v2181_v62 = vor.u32 %v2416_v12, %v2178_v13  ;;  %v2160_v59 = vld [vmem:[%s2882_s27 + $0x40] sm:$0xf]  ;;  %v2414_v51 = vld [vmem:[%s2882_s27 + $0x4c] sm:$0xf0] }
 0x1c7   : > { %v2288_v52 = vld [vmem:[%s2882_s27 + $0x140] sm:$0xf]  ;;  %v2309_v30 = vor.u32 %v2448_v27, %v2306_v11  ;;  %v2446_v1 = vld [vmem:[%s2882_s27 + $0x14c] sm:$0xf0]  ;;  %v2412_v40 = vld [vmem:[%s2882_s27 + $0x44] sm:$0xf]  ;;  %v2161_v9 = vor.u32 %v2414_v51, %v2160_v59 }
 0x1c8   : > { %1474 = vmatpush.bf16.msra.mxu0 %v2193_v8  ;;  %v2162_v41 = vld [vmem:[%s2882_s27 + $0x50] sm:$0xf0]  ;;  %v2444_v6 = vld [vmem:[%s2882_s27 + $0x144] sm:$0xf]  ;;  %v2289_v10 = vor.u32 %v2446_v1, %v2288_v52  ;;  %v2144_v60 = vld [vmem:[%s2882_s27 + $0x20] sm:$0xf] }
 0x1c9   : > { %1523 = vmatpush.bf16.msra.mxu1 %v2321_v15  ;;  %1572 = vmatpush.bf16.msra.mxu2 %v2197_v42  ;;  %v2290_v24 = vld [vmem:[%s2882_s27 + $0x150] sm:$0xf0]  ;;  %v2165_v25 = vor.u32 %v2412_v40, %v2162_v41  ;;  %v2410_v54 = vld [vmem:[%s2882_s27 + $0x2c] sm:$0xf0]  ;;  %v2272_v55 = vld [vmem:[%s2882_s27 + $0x120] sm:$0xf] }
 0x1ca   : > { %1621 = vmatpush.bf16.msra.mxu3 %v2325_v58  ;;  %v2293_v3 = vor.u32 %v2444_v6, %v2290_v24  ;;  %v2442_v26 = vld [vmem:[%s2882_s27 + $0x12c] sm:$0xf0]  ;;  %v2408_v33 = vld [vmem:[%s2882_s27 + $0x24] sm:$0xf]  ;;  %v2146_v28 = vld [vmem:[%s2882_s27 + $0x30] sm:$0xf0]  ;;  %v2145_v48 = vor.u32 %v2410_v54, %v2144_v60 }
 0x1cb   : > { %v2440_v22 = vld [vmem:[%s2882_s27 + $0x124] sm:$0xf]  ;;  %v2274_v47 = vld [vmem:[%s2882_s27 + $0x130] sm:$0xf0]  ;;  %v2128_v23 = vld [vmem:[%s2882_s27] sm:$0xf]  ;;  %v2273_v29 = vor.u32 %v2442_v26, %v2272_v55  ;;  %v2149_v43 = vor.u32 %v2408_v33, %v2146_v28 }
 0x1cc   : > { %1475 = vmatpush.bf16.msra.mxu0 %v2177_v16  ;;  %v2406_v14 = vld [vmem:[%s2882_s27 + $0xc] sm:$0xf0]  ;;  %v2256_v50 = vld [vmem:[%s2882_s27 + $0x100] sm:$0xf]  ;;  %v2404_v2 = vld [vmem:[%s2882_s27 + $0x4] sm:$0xf]  ;;  %v2277_v31 = vor.u32 %v2440_v22, %v2274_v47 }
 0x1cd   : > { %1524 = vmatpush.bf16.msra.mxu1 %v2305_v38  ;;  %1573 = vmatpush.bf16.msra.mxu2 %v2181_v62  ;;  %v2438_v19 = vld [vmem:[%s2882_s27 + $0x10c] sm:$0xf0]  ;;  %v2130_v49 = vld [vmem:[%s2882_s27 + $0x10] sm:$0xf0]  ;;  %v2436_v18 = vld [vmem:[%s2882_s27 + $0x104] sm:$0xf]  ;;  %v2129_v63 = vor.u32 %v2406_v14, %v2128_v23 }
 0x1ce   : > { %1622 = vmatpush.bf16.msra.mxu3 %v2309_v30  ;;  %v2258_v46 = vld [vmem:[%s2882_s27 + $0x110] sm:$0xf0]  ;;  %v2064_v36 = vld [vmem:[#allocation2] sm:$0xf]  ;;  %v2433_v20 = vld [vmem:[%s2882_s27 + $0xec] sm:$0xf]  ;;  %v2257_v0 = vor.u32 %v2438_v19, %v2256_v50  ;;  %v2133_v56 = vor.u32 %v2404_v2, %v2130_v49 }
 0x1cf   : > { %v2250_v53 = vld [vmem:[%s2882_s27 + $0xf8] sm:$0xf0]  ;;  %v2389_v34 = vld [vmem:[#allocation2 + $0x4] sm:$0xf0]  ;;  %v2465_v35 = vld [vmem:[%s2882_s27 + $0x1ec] sm:$0xf]  ;;  %v2261_v7 = vor.u32 %v2436_v18, %v2258_v46 }
 0x1d0   : > { %1476 = vmatpush.bf16.msra.mxu0 %v2161_v9  ;;  %v2378_v57 = vld [vmem:[%s2882_s27 + $0x1f8] sm:$0xf0]  ;;  %v2388_v37 = vld [vmem:[#allocation2 + $0x4] sm:$0xf]  ;;  %v2066_v39 = vld [vmem:[#allocation2 + $0x8] sm:$0xf0]  ;;  %v2253_v32 = vor.u32 %v2433_v20, %v2250_v53  ;;  %v3601_v8 = vor.u32 %v2389_v34, %v2064_v36 }
 0x1d1   : > { %1525 = vmatpush.bf16.msra.mxu1 %v2289_v10  ;;  %1574 = vmatpush.bf16.msra.mxu2 %v2165_v25  ;;  %v2248_v21 = vld [vmem:[%s2882_s27 + $0xe8] sm:$0xf]  ;;  %v2435_v4 = vld [vmem:[%s2882_s27 + $0xf4] sm:$0xf0]  ;;  %v2381_v15 = vor.u32 %v2465_v35, %v2378_v57  ;;  %v2429_v5 = vld [vmem:[%s2882_s27 + $0xcc] sm:$0xf]  ;;  %v3606_v44 = vor.u32 %v2388_v37, %v2066_v39 }
 0x1d2   : > { %1623 = vmatpush.bf16.msra.mxu3 %v2293_v3  ;;  %v2376_v45 = vld [vmem:[%s2882_s27 + $0x1e8] sm:$0xf]  ;;  %v2467_v42 = vld [vmem:[%s2882_s27 + $0x1f4] sm:$0xf0]  ;;  %v2234_v17 = vld [vmem:[%s2882_s27 + $0xd8] sm:$0xf0]  ;;  %v2249_v12 = vor.u32 %v2435_v4, %v2248_v21 }
 0x1d3   : > { %v2461_v58 = vld [vmem:[%s2882_s27 + $0x1cc] sm:$0xf]  ;;  %v2362_v61 = vld [vmem:[%s2882_s27 + $0x1d8] sm:$0xf0]  ;;  %v2377_v13 = vor.u32 %v2467_v42, %v2376_v45  ;;  %v2237_v27 = vor.u32 %v2429_v5, %v2234_v17  ;;  %v2232_v11 = vld [vmem:[%s2882_s27 + $0xc8] sm:$0xf] }
 0x1d4   : > { %1477 = vmatpush.bf16.msra.mxu0 %v2145_v48  ;;  %v2431_v16 = vld [vmem:[%s2882_s27 + $0xd4] sm:$0xf0]  ;;  %v2365_v38 = vor.u32 %v2461_v58, %v2362_v61  ;;  %v2360_v62 = vld [vmem:[%s2882_s27 + $0x1c8] sm:$0xf]  ;;  %v2425_v52 = vld [vmem:[%s2882_s27 + $0xac] sm:$0xf] }
 0x1d5   : > { %1526 = vmatpush.bf16.msra.mxu1 %v2273_v29  ;;  %1575 = vmatpush.bf16.msra.mxu2 %v2149_v43  ;;  %v2463_v59 = vld [vmem:[%s2882_s27 + $0x1d4] sm:$0xf0]  ;;  %v2233_v51 = vor.u32 %v2431_v16, %v2232_v11  ;;  %v2218_v30 = vld [vmem:[%s2882_s27 + $0xb8] sm:$0xf0]  ;;  %v2457_v1 = vld [vmem:[%s2882_s27 + $0x1ac] sm:$0xf] }
 0x1d6   : > { %1624 = vmatpush.bf16.msra.mxu3 %v2277_v31  ;;  %v2361_v40 = vor.u32 %v2463_v59, %v2360_v62  ;;  %v2221_v41 = vor.u32 %v2425_v52, %v2218_v30  ;;  %v2346_v6 = vld [vmem:[%s2882_s27 + $0x1b8] sm:$0xf0]  ;;  %v2216_v24 = vld [vmem:[%s2882_s27 + $0xa8] sm:$0xf]  ;;  %v2427_v9 = vld [vmem:[%s2882_s27 + $0xb4] sm:$0xf0] }
 0x1d7   : > { %v2349_v10 = vor.u32 %v2457_v1, %v2346_v6  ;;  %v2344_v25 = vld [vmem:[%s2882_s27 + $0x1a8] sm:$0xf]  ;;  %v2459_v60 = vld [vmem:[%s2882_s27 + $0x1b4] sm:$0xf0]  ;;  %v2217_v54 = vor.u32 %v2427_v9, %v2216_v24  ;;  %v2072_v3 = vld [vmem:[#allocation2 + $0x10] sm:$0xf] }
 0x1d8   : > { %1478 = vmatpush.bf16.msra.mxu0 %v2129_v63  ;;  %v2345_v55 = vor.u32 %v2459_v60, %v2344_v25  ;;  %v2391_v26 = vld [vmem:[#allocation2 + $0x14] sm:$0xf0]  ;;  %v2390_v33 = vld [vmem:[#allocation2 + $0x14] sm:$0xf]  ;;  %v2074_v28 = vld [vmem:[#allocation2 + $0x18] sm:$0xf0] }
 0x1d9   : > { %1527 = vmatpush.bf16.msra.mxu1 %v2257_v0  ;;  %1576 = vmatpush.bf16.msra.mxu2 %v2133_v56  ;;  %v3626_v22 = vor.u32 %v2391_v26, %v2072_v3  ;;  %v3628_v47 = vor.u32 %v2390_v33, %v2074_v28  ;;  %v2421_v48 = vld [vmem:[%s2882_s27 + $0x8c] sm:$0xf]  ;;  %v2202_v23 = vld [vmem:[%s2882_s27 + $0x98] sm:$0xf0]  ;;  %v2200_v50 = vld [vmem:[%s2882_s27 + $0x88] sm:$0xf] }
 0x1da   : > { %1625 = vmatpush.bf16.msra.mxu3 %v2261_v7  ;;  %v2453_v14 = vld [vmem:[%s2882_s27 + $0x18c] sm:$0xf]  ;;  %v2205_v29 = vor.u32 %v2421_v48, %v2202_v23  ;;  %v2330_v43 = vld [vmem:[%s2882_s27 + $0x198] sm:$0xf0]  ;;  %v2423_v19 = vld [vmem:[%s2882_s27 + $0x94] sm:$0xf0] }
 0x1db   : > { %1479 = vmatmul.bf16.vlgmr.msra.gmra.mxu0 %v3601_v8  ;;  %v2333_v2 = vor.u32 %v2453_v14, %v2330_v43  ;;  %v2201_v31 = vor.u32 %v2423_v19, %v2200_v50  ;;  %v2328_v49 = vld [vmem:[%s2882_s27 + $0x188] sm:$0xf]  ;;  %v2455_v18 = vld [vmem:[%s2882_s27 + $0x194] sm:$0xf0]  ;;  %v2080_v36 = vld [vmem:[#allocation2 + $0x20] sm:$0xf] }
 0x1dc   : > { %1528 = vmatmul.bf16.vlgmr.msra.gmra.mxu1 %v3606_v44  ;;  %1577 = vmatmul.bf16.vlgmr.msra.gmra.mxu2 %v3601_v8  ;;  %v2329_v46 = vor.u32 %v2455_v18, %v2328_v49  ;;  %v2393_v20 = vld [vmem:[#allocation2 + $0x24] sm:$0xf0]  ;;  %v2392_v53 = vld [vmem:[#allocation2 + $0x24] sm:$0xf]  ;;  %v2082_v63 = vld [vmem:[#allocation2 + $0x28] sm:$0xf0] }
 0x1dd   : > { %1765 = vmatpush.bf16.msrb.mxu2 %v2253_v32  ;;  %1626 = vmatmul.bf16.vlgmr.msra.gmra.mxu3 %v3606_v44  ;;  %v3642_v34 = vor.u32 %v2393_v20, %v2080_v36  ;;  %v3644_v35 = vor.u32 %v2392_v53, %v2082_v63  ;;  %v2417_v57 = vld [vmem:[%s2882_s27 + $0x6c] sm:$0xf]  ;;  %v2186_v0 = vld [vmem:[%s2882_s27 + $0x78] sm:$0xf0]  ;;  %v2184_v7 = vld [vmem:[%s2882_s27 + $0x68] sm:$0xf] }
 0x1de   : > { %1814 = vmatpush.bf16.msrb.mxu3 %v2381_v15  ;;  %1667 = vmatpush.bf16.msrb.mxu0 %v2249_v12  ;;  %v2449_v56 = vld [vmem:[%s2882_s27 + $0x16c] sm:$0xf]  ;;  %v2189_v37 = vor.u32 %v2417_v57, %v2186_v0  ;;  %v2314_v39 = vld [vmem:[%s2882_s27 + $0x178] sm:$0xf0]  ;;  %v2419_v32 = vld [vmem:[%s2882_s27 + $0x74] sm:$0xf0] }
 0x1df   : > { %1716 = vmatpush.bf16.msrb.mxu1 %v2377_v13  ;;  %v2317_v21 = vor.u32 %v2449_v56, %v2314_v39  ;;  %v2185_v4 = vor.u32 %v2419_v32, %v2184_v7  ;;  %v2312_v45 = vld [vmem:[%s2882_s27 + $0x168] sm:$0xf]  ;;  %v2451_v15 = vld [vmem:[%s2882_s27 + $0x174] sm:$0xf0]  ;;  %v2088_v5 = vld [vmem:[#allocation2 + $0x30] sm:$0xf] }
 0x1e0   : > { %v2313_v42 = vor.u32 %v2451_v15, %v2312_v45  ;;  %v2395_v17 = vld [vmem:[#allocation2 + $0x34] sm:$0xf0]  ;;  %v2394_v58 = vld [vmem:[#allocation2 + $0x34] sm:$0xf]  ;;  %v2090_v61 = vld [vmem:[#allocation2 + $0x38] sm:$0xf0] }
 0x1e1   : > { %1766 = vmatpush.bf16.msrb.mxu2 %v2237_v27  ;;  %v3658_v12 = vor.u32 %v2395_v17, %v2088_v5  ;;  %v3660_v13 = vor.u32 %v2394_v58, %v2090_v61  ;;  %v2413_v27 = vld [vmem:[%s2882_s27 + $0x4c] sm:$0xf]  ;;  %v2170_v11 = vld [vmem:[%s2882_s27 + $0x58] sm:$0xf0]  ;;  %v2168_v59 = vld [vmem:[%s2882_s27 + $0x48] sm:$0xf] }
 0x1e2   : > { %1815 = vmatpush.bf16.msrb.mxu3 %v2365_v38  ;;  %1668 = vmatpush.bf16.msrb.mxu0 %v2233_v51  ;;  %v2445_v16 = vld [vmem:[%s2882_s27 + $0x14c] sm:$0xf]  ;;  %v2173_v38 = vor.u32 %v2413_v27, %v2170_v11  ;;  %v2298_v62 = vld [vmem:[%s2882_s27 + $0x158] sm:$0xf0]  ;;  %v2415_v51 = vld [vmem:[%s2882_s27 + $0x54] sm:$0xf0] }
 0x1e3   : > { %1717 = vmatpush.bf16.msrb.mxu1 %v2361_v40  ;;  %v2301_v52 = vor.u32 %v2445_v16, %v2298_v62  ;;  %v2169_v30 = vor.u32 %v2415_v51, %v2168_v59  ;;  %v2296_v1 = vld [vmem:[%s2882_s27 + $0x148] sm:$0xf]  ;;  %v2447_v40 = vld [vmem:[%s2882_s27 + $0x154] sm:$0xf0]  ;;  %v2096_v6 = vld [vmem:[#allocation2 + $0x40] sm:$0xf] }
 0x1e4   : > { %v2397_v24 = vld [vmem:[#allocation2 + $0x44] sm:$0xf0]  ;;  %v2396_v9 = vld [vmem:[#allocation2 + $0x44] sm:$0xf]  ;;  %v2441_v3 = vld [vmem:[%s2882_s27 + $0x12c] sm:$0xf] }
 0x1e5   : > { %1767 = vmatpush.bf16.msrb.mxu2 %v2221_v41  ;;  %v2297_v41 = vor.u32 %v2447_v40, %v2296_v1  ;;  %v3674_v25 = vor.u32 %v2397_v24, %v2096_v6  ;;  %v2282_v33 = vld [vmem:[%s2882_s27 + $0x138] sm:$0xf0]  ;;  %v2152_v28 = vld [vmem:[%s2882_s27 + $0x28] sm:$0xf]  ;;  %v2411_v48 = vld [vmem:[%s2882_s27 + $0x34] sm:$0xf0] }
 0x1e6   : > { %1816 = vmatpush.bf16.msrb.mxu3 %v2349_v10  ;;  %1669 = vmatpush.bf16.msrb.mxu0 %v2217_v54  ;;  %v2098_v10 = vld [vmem:[#allocation2 + $0x48] sm:$0xf0]  ;;  %v2285_v23 = vor.u32 %v2441_v3, %v2282_v33  ;;  %v2153_v14 = vor.u32 %v2411_v48, %v2152_v28  ;;  %v2443_v43 = vld [vmem:[%s2882_s27 + $0x134] sm:$0xf0]  ;;  %v2104_v19 = vld [vmem:[#allocation2 + $0x50] sm:$0xf] }
 0x1e7   : > { %1718 = vmatpush.bf16.msrb.mxu1 %v2345_v55  ;;  %v3676_v60 = vor.u32 %v2396_v9, %v2098_v10  ;;  %v2409_v54 = vld [vmem:[%s2882_s27 + $0x2c] sm:$0xf]  ;;  %v2154_v55 = vld [vmem:[%s2882_s27 + $0x38] sm:$0xf0]  ;;  %v2136_v0 = vld [vmem:[%s2882_s27 + $0x8] sm:$0xf] }
 0x1e8   : > { %v2157_v26 = vor.u32 %v2409_v54, %v2154_v55  ;;  %v2106_v49 = vld [vmem:[#allocation2 + $0x58] sm:$0xf0]  ;;  %v2405_v36 = vld [vmem:[%s2882_s27 + $0xc] sm:$0xf]  ;;  %v2407_v56 = vld [vmem:[%s2882_s27 + $0x14] sm:$0xf0] }
 0x1e9   : > { %1768 = vmatpush.bf16.msrb.mxu2 %v2205_v29  ;;  %v2280_v29 = vld [vmem:[%s2882_s27 + $0x128] sm:$0xf]  ;;  %v2138_v20 = vld [vmem:[%s2882_s27 + $0x18] sm:$0xf0]  ;;  %v2437_v53 = vld [vmem:[%s2882_s27 + $0x10c] sm:$0xf]  ;;  %v2137_v39 = vor.u32 %v2407_v56, %v2136_v0 }
 0x1ea   : > { %1817 = vmatpush.bf16.msrb.mxu3 %v2333_v2  ;;  %1670 = vmatpush.bf16.msrb.mxu0 %v2201_v31  ;;  %v2281_v50 = vor.u32 %v2443_v43, %v2280_v29  ;;  %v2399_v2 = vld [vmem:[#allocation2 + $0x54] sm:$0xf0]  ;;  %v2398_v31 = vld [vmem:[#allocation2 + $0x54] sm:$0xf]  ;;  %v2141_v63 = vor.u32 %v2405_v36, %v2138_v20  ;;  %v2266_v57 = vld [vmem:[%s2882_s27 + $0x118] sm:$0xf0] }
 0x1eb   : > { %1484 = vmatmul.bf16.gmra.mxu0 %v3626_v22  ;;  %1719 = vmatpush.bf16.msrb.mxu1 %v2329_v46  ;;  %v3690_v18 = vor.u32 %v2399_v2, %v2104_v19  ;;  %v3692_v46 = vor.u32 %v2398_v31, %v2106_v49  ;;  %v2264_v7 = vld [vmem:[%s2882_s27 + $0x108] sm:$0xf]  ;;  %v2439_v32 = vld [vmem:[%s2882_s27 + $0x114] sm:$0xf0]  ;;  %v2400_v15 = vld [vmem:[#allocation2 + $0x64] sm:$0xf] }
 0x1ec   : > { %1533 = vmatmul.bf16.gmra.mxu1 %v3628_v47  ;;  %1582 = vmatmul.bf16.gmra.mxu2 %v3626_v22  ;;  %v2401_v45 = vld [vmem:[#allocation2 + $0x64] sm:$0xf0]  ;;  %v2120_v58 = vld [vmem:[#allocation2 + $0x70] sm:$0xf]  ;;  %v2403_v61 = vld [vmem:[#allocation2 + $0x74] sm:$0xf0] }
 0x1ed   : > { %1631 = vmatmul.bf16.gmra.mxu3 %v3628_v47  ;;  %1769 = vmatpush.bf16.msrb.mxu2 %v2189_v37  ;;  %v2269_v37 = vor.u32 %v2437_v53, %v2266_v57  ;;  %v2402_v27 = vld [vmem:[#allocation2 + $0x74] sm:$0xf]  ;;  %v2122_v11 = vld [vmem:[#allocation2 + $0x78] sm:$0xf0]  ;;  %v3714_v16 = vor.u32 %v2403_v61, %v2120_v58  ;;  %v3727_v62 = vld [vmem:[%s426_s25] sm:$0xf] }
 0x1ee   : > { %1818 = vmatpush.bf16.msrb.mxu3 %v2317_v21  ;;  %1671 = vmatpush.bf16.msrb.mxu0 %v2185_v4  ;;  %v2265_v21 = vor.u32 %v2439_v32, %v2264_v7  ;;  %v2112_v4 = vld [vmem:[#allocation2 + $0x60] sm:$0xf]  ;;  %v3730_v59 = vperm.slane %v3727_v62, 0  ;;  %v3737_v40 = vperm.slane %v3727_v62, 1  ;;  %s2468_s15 = sshll.u32 %s2632_s21, 5  ;;  %s1943_s8 = sshll.u32 %s2884_s29, 4  ;;  %s1944_s8 = int_to_ptr.vmem [resolvable:$true] %s1943_s8 }
 0x1ef   : > { %1720 = vmatpush.bf16.msrb.mxu1 %v2313_v42  ;;  %v2114_v42 = vld [vmem:[#allocation2 + $0x68] sm:$0xf0]  ;;  %v3706_v5 = vor.u32 %v2401_v45, %v2112_v4  ;;  %s1942_s7 = scalar_lea.hbm %s3946_s5, %s2468_s15  ;;  %s1928_s21 = scalar_lea.sflag [#allocation5], %s378_s14 }
 0x1f0   : > { %v3708_v17 = vor.u32 %v2400_v15, %v2114_v42  ;;  %s1945_s9 = sshll.u32 %s1942_s7, 4  ;;  %s2582_s16 = scalar_lea.hbm %s3946_s5, 1024  ;;  %s1946_s9 = int_to_ptr.hbm [resolvable:$true] %s1945_s9 }
 0x1f1   : > { %1770 = vmatpush.bf16.msrb.mxu2 %v2173_v38  ;;  %v3716_v38 = vor.u32 %v2402_v27, %v2122_v11  ;;  %s2576_s10 = sshra.s32 %s1946_s9, 4  ;;  %s2577_s10 = int_to_ptr.hbm [resolvable:$true] %s2576_s10 }
 0x1f2   : > { %1819 = vmatpush.bf16.msrb.mxu3 %v2301_v52  ;;  %1672 = vmatpush.bf16.msrb.mxu0 %v2169_v30  ;;  %s2578_s11 = scalar_lea.hbm %s2577_s10, 512  ;;  %p2583_p6 = scmp.lt.s32.totalorder %s2577_s10, %s3946_s5 }
 0x1f3   : > { %1721 = vmatpush.bf16.msrb.mxu1 %v2297_v41  ;;  %p2579_p2 = scmp.ne.s32.totalorder %s2577_s10, %s2578_s11  ;;  %p2584_p7 = scmp.lt.s32.totalorder %s2582_s16, %s2578_s11 }
 0x1f5   : > { %1771 = vmatpush.bf16.msrb.mxu2 %v2157_v26  ;;  %p2580_p3 = pnand %p2579_p2, %p2715_p5  ;;  %p2585_p8 = por %p2584_p7, %p2583_p6 }
 0x1f6   : > { %1820 = vmatpush.bf16.msrb.mxu3 %v2285_v23  ;;  %1673 = vmatpush.bf16.msrb.mxu0 %v2153_v14 }
 0x1f7   : > { %1722 = vmatpush.bf16.msrb.mxu1 %v2281_v50  ;;  %p2581_p4 = pneg %p2580_p3 }
 0x1f9   : > { %1772 = vmatpush.bf16.msrb.mxu2 %v2141_v63  ;;  %p2586_p11 = pnand %p2585_p8, %p2581_p4 }
 0x1fa   : > { %1821 = vmatpush.bf16.msrb.mxu3 %v2269_v37  ;;  %1674 = vmatpush.bf16.msrb.mxu0 %v2137_v39 }
 0x1fb   : > { %1489 = vmatmul.bf16.gmra.mxu0 %v3642_v34  ;;  %1723 = vmatpush.bf16.msrb.mxu1 %v2265_v21 }
 0x1fc   : > { %1538 = vmatmul.bf16.gmra.mxu1 %v3644_v35  ;;  %1587 = vmatmul.bf16.gmra.mxu2 %v3642_v34 }
 0x1fd   : > { %1636 = vmatmul.bf16.gmra.mxu3 %v3644_v35 }
 0x20b   : > { %1494 = vmatmul.bf16.gmra.mxu0 %v3658_v12 }
 0x20c   : > { %1543 = vmatmul.bf16.gmra.mxu1 %v3660_v13  ;;  %1592 = vmatmul.bf16.gmra.mxu2 %v3658_v12 }
 0x20d   : > { %1641 = vmatmul.bf16.gmra.mxu3 %v3660_v13 }
 0x21b   : > { %1499 = vmatmul.bf16.gmra.mxu0 %v3674_v25 }
 0x21c   : > { %1548 = vmatmul.bf16.gmra.mxu1 %v3676_v60  ;;  %1597 = vmatmul.bf16.gmra.mxu2 %v3674_v25 }
 0x21d   : > { %1646 = vmatmul.bf16.gmra.mxu3 %v3676_v60 }
 0x22b   : > { %1504 = vmatmul.bf16.gmra.mxu0 %v3690_v18 }
 0x22c   : > { %1553 = vmatmul.bf16.gmra.mxu1 %v3692_v46  ;;  %1602 = vmatmul.bf16.gmra.mxu2 %v3690_v18 }
 0x22d   : > { %1651 = vmatmul.bf16.gmra.mxu3 %v3692_v46 }
 0x23b   : > { %1509 = vmatmul.bf16.gmra.mxu0 %v3706_v5 }
 0x23c   : > { %1558 = vmatmul.bf16.gmra.mxu1 %v3708_v17  ;;  %1607 = vmatmul.bf16.gmra.mxu2 %v3706_v5 }
 0x23d   : > { %1656 = vmatmul.bf16.gmra.mxu3 %v3708_v17 }
 0x24b   : > { %1514 = vmatmul.bf16.gmra.mxu0 %v3714_v16 }
 0x24c   : > { %1563 = vmatmul.bf16.gmra.mxu1 %v3716_v38  ;;  %1612 = vmatmul.bf16.gmra.mxu2 %v3714_v16 }
 0x24d   : > { %1661 = vmatmul.bf16.gmra.mxu3 %v3716_v38 }
 0x258   : > { %v1480_v51 = vpop.f32.mrf.mxu0 }
 0x259   : > { %v1481_v52 = vadd.f32 %v1480_v51, %v3730_v59  ;;  %v1529_v30 = vpop.f32.mrf.mxu1 }
 0x25b   : > { %v1530_v1 = vadd.f32 %v1529_v30, %v1481_v52  ;;  %1675 = vmatmul.bf16.vlgmr.msrb.gmra.mxu0 %v3601_v8 }
 0x25c   : > { %1724 = vmatmul.bf16.vlgmr.msrb.gmra.mxu1 %v3606_v44  ;;  %1773 = vmatmul.bf16.vlgmr.msrb.gmra.mxu2 %v3601_v8 }
 0x25d   : > { %1863 = vst [vmem:[%s2884_s29] sm:$0xff] %v1530_v1  ;;  %1822 = vmatmul.bf16.vlgmr.msrb.gmra.mxu3 %v3606_v44 }
 0x25f   : > { %v1578_v41 = vpop.f32.mrf.mxu2 }
 0x260   : > { %v1579_v6 = vadd.f32 %v1578_v41, %v3737_v40  ;;  %v1627_v24 = vpop.f32.mrf.mxu3  ;;  %v1482_v9 = vpop.f32.mrf.mxu0 }
 0x261   : > { %v1483_v10 = vadd.f32 %v1482_v9, %v3730_v59  ;;  %v1531_v54 = vpop.f32.mrf.mxu1 }
 0x262   : > { %v1628_v55 = vadd.f32 %v1627_v24, %v1579_v6 }
 0x263   : > { %v1532_v3 = vadd.f32 %v1531_v54, %v1483_v10 }
 0x264   : > { %1864 = vst [vmem:[%s2884_s29 + $0x8] sm:$0xff] %v1628_v55 }
 0x265   : > { %1867 = vst [vmem:[%s2884_s29 + $0x20] sm:$0xff] %v1532_v3 }
 0x267   : > { %v1580_v8 = vpop.f32.mrf.mxu2 }
 0x268   : > { %v1581_v26 = vadd.f32 %v1580_v8, %v3737_v40  ;;  %v1629_v33 = vpop.f32.mrf.mxu3  ;;  %v1485_v28 = vpop.f32.mrf.mxu0 }
 0x269   : > { %v1486_v44 = vadd.f32 %v1485_v28, %v3730_v59  ;;  %v1534_v48 = vpop.f32.mrf.mxu1 }
 0x26a   : > { %v1630_v23 = vadd.f32 %v1629_v33, %v1581_v26 }
 0x26b   : > { %v1535_v14 = vadd.f32 %v1534_v48, %v1486_v44  ;;  %1680 = vmatmul.bf16.gmra.mxu0 %v3626_v22 }
 0x26c   : > { %1868 = vst [vmem:[%s2884_s29 + $0x28] sm:$0xff] %v1630_v23  ;;  %1729 = vmatmul.bf16.gmra.mxu1 %v3628_v47  ;;  %1778 = vmatmul.bf16.gmra.mxu2 %v3626_v22 }
 0x26d   : > { %1871 = vst [vmem:[%s2884_s29 + $0x40] sm:$0xff] %v1535_v14  ;;  %1827 = vmatmul.bf16.gmra.mxu3 %v3628_v47 }
 0x26f   : > { %v1583_v29 = vpop.f32.mrf.mxu2 }
 0x270   : > { %v1584_v43 = vadd.f32 %v1583_v29, %v3737_v40  ;;  %v1632_v50 = vpop.f32.mrf.mxu3  ;;  %v1487_v19 = vpop.f32.mrf.mxu0 }
 0x271   : > { %v1488_v2 = vadd.f32 %v1487_v19, %v3730_v59  ;;  %v1536_v31 = vpop.f32.mrf.mxu1 }
 0x272   : > { %v1633_v49 = vadd.f32 %v1632_v50, %v1584_v43 }
 0x273   : > { %v1537_v36 = vadd.f32 %v1536_v31, %v1488_v2 }
 0x274   : > { %1872 = vst [vmem:[%s2884_s29 + $0x48] sm:$0xff] %v1633_v49 }
 0x275   : > { %1875 = vst [vmem:[%s2884_s29 + $0x60] sm:$0xff] %v1537_v36 }
 0x277   : > { %v1585_v20 = vpop.f32.mrf.mxu2 }
 0x278   : > { %v1586_v22 = vadd.f32 %v1585_v20, %v3737_v40  ;;  %v1634_v53 = vpop.f32.mrf.mxu3  ;;  %v1490_v63 = vpop.f32.mrf.mxu0 }
 0x279   : > { %v1491_v47 = vadd.f32 %v1490_v63, %v3730_v59  ;;  %v1539_v57 = vpop.f32.mrf.mxu1 }
 0x27a   : > { %v1635_v0 = vadd.f32 %v1634_v53, %v1586_v22 }
 0x27b   : > { %v1540_v56 = vadd.f32 %v1539_v57, %v1491_v47  ;;  %1685 = vmatmul.bf16.gmra.mxu0 %v3642_v34 }
 0x27c   : > { %1876 = vst [vmem:[%s2884_s29 + $0x68] sm:$0xff] %v1635_v0  ;;  %1734 = vmatmul.bf16.gmra.mxu1 %v3644_v35  ;;  %1783 = vmatmul.bf16.gmra.mxu2 %v3642_v34 }
 0x27d   : > { %1879 = vst [vmem:[%s2884_s29 + $0x80] sm:$0xff] %v1540_v56  ;;  %1832 = vmatmul.bf16.gmra.mxu3 %v3644_v35 }
 0x27f   : > { %v1588_v37 = vpop.f32.mrf.mxu2 }
 0x280   : > { %v1589_v39 = vadd.f32 %v1588_v37, %v3737_v40  ;;  %v1637_v7 = vpop.f32.mrf.mxu3  ;;  %v1492_v32 = vpop.f32.mrf.mxu0 }
 0x281   : > { %v1493_v21 = vadd.f32 %v1492_v32, %v3730_v59  ;;  %v1541_v4 = vpop.f32.mrf.mxu1 }
 0x282   : > { %v1638_v45 = vadd.f32 %v1637_v7, %v1589_v39 }
 0x283   : > { %v1542_v15 = vadd.f32 %v1541_v4, %v1493_v21 }
 0x284   : > { %1880 = vst [vmem:[%s2884_s29 + $0x88] sm:$0xff] %v1638_v45 }
 0x285   : > { %1883 = vst [vmem:[%s2884_s29 + $0xa0] sm:$0xff] %v1542_v15 }
 0x287   : > { %v1590_v42 = vpop.f32.mrf.mxu2 }
 0x288   : > { %v1591_v34 = vadd.f32 %v1590_v42, %v3737_v40  ;;  %v1639_v58 = vpop.f32.mrf.mxu3  ;;  %v1495_v61 = vpop.f32.mrf.mxu0 }
 0x289   : > { %v1496_v35 = vadd.f32 %v1495_v61, %v3730_v59  ;;  %v1544_v27 = vpop.f32.mrf.mxu1 }
 0x28a   : > { %v1640_v11 = vadd.f32 %v1639_v58, %v1591_v34 }
 0x28b   : > { %v1545_v51 = vadd.f32 %v1544_v27, %v1496_v35  ;;  %1690 = vmatmul.bf16.gmra.mxu0 %v3658_v12 }
 0x28c   : > { %1884 = vst [vmem:[%s2884_s29 + $0xa8] sm:$0xff] %v1640_v11  ;;  %1739 = vmatmul.bf16.gmra.mxu1 %v3660_v13  ;;  %1788 = vmatmul.bf16.gmra.mxu2 %v3658_v12 }
 0x28d   : > { %1887 = vst [vmem:[%s2884_s29 + $0xc0] sm:$0xff] %v1545_v51  ;;  %1837 = vmatmul.bf16.gmra.mxu3 %v3660_v13 }
 0x28f   : > { %v1593_v52 = vpop.f32.mrf.mxu2 }
 0x290   : > { %v1594_v30 = vadd.f32 %v1593_v52, %v3737_v40  ;;  %v1642_v1 = vpop.f32.mrf.mxu3  ;;  %v1497_v41 = vpop.f32.mrf.mxu0 }
 0x291   : > { %v1498_v6 = vadd.f32 %v1497_v41, %v3730_v59  ;;  %v1546_v24 = vpop.f32.mrf.mxu1 }
 0x292   : > { %v1643_v9 = vadd.f32 %v1642_v1, %v1594_v30 }
 0x293   : > { %v1547_v10 = vadd.f32 %v1546_v24, %v1498_v6 }
 0x294   : > { %1888 = vst [vmem:[%s2884_s29 + $0xc8] sm:$0xff] %v1643_v9 }
 0x295   : > { %1891 = vst [vmem:[%s2884_s29 + $0xe0] sm:$0xff] %v1547_v10 }
 0x297   : > { %v1595_v54 = vpop.f32.mrf.mxu2 }
 0x298   : > { %v1596_v12 = vadd.f32 %v1595_v54, %v3737_v40  ;;  %v1644_v55 = vpop.f32.mrf.mxu3  ;;  %v1500_v3 = vpop.f32.mrf.mxu0 }
 0x299   : > { %v1501_v13 = vadd.f32 %v1500_v3, %v3730_v59  ;;  %v1549_v8 = vpop.f32.mrf.mxu1 }
 0x29a   : > { %v1645_v26 = vadd.f32 %v1644_v55, %v1596_v12 }
 0x29b   : > { %v1550_v33 = vadd.f32 %v1549_v8, %v1501_v13  ;;  %1695 = vmatmul.bf16.gmra.mxu0 %v3674_v25  ;;  %v3830_v8 = vperm.slane %v3727_v62, 2 }
 0x29c   : > { %1892 = vst [vmem:[%s2884_s29 + $0xe8] sm:$0xff] %v1645_v26  ;;  %1744 = vmatmul.bf16.gmra.mxu1 %v3676_v60  ;;  %1793 = vmatmul.bf16.gmra.mxu2 %v3674_v25 }
 0x29d   : > { %1895 = vst [vmem:[%s2884_s29 + $0x100] sm:$0xff] %v1550_v33  ;;  %1842 = vmatmul.bf16.gmra.mxu3 %v3676_v60 }
 0x29f   : > { %v1598_v28 = vpop.f32.mrf.mxu2 }
 0x2a0   : > { %v1599_v44 = vadd.f32 %v1598_v28, %v3737_v40  ;;  %v1647_v48 = vpop.f32.mrf.mxu3  ;;  %v1502_v23 = vpop.f32.mrf.mxu0 }
 0x2a1   : > { %v1503_v14 = vadd.f32 %v1502_v23, %v3730_v59  ;;  %v1551_v29 = vpop.f32.mrf.mxu1  ;;  %v3836_v23 = vperm.slane %v3727_v62, 3 }
 0x2a2   : > { %v1648_v43 = vadd.f32 %v1647_v48, %v1599_v44 }
 0x2a3   : > { %v1552_v50 = vadd.f32 %v1551_v29, %v1503_v14 }
 0x2a4   : > { %1896 = vst [vmem:[%s2884_s29 + $0x108] sm:$0xff] %v1648_v43 }
 0x2a5   : > { %1899 = vst [vmem:[%s2884_s29 + $0x120] sm:$0xff] %v1552_v50 }
 0x2a7   : > { %v1600_v19 = vpop.f32.mrf.mxu2 }
 0x2a8   : > { %v1601_v25 = vadd.f32 %v1600_v19, %v3737_v40  ;;  %v1649_v2 = vpop.f32.mrf.mxu3  ;;  %v1505_v31 = vpop.f32.mrf.mxu0 }
 0x2a9   : > { %v1506_v60 = vadd.f32 %v1505_v31, %v3730_v59  ;;  %v1554_v49 = vpop.f32.mrf.mxu1 }
 0x2aa   : > { %v1650_v36 = vadd.f32 %v1649_v2, %v1601_v25 }
 0x2ab   : > { %v1555_v20 = vadd.f32 %v1554_v49, %v1506_v60  ;;  %1700 = vmatmul.bf16.gmra.mxu0 %v3690_v18 }
 0x2ac   : > { %1900 = vst [vmem:[%s2884_s29 + $0x128] sm:$0xff] %v1650_v36  ;;  %1749 = vmatmul.bf16.gmra.mxu1 %v3692_v46  ;;  %1798 = vmatmul.bf16.gmra.mxu2 %v3690_v18 }
 0x2ad   : > { %1903 = vst [vmem:[%s2884_s29 + $0x140] sm:$0xff] %v1555_v20  ;;  %1847 = vmatmul.bf16.gmra.mxu3 %v3692_v46 }
 0x2af   : > { %v1603_v22 = vpop.f32.mrf.mxu2 }
 0x2b0   : > { %v1604_v53 = vadd.f32 %v1603_v22, %v3737_v40  ;;  %v1652_v63 = vpop.f32.mrf.mxu3  ;;  %v1507_v47 = vpop.f32.mrf.mxu0 }
 0x2b1   : > { %v1508_v57 = vadd.f32 %v1507_v47, %v3730_v59  ;;  %v1556_v0 = vpop.f32.mrf.mxu1 }
 0x2b2   : > { %v1653_v56 = vadd.f32 %v1652_v63, %v1604_v53 }
 0x2b3   : > { %v1557_v37 = vadd.f32 %v1556_v0, %v1508_v57 }
 0x2b4   : > { %1904 = vst [vmem:[%s2884_s29 + $0x148] sm:$0xff] %v1653_v56 }
 0x2b5   : > { %1907 = vst [vmem:[%s2884_s29 + $0x160] sm:$0xff] %v1557_v37 }
 0x2b7   : > { %v1605_v39 = vpop.f32.mrf.mxu2 }
 0x2b8   : > { %v1606_v18 = vadd.f32 %v1605_v39, %v3737_v40  ;;  %v1654_v7 = vpop.f32.mrf.mxu3  ;;  %v1510_v32 = vpop.f32.mrf.mxu0 }
 0x2b9   : > { %v1511_v46 = vadd.f32 %v1510_v32, %v3730_v59  ;;  %v1559_v21 = vpop.f32.mrf.mxu1 }
 0x2ba   : > { %v1655_v4 = vadd.f32 %v1654_v7, %v1606_v18 }
 0x2bb   : > { %v1560_v45 = vadd.f32 %v1559_v21, %v1511_v46  ;;  %1705 = vmatmul.bf16.gmra.mxu0 %v3706_v5 }
 0x2bc   : > { %1908 = vst [vmem:[%s2884_s29 + $0x168] sm:$0xff] %v1655_v4  ;;  %1754 = vmatmul.bf16.gmra.mxu1 %v3708_v17  ;;  %1803 = vmatmul.bf16.gmra.mxu2 %v3706_v5 }
 0x2bd   : > { %1911 = vst [vmem:[%s2884_s29 + $0x180] sm:$0xff] %v1560_v45  ;;  %1852 = vmatmul.bf16.gmra.mxu3 %v3708_v17 }
 0x2bf   : > { %v1608_v15 = vpop.f32.mrf.mxu2 }
 0x2c0   : > { %v1609_v42 = vadd.f32 %v1608_v15, %v3737_v40  ;;  %v1657_v34 = vpop.f32.mrf.mxu3  ;;  %v1512_v58 = vpop.f32.mrf.mxu0 }
 0x2c1   : > { %v1513_v61 = vadd.f32 %v1512_v58, %v3730_v59  ;;  %v1561_v35 = vpop.f32.mrf.mxu1 }
 0x2c2   : > { %v1658_v27 = vadd.f32 %v1657_v34, %v1609_v42 }
 0x2c3   : > { %v1562_v11 = vadd.f32 %v1561_v35, %v1513_v61 }
 0x2c4   : > { %1912 = vst [vmem:[%s2884_s29 + $0x188] sm:$0xff] %v1658_v27 }
 0x2c5   : > { %1915 = vst [vmem:[%s2884_s29 + $0x1a0] sm:$0xff] %v1562_v11 }
 0x2c7   : > { %v1610_v51 = vpop.f32.mrf.mxu2 }
 0x2c8   : > { %v1611_v5 = vadd.f32 %v1610_v51, %v3737_v40  ;;  %v1659_v52 = vpop.f32.mrf.mxu3  ;;  %v1515_v30 = vpop.f32.mrf.mxu0 }
 0x2c9   : > { %v1516_v17 = vadd.f32 %v1515_v30, %v3730_v59  ;;  %v1564_v1 = vpop.f32.mrf.mxu1 }
 0x2ca   : > { %v1660_v41 = vadd.f32 %v1659_v52, %v1611_v5 }
 0x2cb   : > { %v1565_v6 = vadd.f32 %v1564_v1, %v1516_v17  ;;  %1710 = vmatmul.bf16.gmra.mxu0 %v3714_v16 }
 0x2cc   : > { %1916 = vst [vmem:[%s2884_s29 + $0x1a8] sm:$0xff] %v1660_v41  ;;  %1759 = vmatmul.bf16.gmra.mxu1 %v3716_v38  ;;  %1808 = vmatmul.bf16.gmra.mxu2 %v3714_v16 }
 0x2cd   : > { %1919 = vst [vmem:[%s2884_s29 + $0x1c0] sm:$0xff] %v1565_v6  ;;  %1857 = vmatmul.bf16.gmra.mxu3 %v3716_v38 }
 0x2cf   : > { %v1613_v24 = vpop.f32.mrf.mxu2 }
 0x2d0   : > { %v1614_v9 = vadd.f32 %v1613_v24, %v3737_v40  ;;  %v1662_v10 = vpop.f32.mrf.mxu3  ;;  %v1517_v54 = vpop.f32.mrf.mxu0 }
 0x2d1   : > { %v1518_v12 = vadd.f32 %v1517_v54, %v3730_v59  ;;  %v1566_v55 = vpop.f32.mrf.mxu1 }
 0x2d2   : > { %v1663_v3 = vadd.f32 %v1662_v10, %v1614_v9 }
 0x2d3   : > { %v1567_v13 = vadd.f32 %v1566_v55, %v1518_v12 }
 0x2d4   : > { %1920 = vst [vmem:[%s2884_s29 + $0x1c8] sm:$0xff] %v1663_v3 }
 0x2d5   : > { %1923 = vst [vmem:[%s2884_s29 + $0x1e0] sm:$0xff] %v1567_v13 }
 0x2d7   : > { %v1615_v16 = vpop.f32.mrf.mxu2 }
 0x2d8   : > { %v1616_v38 = vadd.f32 %v1615_v16, %v3737_v40  ;;  %v1664_v26 = vpop.f32.mrf.mxu3  ;;  %v1676_v33 = vpop.f32.mrf.mxu0 }
 0x2d9   : > { %v1677_v28 = vadd.f32 %v1676_v33, %v3830_v8  ;;  %v1725_v44 = vpop.f32.mrf.mxu1 }
 0x2da   : > { %v1665_v59 = vadd.f32 %v1664_v26, %v1616_v38 }
 0x2db   : > { %v1726_v48 = vadd.f32 %v1725_v44, %v1677_v28 }
 0x2dc   : > { %1924 = vst [vmem:[%s2884_s29 + $0x1e8] sm:$0xff] %v1665_v59 }
 0x2dd   : > { %1865 = vst [vmem:[%s2884_s29 + $0x10] sm:$0xff] %v1726_v48 }
 0x2df   : > { %v1774_v14 = vpop.f32.mrf.mxu2 }
 0x2e0   : > { %v1775_v29 = vadd.f32 %v1774_v14, %v3836_v23  ;;  %v1823_v43 = vpop.f32.mrf.mxu3  ;;  %v1678_v40 = vpop.f32.mrf.mxu0 }
 0x2e1   : > { %v1679_v50 = vadd.f32 %v1678_v40, %v3830_v8  ;;  %v1727_v19 = vpop.f32.mrf.mxu1 }
 0x2e2   : > { %v1824_v25 = vadd.f32 %v1823_v43, %v1775_v29 }
 0x2e3   : > { %v1728_v2 = vadd.f32 %v1727_v19, %v1679_v50 }
 0x2e4   : > { %1866 = vst [vmem:[%s2884_s29 + $0x18] sm:$0xff] %v1824_v25 }
 0x2e5   : > { %1869 = vst [vmem:[%s2884_s29 + $0x30] sm:$0xff] %v1728_v2 }
 0x2e7   : > { %v1776_v31 = vpop.f32.mrf.mxu2 }
 0x2e8   : > { %v1777_v60 = vadd.f32 %v1776_v31, %v3836_v23  ;;  %v1825_v62 = vpop.f32.mrf.mxu3  ;;  %v1681_v49 = vpop.f32.mrf.mxu0 }
 0x2e9   : > { %v1682_v36 = vadd.f32 %v1681_v49, %v3830_v8  ;;  %v1730_v20 = vpop.f32.mrf.mxu1 }
 0x2ea   : > { %v1826_v22 = vadd.f32 %v1825_v62, %v1777_v60 }
 0x2eb   : > { %v1731_v53 = vadd.f32 %v1730_v20, %v1682_v36 }
 0x2ec   : > { %1870 = vst [vmem:[%s2884_s29 + $0x38] sm:$0xff] %v1826_v22 }
 0x2ed   : > { %1873 = vst [vmem:[%s2884_s29 + $0x50] sm:$0xff] %v1731_v53 }
 0x2ef   : > { %v1779_v63 = vpop.f32.mrf.mxu2 }
 0x2f0   : > { %v1780_v47 = vadd.f32 %v1779_v63, %v3836_v23  ;;  %v1828_v57 = vpop.f32.mrf.mxu3  ;;  %v1683_v0 = vpop.f32.mrf.mxu0 }
 0x2f1   : > { %v1684_v56 = vadd.f32 %v1683_v0, %v3830_v8  ;;  %v1732_v37 = vpop.f32.mrf.mxu1 }
 0x2f2   : > { %v1829_v39 = vadd.f32 %v1828_v57, %v1780_v47 }
 0x2f3   : > { %v1733_v18 = vadd.f32 %v1732_v37, %v1684_v56 }
 0x2f4   : > { %1874 = vst [vmem:[%s2884_s29 + $0x58] sm:$0xff] %v1829_v39 }
 0x2f5   : > { %1877 = vst [vmem:[%s2884_s29 + $0x70] sm:$0xff] %v1733_v18 }
 0x2f7   : > { %v1781_v7 = vpop.f32.mrf.mxu2 }
 0x2f8   : > { %v1782_v32 = vadd.f32 %v1781_v7, %v3836_v23  ;;  %v1830_v46 = vpop.f32.mrf.mxu3  ;;  %v1686_v21 = vpop.f32.mrf.mxu0 }
 0x2f9   : > { %v1687_v4 = vadd.f32 %v1686_v21, %v3830_v8  ;;  %v1735_v45 = vpop.f32.mrf.mxu1 }
 0x2fa   : > { %v1831_v15 = vadd.f32 %v1830_v46, %v1782_v32 }
 0x2fb   : > { %v1736_v42 = vadd.f32 %v1735_v45, %v1687_v4 }
 0x2fc   : > { %1878 = vst [vmem:[%s2884_s29 + $0x78] sm:$0xff] %v1831_v15 }
 0x2fd   : > { %1881 = vst [vmem:[%s2884_s29 + $0x90] sm:$0xff] %v1736_v42 }
 0x2ff   : > { %v1784_v34 = vpop.f32.mrf.mxu2 }
 0x300   : > { %v1785_v58 = vadd.f32 %v1784_v34, %v3836_v23  ;;  %v1833_v61 = vpop.f32.mrf.mxu3  ;;  %v1688_v35 = vpop.f32.mrf.mxu0 }
 0x301   : > { %v1689_v27 = vadd.f32 %v1688_v35, %v3830_v8  ;;  %v1737_v11 = vpop.f32.mrf.mxu1 }
 0x302   : > { %v1834_v51 = vadd.f32 %v1833_v61, %v1785_v58 }
 0x303   : > { %v1738_v5 = vadd.f32 %v1737_v11, %v1689_v27 }
 0x304   : > { %1882 = vst [vmem:[%s2884_s29 + $0x98] sm:$0xff] %v1834_v51 }
 0x305   : > { %1885 = vst [vmem:[%s2884_s29 + $0xb0] sm:$0xff] %v1738_v5 }
 0x307   : > { %v1786_v52 = vpop.f32.mrf.mxu2 }
 0x308   : > { %v1787_v30 = vadd.f32 %v1786_v52, %v3836_v23  ;;  %v1835_v17 = vpop.f32.mrf.mxu3  ;;  %v1691_v1 = vpop.f32.mrf.mxu0 }
 0x309   : > { %v1692_v41 = vadd.f32 %v1691_v1, %v3830_v8  ;;  %v1740_v6 = vpop.f32.mrf.mxu1 }
 0x30a   : > { %v1836_v24 = vadd.f32 %v1835_v17, %v1787_v30 }
 0x30b   : > { %v1741_v9 = vadd.f32 %v1740_v6, %v1692_v41 }
 0x30c   : > { %1886 = vst [vmem:[%s2884_s29 + $0xb8] sm:$0xff] %v1836_v24 }
 0x30d   : > { %1889 = vst [vmem:[%s2884_s29 + $0xd0] sm:$0xff] %v1741_v9 }
 0x30f   : > { %v1789_v10 = vpop.f32.mrf.mxu2 }
 0x310   : > { %v1790_v54 = vadd.f32 %v1789_v10, %v3836_v23  ;;  %v1838_v12 = vpop.f32.mrf.mxu3  ;;  %v1693_v55 = vpop.f32.mrf.mxu0 }
 0x311   : > { %v1694_v3 = vadd.f32 %v1693_v55, %v3830_v8  ;;  %v1742_v13 = vpop.f32.mrf.mxu1 }
 0x312   : > { %v1839_v16 = vadd.f32 %v1838_v12, %v1790_v54 }
 0x313   : > { %v1743_v38 = vadd.f32 %v1742_v13, %v1694_v3 }
 0x314   : > { %1890 = vst [vmem:[%s2884_s29 + $0xd8] sm:$0xff] %v1839_v16 }
 0x315   : > { %1893 = vst [vmem:[%s2884_s29 + $0xf0] sm:$0xff] %v1743_v38 }
 0x317   : > { %v1791_v26 = vpop.f32.mrf.mxu2 }
 0x318   : > { %v1792_v33 = vadd.f32 %v1791_v26, %v3836_v23  ;;  %v1840_v28 = vpop.f32.mrf.mxu3  ;;  %v1696_v44 = vpop.f32.mrf.mxu0 }
 0x319   : > { %v1697_v59 = vadd.f32 %v1696_v44, %v3830_v8  ;;  %v1745_v48 = vpop.f32.mrf.mxu1 }
 0x31a   : > { %v1841_v14 = vadd.f32 %v1840_v28, %v1792_v33 }
 0x31b   : > { %v1746_v29 = vadd.f32 %v1745_v48, %v1697_v59 }
 0x31c   : > { %1894 = vst [vmem:[%s2884_s29 + $0xf8] sm:$0xff] %v1841_v14 }
 0x31d   : > { %1897 = vst [vmem:[%s2884_s29 + $0x110] sm:$0xff] %v1746_v29 }
 0x31f   : > { %v1794_v43 = vpop.f32.mrf.mxu2 }
 0x320   : > { %v1795_v40 = vadd.f32 %v1794_v43, %v3836_v23  ;;  %v1843_v50 = vpop.f32.mrf.mxu3  ;;  %v1698_v19 = vpop.f32.mrf.mxu0 }
 0x321   : > { %v1699_v25 = vadd.f32 %v1698_v19, %v3830_v8  ;;  %v1747_v2 = vpop.f32.mrf.mxu1 }
 0x322   : > { %v1844_v31 = vadd.f32 %v1843_v50, %v1795_v40 }
 0x323   : > { %v1748_v60 = vadd.f32 %v1747_v2, %v1699_v25 }
 0x324   : > { %1898 = vst [vmem:[%s2884_s29 + $0x118] sm:$0xff] %v1844_v31 }
 0x325   : > { %1901 = vst [vmem:[%s2884_s29 + $0x130] sm:$0xff] %v1748_v60 }
 0x327   : > { %v1796_v62 = vpop.f32.mrf.mxu2 }
 0x328   : > { %v1797_v49 = vadd.f32 %v1796_v62, %v3836_v23  ;;  %v1845_v36 = vpop.f32.mrf.mxu3  ;;  %v1701_v20 = vpop.f32.mrf.mxu0 }
 0x329   : > { %v1702_v22 = vadd.f32 %v1701_v20, %v3830_v8  ;;  %v1750_v53 = vpop.f32.mrf.mxu1 }
 0x32a   : > { %v1846_v63 = vadd.f32 %v1845_v36, %v1797_v49 }
 0x32b   : > { %v1751_v47 = vadd.f32 %v1750_v53, %v1702_v22 }
 0x32c   : > { %1902 = vst [vmem:[%s2884_s29 + $0x138] sm:$0xff] %v1846_v63 }
 0x32d   : > { %1905 = vst [vmem:[%s2884_s29 + $0x150] sm:$0xff] %v1751_v47 }
 0x32f   : > { %v1799_v57 = vpop.f32.mrf.mxu2 }
 0x330   : > { %v1800_v0 = vadd.f32 %v1799_v57, %v3836_v23  ;;  %v1848_v56 = vpop.f32.mrf.mxu3  ;;  %v1703_v37 = vpop.f32.mrf.mxu0 }
 0x331   : > { %v1704_v39 = vadd.f32 %v1703_v37, %v3830_v8  ;;  %v1752_v18 = vpop.f32.mrf.mxu1 }
 0x332   : > { %v1849_v7 = vadd.f32 %v1848_v56, %v1800_v0 }
 0x333   : > { %v1753_v32 = vadd.f32 %v1752_v18, %v1704_v39 }
 0x334   : > { %1906 = vst [vmem:[%s2884_s29 + $0x158] sm:$0xff] %v1849_v7 }
 0x335   : > { %1909 = vst [vmem:[%s2884_s29 + $0x170] sm:$0xff] %v1753_v32 }
 0x337   : > { %v1801_v46 = vpop.f32.mrf.mxu2 }
 0x338   : > { %v1802_v21 = vadd.f32 %v1801_v46, %v3836_v23  ;;  %v1850_v4 = vpop.f32.mrf.mxu3  ;;  %v1706_v45 = vpop.f32.mrf.mxu0 }
 0x339   : > { %v1707_v15 = vadd.f32 %v1706_v45, %v3830_v8  ;;  %v1755_v42 = vpop.f32.mrf.mxu1 }
 0x33a   : > { %v1851_v34 = vadd.f32 %v1850_v4, %v1802_v21 }
 0x33b   : > { %v1756_v58 = vadd.f32 %v1755_v42, %v1707_v15 }
 0x33c   : > { %1910 = vst [vmem:[%s2884_s29 + $0x178] sm:$0xff] %v1851_v34 }
 0x33d   : > { %1913 = vst [vmem:[%s2884_s29 + $0x190] sm:$0xff] %v1756_v58 }
 0x33f   : > { %v1804_v61 = vpop.f32.mrf.mxu2 }
 0x340   : > { %v1805_v35 = vadd.f32 %v1804_v61, %v3836_v23  ;;  %v1853_v27 = vpop.f32.mrf.mxu3  ;;  %v1708_v11 = vpop.f32.mrf.mxu0 }
 0x341   : > { %v1709_v51 = vadd.f32 %v1708_v11, %v3830_v8  ;;  %v1757_v5 = vpop.f32.mrf.mxu1 }
 0x342   : > { %v1854_v52 = vadd.f32 %v1853_v27, %v1805_v35 }
 0x343   : > { %v1758_v30 = vadd.f32 %v1757_v5, %v1709_v51 }
 0x344   : > { %1914 = vst [vmem:[%s2884_s29 + $0x198] sm:$0xff] %v1854_v52 }
 0x345   : > { %1917 = vst [vmem:[%s2884_s29 + $0x1b0] sm:$0xff] %v1758_v30 }
 0x347   : > { %v1806_v17 = vpop.f32.mrf.mxu2 }
 0x348   : > { %v1807_v1 = vadd.f32 %v1806_v17, %v3836_v23  ;;  %v1855_v41 = vpop.f32.mrf.mxu3  ;;  %v1711_v6 = vpop.f32.mrf.mxu0 }
 0x349   : > { %v1712_v24 = vadd.f32 %v1711_v6, %v3830_v8  ;;  %v1760_v9 = vpop.f32.mrf.mxu1 }
 0x34a   : > { %v1856_v10 = vadd.f32 %v1855_v41, %v1807_v1 }
 0x34b   : > { %v1761_v54 = vadd.f32 %v1760_v9, %v1712_v24 }
 0x34c   : > { %1918 = vst [vmem:[%s2884_s29 + $0x1b8] sm:$0xff] %v1856_v10 }
 0x34d   : > { %1921 = vst [vmem:[%s2884_s29 + $0x1d0] sm:$0xff] %v1761_v54 }
 0x34f   : > { %v1809_v12 = vpop.f32.mrf.mxu2 }
 0x350   : > { %v1810_v55 = vadd.f32 %v1809_v12, %v3836_v23  ;;  %v1858_v3 = vpop.f32.mrf.mxu3  ;;  %v1713_v13 = vpop.f32.mrf.mxu0 }
 0x351   : > { %v1714_v16 = vadd.f32 %v1713_v13, %v3830_v8  ;;  %v1762_v26 = vpop.f32.mrf.mxu1 }
 0x352   : > { %v1859_v38 = vadd.f32 %v1858_v3, %v1810_v55 }
 0x353   : > { %v1763_v33 = vadd.f32 %v1762_v26, %v1714_v16 }
 0x354   : > { %1922 = vst [vmem:[%s2884_s29 + $0x1d8] sm:$0xff] %v1859_v38 }
 0x355   : > { %1925 = vst [vmem:[%s2884_s29 + $0x1f0] sm:$0xff] %v1763_v33 }
 0x357   : > { %v1811_v28 = vpop.f32.mrf.mxu2 }
 0x358   : > { %v1812_v44 = vadd.f32 %v1811_v28, %v3836_v23  ;;  %v1860_v59 = vpop.f32.mrf.mxu3 }
 0x35a   : > { %v1861_v8 = vadd.f32 %v1860_v59, %v1812_v44 }
 0x35c   : > { %1926 = vst [vmem:[%s2884_s29 + $0x1f8] sm:$0xff] %v1861_v8 }
 0x35d   : > { %2589 = shalt.err (!%p2586_p11)
}
 0x35e   : > { %s2643_s14 = smov 512   ;;  %s2644_s29 = smov 1024  }
 0x35f   : > { %s2645_s15 = smov 32  }
 0x360   : > { %2469 = dma.vmem_to_hbm [thread:$0]  (%p2715_p5), %s1944_s8, 8192, %s1946_s9, %s1928_s21, %s2643_s14, %s2644_s29, %s2645_s15  }
 0x361 PF: > { %s1960_s25 = sand.u32 1, %s2620_s18   ;;  %p2472_p12 = pnand %p2053_p10, %p2726_p9 }
 0x362   : > { %s1961_s24 = scalar_lea.sflag [#allocation5], %s1960_s25 }
 0x363   : > { %p2473_p13 = pneg %p2472_p12 }
 0x365   : > { %2615 = dma.done.wait (%p2473_p13), %s1961_s24, 8192  }
 0x366   : > { %2617 = vsyncadd (%p2473_p13), %s1961_s24, 4294959104  ;;  %s18_s23 = sadd.s32 1, %s2640_s23   ;;  %s3949_s18 = smov %s2624_s19 }
 0x367   : > { %p15_p0 = scmp.ge.s32.totalorder %s18_s23, 4   ;;  %s3950_s19 = smov %s2628_s20 }
 0x368   : > { %s3951_s20 = smov %s2724_s30  ;;  %s3952_s21 = smov %s2636_s22 }
 0x369   : > { %s3953_s22 = smov %s3955_s26  ;;  %17 = sbr.rel (!%p15_p0) target bundleno = 4 (0x4), region = 113 }
 0x36e   :  { %1967 = vsyncpa [#allocation5], 1 }
 0x36f   :  { %1969 = vsyncpa [#allocation5 + $0x1], 1 }

</bundles_post_ra>
